<compile_context>
chip_gen: v6e
topology: v6e:2x2x1
jax: 0.10.0
libtpu: 0.0.40
codegen_flags: <defaults>
</compile_context>

<pallas_src>
import jax
import jax.numpy as jnp
from jax.experimental import pallas as pl
from jax.experimental.pallas import tpu as pltpu

B = 8            # batch
S = 5            # number of stacked encoder vectors (conv "height")
E = 64           # encoder feature dim        (orig 300)
C = 64           # conv out channels          (orig 300)
H = 6 * E        # seq-decoder input/hidden   (orig 1800)
A = 4            # aspect_size
HWO = 3 * E      # highway output width       (orig 900)
HWP = 256        # per-projection lane padding for the packed highway columns
NPOS = (S - 2 + 1) + (S - 3 + 1) + (S - 4 + 1)   # 4 + 3 + 2 = 9 conv positions
CONV_OFF = 3 * HWP                               # conv columns start here
WCOLS = CONV_OFF + NPOS * C                      # 768 + 576 = 1344


def _full_spec(shape):
    nd = len(shape)
    return pl.BlockSpec(shape, lambda i, _nd=nd: (0,) * _nd)


# ---------------------------------------------------------------------------
# Single fused kernel: [conv(2/3/4)+relu+maxpool + HighWay] (one matmul),
# then SeqDecoder (GRUCell unrolled, x-side hoisted).
# ---------------------------------------------------------------------------
def _fused_kernel(pin_ref, chr_ref, wrd_ref, crp_ref, one_ref,
                  wcomb_ref, bcomb_ref,
                  wx_ref, bx_ref, wh_ref, bhn_ref,
                  ewx_ref, ew1_ref, ew2_ref, linw_ref, linb_ref,
                  logits_ref, probs_ref):
    f32 = jnp.float32
    bf16 = jnp.bfloat16

    # ---- stage 1: single MXU push for highway + every conv position ---------
    # torch conv height order: pinyin, char, word, char_rep, word_one
    x5 = jnp.concatenate([pin_ref[...], chr_ref[...], wrd_ref[...],
                          crp_ref[...], one_ref[...]], axis=-1)        # (B, 5E)
    y = jnp.dot(x5.astype(bf16), wcomb_ref[...],
                preferred_element_type=f32) + bcomb_ref[...]           # (B, WCOLS)

    # HighWay(5E -> 3E).
    # TODO(synk): HighWay class body was not provided; implemented as a standard
    # gated highway with input projection: z1 = T*relu(Wh x) + (1-T)*(Wp x).
    hh = jnp.maximum(y[:, 0:HWO], 0.0)
    tg = jax.nn.sigmoid(y[:, HWP:HWP + HWO])
    pj = y[:, 2 * HWP:2 * HWP + HWO]
    z1 = tg * hh + (1.0 - tg) * pj                                     # (B, 3E)

    # Convs: bias is position-invariant (already added), so max over position
    # lane-blocks then relu == torch relu-then-maxpool.
    maxes = []
    col = CONV_OFF
    for k in (2, 3, 4):
        npos = S - k + 1
        m = y[:, col:col + C]
        for t in range(1, npos):
            m = jnp.maximum(m, y[:, col + t * C:col + (t + 1) * C])
        maxes.append(m)
        col += npos * C
    convzz = jnp.maximum(jnp.concatenate(maxes, axis=-1), 0.0)         # (B, 3C)

    # z = cat(highway_out, conv_feats); stays in VMEM (never hits HBM).
    encx = jnp.concatenate([z1, convzz], axis=-1)                      # (B, H)
    # TODO(synk): top-level nn.Dropout(0.5) on z treated as identity (eval mode).

    # ---- stage 2: SeqDecoder (GRUCell unrolled over A steps) -----------------
    wh = wh_ref[...]                     # (H, 3H) bf16, cols [r | z | n_hid]
    ewx = ewx_ref[...]                   # (A, 3H)  = emb @ Wx  (precomputed)
    ew1 = ew1_ref[...]                   # (1, A)   = (emb @ w1).T
    ew2 = ew2_ref[...]                   # (1, A)   = (emb @ w2).T
    linw = linw_ref[...]                 # (A, H)   row i = linear[i].weight
    linb = linb_ref[...]                 # (1, A)

    # x-side of the gates for g = 0 (step-invariant), biases folded in.
    gx0 = jnp.dot(encx.astype(bf16), wx_ref[...],
                  preferred_element_type=f32) + bx_ref[...]            # (B, 3H)
    bhn_b = jnp.broadcast_to(bhn_ref[...], (B, H))                     # hoisted

    hidden = jnp.zeros((B, H), f32)
    g_coeff = jnp.zeros((B, A), f32)     # g      = g_coeff  @ emb
    se_coeff = jnp.zeros((B, A), f32)    # sum_e  = se_coeff @ emb
    iota_a = jax.lax.broadcasted_iota(jnp.int32, (1, A), 1)

    logit_cols, prob_cols = [], []
    for i in range(A):
        # gates_x = (encx + g) @ Wx + b_x ; g lives in the A-row embedding basis.
        gx = gx0
        for j in range(i):               # g_coeff columns >= i are still zero
            gx = gx + g_coeff[:, j:j + 1] * ewx[j:j + 1, :]

        if i == 0:                       # hidden == 0 -> skip the MXU push
            r = jax.nn.sigmoid(gx[:, 0:H])
            zt = jax.nn.sigmoid(gx[:, H:2 * H])
            n = jnp.tanh(gx[:, 2 * H:3 * H] + r * bhn_b)
            hidden = (1.0 - zt) * n
        else:
            gh = jnp.dot(hidden.astype(bf16), wh,
                         preferred_element_type=f32)                   # (B, 3H)
            r = jax.nn.sigmoid(gx[:, 0:H] + gh[:, 0:H])
            zt = jax.nn.sigmoid(gx[:, H:2 * H] + gh[:, H:2 * H])
            n = jnp.tanh(gx[:, 2 * H:3 * H] + r * (gh[:, 2 * H:3 * H] + bhn_b))
            hidden = (1.0 - zt) * n + zt * hidden
        # TODO(synk): nn.Dropout(0.5) on hidden treated as identity (eval mode).

        # per-aspect Linear(H, 1): VPU mul + lane reduce (no (H,1) MXU push).
        logi = (jnp.sum(hidden * linw[i:i + 1, :], axis=-1, keepdims=True)
                + linb[:, i:i + 1])                                    # (B, 1)
        p = jax.nn.sigmoid(logi)
        logit_cols.append(logi)
        prob_cols.append(p)

        if i < A - 1:                    # se/g bookkeeping only feeds later steps
            sw1 = jnp.sum(se_coeff * ew1, axis=-1, keepdims=True)      # w1(se)
            hg = jax.nn.sigmoid(sw1 + ew2[:, i:i + 1])                 # (B, 1)
            onehot_i = (iota_a == i).astype(f32)                       # (1, A)
            # g = (1 - h)*e + h*se  (uses pre-update sum, torch order)
            g_coeff = hg * se_coeff + (1.0 - hg) * onehot_i
            # pred = (p > 0.5)*(i+1); row 0 of label_embedding is the zero
            # padding row, so the gather reduces to a coefficient select.
            # TODO(synk): assumes embedding row 0 stays zero (padding_idx=0).
            sel = jnp.where(p > 0.5, 1.0, 0.0)                         # (B, 1)
            se_coeff = se_coeff + sel * onehot_i

    # single (B, A) store per output instead of A masked column stores
    logits_ref[...] = jnp.concatenate(logit_cols, axis=-1)
    probs_ref[...] = jnp.concatenate(prob_cols, axis=-1)


# ---------------------------------------------------------------------------
# Parameter init (torch-like layouts) + packing into kernel-ready layouts
# ---------------------------------------------------------------------------
def _xavier(key, shape, fan_in, fan_out):
    lim = (6.0 / (fan_in + fan_out)) ** 0.5
    return jax.random.uniform(key, shape, jnp.float32, -lim, lim)


def init_raw_params(key):
    ks = iter(jax.random.split(key, 24))
    p = {}
    for k in (2, 3, 4):                       # Conv2d(1, C, (k, E)): (C, 1, k, E) squeezed
        p[f"conv_w{k}"] = _xavier(next(ks), (C, k, E), k * E, C)
        p[f"conv_b{k}"] = jnp.zeros((C,), jnp.float32)
    for nm in ("h", "t", "p"):                # HighWay projections: Linear(5E, 3E)
        p[f"hw_{nm}_w"] = _xavier(next(ks), (HWO, S * E), S * E, HWO)
        p[f"hw_{nm}_b"] = jnp.zeros((HWO,), jnp.float32)
    # GRUCell(H, H): torch weight_ih / weight_hh are (3H, H), row order r|z|n.
    p["gru_wih"] = _xavier(next(ks), (3 * H, H), H, 3 * H)
    p["gru_whh"] = _xavier(next(ks), (3 * H, H), H, 3 * H)
    p["gru_bih"] = jnp.zeros((3 * H,), jnp.float32)
    p["gru_bhh"] = jnp.zeros((3 * H,), jnp.float32)
    p["lin_w"] = _xavier(next(ks), (A, H), H, 1)   # row i = linear[i].weight
    p["lin_b"] = jnp.zeros((A,), jnp.float32)
    p["emb"] = _xavier(next(ks), (A, H), 11, H)    # label_embedding rows 1..A
    p["w1"] = _xavier(next(ks), (H,), H, 1)
    p["w2"] = _xavier(next(ks), (H,), H, 1)
    return p


# conv-order block j is fed by highway-order block CONV_FROM_HW[j]
# conv order   : pinyin, char, word, char_rep, word_one
# highway order: word, char_rep, char, pinyin, word_one
CONV_FROM_HW = (3, 2, 0, 1, 4)


def pack_params(p):
    w = {}
    # --- combined conv + highway RHS: (5E, WCOLS) -----------------------------
    # cols [0, 768)  : [Wh | Wt | Wp], each padded to HWP=256 lanes (aligned slices)
    # cols [768, ...): conv position blocks, k=2 then k=3 then k=4, C cols each
    wcomb = jnp.zeros((S * E, WCOLS), jnp.float32)
    bcomb = jnp.zeros((1, WCOLS), jnp.float32)
    perm = jnp.array(CONV_FROM_HW)
    for j, nm in enumerate(("h", "t", "p")):
        # transpose to (5E, 3E) and permute row blocks from highway input order
        # to conv order, so the single x5 concat feeds both conv and highway.
        wt = p[f"hw_{nm}_w"].T.reshape(S, E, HWO)[perm].reshape(S * E, HWO)
        wcomb = wcomb.at[:, j * HWP:j * HWP + HWO].set(wt)
        bcomb = bcomb.at[:, j * HWP:j * HWP + HWO].set(p[f"hw_{nm}_b"][None, :])
    col = CONV_OFF
    for k in (2, 3, 4):
        wk = jnp.transpose(p[f"conv_w{k}"], (1, 2, 0))           # (k, E, C)
        bk = p[f"conv_b{k}"][None, :]
        for t in range(S - k + 1):                               # one block per position
            for tap in range(k):
                wcomb = wcomb.at[(t + tap) * E:(t + tap + 1) * E,
                                 col:col + C].set(wk[tap])
            bcomb = bcomb.at[:, col:col + C].set(bk)
            col += C
    w["wcomb"] = wcomb.astype(jnp.bfloat16)
    w["bcomb"] = bcomb

    # --- GRU: zero-block-free split weights ----------------------------------
    wih, whh = p["gru_wih"].T, p["gru_whh"].T                    # (H, 3H): cols r|z|n
    w["wx"] = wih.astype(jnp.bfloat16)                           # [r | z | n_in]
    w["wh"] = whh.astype(jnp.bfloat16)                           # [r | z | n_hid]
    bih, bhh = p["gru_bih"], p["gru_bhh"]
    w["bx"] = jnp.concatenate([bih[0:H] + bhh[0:H],
                               bih[H:2 * H] + bhh[H:2 * H],
                               bih[2 * H:3 * H]])[None, :]       # (1, 3H)
    w["bhn"] = bhh[2 * H:3 * H][None, :]                         # (1, H)

    # --- decoder small params; emb-dependent products precomputed in f32 -----
    emb = p["emb"]                                               # (A, H)
    w["ewx"] = jnp.dot(emb, wih)                                 # (A, 3H) = emb @ Wx
    w["ew1"] = jnp.dot(emb, p["w1"][:, None]).T                  # (1, A)
    w["ew2"] = jnp.dot(emb, p["w2"][:, None]).T                  # (1, A)
    w["linw"] = p["lin_w"]                                       # (A, H)
    w["linb"] = p["lin_b"][None, :]                              # (1, A)
    return w


# ---------------------------------------------------------------------------
# Forward wrapper (single pallas_call)
# ---------------------------------------------------------------------------
def sequence_aspect_net_forward(enc_word, enc_word_char_rep, enc_char,
                                enc_pinyin, enc_word_one, packed):
    args = (enc_pinyin, enc_char, enc_word, enc_word_char_rep, enc_word_one,
            packed["wcomb"], packed["bcomb"],
            packed["wx"], packed["bx"], packed["wh"], packed["bhn"],
            packed["ewx"], packed["ew1"], packed["ew2"],
            packed["linw"], packed["linb"])

    # derive the VMEM limit from the actual packed footprint (double-buffered
    # inputs/outputs + compute slack) instead of a hard-coded cap
    in_bytes = sum(int(a.size) * a.dtype.itemsize for a in args)
    out_bytes = 2 * B * A * 4
    vmem_limit = int(2 * (in_bytes + out_bytes) + (8 << 20))

    return pl.pallas_call(
        _fused_kernel,
        out_shape=(jax.ShapeDtypeStruct((B, A), jnp.float32),
                   jax.ShapeDtypeStruct((B, A), jnp.float32)),
        grid=(1,),
        in_specs=[_full_spec(a.shape) for a in args],
        out_specs=(_full_spec((B, A)), _full_spec((B, A))),
        compiler_params=pltpu.CompilerParams(
            dimension_semantics=("arbitrary",),
            vmem_limit_bytes=vmem_limit),
    )(*args)


if __name__ == "__main__":
    key = jax.random.PRNGKey(0)
    k_enc, k_par = jax.random.split(key)
    ek = jax.random.split(k_enc, 5)

    # TODO(synk): HUARN / CharNN / WordNN encoder class bodies were not provided;
    # their (B, E) outputs are stood in by deterministic random activations.
    enc_word = jax.random.normal(ek[0], (B, E), jnp.float32)
    enc_word_char_rep = jax.random.normal(ek[1], (B, E), jnp.float32)
    enc_char = jax.random.normal(ek[2], (B, E), jnp.float32)
    enc_pinyin = jax.random.normal(ek[3], (B, E), jnp.float32)
    enc_word_one = jax.random.normal(ek[4], (B, E), jnp.float32)

    packed = pack_params(init_raw_params(k_par))

    fwd = jax.jit(sequence_aspect_net_forward)
    logits, probs = fwd(enc_word, enc_word_char_rep, enc_char,
                        enc_pinyin, enc_word_one, packed)
    jax.block_until_ready((logits, probs))

    assert logits.shape == (B, A) and probs.shape == (B, A)
    assert bool(jnp.all(jnp.isfinite(logits))) and bool(jnp.all(jnp.isfinite(probs)))
    assert bool(jnp.all(probs >= 0.0)) and bool(jnp.all(probs <= 1.0))
    print("KERNEL_OK")
</pallas_src>

<mosaic_0001>
module attributes {stable_mosaic.version = 11 : i64} {
  func.func @_fused_kernel(%arg0: i32, %arg1: memref<8x64xf32, #tpu.memory_space<vmem>>, %arg2: memref<8x64xf32, #tpu.memory_space<vmem>>, %arg3: memref<8x64xf32, #tpu.memory_space<vmem>>, %arg4: memref<8x64xf32, #tpu.memory_space<vmem>>, %arg5: memref<8x64xf32, #tpu.memory_space<vmem>>, %arg6: memref<320x1344xbf16, #tpu.memory_space<vmem>>, %arg7: memref<1x1344xf32, #tpu.memory_space<vmem>>, %arg8: memref<384x1152xbf16, #tpu.memory_space<vmem>>, %arg9: memref<1x1152xf32, #tpu.memory_space<vmem>>, %arg10: memref<384x1152xbf16, #tpu.memory_space<vmem>>, %arg11: memref<1x384xf32, #tpu.memory_space<vmem>>, %arg12: memref<4x1152xf32, #tpu.memory_space<vmem>>, %arg13: memref<1x4xf32, #tpu.memory_space<vmem>>, %arg14: memref<1x4xf32, #tpu.memory_space<vmem>>, %arg15: memref<4x384xf32, #tpu.memory_space<vmem>>, %arg16: memref<1x4xf32, #tpu.memory_space<vmem>>, %arg17: memref<8x4xf32, #tpu.memory_space<vmem>>, %arg18: memref<8x4xf32, #tpu.memory_space<vmem>>) attributes {dimension_semantics = [#tpu.dimension_semantics<arbitrary>], iteration_bounds = array<i64: 1>, scalar_prefetch = 0 : i64, scratch_operands = 0 : i64, tpu.core_type = #tpu.core_type<tc>, window_params = [{pipeline_mode = #tpu.pipeline_mode<synchronous>, transform_indices = @transform_0, window_bounds = array<i64: 8, 64>}, {pipeline_mode = #tpu.pipeline_mode<synchronous>, transform_indices = @transform_1, window_bounds = array<i64: 8, 64>}, {pipeline_mode = #tpu.pipeline_mode<synchronous>, transform_indices = @transform_2, window_bounds = array<i64: 8, 64>}, {pipeline_mode = #tpu.pipeline_mode<synchronous>, transform_indices = @transform_3, window_bounds = array<i64: 8, 64>}, {pipeline_mode = #tpu.pipeline_mode<synchronous>, transform_indices = @transform_4, window_bounds = array<i64: 8, 64>}, {pipeline_mode = #tpu.pipeline_mode<synchronous>, transform_indices = @transform_5, window_bounds = array<i64: 320, 1344>}, {pipeline_mode = #tpu.pipeline_mode<synchronous>, transform_indices = @transform_6, window_bounds = array<i64: 1, 1344>}, {pipeline_mode = #tpu.pipeline_mode<synchronous>, transform_indices = @transform_7, window_bounds = array<i64: 384, 1152>}, {pipeline_mode = #tpu.pipeline_mode<synchronous>, transform_indices = @transform_8, window_bounds = array<i64: 1, 1152>}, {pipeline_mode = #tpu.pipeline_mode<synchronous>, transform_indices = @transform_9, window_bounds = array<i64: 384, 1152>}, {pipeline_mode = #tpu.pipeline_mode<synchronous>, transform_indices = @transform_10, window_bounds = array<i64: 1, 384>}, {pipeline_mode = #tpu.pipeline_mode<synchronous>, transform_indices = @transform_11, window_bounds = array<i64: 4, 1152>}, {pipeline_mode = #tpu.pipeline_mode<synchronous>, transform_indices = @transform_12, window_bounds = array<i64: 1, 4>}, {pipeline_mode = #tpu.pipeline_mode<synchronous>, transform_indices = @transform_13, window_bounds = array<i64: 1, 4>}, {pipeline_mode = #tpu.pipeline_mode<synchronous>, transform_indices = @transform_14, window_bounds = array<i64: 4, 384>}, {pipeline_mode = #tpu.pipeline_mode<synchronous>, transform_indices = @transform_15, window_bounds = array<i64: 1, 4>}, {pipeline_mode = #tpu.pipeline_mode<synchronous>, transform_indices = @transform_16, window_bounds = array<i64: 8, 4>}, {pipeline_mode = #tpu.pipeline_mode<synchronous>, transform_indices = @transform_17, window_bounds = array<i64: 8, 4>}]} {
    %c0 = arith.constant 0 : index
    %c0_0 = arith.constant 0 : index
    %0 = vector.load %arg1[%c0, %c0_0] : memref<8x64xf32, #tpu.memory_space<vmem>>, vector<8x64xf32>
    %c0_1 = arith.constant 0 : index
    %c0_2 = arith.constant 0 : index
    %1 = vector.load %arg2[%c0_1, %c0_2] : memref<8x64xf32, #tpu.memory_space<vmem>>, vector<8x64xf32>
    %c0_3 = arith.constant 0 : index
    %c0_4 = arith.constant 0 : index
    %2 = vector.load %arg3[%c0_3, %c0_4] : memref<8x64xf32, #tpu.memory_space<vmem>>, vector<8x64xf32>
    %c0_5 = arith.constant 0 : index
    %c0_6 = arith.constant 0 : index
    %3 = vector.load %arg4[%c0_5, %c0_6] : memref<8x64xf32, #tpu.memory_space<vmem>>, vector<8x64xf32>
    %c0_7 = arith.constant 0 : index
    %c0_8 = arith.constant 0 : index
    %4 = vector.load %arg5[%c0_7, %c0_8] : memref<8x64xf32, #tpu.memory_space<vmem>>, vector<8x64xf32>
    %5 = tpu.concatenate %0, %1, %2, %3, %4 in 1 : vector<8x64xf32>, vector<8x64xf32>, vector<8x64xf32>, vector<8x64xf32>, vector<8x64xf32> -> vector<8x320xf32>
    %6 = arith.truncf %5 : vector<8x320xf32> to vector<8x320xbf16>
    %c0_9 = arith.constant 0 : index
    %c0_10 = arith.constant 0 : index
    %7 = vector.load %arg6[%c0_9, %c0_10] : memref<320x1344xbf16, #tpu.memory_space<vmem>>, vector<320x1344xbf16>
    %cst = arith.constant dense<0.000000e+00> : vector<8x1344xf32>
    %8 = tpu.matmul %6, %7, %cst {dimension_numbers = #tpu.dot_dimension_numbers<[1], [0], [0], [1], [0, 0, 1, 1], [], []>} : vector<8x320xbf16>, vector<320x1344xbf16>, vector<8x1344xf32> -> vector<8x1344xf32>
    %c0_11 = arith.constant 0 : index
    %c0_12 = arith.constant 0 : index
    %9 = vector.load %arg7[%c0_11, %c0_12] : memref<1x1344xf32, #tpu.memory_space<vmem>>, vector<1x1344xf32>
    %10 = vector.broadcast %9 : vector<1x1344xf32> to vector<8x1344xf32>
    %11 = arith.addf %8, %10 : vector<8x1344xf32>
    %12 = vector.extract_strided_slice %11 {offsets = [0, 0], sizes = [8, 192], strides = [1, 1]} : vector<8x1344xf32> to vector<8x192xf32>
    %cst_13 = arith.constant 0.000000e+00 : f32
    %13 = vector.broadcast %cst_13 : f32 to vector<8x192xf32>
    %14 = arith.maximumf %12, %13 : vector<8x192xf32>
    %15 = vector.extract_strided_slice %11 {offsets = [0, 256], sizes = [8, 192], strides = [1, 1]} : vector<8x1344xf32> to vector<8x192xf32>
    %16 = arith.negf %15 : vector<8x192xf32>
    %17 = math.exp %16 : vector<8x192xf32>
    %cst_14 = arith.constant 1.000000e+00 : f32
    %18 = vector.broadcast %cst_14 : f32 to vector<8x192xf32>
    %19 = arith.addf %18, %17 : vector<8x192xf32>
    %20 = arith.divf %18, %19 : vector<8x192xf32>
    %21 = vector.extract_strided_slice %11 {offsets = [0, 512], sizes = [8, 192], strides = [1, 1]} : vector<8x1344xf32> to vector<8x192xf32>
    %22 = arith.mulf %20, %14 : vector<8x192xf32>
    %cst_15 = arith.constant 1.000000e+00 : f32
    %23 = vector.broadcast %cst_15 : f32 to vector<8x192xf32>
    %24 = arith.subf %23, %20 : vector<8x192xf32>
    %25 = arith.mulf %24, %21 : vector<8x192xf32>
    %26 = arith.addf %22, %25 : vector<8x192xf32>
    %27 = vector.extract_strided_slice %11 {offsets = [0, 768], sizes = [8, 64], strides = [1, 1]} : vector<8x1344xf32> to vector<8x64xf32>
    %28 = vector.extract_strided_slice %11 {offsets = [0, 832], sizes = [8, 64], strides = [1, 1]} : vector<8x1344xf32> to vector<8x64xf32>
    %29 = arith.maximumf %27, %28 : vector<8x64xf32>
    %30 = vector.extract_strided_slice %11 {offsets = [0, 896], sizes = [8, 64], strides = [1, 1]} : vector<8x1344xf32> to vector<8x64xf32>
    %31 = arith.maximumf %29, %30 : vector<8x64xf32>
    %32 = vector.extract_strided_slice %11 {offsets = [0, 960], sizes = [8, 64], strides = [1, 1]} : vector<8x1344xf32> to vector<8x64xf32>
    %33 = arith.maximumf %31, %32 : vector<8x64xf32>
    %34 = vector.extract_strided_slice %11 {offsets = [0, 1024], sizes = [8, 64], strides = [1, 1]} : vector<8x1344xf32> to vector<8x64xf32>
    %35 = vector.extract_strided_slice %11 {offsets = [0, 1088], sizes = [8, 64], strides = [1, 1]} : vector<8x1344xf32> to vector<8x64xf32>
    %36 = arith.maximumf %34, %35 : vector<8x64xf32>
    %37 = vector.extract_strided_slice %11 {offsets = [0, 1152], sizes = [8, 64], strides = [1, 1]} : vector<8x1344xf32> to vector<8x64xf32>
    %38 = arith.maximumf %36, %37 : vector<8x64xf32>
    %39 = vector.extract_strided_slice %11 {offsets = [0, 1216], sizes = [8, 64], strides = [1, 1]} : vector<8x1344xf32> to vector<8x64xf32>
    %40 = vector.extract_strided_slice %11 {offsets = [0, 1280], sizes = [8, 64], strides = [1, 1]} : vector<8x1344xf32> to vector<8x64xf32>
    %41 = arith.maximumf %39, %40 : vector<8x64xf32>
    %42 = tpu.concatenate %33, %38, %41 in 1 : vector<8x64xf32>, vector<8x64xf32>, vector<8x64xf32> -> vector<8x192xf32>
    %cst_16 = arith.constant 0.000000e+00 : f32
    %43 = vector.broadcast %cst_16 : f32 to vector<8x192xf32>
    %44 = arith.maximumf %42, %43 : vector<8x192xf32>
    %45 = tpu.concatenate %26, %44 in 1 : vector<8x192xf32>, vector<8x192xf32> -> vector<8x384xf32>
    %c0_17 = arith.constant 0 : index
    %c0_18 = arith.constant 0 : index
    %46 = vector.load %arg10[%c0_17, %c0_18] : memref<384x1152xbf16, #tpu.memory_space<vmem>>, vector<384x1152xbf16>
    %c0_19 = arith.constant 0 : index
    %c0_20 = arith.constant 0 : index
    %47 = vector.load %arg12[%c0_19, %c0_20] : memref<4x1152xf32, #tpu.memory_space<vmem>>, vector<4x1152xf32>
    %c0_21 = arith.constant 0 : index
    %c0_22 = arith.constant 0 : index
    %48 = vector.load %arg13[%c0_21, %c0_22] : memref<1x4xf32, #tpu.memory_space<vmem>>, vector<1x4xf32>
    %c0_23 = arith.constant 0 : index
    %c0_24 = arith.constant 0 : index
    %49 = vector.load %arg14[%c0_23, %c0_24] : memref<1x4xf32, #tpu.memory_space<vmem>>, vector<1x4xf32>
    %c0_25 = arith.constant 0 : index
    %c0_26 = arith.constant 0 : index
    %50 = vector.load %arg15[%c0_25, %c0_26] : memref<4x384xf32, #tpu.memory_space<vmem>>, vector<4x384xf32>
    %c0_27 = arith.constant 0 : index
    %c0_28 = arith.constant 0 : index
    %51 = vector.load %arg16[%c0_27, %c0_28] : memref<1x4xf32, #tpu.memory_space<vmem>>, vector<1x4xf32>
    %52 = arith.truncf %45 : vector<8x384xf32> to vector<8x384xbf16>
    %c0_29 = arith.constant 0 : index
    %c0_30 = arith.constant 0 : index
    %53 = vector.load %arg8[%c0_29, %c0_30] : memref<384x1152xbf16, #tpu.memory_space<vmem>>, vector<384x1152xbf16>
    %cst_31 = arith.constant dense<0.000000e+00> : vector<8x1152xf32>
    %54 = tpu.matmul %52, %53, %cst_31 {dimension_numbers = #tpu.dot_dimension_numbers<[1], [0], [0], [1], [0, 0, 1, 1], [], []>} : vector<8x384xbf16>, vector<384x1152xbf16>, vector<8x1152xf32> -> vector<8x1152xf32>
    %c0_32 = arith.constant 0 : index
    %c0_33 = arith.constant 0 : index
    %55 = vector.load %arg9[%c0_32, %c0_33] : memref<1x1152xf32, #tpu.memory_space<vmem>>, vector<1x1152xf32>
    %56 = vector.broadcast %55 : vector<1x1152xf32> to vector<8x1152xf32>
    %57 = arith.addf %54, %56 : vector<8x1152xf32>
    %c0_34 = arith.constant 0 : index
    %c0_35 = arith.constant 0 : index
    %58 = vector.load %arg11[%c0_34, %c0_35] : memref<1x384xf32, #tpu.memory_space<vmem>>, vector<1x384xf32>
    %59 = vector.shape_cast %58 : vector<1x384xf32> to vector<1x384xf32>
    %60 = vector.broadcast %59 : vector<1x384xf32> to vector<8x384xf32>
    %cst_36 = arith.constant 0.000000e+00 : f32
    %61 = vector.broadcast %cst_36 : f32 to vector<8x4xf32>
    %62 = tpu.iota {dimensions = array<i32: 1>} : vector<1x4xi32>
    %63 = vector.extract_strided_slice %57 {offsets = [0, 0], sizes = [8, 384], strides = [1, 1]} : vector<8x1152xf32> to vector<8x384xf32>
    %64 = arith.negf %63 : vector<8x384xf32>
    %65 = math.exp %64 : vector<8x384xf32>
    %cst_37 = arith.constant 1.000000e+00 : f32
    %66 = vector.broadcast %cst_37 : f32 to vector<8x384xf32>
    %67 = arith.addf %66, %65 : vector<8x384xf32>
    %68 = arith.divf %66, %67 : vector<8x384xf32>
    %69 = vector.extract_strided_slice %57 {offsets = [0, 384], sizes = [8, 384], strides = [1, 1]} : vector<8x1152xf32> to vector<8x384xf32>
    %70 = arith.negf %69 : vector<8x384xf32>
    %71 = math.exp %70 : vector<8x384xf32>
    %cst_38 = arith.constant 1.000000e+00 : f32
    %72 = vector.broadcast %cst_38 : f32 to vector<8x384xf32>
    %73 = arith.addf %72, %71 : vector<8x384xf32>
    %74 = arith.divf %72, %73 : vector<8x384xf32>
    %75 = vector.extract_strided_slice %57 {offsets = [0, 768], sizes = [8, 384], strides = [1, 1]} : vector<8x1152xf32> to vector<8x384xf32>
    %76 = arith.mulf %68, %60 : vector<8x384xf32>
    %77 = arith.addf %75, %76 : vector<8x384xf32>
    %78 = math.tanh %77 : vector<8x384xf32>
    %cst_39 = arith.constant 1.000000e+00 : f32
    %79 = vector.broadcast %cst_39 : f32 to vector<8x384xf32>
    %80 = arith.subf %79, %74 : vector<8x384xf32>
    %81 = arith.mulf %80, %78 : vector<8x384xf32>
    %82 = vector.extract_strided_slice %50 {offsets = [0, 0], sizes = [1, 384], strides = [1, 1]} : vector<4x384xf32> to vector<1x384xf32>
    %83 = vector.broadcast %82 : vector<1x384xf32> to vector<8x384xf32>
    %84 = arith.mulf %81, %83 : vector<8x384xf32>
    %cst_40 = arith.constant dense<0.000000e+00> : vector<8xf32>
    %85 = vector.multi_reduction <add>, %84, %cst_40 [1] : vector<8x384xf32> to vector<8xf32>
    %86 = vector.shape_cast %85 : vector<8xf32> to vector<8x1xf32>
    %87 = vector.extract_strided_slice %51 {offsets = [0, 0], sizes = [1, 1], strides = [1, 1]} : vector<1x4xf32> to vector<1x1xf32>
    %88 = vector.broadcast %87 : vector<1x1xf32> to vector<8x1xf32>
    %89 = arith.addf %86, %88 : vector<8x1xf32>
    %90 = arith.negf %89 : vector<8x1xf32>
    %91 = math.exp %90 : vector<8x1xf32>
    %cst_41 = arith.constant 1.000000e+00 : f32
    %92 = vector.broadcast %cst_41 : f32 to vector<8x1xf32>
    %93 = arith.addf %92, %91 : vector<8x1xf32>
    %94 = arith.divf %92, %93 : vector<8x1xf32>
    %95 = vector.broadcast %48 : vector<1x4xf32> to vector<8x4xf32>
    %96 = arith.mulf %61, %95 : vector<8x4xf32>
    %cst_42 = arith.constant dense<0.000000e+00> : vector<8xf32>
    %97 = vector.multi_reduction <add>, %96, %cst_42 [1] : vector<8x4xf32> to vector<8xf32>
    %98 = vector.shape_cast %97 : vector<8xf32> to vector<8x1xf32>
    %99 = vector.extract_strided_slice %49 {offsets = [0, 0], sizes = [1, 1], strides = [1, 1]} : vector<1x4xf32> to vector<1x1xf32>
    %100 = vector.broadcast %99 : vector<1x1xf32> to vector<8x1xf32>
    %101 = arith.addf %98, %100 : vector<8x1xf32>
    %102 = arith.negf %101 : vector<8x1xf32>
    %103 = math.exp %102 : vector<8x1xf32>
    %cst_43 = arith.constant 1.000000e+00 : f32
    %104 = vector.broadcast %cst_43 : f32 to vector<8x1xf32>
    %105 = arith.addf %104, %103 : vector<8x1xf32>
    %106 = arith.divf %104, %105 : vector<8x1xf32>
    %c0_i32 = arith.constant 0 : i32
    %107 = vector.broadcast %c0_i32 : i32 to vector<1x4xi32>
    %108 = arith.cmpi eq, %62, %107 : vector<1x4xi32>
    %109 = arith.extui %108 : vector<1x4xi1> to vector<1x4xi32>
    %110 = arith.sitofp %109 : vector<1x4xi32> to vector<1x4xf32>
    %111 = vector.broadcast %106 : vector<8x1xf32> to vector<8x4xf32>
    %112 = arith.mulf %111, %61 : vector<8x4xf32>
    %cst_44 = arith.constant 1.000000e+00 : f32
    %113 = vector.broadcast %cst_44 : f32 to vector<8x1xf32>
    %114 = arith.subf %113, %106 : vector<8x1xf32>
    %115 = vector.broadcast %114 : vector<8x1xf32> to vector<8x4xf32>
    %116 = vector.broadcast %110 : vector<1x4xf32> to vector<8x4xf32>
    %117 = arith.mulf %115, %116 : vector<8x4xf32>
    %118 = arith.addf %112, %117 : vector<8x4xf32>
    %cst_45 = arith.constant 5.000000e-01 : f32
    %119 = vector.broadcast %cst_45 : f32 to vector<8x1xf32>
    %120 = arith.cmpf ogt, %94, %119 : vector<8x1xf32>
    %cst_46 = arith.constant 1.000000e+00 : f32
    %cst_47 = arith.constant 0.000000e+00 : f32
    %121 = vector.broadcast %cst_46 : f32 to vector<8x1xf32>
    %122 = vector.broadcast %cst_47 : f32 to vector<8x1xf32>
    %123 = arith.select %120, %121, %122 : vector<8x1xi1>, vector<8x1xf32>
    %124 = vector.broadcast %123 : vector<8x1xf32> to vector<8x4xf32>
    %125 = vector.broadcast %110 : vector<1x4xf32> to vector<8x4xf32>
    %126 = arith.mulf %124, %125 : vector<8x4xf32>
    %127 = arith.addf %61, %126 : vector<8x4xf32>
    %128 = vector.extract_strided_slice %118 {offsets = [0, 0], sizes = [8, 1], strides = [1, 1]} : vector<8x4xf32> to vector<8x1xf32>
    %129 = vector.extract_strided_slice %47 {offsets = [0, 0], sizes = [1, 1152], strides = [1, 1]} : vector<4x1152xf32> to vector<1x1152xf32>
    %130 = vector.broadcast %128 : vector<8x1xf32> to vector<8x1152xf32>
    %131 = vector.broadcast %129 : vector<1x1152xf32> to vector<8x1152xf32>
    %132 = arith.mulf %130, %131 : vector<8x1152xf32>
    %133 = arith.addf %57, %132 : vector<8x1152xf32>
    %134 = arith.truncf %81 : vector<8x384xf32> to vector<8x384xbf16>
    %cst_48 = arith.constant dense<0.000000e+00> : vector<8x1152xf32>
    %135 = tpu.matmul %134, %46, %cst_48 {dimension_numbers = #tpu.dot_dimension_numbers<[1], [0], [0], [1], [0, 0, 1, 1], [], []>} : vector<8x384xbf16>, vector<384x1152xbf16>, vector<8x1152xf32> -> vector<8x1152xf32>
    %136 = vector.extract_strided_slice %133 {offsets = [0, 0], sizes = [8, 384], strides = [1, 1]} : vector<8x1152xf32> to vector<8x384xf32>
    %137 = vector.extract_strided_slice %135 {offsets = [0, 0], sizes = [8, 384], strides = [1, 1]} : vector<8x1152xf32> to vector<8x384xf32>
    %138 = arith.addf %136, %137 : vector<8x384xf32>
    %139 = arith.negf %138 : vector<8x384xf32>
    %140 = math.exp %139 : vector<8x384xf32>
    %cst_49 = arith.constant 1.000000e+00 : f32
    %141 = vector.broadcast %cst_49 : f32 to vector<8x384xf32>
    %142 = arith.addf %141, %140 : vector<8x384xf32>
    %143 = arith.divf %141, %142 : vector<8x384xf32>
    %144 = vector.extract_strided_slice %133 {offsets = [0, 384], sizes = [8, 384], strides = [1, 1]} : vector<8x1152xf32> to vector<8x384xf32>
    %145 = vector.extract_strided_slice %135 {offsets = [0, 384], sizes = [8, 384], strides = [1, 1]} : vector<8x1152xf32> to vector<8x384xf32>
    %146 = arith.addf %144, %145 : vector<8x384xf32>
    %147 = arith.negf %146 : vector<8x384xf32>
    %148 = math.exp %147 : vector<8x384xf32>
    %cst_50 = arith.constant 1.000000e+00 : f32
    %149 = vector.broadcast %cst_50 : f32 to vector<8x384xf32>
    %150 = arith.addf %149, %148 : vector<8x384xf32>
    %151 = arith.divf %149, %150 : vector<8x384xf32>
    %152 = vector.extract_strided_slice %133 {offsets = [0, 768], sizes = [8, 384], strides = [1, 1]} : vector<8x1152xf32> to vector<8x384xf32>
    %153 = vector.extract_strided_slice %135 {offsets = [0, 768], sizes = [8, 384], strides = [1, 1]} : vector<8x1152xf32> to vector<8x384xf32>
    %154 = arith.addf %153, %60 : vector<8x384xf32>
    %155 = arith.mulf %143, %154 : vector<8x384xf32>
    %156 = arith.addf %152, %155 : vector<8x384xf32>
    %157 = math.tanh %156 : vector<8x384xf32>
    %cst_51 = arith.constant 1.000000e+00 : f32
    %158 = vector.broadcast %cst_51 : f32 to vector<8x384xf32>
    %159 = arith.subf %158, %151 : vector<8x384xf32>
    %160 = arith.mulf %159, %157 : vector<8x384xf32>
    %161 = arith.mulf %151, %81 : vector<8x384xf32>
    %162 = arith.addf %160, %161 : vector<8x384xf32>
    %163 = vector.extract_strided_slice %50 {offsets = [1, 0], sizes = [1, 384], strides = [1, 1]} : vector<4x384xf32> to vector<1x384xf32>
    %164 = vector.broadcast %163 : vector<1x384xf32> to vector<8x384xf32>
    %165 = arith.mulf %162, %164 : vector<8x384xf32>
    %cst_52 = arith.constant dense<0.000000e+00> : vector<8xf32>
    %166 = vector.multi_reduction <add>, %165, %cst_52 [1] : vector<8x384xf32> to vector<8xf32>
    %167 = vector.shape_cast %166 : vector<8xf32> to vector<8x1xf32>
    %168 = vector.extract_strided_slice %51 {offsets = [0, 1], sizes = [1, 1], strides = [1, 1]} : vector<1x4xf32> to vector<1x1xf32>
    %169 = vector.broadcast %168 : vector<1x1xf32> to vector<8x1xf32>
    %170 = arith.addf %167, %169 : vector<8x1xf32>
    %171 = arith.negf %170 : vector<8x1xf32>
    %172 = math.exp %171 : vector<8x1xf32>
    %cst_53 = arith.constant 1.000000e+00 : f32
    %173 = vector.broadcast %cst_53 : f32 to vector<8x1xf32>
    %174 = arith.addf %173, %172 : vector<8x1xf32>
    %175 = arith.divf %173, %174 : vector<8x1xf32>
    %176 = vector.broadcast %48 : vector<1x4xf32> to vector<8x4xf32>
    %177 = arith.mulf %127, %176 : vector<8x4xf32>
    %cst_54 = arith.constant dense<0.000000e+00> : vector<8xf32>
    %178 = vector.multi_reduction <add>, %177, %cst_54 [1] : vector<8x4xf32> to vector<8xf32>
    %179 = vector.shape_cast %178 : vector<8xf32> to vector<8x1xf32>
    %180 = vector.extract_strided_slice %49 {offsets = [0, 1], sizes = [1, 1], strides = [1, 1]} : vector<1x4xf32> to vector<1x1xf32>
    %181 = vector.broadcast %180 : vector<1x1xf32> to vector<8x1xf32>
    %182 = arith.addf %179, %181 : vector<8x1xf32>
    %183 = arith.negf %182 : vector<8x1xf32>
    %184 = math.exp %183 : vector<8x1xf32>
    %cst_55 = arith.constant 1.000000e+00 : f32
    %185 = vector.broadcast %cst_55 : f32 to vector<8x1xf32>
    %186 = arith.addf %185, %184 : vector<8x1xf32>
    %187 = arith.divf %185, %186 : vector<8x1xf32>
    %c1_i32 = arith.constant 1 : i32
    %188 = vector.broadcast %c1_i32 : i32 to vector<1x4xi32>
    %189 = arith.cmpi eq, %62, %188 : vector<1x4xi32>
    %190 = arith.extui %189 : vector<1x4xi1> to vector<1x4xi32>
    %191 = arith.sitofp %190 : vector<1x4xi32> to vector<1x4xf32>
    %192 = vector.broadcast %187 : vector<8x1xf32> to vector<8x4xf32>
    %193 = arith.mulf %192, %127 : vector<8x4xf32>
    %cst_56 = arith.constant 1.000000e+00 : f32
    %194 = vector.broadcast %cst_56 : f32 to vector<8x1xf32>
    %195 = arith.subf %194, %187 : vector<8x1xf32>
    %196 = vector.broadcast %195 : vector<8x1xf32> to vector<8x4xf32>
    %197 = vector.broadcast %191 : vector<1x4xf32> to vector<8x4xf32>
    %198 = arith.mulf %196, %197 : vector<8x4xf32>
    %199 = arith.addf %193, %198 : vector<8x4xf32>
    %cst_57 = arith.constant 5.000000e-01 : f32
    %200 = vector.broadcast %cst_57 : f32 to vector<8x1xf32>
    %201 = arith.cmpf ogt, %175, %200 : vector<8x1xf32>
    %cst_58 = arith.constant 1.000000e+00 : f32
    %cst_59 = arith.constant 0.000000e+00 : f32
    %202 = vector.broadcast %cst_58 : f32 to vector<8x1xf32>
    %203 = vector.broadcast %cst_59 : f32 to vector<8x1xf32>
    %204 = arith.select %201, %202, %203 : vector<8x1xi1>, vector<8x1xf32>
    %205 = vector.broadcast %204 : vector<8x1xf32> to vector<8x4xf32>
    %206 = vector.broadcast %191 : vector<1x4xf32> to vector<8x4xf32>
    %207 = arith.mulf %205, %206 : vector<8x4xf32>
    %208 = arith.addf %127, %207 : vector<8x4xf32>
    %209 = vector.extract_strided_slice %199 {offsets = [0, 0], sizes = [8, 1], strides = [1, 1]} : vector<8x4xf32> to vector<8x1xf32>
    %210 = vector.extract_strided_slice %47 {offsets = [0, 0], sizes = [1, 1152], strides = [1, 1]} : vector<4x1152xf32> to vector<1x1152xf32>
    %211 = vector.broadcast %209 : vector<8x1xf32> to vector<8x1152xf32>
    %212 = vector.broadcast %210 : vector<1x1152xf32> to vector<8x1152xf32>
    %213 = arith.mulf %211, %212 : vector<8x1152xf32>
    %214 = arith.addf %57, %213 : vector<8x1152xf32>
    %215 = vector.extract_strided_slice %199 {offsets = [0, 1], sizes = [8, 1], strides = [1, 1]} : vector<8x4xf32> to vector<8x1xf32>
    %216 = vector.extract_strided_slice %47 {offsets = [1, 0], sizes = [1, 1152], strides = [1, 1]} : vector<4x1152xf32> to vector<1x1152xf32>
    %217 = vector.broadcast %215 : vector<8x1xf32> to vector<8x1152xf32>
    %218 = vector.broadcast %216 : vector<1x1152xf32> to vector<8x1152xf32>
    %219 = arith.mulf %217, %218 : vector<8x1152xf32>
    %220 = arith.addf %214, %219 : vector<8x1152xf32>
    %221 = arith.truncf %162 : vector<8x384xf32> to vector<8x384xbf16>
    %cst_60 = arith.constant dense<0.000000e+00> : vector<8x1152xf32>
    %222 = tpu.matmul %221, %46, %cst_60 {dimension_numbers = #tpu.dot_dimension_numbers<[1], [0], [0], [1], [0, 0, 1, 1], [], []>} : vector<8x384xbf16>, vector<384x1152xbf16>, vector<8x1152xf32> -> vector<8x1152xf32>
    %223 = vector.extract_strided_slice %220 {offsets = [0, 0], sizes = [8, 384], strides = [1, 1]} : vector<8x1152xf32> to vector<8x384xf32>
    %224 = vector.extract_strided_slice %222 {offsets = [0, 0], sizes = [8, 384], strides = [1, 1]} : vector<8x1152xf32> to vector<8x384xf32>
    %225 = arith.addf %223, %224 : vector<8x384xf32>
    %226 = arith.negf %225 : vector<8x384xf32>
    %227 = math.exp %226 : vector<8x384xf32>
    %cst_61 = arith.constant 1.000000e+00 : f32
    %228 = vector.broadcast %cst_61 : f32 to vector<8x384xf32>
    %229 = arith.addf %228, %227 : vector<8x384xf32>
    %230 = arith.divf %228, %229 : vector<8x384xf32>
    %231 = vector.extract_strided_slice %220 {offsets = [0, 384], sizes = [8, 384], strides = [1, 1]} : vector<8x1152xf32> to vector<8x384xf32>
    %232 = vector.extract_strided_slice %222 {offsets = [0, 384], sizes = [8, 384], strides = [1, 1]} : vector<8x1152xf32> to vector<8x384xf32>
    %233 = arith.addf %231, %232 : vector<8x384xf32>
    %234 = arith.negf %233 : vector<8x384xf32>
    %235 = math.exp %234 : vector<8x384xf32>
    %cst_62 = arith.constant 1.000000e+00 : f32
    %236 = vector.broadcast %cst_62 : f32 to vector<8x384xf32>
    %237 = arith.addf %236, %235 : vector<8x384xf32>
    %238 = arith.divf %236, %237 : vector<8x384xf32>
    %239 = vector.extract_strided_slice %220 {offsets = [0, 768], sizes = [8, 384], strides = [1, 1]} : vector<8x1152xf32> to vector<8x384xf32>
    %240 = vector.extract_strided_slice %222 {offsets = [0, 768], sizes = [8, 384], strides = [1, 1]} : vector<8x1152xf32> to vector<8x384xf32>
    %241 = arith.addf %240, %60 : vector<8x384xf32>
    %242 = arith.mulf %230, %241 : vector<8x384xf32>
    %243 = arith.addf %239, %242 : vector<8x384xf32>
    %244 = math.tanh %243 : vector<8x384xf32>
    %cst_63 = arith.constant 1.000000e+00 : f32
    %245 = vector.broadcast %cst_63 : f32 to vector<8x384xf32>
    %246 = arith.subf %245, %238 : vector<8x384xf32>
    %247 = arith.mulf %246, %244 : vector<8x384xf32>
    %248 = arith.mulf %238, %162 : vector<8x384xf32>
    %249 = arith.addf %247, %248 : vector<8x384xf32>
    %250 = vector.extract_strided_slice %50 {offsets = [2, 0], sizes = [1, 384], strides = [1, 1]} : vector<4x384xf32> to vector<1x384xf32>
    %251 = vector.broadcast %250 : vector<1x384xf32> to vector<8x384xf32>
    %252 = arith.mulf %249, %251 : vector<8x384xf32>
    %cst_64 = arith.constant dense<0.000000e+00> : vector<8xf32>
    %253 = vector.multi_reduction <add>, %252, %cst_64 [1] : vector<8x384xf32> to vector<8xf32>
    %254 = vector.shape_cast %253 : vector<8xf32> to vector<8x1xf32>
    %255 = vector.extract_strided_slice %51 {offsets = [0, 2], sizes = [1, 1], strides = [1, 1]} : vector<1x4xf32> to vector<1x1xf32>
    %256 = vector.broadcast %255 : vector<1x1xf32> to vector<8x1xf32>
    %257 = arith.addf %254, %256 : vector<8x1xf32>
    %258 = arith.negf %257 : vector<8x1xf32>
    %259 = math.exp %258 : vector<8x1xf32>
    %cst_65 = arith.constant 1.000000e+00 : f32
    %260 = vector.broadcast %cst_65 : f32 to vector<8x1xf32>
    %261 = arith.addf %260, %259 : vector<8x1xf32>
    %262 = arith.divf %260, %261 : vector<8x1xf32>
    %263 = vector.broadcast %48 : vector<1x4xf32> to vector<8x4xf32>
    %264 = arith.mulf %208, %263 : vector<8x4xf32>
    %cst_66 = arith.constant dense<0.000000e+00> : vector<8xf32>
    %265 = vector.multi_reduction <add>, %264, %cst_66 [1] : vector<8x4xf32> to vector<8xf32>
    %266 = vector.shape_cast %265 : vector<8xf32> to vector<8x1xf32>
    %267 = vector.extract_strided_slice %49 {offsets = [0, 2], sizes = [1, 1], strides = [1, 1]} : vector<1x4xf32> to vector<1x1xf32>
    %268 = vector.broadcast %267 : vector<1x1xf32> to vector<8x1xf32>
    %269 = arith.addf %266, %268 : vector<8x1xf32>
    %270 = arith.negf %269 : vector<8x1xf32>
    %271 = math.exp %270 : vector<8x1xf32>
    %cst_67 = arith.constant 1.000000e+00 : f32
    %272 = vector.broadcast %cst_67 : f32 to vector<8x1xf32>
    %273 = arith.addf %272, %271 : vector<8x1xf32>
    %274 = arith.divf %272, %273 : vector<8x1xf32>
    %c2_i32 = arith.constant 2 : i32
    %275 = vector.broadcast %c2_i32 : i32 to vector<1x4xi32>
    %276 = arith.cmpi eq, %62, %275 : vector<1x4xi32>
    %277 = arith.extui %276 : vector<1x4xi1> to vector<1x4xi32>
    %278 = arith.sitofp %277 : vector<1x4xi32> to vector<1x4xf32>
    %279 = vector.broadcast %274 : vector<8x1xf32> to vector<8x4xf32>
    %280 = arith.mulf %279, %208 : vector<8x4xf32>
    %cst_68 = arith.constant 1.000000e+00 : f32
    %281 = vector.broadcast %cst_68 : f32 to vector<8x1xf32>
    %282 = arith.subf %281, %274 : vector<8x1xf32>
    %283 = vector.broadcast %282 : vector<8x1xf32> to vector<8x4xf32>
    %284 = vector.broadcast %278 : vector<1x4xf32> to vector<8x4xf32>
    %285 = arith.mulf %283, %284 : vector<8x4xf32>
    %286 = arith.addf %280, %285 : vector<8x4xf32>
    %287 = vector.extract_strided_slice %286 {offsets = [0, 0], sizes = [8, 1], strides = [1, 1]} : vector<8x4xf32> to vector<8x1xf32>
    %288 = vector.extract_strided_slice %47 {offsets = [0, 0], sizes = [1, 1152], strides = [1, 1]} : vector<4x1152xf32> to vector<1x1152xf32>
    %289 = vector.broadcast %287 : vector<8x1xf32> to vector<8x1152xf32>
    %290 = vector.broadcast %288 : vector<1x1152xf32> to vector<8x1152xf32>
    %291 = arith.mulf %289, %290 : vector<8x1152xf32>
    %292 = arith.addf %57, %291 : vector<8x1152xf32>
    %293 = vector.extract_strided_slice %286 {offsets = [0, 1], sizes = [8, 1], strides = [1, 1]} : vector<8x4xf32> to vector<8x1xf32>
    %294 = vector.extract_strided_slice %47 {offsets = [1, 0], sizes = [1, 1152], strides = [1, 1]} : vector<4x1152xf32> to vector<1x1152xf32>
    %295 = vector.broadcast %293 : vector<8x1xf32> to vector<8x1152xf32>
    %296 = vector.broadcast %294 : vector<1x1152xf32> to vector<8x1152xf32>
    %297 = arith.mulf %295, %296 : vector<8x1152xf32>
    %298 = arith.addf %292, %297 : vector<8x1152xf32>
    %299 = vector.extract_strided_slice %286 {offsets = [0, 2], sizes = [8, 1], strides = [1, 1]} : vector<8x4xf32> to vector<8x1xf32>
    %300 = vector.extract_strided_slice %47 {offsets = [2, 0], sizes = [1, 1152], strides = [1, 1]} : vector<4x1152xf32> to vector<1x1152xf32>
    %301 = vector.broadcast %299 : vector<8x1xf32> to vector<8x1152xf32>
    %302 = vector.broadcast %300 : vector<1x1152xf32> to vector<8x1152xf32>
    %303 = arith.mulf %301, %302 : vector<8x1152xf32>
    %304 = arith.addf %298, %303 : vector<8x1152xf32>
    %305 = arith.truncf %249 : vector<8x384xf32> to vector<8x384xbf16>
    %cst_69 = arith.constant dense<0.000000e+00> : vector<8x1152xf32>
    %306 = tpu.matmul %305, %46, %cst_69 {dimension_numbers = #tpu.dot_dimension_numbers<[1], [0], [0], [1], [0, 0, 1, 1], [], []>} : vector<8x384xbf16>, vector<384x1152xbf16>, vector<8x1152xf32> -> vector<8x1152xf32>
    %307 = vector.extract_strided_slice %304 {offsets = [0, 0], sizes = [8, 384], strides = [1, 1]} : vector<8x1152xf32> to vector<8x384xf32>
    %308 = vector.extract_strided_slice %306 {offsets = [0, 0], sizes = [8, 384], strides = [1, 1]} : vector<8x1152xf32> to vector<8x384xf32>
    %309 = arith.addf %307, %308 : vector<8x384xf32>
    %310 = arith.negf %309 : vector<8x384xf32>
    %311 = math.exp %310 : vector<8x384xf32>
    %cst_70 = arith.constant 1.000000e+00 : f32
    %312 = vector.broadcast %cst_70 : f32 to vector<8x384xf32>
    %313 = arith.addf %312, %311 : vector<8x384xf32>
    %314 = arith.divf %312, %313 : vector<8x384xf32>
    %315 = vector.extract_strided_slice %304 {offsets = [0, 384], sizes = [8, 384], strides = [1, 1]} : vector<8x1152xf32> to vector<8x384xf32>
    %316 = vector.extract_strided_slice %306 {offsets = [0, 384], sizes = [8, 384], strides = [1, 1]} : vector<8x1152xf32> to vector<8x384xf32>
    %317 = arith.addf %315, %316 : vector<8x384xf32>
    %318 = arith.negf %317 : vector<8x384xf32>
    %319 = math.exp %318 : vector<8x384xf32>
    %cst_71 = arith.constant 1.000000e+00 : f32
    %320 = vector.broadcast %cst_71 : f32 to vector<8x384xf32>
    %321 = arith.addf %320, %319 : vector<8x384xf32>
    %322 = arith.divf %320, %321 : vector<8x384xf32>
    %323 = vector.extract_strided_slice %304 {offsets = [0, 768], sizes = [8, 384], strides = [1, 1]} : vector<8x1152xf32> to vector<8x384xf32>
    %324 = vector.extract_strided_slice %306 {offsets = [0, 768], sizes = [8, 384], strides = [1, 1]} : vector<8x1152xf32> to vector<8x384xf32>
    %325 = arith.addf %324, %60 : vector<8x384xf32>
    %326 = arith.mulf %314, %325 : vector<8x384xf32>
    %327 = arith.addf %323, %326 : vector<8x384xf32>
    %328 = math.tanh %327 : vector<8x384xf32>
    %cst_72 = arith.constant 1.000000e+00 : f32
    %329 = vector.broadcast %cst_72 : f32 to vector<8x384xf32>
    %330 = arith.subf %329, %322 : vector<8x384xf32>
    %331 = arith.mulf %330, %328 : vector<8x384xf32>
    %332 = arith.mulf %322, %249 : vector<8x384xf32>
    %333 = arith.addf %331, %332 : vector<8x384xf32>
    %334 = vector.extract_strided_slice %50 {offsets = [3, 0], sizes = [1, 384], strides = [1, 1]} : vector<4x384xf32> to vector<1x384xf32>
    %335 = vector.broadcast %334 : vector<1x384xf32> to vector<8x384xf32>
    %336 = arith.mulf %333, %335 : vector<8x384xf32>
    %cst_73 = arith.constant dense<0.000000e+00> : vector<8xf32>
    %337 = vector.multi_reduction <add>, %336, %cst_73 [1] : vector<8x384xf32> to vector<8xf32>
    %338 = vector.shape_cast %337 : vector<8xf32> to vector<8x1xf32>
    %339 = vector.extract_strided_slice %51 {offsets = [0, 3], sizes = [1, 1], strides = [1, 1]} : vector<1x4xf32> to vector<1x1xf32>
    %340 = vector.broadcast %339 : vector<1x1xf32> to vector<8x1xf32>
    %341 = arith.addf %338, %340 : vector<8x1xf32>
    %342 = arith.negf %341 : vector<8x1xf32>
    %343 = math.exp %342 : vector<8x1xf32>
    %cst_74 = arith.constant 1.000000e+00 : f32
    %344 = vector.broadcast %cst_74 : f32 to vector<8x1xf32>
    %345 = arith.addf %344, %343 : vector<8x1xf32>
    %346 = arith.divf %344, %345 : vector<8x1xf32>
    %347 = tpu.concatenate %89, %170, %257, %341 in 1 : vector<8x1xf32>, vector<8x1xf32>, vector<8x1xf32>, vector<8x1xf32> -> vector<8x4xf32>
    %c0_75 = arith.constant 0 : index
    %c0_76 = arith.constant 0 : index
    %348 = vector.load %arg17[%c0_75, %c0_76] : memref<8x4xf32, #tpu.memory_space<vmem>>, vector<8x4xf32>
    tpu.vector_store %arg17[%c0_75, %c0_76], %347 {strides = array<i32>} : memref<8x4xf32, #tpu.memory_space<vmem>>, vector<8x4xf32>,
    %349 = tpu.concatenate %94, %175, %262, %346 in 1 : vector<8x1xf32>, vector<8x1xf32>, vector<8x1xf32>, vector<8x1xf32> -> vector<8x4xf32>
    %c0_77 = arith.constant 0 : index
    %c0_78 = arith.constant 0 : index
    %350 = vector.load %arg18[%c0_77, %c0_78] : memref<8x4xf32, #tpu.memory_space<vmem>>, vector<8x4xf32>
    tpu.vector_store %arg18[%c0_77, %c0_78], %349 {strides = array<i32>} : memref<8x4xf32, #tpu.memory_space<vmem>>, vector<8x4xf32>,
    return
  }
  func.func @transform_0(%arg0: i32) -> (i32, i32) {
    %c0_i32 = arith.constant 0 : i32
    %c0_i32_0 = arith.constant 0 : i32
    %c0_i32_1 = arith.constant 0 : i32
    return %c0_i32, %c0_i32_0 : i32, i32
  }
  func.func @transform_1(%arg0: i32) -> (i32, i32) {
    %c0_i32 = arith.constant 0 : i32
    %c0_i32_0 = arith.constant 0 : i32
    %c0_i32_1 = arith.constant 0 : i32
    return %c0_i32, %c0_i32_0 : i32, i32
  }
  func.func @transform_2(%arg0: i32) -> (i32, i32) {
    %c0_i32 = arith.constant 0 : i32
    %c0_i32_0 = arith.constant 0 : i32
    %c0_i32_1 = arith.constant 0 : i32
    return %c0_i32, %c0_i32_0 : i32, i32
  }
  func.func @transform_3(%arg0: i32) -> (i32, i32) {
    %c0_i32 = arith.constant 0 : i32
    %c0_i32_0 = arith.constant 0 : i32
    %c0_i32_1 = arith.constant 0 : i32
    return %c0_i32, %c0_i32_0 : i32, i32
  }
  func.func @transform_4(%arg0: i32) -> (i32, i32) {
    %c0_i32 = arith.constant 0 : i32
    %c0_i32_0 = arith.constant 0 : i32
    %c0_i32_1 = arith.constant 0 : i32
    return %c0_i32, %c0_i32_0 : i32, i32
  }
  func.func @transform_5(%arg0: i32) -> (i32, i32) {
    %c0_i32 = arith.constant 0 : i32
    %c0_i32_0 = arith.constant 0 : i32
    %c0_i32_1 = arith.constant 0 : i32
    return %c0_i32, %c0_i32_0 : i32, i32
  }
  func.func @transform_6(%arg0: i32) -> (i32, i32) {
    %c0_i32 = arith.constant 0 : i32
    %c0_i32_0 = arith.constant 0 : i32
    %c0_i32_1 = arith.constant 0 : i32
    return %c0_i32, %c0_i32_0 : i32, i32
  }
  func.func @transform_7(%arg0: i32) -> (i32, i32) {
    %c0_i32 = arith.constant 0 : i32
    %c0_i32_0 = arith.constant 0 : i32
    %c0_i32_1 = arith.constant 0 : i32
    return %c0_i32, %c0_i32_0 : i32, i32
  }
  func.func @transform_8(%arg0: i32) -> (i32, i32) {
    %c0_i32 = arith.constant 0 : i32
    %c0_i32_0 = arith.constant 0 : i32
    %c0_i32_1 = arith.constant 0 : i32
    return %c0_i32, %c0_i32_0 : i32, i32
  }
  func.func @transform_9(%arg0: i32) -> (i32, i32) {
    %c0_i32 = arith.constant 0 : i32
    %c0_i32_0 = arith.constant 0 : i32
    %c0_i32_1 = arith.constant 0 : i32
    return %c0_i32, %c0_i32_0 : i32, i32
  }
  func.func @transform_10(%arg0: i32) -> (i32, i32) {
    %c0_i32 = arith.constant 0 : i32
    %c0_i32_0 = arith.constant 0 : i32
    %c0_i32_1 = arith.constant 0 : i32
    return %c0_i32, %c0_i32_0 : i32, i32
  }
  func.func @transform_11(%arg0: i32) -> (i32, i32) {
    %c0_i32 = arith.constant 0 : i32
    %c0_i32_0 = arith.constant 0 : i32
    %c0_i32_1 = arith.constant 0 : i32
    return %c0_i32, %c0_i32_0 : i32, i32
  }
  func.func @transform_12(%arg0: i32) -> (i32, i32) {
    %c0_i32 = arith.constant 0 : i32
    %c0_i32_0 = arith.constant 0 : i32
    %c0_i32_1 = arith.constant 0 : i32
    return %c0_i32, %c0_i32_0 : i32, i32
  }
  func.func @transform_13(%arg0: i32) -> (i32, i32) {
    %c0_i32 = arith.constant 0 : i32
    %c0_i32_0 = arith.constant 0 : i32
    %c0_i32_1 = arith.constant 0 : i32
    return %c0_i32, %c0_i32_0 : i32, i32
  }
  func.func @transform_14(%arg0: i32) -> (i32, i32) {
    %c0_i32 = arith.constant 0 : i32
    %c0_i32_0 = arith.constant 0 : i32
    %c0_i32_1 = arith.constant 0 : i32
    return %c0_i32, %c0_i32_0 : i32, i32
  }
  func.func @transform_15(%arg0: i32) -> (i32, i32) {
    %c0_i32 = arith.constant 0 : i32
    %c0_i32_0 = arith.constant 0 : i32
    %c0_i32_1 = arith.constant 0 : i32
    return %c0_i32, %c0_i32_0 : i32, i32
  }
  func.func @transform_16(%arg0: i32) -> (i32, i32) {
    %c0_i32 = arith.constant 0 : i32
    %c0_i32_0 = arith.constant 0 : i32
    %c0_i32_1 = arith.constant 0 : i32
    return %c0_i32, %c0_i32_0 : i32, i32
  }
  func.func @transform_17(%arg0: i32) -> (i32, i32) {
    %c0_i32 = arith.constant 0 : i32
    %c0_i32_0 = arith.constant 0 : i32
    %c0_i32_1 = arith.constant 0 : i32
    return %c0_i32, %c0_i32_0 : i32, i32
  }
}

</mosaic_0001>

<bundles_post_ra>
// kernel: sequence_aspect_net_forward.1
= control target key start
LH: loop header
LB: loop body
LE: loop exit
PB: predicated region body
PF: predicated region fallthrough
CT: control target
= control target key end

     0   :  { %s12067_s0 = inlined_call_operand.hbm [shape: f32[8,64], index: 0, kind: input, shape index: {}]   ;;  %s12068_s1 = inlined_call_operand.hbm [shape: f32[8,64], index: 1, kind: input, shape index: {}]   ;;  %s12069_s2 = inlined_call_operand.hbm [shape: f32[8,64], index: 2, kind: input, shape index: {}]   ;;  %s12070_s3 = inlined_call_operand.hbm [shape: f32[8,64], index: 3, kind: input, shape index: {}]   ;;  %s12071_s4 = inlined_call_operand.hbm [shape: f32[8,64], index: 4, kind: input, shape index: {}]   ;;  %s12072_s5 = inlined_call_operand.hbm [shape: bf16[320,1344], index: 5, kind: input, shape index: {}]   ;;  %s12073_s6 = inlined_call_operand.hbm [shape: f32[1,1344], index: 6, kind: input, shape index: {}]   ;;  %s12074_s7 = inlined_call_operand.hbm [shape: bf16[384,1152], index: 7, kind: input, shape index: {}]   ;;  %s12075_s8 = inlined_call_operand.vmem [shape: f32[1,1152], index: 8, kind: input, shape index: {}]   ;;  %s12076_s9 = inlined_call_operand.hbm [shape: bf16[384,1152], index: 9, kind: input, shape index: {}]   ;;  %s12077_s10 = inlined_call_operand.hbm [shape: f32[1,384], index: 10, kind: input, shape index: {}]   ;;  %s12078_s11 = inlined_call_operand.hbm [shape: f32[4,1152], index: 11, kind: input, shape index: {}]   ;;  %s12079_s12 = inlined_call_operand.hbm [shape: f32[1,4], index: 12, kind: input, shape index: {}]   ;;  %s12080_s13 = inlined_call_operand.hbm [shape: f32[1,4], index: 13, kind: input, shape index: {}]   ;;  %s12081_s14 = inlined_call_operand.vmem [shape: f32[4,384], index: 14, kind: input, shape index: {}]   ;;  %s12082_s15 = inlined_call_operand.hbm [shape: f32[1,4], index: 15, kind: input, shape index: {}]   ;;  %s12083_s16 = inlined_call_operand.vmem [shape: f32[8,4], index: 16, kind: output, shape index: {0}]   ;;  %s12084_s17 = inlined_call_operand.vmem [shape: f32[8,4], index: 17, kind: output, shape index: {1}]  }
   0x1   :  { %12324 = sst [smem:[#allocation236_spill]] %s12067_s0 }
   0x2   :  { %12325 = sst [smem:[#allocation237_spill]] %s12068_s1 }
   0x3   :  { %23 = vsyncpa [#allocation3], 0 }
   0x4   :  { %24 = vsyncpa [#allocation5], 0 }
   0x5   :  { %25 = vsyncpa [#allocation8], 0 }
   0x6   :  { %26 = vsyncpa [#allocation11], 0 }
   0x7   :  { %27 = vsyncpa [#allocation14], 0 }
   0x8   :  { %28 = vsyncpa [#allocation17], 0 }
   0x9   :  { %29 = vsyncpa [#allocation20], 0 }
   0xa   :  { %30 = vsyncpa [#allocation23], 0  ;;  %s10193_s24 = smov [#allocation4]   ;;  %s10194_s26 = smov [#allocation7]  }
   0xb   :  { %s47_s25 = sshll.u32 %s10193_s24, 4  ;;  %s67_s27 = sshll.u32 %s10194_s26, 4  ;;  %s48_s25 = int_to_ptr.vmem [resolvable:$true] %s47_s25  ;;  %s68_s27 = int_to_ptr.vmem [resolvable:$true] %s67_s27 }
   0xc   :  { %s9905_s28 = scalar_lea.vmem %s48_s25, 128  ;;  %p9910_p1 = scmp.lt.s32.totalorder %s48_s25, %s48_s25 }
   0xd   :  { %p9906_p0 = scmp.ne.s32.totalorder %s48_s25, %s9905_s28  ;;  %p9911_p2 = scmp.lt.s32.totalorder %s9905_s28, %s9905_s28 }
   0xf   :  { %p9912_p3 = por %p9911_p2, %p9910_p1 }
  0x11   :  { %p9913_p4 = pnand %p9912_p3, %p9906_p0 }
  0x13   :  { %9916 = shalt.err (!%p9913_p4)
}
  0x14   :  { %s12326_s30 = sld [smem:[#allocation237_spill]]  ;;  %s9925_s18 = scalar_lea.vmem %s68_s27, 128 }
  0x15   :  { %p9926_p5 = scmp.ne.s32.totalorder %s68_s27, %s9925_s18  ;;  %p9930_p6 = scmp.lt.s32.totalorder %s68_s27, %s68_s27 }
  0x16   :  { %p9931_p7 = scmp.lt.s32.totalorder %s9925_s18, %s9925_s18 }
  0x18   :  { %p9932_p8 = por %p9931_p7, %p9930_p6 }
  0x1a   :  { %50 = dma.hbm_to_vmem [thread:$0]  %s12326_s30, 128, %s48_s25, [#allocation5]  }
  0x1b   :  { %p9933_p9 = pnand %p9932_p8, %p9926_p5 }
  0x1d   :  { %9936 = shalt.err (!%p9933_p9)
}
  0x1e   :  { %70 = dma.hbm_to_vmem [thread:$0]  %s12070_s3, 128, %s68_s27, [#allocation8]  }
  0x1f   :  { %s10195_s20 = smov [#allocation10]  }
  0x20   :  { %s86_s21 = sshll.u32 %s10195_s20, 4  ;;  %s87_s21 = int_to_ptr.vmem [resolvable:$true] %s86_s21 }
  0x21   :  { %s9945_s22 = scalar_lea.vmem %s87_s21, 28160  ;;  %p9950_p11 = scmp.lt.s32.totalorder %s87_s21, %s87_s21 }
  0x22   :  { %p9946_p10 = scmp.ne.s32.totalorder %s87_s21, %s9945_s22  ;;  %p9951_p12 = scmp.lt.s32.totalorder %s9945_s22, %s9945_s22 }
  0x24   :  { %p9952_p13 = por %p9951_p12, %p9950_p11 }
  0x26   :  { %p9953_p0 = pnand %p9952_p13, %p9946_p10 }
  0x28   :  { %9956 = shalt.err (!%p9953_p0)
}
  0x29   :  { %s10196_s23 = smov 704   ;;  %s10197_s24 = smov 44  }
  0x2a   :  { %92 = dma.hbm_to_vmem [thread:$0]  %s12072_s5, 28160, %s87_s21, [#allocation11], %s10196_s23, %s10196_s23, %s10197_s24  }
  0x2b   :  { %s10198_s28 = smov [#allocation13]  }
  0x2c   :  { %s108_s29 = sshll.u32 %s10198_s28, 4  ;;  %s109_s29 = int_to_ptr.vmem [resolvable:$true] %s108_s29 }
  0x2d   :  { %s9965_s3 = scalar_lea.vmem %s109_s29, 27648  ;;  %p9970_p2 = scmp.lt.s32.totalorder %s109_s29, %s109_s29 }
  0x2e   :  { %p9966_p1 = scmp.ne.s32.totalorder %s109_s29, %s9965_s3  ;;  %p9971_p3 = scmp.lt.s32.totalorder %s9965_s3, %s9965_s3 }
  0x30   :  { %p9972_p4 = por %p9971_p3, %p9970_p2 }
  0x32   :  { %p9973_p5 = pnand %p9972_p4, %p9966_p1 }
  0x34   :  { %9976 = shalt.err (!%p9973_p5)
}
  0x35   :  { %s10199_s27 = smov 576   ;;  %s10200_s0 = smov 36  }
  0x36   :  { %114 = dma.hbm_to_vmem [thread:$0]  %s12074_s7, 27648, %s109_s29, [#allocation14], %s10199_s27, %s10199_s27, %s10200_s0  }
  0x37   :  { %s10201_s5 = smov [#allocation16]   ;;  %s10202_s1 = smov [#allocation19]  }
  0x38   :  { %s135_s19 = sshll.u32 %s10201_s5, 4  ;;  %s155_s20 = sshll.u32 %s10202_s1, 4  ;;  %s136_s19 = int_to_ptr.vmem [resolvable:$true] %s135_s19  ;;  %s156_s20 = int_to_ptr.vmem [resolvable:$true] %s155_s20 }
  0x39   :  { %s9985_s21 = scalar_lea.vmem %s136_s19, 48  ;;  %s9989_s22 = scalar_lea.vmem %s136_s19, 64 }
  0x3a   :  { %p9986_p6 = scmp.ne.s32.totalorder %s136_s19, %s9985_s21  ;;  %p9990_p7 = scmp.lt.s32.totalorder %s136_s19, %s136_s19 }
  0x3b   :  { %p9991_p8 = scmp.lt.s32.totalorder %s9989_s22, %s9985_s21 }
  0x3d   :  { %p9992_p9 = por %p9991_p8, %p9990_p7 }
  0x3f   :  { %p9993_p10 = pnand %p9992_p9, %p9986_p6 }
  0x41   :  { %9996 = shalt.err (!%p9993_p10)
}
  0x42   :  { %138 = dma.hbm_to_vmem [thread:$0]  %s12077_s10, 48, %s136_s19, [#allocation17]  }
  0x43   :  { %s10005_s25 = scalar_lea.vmem %s156_s20, 16  ;;  %s10009_s7 = scalar_lea.vmem %s156_s20, 32 }
  0x44   :  { %p10006_p11 = scmp.ne.s32.totalorder %s156_s20, %s10005_s25  ;;  %p10010_p12 = scmp.lt.s32.totalorder %s156_s20, %s156_s20 }
  0x45   :  { %p10011_p13 = scmp.lt.s32.totalorder %s10009_s7, %s10005_s25 }
  0x47   :  { %p10012_p0 = por %p10011_p13, %p10010_p12 }
  0x49   :  { %p10013_p1 = pnand %p10012_p0, %p10006_p11 }
  0x4b   :  { %10016 = shalt.err (!%p10013_p1)
}
  0x4c   :  { %158 = dma.hbm_to_vmem [thread:$0]  %s12079_s12, 16, %s156_s20, [#allocation20]  }
  0x4d   :  { %s10203_s29 = smov [#allocation2]   ;;  %s10204_s30 = smov [#allocation6]  }
  0x4e   :  { %s37_s3 = sshll.u32 %s10203_s29, 4  ;;  %s57_s18 = sshll.u32 %s10204_s30, 4  ;;  %s38_s3 = int_to_ptr.vmem [resolvable:$true] %s37_s3  ;;  %s58_s18 = int_to_ptr.vmem [resolvable:$true] %s57_s18 }
  0x4f   :  { %s10025_s5 = scalar_lea.vmem %s38_s3, 128  ;;  %p10030_p3 = scmp.lt.s32.totalorder %s38_s3, %s38_s3 }
  0x50   :  { %p10026_p2 = scmp.ne.s32.totalorder %s38_s3, %s10025_s5  ;;  %p10031_p4 = scmp.lt.s32.totalorder %s10025_s5, %s10025_s5 }
  0x52   :  { %p10032_p5 = por %p10031_p4, %p10030_p3 }
  0x54   :  { %p10033_p6 = pnand %p10032_p5, %p10026_p2 }
  0x56   :  { %10036 = shalt.err (!%p10033_p6)
}
  0x57   :  { %s12327_s1 = sld [smem:[#allocation236_spill]]  ;;  %s10045_s21 = scalar_lea.vmem %s58_s18, 128 }
  0x58   :  { %p10046_p7 = scmp.ne.s32.totalorder %s58_s18, %s10045_s21  ;;  %p10050_p8 = scmp.lt.s32.totalorder %s58_s18, %s58_s18 }
  0x59   :  { %p10051_p9 = scmp.lt.s32.totalorder %s10045_s21, %s10045_s21 }
  0x5b   :  { %p10052_p10 = por %p10051_p9, %p10050_p8 }
  0x5d   :  { %40 = dma.hbm_to_vmem [thread:$0]  %s12327_s1, 128, %s38_s3, [#allocation3]  }
  0x5e   :  { %p10053_p11 = pnand %p10052_p10, %p10046_p7 }
  0x60   :  { %10056 = shalt.err (!%p10053_p11)
}
  0x61   :  { %60 = dma.hbm_to_vmem [thread:$0]  %s12069_s2, 128, %s58_s18, [#allocation5]  }
  0x62   :  { %s10205_s22 = smov [#allocation9]   ;;  %s10206_s24 = smov [#allocation12]  }
  0x63   :  { %s77_s23 = sshll.u32 %s10205_s22, 4  ;;  %s99_s25 = sshll.u32 %s10206_s24, 4  ;;  %s78_s23 = int_to_ptr.vmem [resolvable:$true] %s77_s23  ;;  %s100_s25 = int_to_ptr.vmem [resolvable:$true] %s99_s25 }
  0x64   :  { %s10065_s7 = scalar_lea.vmem %s78_s23, 128  ;;  %p10070_p13 = scmp.lt.s32.totalorder %s78_s23, %s78_s23 }
  0x65   :  { %p10066_p12 = scmp.ne.s32.totalorder %s78_s23, %s10065_s7  ;;  %p10071_p0 = scmp.lt.s32.totalorder %s10065_s7, %s10065_s7 }
  0x67   :  { %p10072_p1 = por %p10071_p0, %p10070_p13 }
  0x69   :  { %p10073_p2 = pnand %p10072_p1, %p10066_p12 }
  0x6b   :  { %10076 = shalt.err (!%p10073_p2)
}
  0x6c   :  { %80 = dma.hbm_to_vmem [thread:$0]  %s12071_s4, 128, %s78_s23, [#allocation8]  }
  0x6d   :  { %s10085_s29 = scalar_lea.vmem %s100_s25, 176  ;;  %s10089_s2 = scalar_lea.vmem %s100_s25, 192 }
  0x6e   :  { %p10086_p3 = scmp.ne.s32.totalorder %s100_s25, %s10085_s29  ;;  %p10090_p4 = scmp.lt.s32.totalorder %s100_s25, %s100_s25 }
  0x6f   :  { %p10091_p5 = scmp.lt.s32.totalorder %s10089_s2, %s10085_s29 }
  0x71   :  { %p10092_p6 = por %p10091_p5, %p10090_p4 }
  0x73   :  { %p10093_p7 = pnand %p10092_p6, %p10086_p3 }
  0x75   :  { %10096 = shalt.err (!%p10093_p7)
}
  0x76   :  { %102 = dma.hbm_to_vmem [thread:$0]  %s12073_s6, 176, %s100_s25, [#allocation11]  }
  0x77   :  { %s10207_s18 = smov [#allocation15]   ;;  %s10208_s10 = smov [#allocation18]  }
  0x78   :  { %s122_s5 = sshll.u32 %s10207_s18, 4  ;;  %s145_s19 = sshll.u32 %s10208_s10, 4  ;;  %s123_s5 = int_to_ptr.vmem [resolvable:$true] %s122_s5  ;;  %s146_s19 = int_to_ptr.vmem [resolvable:$true] %s145_s19 }
  0x79   :  { %s10105_s1 = scalar_lea.vmem %s123_s5, 27648  ;;  %p10110_p9 = scmp.lt.s32.totalorder %s123_s5, %s123_s5 }
  0x7a   :  { %p10106_p8 = scmp.ne.s32.totalorder %s123_s5, %s10105_s1  ;;  %p10111_p10 = scmp.lt.s32.totalorder %s10105_s1, %s10105_s1 }
  0x7c   :  { %p10112_p11 = por %p10111_p10, %p10110_p9 }
  0x7e   :  { %p10113_p12 = pnand %p10112_p11, %p10106_p8 }
  0x80   :  { %10116 = shalt.err (!%p10113_p12)
}
  0x81   :  { %128 = dma.hbm_to_vmem [thread:$0]  %s12076_s9, 27648, %s123_s5, [#allocation14], %s10199_s27, %s10199_s27, %s10200_s0  }
  0x82   :  { %s10125_s6 = scalar_lea.vmem %s146_s19, 576  ;;  %p10130_p0 = scmp.lt.s32.totalorder %s146_s19, %s146_s19 }
  0x83   :  { %p10126_p13 = scmp.ne.s32.totalorder %s146_s19, %s10125_s6  ;;  %p10131_p1 = scmp.lt.s32.totalorder %s10125_s6, %s10125_s6 }
  0x85   :  { %p10132_p2 = por %p10131_p1, %p10130_p0 }
  0x87   :  { %p10133_p3 = pnand %p10132_p2, %p10126_p13 }
  0x89   :  { %10136 = shalt.err (!%p10133_p3)
}
  0x8a   :  { %148 = dma.hbm_to_vmem [thread:$0]  %s12078_s11, 576, %s146_s19, [#allocation17]  }
  0x8b   :  { %s10209_s22 = smov [#allocation21]   ;;  %s10210_s24 = smov [#allocation22]  }
  0x8c   :  { %s165_s23 = sshll.u32 %s10209_s22, 4  ;;  %s177_s25 = sshll.u32 %s10210_s24, 4  ;;  %s166_s23 = int_to_ptr.vmem [resolvable:$true] %s165_s23  ;;  %s178_s25 = int_to_ptr.vmem [resolvable:$true] %s177_s25 }
  0x8d   :  { %s10145_s7 = scalar_lea.vmem %s166_s23, 16  ;;  %s10149_s9 = scalar_lea.vmem %s166_s23, 32 }
  0x8e   :  { %p10146_p4 = scmp.ne.s32.totalorder %s166_s23, %s10145_s7  ;;  %p10150_p5 = scmp.lt.s32.totalorder %s166_s23, %s166_s23 }
  0x8f   :  { %p10151_p6 = scmp.lt.s32.totalorder %s10149_s9, %s10145_s7 }
  0x91   :  { %p10152_p7 = por %p10151_p6, %p10150_p5 }
  0x93   :  { %p10153_p8 = pnand %p10152_p7, %p10146_p4 }
  0x95   :  { %10156 = shalt.err (!%p10153_p8)
}
  0x96   :  { %168 = dma.hbm_to_vmem [thread:$0]  %s12080_s13, 16, %s166_s23, [#allocation20]  }
  0x97   :  { %s10165_s26 = scalar_lea.vmem %s178_s25, 16  ;;  %s10169_s11 = scalar_lea.vmem %s178_s25, 32 }
  0x98   :  { %p10166_p9 = scmp.ne.s32.totalorder %s178_s25, %s10165_s26  ;;  %p10170_p10 = scmp.lt.s32.totalorder %s178_s25, %s178_s25 }
  0x99   :  { %p10171_p11 = scmp.lt.s32.totalorder %s10169_s11, %s10165_s26 }
  0x9b   :  { %p10172_p12 = por %p10171_p11, %p10170_p10 }
  0x9d   :  { %p10173_p13 = pnand %p10172_p12, %p10166_p9 }
  0x9f   :  { %10176 = shalt.err (!%p10173_p13)
}
  0xa0   :  { %180 = dma.hbm_to_vmem [thread:$0]  %s12082_s15, 16, %s178_s25, [#allocation23]  }
  0xa1   :  { %10177 = dma.done.wait [#allocation3], 128  }
  0xa2   :  { %10178 = vsyncadd [#allocation3], 4294967168 }
  0xa3   :  { %10179 = dma.done.wait [#allocation5], 256  }
  0xa4   :  { %10180 = vsyncadd [#allocation5], 4294967040 }
  0xa5   :  { %10181 = dma.done.wait [#allocation8], 256  }
  0xa6   :  { %10182 = vsyncadd [#allocation8], 4294967040 }
  0xa7   :  { %10183 = dma.done.wait [#allocation11], 28336  }
  0xa8   :  { %10184 = vsyncadd [#allocation11], 4294938960 }
  0xa9   :  { %10185 = dma.done.wait [#allocation14], 55296  }
  0xaa   :  { %10186 = vsyncadd [#allocation14], 4294912000 }
  0xab   :  { %10187 = dma.done.wait [#allocation17], 624  }
  0xac   :  { %10188 = vsyncadd [#allocation17], 4294966672 }
  0xad   :  { %10189 = dma.done.wait [#allocation20], 32  }
  0xae   :  { %10190 = vsyncadd [#allocation20], 4294967264 }
  0xaf   :  { %10191 = dma.done.wait [#allocation23], 16  }
  0xb0   :  { %10192 = vsyncadd [#allocation23], 4294967280  ;;  %v12085_v0 = vmov 0   ;;  %v225_v1 = vld [vmem:[#allocation4] sm:$0xff]  ;;  %v227_v2 = vld [vmem:[#allocation7] sm:$0xff]  ;;  %s10212_s13 = smov 64  }
  0xb1   :  { %1738 = vmatprep.mubr.bf16.mxu1 %v12085_v0  ;;  %8556 = vset.pattern.permute.xlu0 %v12085_v0  ;;  %v8541_v3 = vpack.i.bf16 %v225_v1, %v227_v2  ;;  %v8567_v4 = vld [vmem:[#allocation10 + $0x68c] ss:$44 sps:$4 sm:$0xff]   ;;  %v8569_v5 = vld [vmem:[#allocation10 + $0x688] ss:$44 sps:$4 sm:$0xff]   ;;  %v8572_v7 = vld [vmem:[#allocation10 + $0x630] ss:$44 sps:$4 sm:$0xff]  }
  0xb2   :  { %8557 = vset.pattern.permute.xlu1 %v12085_v0  ;;  %v8570_v6 = vld [vmem:[#allocation10 + $0x634] ss:$44 sps:$4 sm:$0xff]   ;;  %1714 = vmatprep.subr.bf16.mxu1 %v8567_v4  ;;  %v8573_v8 = vld [vmem:[#allocation10 + $0x5dc] ss:$44 sps:$4 sm:$0xff]   ;;  %v8579_v9 = vld [vmem:[#allocation10 + $0x26c] ss:$44 sps:$4 sm:$0xff]  }
  0xb3   :  { %8542 = vrot.lane.b32.xlu0 %v8541_v3, %s10212_s13  ;;  %1715 = vmatpush1.bf16.msra.mxu1 %v8569_v5  ;;  %v8575_v10 = vld [vmem:[#allocation10 + $0x5d8] ss:$44 sps:$4 sm:$0xff]   ;;  %v8584_v12 = vld [vmem:[#allocation10 + $0x268] ss:$44 sps:$4 sm:$0xff]   ;;  %v8578_v14 = vld [vmem:[#allocation10 + $0x580] ss:$44 sps:$4 sm:$0xff]  }
  0xb4   :  { %1716 = vmatprep.subr.bf16.mxu1 %v8570_v6  ;;  %v8576_v11 = vld [vmem:[#allocation10 + $0x584] ss:$44 sps:$4 sm:$0xff]   ;;  %1665 = vmatprep.subr.bf16.mxu0 %v8579_v9  ;;  %v8585_v13 = vld [vmem:[#allocation10 + $0x214] ss:$44 sps:$4 sm:$0xff]   ;;  %v228_v15 = vld [vmem:[#allocation9] sm:$0xff]  ;;  %vm237_vm0 = vcmask 523264  }
  0xb5   :  { %1666 = vmatpush1.bf16.msra.mxu0 %v8584_v12  ;;  %v8590_v16 = vld [vmem:[#allocation10 + $0x210] ss:$44 sps:$4 sm:$0xff]   ;;  %v8583_v18 = vld [vmem:[#allocation10 + $0x274] ss:$44 sps:$4 sm:$0xff]   ;;  %v8596_v19 = vld [vmem:[#allocation10 + $0x1b8] ss:$44 sps:$4 sm:$0xff]   ;;  %v10359_v20 = vpack.c.bf16 %v228_v15, %v228_v15 }
  0xb6   :  { %1667 = vmatprep.subr.bf16.mxu0 %v8585_v13  ;;  %v8591_v17 = vld [vmem:[#allocation10 + $0x1bc] ss:$44 sps:$4 sm:$0xff]   ;;  %v8597_v21 = vld [vmem:[#allocation10 + $0x164] ss:$44 sps:$4 sm:$0xff]   ;;  %v8602_v24 = vld [vmem:[#allocation10 + $0x160] ss:$44 sps:$4 sm:$0xff]  }
  0xb7   :  { %1717 = vmatpush1.bf16.msra.mxu1 %v8572_v7  ;;  %v8581_v22 = vld [vmem:[#allocation10 + $0x270] ss:$44 sps:$4 sm:$0xff]   ;;  %v8603_v25 = vld [vmem:[#allocation10 + $0x10c] ss:$44 sps:$4 sm:$0xff]   ;;  %v8608_v28 = vld [vmem:[#allocation10 + $0x108] ss:$44 sps:$4 sm:$0xff]  }
  0xb8   :  { %1718 = vmatprep.subr.bf16.mxu1 %v8573_v8  ;;  %v8589_v23 = vld [vmem:[#allocation10 + $0x21c] ss:$44 sps:$4 sm:$0xff]   ;;  %v8587_v26 = vld [vmem:[#allocation10 + $0x218] ss:$44 sps:$4 sm:$0xff]   ;;  %v8609_v29 = vld [vmem:[#allocation10 + $0xb4] ss:$44 sps:$4 sm:$0xff]  }
  0xb9   :  { %1668 = vmatpush1.bf16.msra.mxu0 %v8590_v16  ;;  %v8595_v27 = vld [vmem:[#allocation10 + $0x1c4] ss:$44 sps:$4 sm:$0xff]   ;;  %v8593_v30 = vld [vmem:[#allocation10 + $0x1c0] ss:$44 sps:$4 sm:$0xff]   ;;  %v8615_v33 = vld [vmem:[#allocation10 + $0x5c] ss:$44 sps:$4 sm:$0xff]  }
  0xba   :  { %1669 = vmatprep.subr.bf16.mxu0 %v8591_v17  ;;  %v8601_v31 = vld [vmem:[#allocation10 + $0x16c] ss:$44 sps:$4 sm:$0xff]   ;;  %v8614_v32 = vld [vmem:[#allocation10 + $0xb0] ss:$44 sps:$4 sm:$0xff]   ;;  %v8599_v34 = vld [vmem:[#allocation10 + $0x168] ss:$44 sps:$4 sm:$0xff]  }
  0xbb   :  { %1719 = vmatpush1.bf16.msra.mxu1 %v8575_v10  ;;  %v8607_v35 = vld [vmem:[#allocation10 + $0x114] ss:$44 sps:$4 sm:$0xff]   ;;  %v8620_v36 = vld [vmem:[#allocation10 + $0x58] ss:$44 sps:$4 sm:$0xff]   ;;  %v8605_v38 = vld [vmem:[#allocation10 + $0x110] ss:$44 sps:$4 sm:$0xff]  }
  0xbc   :  { %1720 = vmatprep.subr.bf16.mxu1 %v8576_v11  ;;  %v8621_v37 = vld [vmem:[#allocation10 + $0x4] ss:$44 sps:$4 sm:$0xff]   ;;  %v8613_v39 = vld [vmem:[#allocation10 + $0xbc] ss:$44 sps:$4 sm:$0xff]   ;;  %v8626_v40 = vld [vmem:[#allocation10] ss:$44 sps:$4 sm:$0xff]  }
  0xbd   :  { %1670 = vmatpush1.bf16.msra.mxu0 %v8596_v19  ;;  %v8627_v41 = vld [vmem:[#allocation10 + $0x52c] ss:$44 sps:$4 sm:$0xff]   ;;  %v8619_v43 = vld [vmem:[#allocation10 + $0x64] ss:$44 sps:$4 sm:$0xff]   ;;  %v8632_v44 = vld [vmem:[#allocation10 + $0x528] ss:$44 sps:$4 sm:$0xff]  }
  0xbe   :  { %1671 = vmatprep.subr.bf16.mxu0 %v8597_v21  ;;  %v8611_v42 = vld [vmem:[#allocation10 + $0xb8] ss:$44 sps:$4 sm:$0xff]   ;;  %v8633_v45 = vld [vmem:[#allocation10 + $0x4d4] ss:$44 sps:$4 sm:$0xff]   ;;  %v8638_v48 = vld [vmem:[#allocation10 + $0x4d0] ss:$44 sps:$4 sm:$0xff]  }
  0xbf   :  { %1721 = vmatpush1.bf16.msra.mxu1 %v8578_v14  ;;  %v8617_v46 = vld [vmem:[#allocation10 + $0x60] ss:$44 sps:$4 sm:$0xff]   ;;  %v8639_v49 = vld [vmem:[#allocation10 + $0x47c] ss:$44 sps:$4 sm:$0xff]   ;;  %v8644_v52 = vld [vmem:[#allocation10 + $0x478] ss:$44 sps:$4 sm:$0xff]  }
  0xc0   :  { %1747 = vmatprep.subr.bf16.mxu1 %v8583_v18  ;;  %v8625_v47 = vld [vmem:[#allocation10 + $0xc] ss:$44 sps:$4 sm:$0xff]   ;;  %v8623_v50 = vld [vmem:[#allocation10 + $0x8] ss:$44 sps:$4 sm:$0xff]   ;;  %v8645_v53 = vld [vmem:[#allocation10 + $0x424] ss:$44 sps:$4 sm:$0xff]  }
  0xc1   :  { %1672 = vmatpush1.bf16.msra.mxu0 %v8602_v24  ;;  %v8631_v51 = vld [vmem:[#allocation10 + $0x534] ss:$44 sps:$4 sm:$0xff]   ;;  %v8629_v54 = vld [vmem:[#allocation10 + $0x530] ss:$44 sps:$4 sm:$0xff]   ;;  %v8651_v57 = vld [vmem:[#allocation10 + $0x3cc] ss:$44 sps:$4 sm:$0xff]  }
  0xc2   :  { %7796 = vmatmul.mubr.msk.bf16.vlgmr.msra.gmra.mxu1 %vm237_vm0, %v10359_v20  ;;  %1673 = vmatprep.subr.bf16.mxu0 %v8603_v25  ;;  %v8637_v55 = vld [vmem:[#allocation10 + $0x4dc] ss:$44 sps:$4 sm:$0xff]   ;;  %v8650_v56 = vld [vmem:[#allocation10 + $0x420] ss:$44 sps:$4 sm:$0xff]   ;;  %v8635_v58 = vld [vmem:[#allocation10 + $0x4d8] ss:$44 sps:$4 sm:$0xff]  }
  0xc3   :  { %1748 = vmatpush1.bf16.msra.mxu1 %v8581_v22  ;;  %v8643_v59 = vld [vmem:[#allocation10 + $0x484] ss:$44 sps:$4 sm:$0xff]   ;;  %v8656_v60 = vld [vmem:[#allocation10 + $0x3c8] ss:$44 sps:$4 sm:$0xff]   ;;  %v8641_v62 = vld [vmem:[#allocation10 + $0x480] ss:$44 sps:$4 sm:$0xff]  }
  0xc4   :  { %1749 = vmatprep.subr.bf16.mxu1 %v8589_v23  ;;  %v8657_v61 = vld [vmem:[#allocation10 + $0x374] ss:$44 sps:$4 sm:$0xff]   ;;  %v8649_v63 = vld [vmem:[#allocation10 + $0x42c] ss:$44 sps:$4 sm:$0xff]   ;;  %v8662_v1 = vld [vmem:[#allocation10 + $0x370] ss:$44 sps:$4 sm:$0xff]  }
  0xc5   :  { %1674 = vmatpush1.bf16.msra.mxu0 %v8608_v28  ;;  %v8663_v2 = vld [vmem:[#allocation10 + $0x31c] ss:$44 sps:$4 sm:$0xff]   ;;  %v8655_v4 = vld [vmem:[#allocation10 + $0x3d4] ss:$44 sps:$4 sm:$0xff]   ;;  %v8668_v5 = vld [vmem:[#allocation10 + $0x318] ss:$44 sps:$4 sm:$0xff]  }
  0xc6   :  { %1675 = vmatprep.subr.bf16.mxu0 %v8609_v29  ;;  %v8647_v3 = vld [vmem:[#allocation10 + $0x428] ss:$44 sps:$4 sm:$0xff]   ;;  %v8669_v6 = vld [vmem:[#allocation10 + $0x2c4] ss:$44 sps:$4 sm:$0xff]   ;;  %v8674_v9 = vld [vmem:[#allocation10 + $0x2c0] ss:$44 sps:$4 sm:$0xff]  }
  0xc7   :  { %1750 = vmatpush1.bf16.msra.mxu1 %v8587_v26  ;;  %v8653_v7 = vld [vmem:[#allocation10 + $0x3d0] ss:$44 sps:$4 sm:$0xff]   ;;  %v8677_v10 = vld [vmem:[#allocation10 + $0x694] ss:$44 sps:$4 sm:$0xff]   ;;  %v8659_v11 = vld [vmem:[#allocation10 + $0x378] ss:$44 sps:$4 sm:$0xff]  }
  0xc8   :  { %1751 = vmatprep.subr.bf16.mxu1 %v8595_v27  ;;  %v8661_v8 = vld [vmem:[#allocation10 + $0x37c] ss:$44 sps:$4 sm:$0xff]   ;;  %v8667_v12 = vld [vmem:[#allocation10 + $0x324] ss:$44 sps:$4 sm:$0xff]   ;;  %v8665_v13 = vld [vmem:[#allocation10 + $0x320] ss:$44 sps:$4 sm:$0xff]  }
  0xc9   :  { %1676 = vmatpush1.bf16.msra.mxu0 %v8614_v32  ;;  %v8673_v14 = vld [vmem:[#allocation10 + $0x2cc] ss:$44 sps:$4 sm:$0xff]   ;;  %v8671_v15 = vld [vmem:[#allocation10 + $0x2c8] ss:$44 sps:$4 sm:$0xff]   ;;  %v8675_v25 = vld [vmem:[#allocation10 + $0x690] ss:$44 sps:$4 sm:$0xff]  }
  0xca   :  { %1677 = vmatprep.subr.bf16.mxu0 %v8615_v33  ;;  %v8680_v16 = vld [vmem:[#allocation10 + $0x69c] ss:$44 sps:$4 sm:$0xff]   ;;  %v8678_v28 = vld [vmem:[#allocation10 + $0x698] ss:$44 sps:$4 sm:$0xff]   ;;  %v8684_v32 = vld [vmem:[#allocation10 + $0x640] ss:$44 sps:$4 sm:$0xff]  }
  0xcb   :  { %1752 = vmatpush1.bf16.msra.mxu1 %v8593_v30  ;;  %v226_v17 = vld [vmem:[#allocation6] sm:$0xff]  ;;  %v224_v19 = vld [vmem:[#allocation2] sm:$0xff]  ;;  %v8686_v30 = vld [vmem:[#allocation10 + $0x644] ss:$44 sps:$4 sm:$0xff]   ;;  %vm10214_vm1 = vmmov 0   ;;  %vm4400_vm2 = vcmask 31744  }
  0xcc   :  { %1753 = vmatprep.subr.bf16.mxu1 %v8601_v31  ;;  %v8683_v29 = vld [vmem:[#allocation10 + $0x63c] ss:$44 sps:$4 sm:$0xff]   ;;  %v8681_v31 = vld [vmem:[#allocation10 + $0x638] ss:$44 sps:$4 sm:$0xff]   ;;  %vm7549_vm8 = vcmask 7168   ;;  %vm7551_vm9 = vcmask 15360  }
  0xcd   :  { %1678 = vmatpush1.bf16.msra.mxu0 %v8620_v36  ;;  %v8689_v33 = vld [vmem:[#allocation10 + $0x5e4] ss:$44 sps:$4 sm:$0xff]   ;;  %v8690_v36 = vld [vmem:[#allocation10 + $0x5e8] ss:$44 sps:$4 sm:$0xff]   ;;  %vm7553_vm10 = vcmask 23552  }
  0xce   :  { %1679 = vmatprep.subr.bf16.mxu0 %v8621_v37  ;;  %v8695_v37 = vld [vmem:[#allocation10 + $0x58c] ss:$44 sps:$4 sm:$0xff]  }
  0xcf   :  { %1754 = vmatpush1.bf16.msra.mxu1 %v8599_v34  ;;  %v8692_v34 = vld [vmem:[#allocation10 + $0x5ec] ss:$44 sps:$4 sm:$0xff]  }
  0xd0   :  { %1755 = vmatprep.subr.bf16.mxu1 %v8607_v35  ;;  %v8687_v35 = vld [vmem:[#allocation10 + $0x5e0] ss:$44 sps:$4 sm:$0xff]  }
  0xd1   :  { %1680 = vmatpush1.bf16.msra.mxu0 %v8626_v40  ;;  %v8696_v40 = vld [vmem:[#allocation10 + $0x590] ss:$44 sps:$4 sm:$0xff]  }
  0xd2   :  { %1681 = vmatprep.subr.bf16.mxu0 %v8627_v41  ;;  %v8701_v41 = vld [vmem:[#allocation10 + $0x27c] ss:$44 sps:$4 sm:$0xff]  }
  0xd3   :  { %1756 = vmatpush1.bf16.msra.mxu1 %v8605_v38  ;;  %v8698_v38 = vld [vmem:[#allocation10 + $0x594] ss:$44 sps:$4 sm:$0xff]  }
  0xd4   :  { %1757 = vmatprep.subr.bf16.mxu1 %v8613_v39  ;;  %v8693_v39 = vld [vmem:[#allocation10 + $0x588] ss:$44 sps:$4 sm:$0xff]  }
  0xd5   :  { %1682 = vmatpush2.bf16.msra.mxu0 %v8632_v44  ;;  %v8702_v44 = vld [vmem:[#allocation10 + $0x280] ss:$44 sps:$4 sm:$0xff]  }
  0xd6   :  { %1683 = vmatprep.subr.bf16.mxu0 %v8633_v45  ;;  %v8707_v45 = vld [vmem:[#allocation10 + $0x224] ss:$44 sps:$4 sm:$0xff]  }
  0xd7   :  { %1758 = vmatpush1.bf16.msra.mxu1 %v8611_v42  ;;  %v8704_v42 = vld [vmem:[#allocation10 + $0x284] ss:$44 sps:$4 sm:$0xff]  }
  0xd8   :  { %1759 = vmatprep.subr.bf16.mxu1 %v8619_v43  ;;  %v8699_v43 = vld [vmem:[#allocation10 + $0x278] ss:$44 sps:$4 sm:$0xff]  }
  0xd9   :  { %1684 = vmatpush2.bf16.msra.mxu0 %v8638_v48  ;;  %v8708_v48 = vld [vmem:[#allocation10 + $0x228] ss:$44 sps:$4 sm:$0xff]  }
  0xda   :  { %1685 = vmatprep.subr.bf16.mxu0 %v8639_v49  ;;  %v8713_v49 = vld [vmem:[#allocation10 + $0x1cc] ss:$44 sps:$4 sm:$0xff]  }
  0xdb   :  { %1760 = vmatpush1.bf16.msra.mxu1 %v8617_v46  ;;  %v8710_v46 = vld [vmem:[#allocation10 + $0x22c] ss:$44 sps:$4 sm:$0xff]  }
  0xdc   :  { %1761 = vmatprep.subr.bf16.mxu1 %v8625_v47  ;;  %v8705_v47 = vld [vmem:[#allocation10 + $0x220] ss:$44 sps:$4 sm:$0xff]  }
  0xdd   :  { %1686 = vmatpush2.bf16.msra.mxu0 %v8644_v52  ;;  %v8714_v52 = vld [vmem:[#allocation10 + $0x1d0] ss:$44 sps:$4 sm:$0xff]  }
  0xde   :  { %1687 = vmatprep.subr.bf16.mxu0 %v8645_v53  ;;  %v8719_v53 = vld [vmem:[#allocation10 + $0x174] ss:$44 sps:$4 sm:$0xff]  }
  0xdf   :  { %1762 = vmatpush1.bf16.msra.mxu1 %v8623_v50  ;;  %v8716_v50 = vld [vmem:[#allocation10 + $0x1d4] ss:$44 sps:$4 sm:$0xff]  }
  0xe0   :  { %1763 = vmatprep.subr.bf16.mxu1 %v8631_v51  ;;  %v8711_v51 = vld [vmem:[#allocation10 + $0x1c8] ss:$44 sps:$4 sm:$0xff]  }
  0xe1   :  { %1688 = vmatpush2.bf16.msra.mxu0 %v8650_v56  ;;  %v8720_v56 = vld [vmem:[#allocation10 + $0x178] ss:$44 sps:$4 sm:$0xff]  }
  0xe2   :  { %1689 = vmatprep.subr.bf16.mxu0 %v8651_v57  ;;  %v8725_v57 = vld [vmem:[#allocation10 + $0x11c] ss:$44 sps:$4 sm:$0xff]  }
  0xe3   :  { %1764 = vmatpush2.bf16.msra.mxu1 %v8629_v54  ;;  %v8722_v54 = vld [vmem:[#allocation10 + $0x17c] ss:$44 sps:$4 sm:$0xff]  }
  0xe4   :  { %1765 = vmatprep.subr.bf16.mxu1 %v8637_v55  ;;  %v8717_v55 = vld [vmem:[#allocation10 + $0x170] ss:$44 sps:$4 sm:$0xff]  }
  0xe5   :  { %1690 = vmatpush2.bf16.msra.mxu0 %v8656_v60  ;;  %v8726_v60 = vld [vmem:[#allocation10 + $0x120] ss:$44 sps:$4 sm:$0xff]  }
  0xe6   :  { %1691 = vmatprep.subr.bf16.mxu0 %v8657_v61  ;;  %v8731_v61 = vld [vmem:[#allocation10 + $0xc4] ss:$44 sps:$4 sm:$0xff]  }
  0xe7   :  { %1766 = vmatpush2.bf16.msra.mxu1 %v8635_v58  ;;  %v8728_v58 = vld [vmem:[#allocation10 + $0x124] ss:$44 sps:$4 sm:$0xff]  }
  0xe8   :  { %1767 = vmatprep.subr.bf16.mxu1 %v8643_v59  ;;  %v8723_v59 = vld [vmem:[#allocation10 + $0x118] ss:$44 sps:$4 sm:$0xff]  }
  0xe9   :  { %1692 = vmatpush2.bf16.msra.mxu0 %v8662_v1  ;;  %v8732_v1 = vld [vmem:[#allocation10 + $0xc8] ss:$44 sps:$4 sm:$0xff]  }
  0xea   :  { %1693 = vmatprep.subr.bf16.mxu0 %v8663_v2  ;;  %v8737_v2 = vld [vmem:[#allocation10 + $0x6c] ss:$44 sps:$4 sm:$0xff]  }
  0xeb   :  { %1768 = vmatpush2.bf16.msra.mxu1 %v8641_v62  ;;  %v8734_v62 = vld [vmem:[#allocation10 + $0xcc] ss:$44 sps:$4 sm:$0xff]  }
  0xec   :  { %1769 = vmatprep.subr.bf16.mxu1 %v8649_v63  ;;  %v8729_v63 = vld [vmem:[#allocation10 + $0xc0] ss:$44 sps:$4 sm:$0xff]  }
  0xed   :  { %1694 = vmatpush2.bf16.msra.mxu0 %v8668_v5  ;;  %v8738_v5 = vld [vmem:[#allocation10 + $0x70] ss:$44 sps:$4 sm:$0xff]  }
  0xee   :  { %1695 = vmatprep.subr.bf16.mxu0 %v8669_v6  ;;  %v8743_v6 = vld [vmem:[#allocation10 + $0x14] ss:$44 sps:$4 sm:$0xff]  }
  0xef   :  { %1770 = vmatpush2.bf16.msra.mxu1 %v8647_v3  ;;  %v8740_v3 = vld [vmem:[#allocation10 + $0x74] ss:$44 sps:$4 sm:$0xff]  }
  0xf0   :  { %1771 = vmatprep.subr.bf16.mxu1 %v8655_v4  ;;  %v8735_v4 = vld [vmem:[#allocation10 + $0x68] ss:$44 sps:$4 sm:$0xff]  }
  0xf1   :  { %1696 = vmatpush2.bf16.msra.mxu0 %v8674_v9  ;;  %v8744_v9 = vld [vmem:[#allocation10 + $0x18] ss:$44 sps:$4 sm:$0xff]  }
  0xf2   :  { %1796 = vmatprep.subr.bf16.mxu0 %v8677_v10  ;;  %v8749_v10 = vld [vmem:[#allocation10 + $0x53c] ss:$44 sps:$4 sm:$0xff]  }
  0xf3   :  { %1772 = vmatpush2.bf16.msra.mxu1 %v8653_v7  ;;  %v8746_v7 = vld [vmem:[#allocation10 + $0x1c] ss:$44 sps:$4 sm:$0xff]  }
  0xf4   :  { %1773 = vmatprep.subr.bf16.mxu1 %v8661_v8  ;;  %v8741_v8 = vld [vmem:[#allocation10 + $0x10] ss:$44 sps:$4 sm:$0xff]  }
  0xf7   :  { %1774 = vmatpush2.bf16.msra.mxu1 %v8659_v11  ;;  %v8752_v11 = vld [vmem:[#allocation10 + $0x544] ss:$44 sps:$4 sm:$0xff]  }
  0xf8   :  { %1775 = vmatprep.subr.bf16.mxu1 %v8667_v12  ;;  %v8747_v12 = vld [vmem:[#allocation10 + $0x538] ss:$44 sps:$4 sm:$0xff]  }
  0xfb   :  { %1776 = vmatpush2.bf16.msra.mxu1 %v8665_v13  ;;  %v8750_v13 = vld [vmem:[#allocation10 + $0x540] ss:$44 sps:$4 sm:$0xff]  }
  0xfc   :  { %1777 = vmatprep.subr.bf16.mxu1 %v8673_v14  ;;  %v8755_v14 = vld [vmem:[#allocation10 + $0x4e4] ss:$44 sps:$4 sm:$0xff]  }
  0xff   :  { %1778 = vmatpush2.bf16.msra.mxu1 %v8671_v15  ;;  %v8758_v15 = vld [vmem:[#allocation10 + $0x4ec] ss:$44 sps:$4 sm:$0xff]  }
 0x100   :  { %1878 = vmatprep.subr.bf16.mxu1 %v8680_v16  ;;  %v8753_v16 = vld [vmem:[#allocation10 + $0x4e0] ss:$44 sps:$4 sm:$0xff]  }
 0x125   :  { %v8543_v18 = vpop.permute.xlu0 %8542 }
 0x126   :  { %v8545_v21 = vunpack.i.h.bf16 %v8543_v18  ;;  %v8544_v22 = vunpack.i.l.bf16 %v8543_v18  ;;  %v8761_v18 = vld [vmem:[#allocation10 + $0x48c] ss:$44 sps:$4 sm:$0xff]  }
 0x128   :  { %v238_v23 = vsel %vm237_vm0, %v224_v19, %v8545_v21  ;;  %v239_v24 = vsel %vm237_vm0, %v226_v17, %v8544_v22  ;;  %v8756_v17 = vld [vmem:[#allocation10 + $0x4e8] ss:$44 sps:$4 sm:$0xff]   ;;  %v8762_v22 = vld [vmem:[#allocation10 + $0x490] ss:$44 sps:$4 sm:$0xff]  }
 0x129   :  { %v10365_v26 = vpack.c.bf16 %v238_v23, %v238_v23  ;;  %v10367_v27 = vpack.c.bf16 %v239_v24, %v239_v24  ;;  %v8764_v19 = vld [vmem:[#allocation10 + $0x494] ss:$44 sps:$4 sm:$0xff]   ;;  %v8770_v24 = vld [vmem:[#allocation10 + $0x43c] ss:$44 sps:$4 sm:$0xff]  }
 0x12a   :  { %v8759_v21 = vld [vmem:[#allocation10 + $0x488] ss:$44 sps:$4 sm:$0xff]  }
 0x12b   :  { %1697 = vmatprep.mubr.bf16.mxu0 %v10367_v27  ;;  %1779 = vmatprep.mubr.bf16.mxu1 %v10367_v27  ;;  %v8767_v23 = vld [vmem:[#allocation10 + $0x434] ss:$44 sps:$4 sm:$0xff]  }
 0x12c   :  { %1698 = vmatmul.mubr.bf16.vlgmr.msra.gmra.mxu0 %v10365_v26  ;;  %1780 = vmatmul.mubr.bf16.vlgmr.msra.gmra.mxu1 %v10365_v26 }
 0x12d   :  { %1797 = vmatpush1.bf16.msra.mxu0 %v8675_v25  ;;  %1879 = vmatpush1.bf16.msra.mxu1 %v8678_v28  ;;  %v8765_v25 = vld [vmem:[#allocation10 + $0x430] ss:$44 sps:$4 sm:$0xff]   ;;  %v8768_v28 = vld [vmem:[#allocation10 + $0x438] ss:$44 sps:$4 sm:$0xff]  }
 0x12e   :  { %1798 = vmatprep.subr.bf16.mxu0 %v8683_v29  ;;  %1880 = vmatprep.subr.bf16.mxu1 %v8686_v30  ;;  %v8773_v29 = vld [vmem:[#allocation10 + $0x3dc] ss:$44 sps:$4 sm:$0xff]   ;;  %v8776_v30 = vld [vmem:[#allocation10 + $0x3e4] ss:$44 sps:$4 sm:$0xff]  }
 0x12f   :  { %1820 = vmatprep.mubr.bf16.mxu0 %v12085_v0  ;;  %1902 = vmatprep.mubr.bf16.mxu1 %v12085_v0 }
 0x131   :  { %1799 = vmatpush1.bf16.msra.mxu0 %v8681_v31  ;;  %1881 = vmatpush1.bf16.msra.mxu1 %v8684_v32  ;;  %v8771_v31 = vld [vmem:[#allocation10 + $0x3d8] ss:$44 sps:$4 sm:$0xff]   ;;  %v8774_v32 = vld [vmem:[#allocation10 + $0x3e0] ss:$44 sps:$4 sm:$0xff]  }
 0x132   :  { %1800 = vmatprep.subr.bf16.mxu0 %v8689_v33  ;;  %1882 = vmatprep.subr.bf16.mxu1 %v8692_v34  ;;  %v8779_v33 = vld [vmem:[#allocation10 + $0x384] ss:$44 sps:$4 sm:$0xff]   ;;  %v8782_v34 = vld [vmem:[#allocation10 + $0x38c] ss:$44 sps:$4 sm:$0xff]  }
 0x135   :  { %1801 = vmatpush1.bf16.msra.mxu0 %v8687_v35  ;;  %1883 = vmatpush1.bf16.msra.mxu1 %v8690_v36  ;;  %v8777_v35 = vld [vmem:[#allocation10 + $0x380] ss:$44 sps:$4 sm:$0xff]   ;;  %v8780_v36 = vld [vmem:[#allocation10 + $0x388] ss:$44 sps:$4 sm:$0xff]  }
 0x136   :  { %1802 = vmatprep.subr.bf16.mxu0 %v8695_v37  ;;  %1884 = vmatprep.subr.bf16.mxu1 %v8698_v38  ;;  %v8785_v37 = vld [vmem:[#allocation10 + $0x32c] ss:$44 sps:$4 sm:$0xff]   ;;  %v8788_v38 = vld [vmem:[#allocation10 + $0x334] ss:$44 sps:$4 sm:$0xff]  }
 0x139   :  { %1803 = vmatpush1.bf16.msra.mxu0 %v8693_v39  ;;  %1885 = vmatpush1.bf16.msra.mxu1 %v8696_v40  ;;  %v8783_v39 = vld [vmem:[#allocation10 + $0x328] ss:$44 sps:$4 sm:$0xff]   ;;  %v8786_v40 = vld [vmem:[#allocation10 + $0x330] ss:$44 sps:$4 sm:$0xff]  }
 0x13a   :  { %1829 = vmatprep.subr.bf16.mxu0 %v8701_v41  ;;  %1911 = vmatprep.subr.bf16.mxu1 %v8704_v42  ;;  %v8791_v41 = vld [vmem:[#allocation10 + $0x2d4] ss:$44 sps:$4 sm:$0xff]   ;;  %v8794_v42 = vld [vmem:[#allocation10 + $0x2dc] ss:$44 sps:$4 sm:$0xff]  }
 0x13c   :  { %7797 = vmatmul.mubr.msk.bf16.vlgmr.msra.gmra.mxu0 %vm237_vm0, %v10359_v20  ;;  %7798 = vmatmul.mubr.msk.bf16.vlgmr.msra.gmra.mxu1 %vm237_vm0, %v10359_v20 }
 0x13d   :  { %1830 = vmatpush1.bf16.msra.mxu0 %v8699_v43  ;;  %1861 = vmatprep.mubr.bf16.mxu0 %v10367_v27  ;;  %v8789_v43 = vld [vmem:[#allocation10 + $0x2d0] ss:$44 sps:$4 sm:$0xff]  }
 0x13e   :  { %1912 = vmatpush1.bf16.msra.mxu1 %v8702_v44  ;;  %1943 = vmatprep.mubr.bf16.mxu1 %v10367_v27  ;;  %v8792_v44 = vld [vmem:[#allocation10 + $0x2d8] ss:$44 sps:$4 sm:$0xff]  }
 0x13f   :  { %1831 = vmatprep.subr.bf16.mxu0 %v8707_v45  ;;  %1913 = vmatprep.subr.bf16.mxu1 %v8710_v46  ;;  %v8797_v45 = vld [vmem:[#allocation10 + $0x6a4] ss:$44 sps:$4 sm:$0xff]   ;;  %v8800_v46 = vld [vmem:[#allocation10 + $0x6ac] ss:$44 sps:$4 sm:$0xff]  }
 0x141   :  { %1832 = vmatpush1.bf16.msra.mxu0 %v8705_v47  ;;  %v8795_v47 = vld [vmem:[#allocation10 + $0x6a0] ss:$44 sps:$4 sm:$0xff]  }
 0x142   :  { %1914 = vmatpush1.bf16.msra.mxu1 %v8708_v48  ;;  %1833 = vmatprep.subr.bf16.mxu0 %v8713_v49  ;;  %v8798_v48 = vld [vmem:[#allocation10 + $0x6a8] ss:$44 sps:$4 sm:$0xff]   ;;  %v8803_v49 = vld [vmem:[#allocation10 + $0x64c] ss:$44 sps:$4 sm:$0xff]  }
 0x143   :  { %1915 = vmatprep.subr.bf16.mxu1 %v8716_v50  ;;  %v8806_v50 = vld [vmem:[#allocation10 + $0x654] ss:$44 sps:$4 sm:$0xff]  }
 0x145   :  { %1834 = vmatpush1.bf16.msra.mxu0 %v8711_v51  ;;  %v8801_v51 = vld [vmem:[#allocation10 + $0x648] ss:$44 sps:$4 sm:$0xff]  }
 0x146   :  { %1916 = vmatpush1.bf16.msra.mxu1 %v8714_v52  ;;  %1835 = vmatprep.subr.bf16.mxu0 %v8719_v53  ;;  %v8804_v52 = vld [vmem:[#allocation10 + $0x650] ss:$44 sps:$4 sm:$0xff]   ;;  %v8809_v53 = vld [vmem:[#allocation10 + $0x5f4] ss:$44 sps:$4 sm:$0xff]  }
 0x147   :  { %1917 = vmatprep.subr.bf16.mxu1 %v8722_v54  ;;  %v8812_v54 = vld [vmem:[#allocation10 + $0x5fc] ss:$44 sps:$4 sm:$0xff]  }
 0x149   :  { %1836 = vmatpush1.bf16.msra.mxu0 %v8717_v55  ;;  %v8807_v55 = vld [vmem:[#allocation10 + $0x5f0] ss:$44 sps:$4 sm:$0xff]  }
 0x14a   :  { %1918 = vmatpush1.bf16.msra.mxu1 %v8720_v56  ;;  %1837 = vmatprep.subr.bf16.mxu0 %v8725_v57  ;;  %v8810_v56 = vld [vmem:[#allocation10 + $0x5f8] ss:$44 sps:$4 sm:$0xff]   ;;  %v8815_v57 = vld [vmem:[#allocation10 + $0x59c] ss:$44 sps:$4 sm:$0xff]  }
 0x14b   :  { %1919 = vmatprep.subr.bf16.mxu1 %v8728_v58  ;;  %v8818_v58 = vld [vmem:[#allocation10 + $0x5a4] ss:$44 sps:$4 sm:$0xff]  }
 0x14d   :  { %1838 = vmatpush1.bf16.msra.mxu0 %v8723_v59  ;;  %v8813_v59 = vld [vmem:[#allocation10 + $0x598] ss:$44 sps:$4 sm:$0xff]  }
 0x14e   :  { %1920 = vmatpush1.bf16.msra.mxu1 %v8726_v60  ;;  %1839 = vmatprep.subr.bf16.mxu0 %v8731_v61  ;;  %v8816_v61 = vld [vmem:[#allocation10 + $0x5a0] ss:$44 sps:$4 sm:$0xff]  }
 0x14f   :  { %1921 = vmatprep.subr.bf16.mxu1 %v8734_v62  ;;  %v8821_v62 = vld [vmem:[#allocation10 + $0x28c] ss:$44 sps:$4 sm:$0xff]  }
 0x151   :  { %1840 = vmatpush1.bf16.msra.mxu0 %v8729_v63  ;;  %v8822_v63 = vld [vmem:[#allocation10 + $0x550] ss:$44 sps:$4 sm:$0xff]  }
 0x152   :  { %1922 = vmatpush1.bf16.msra.mxu1 %v8732_v1  ;;  %1841 = vmatprep.subr.bf16.mxu0 %v8737_v2  ;;  %v8819_v2 = vld [vmem:[#allocation10 + $0x288] ss:$44 sps:$4 sm:$0xff]  }
 0x153   :  { %1923 = vmatprep.subr.bf16.mxu1 %v8740_v3 }
 0x155   :  { %1842 = vmatpush1.bf16.msra.mxu0 %v8735_v4  ;;  %v8823_v4 = vld [vmem:[#allocation10 + $0x290] ss:$44 sps:$4 sm:$0xff]  }
 0x156   :  { %1924 = vmatpush1.bf16.msra.mxu1 %v8738_v5  ;;  %1843 = vmatprep.subr.bf16.mxu0 %v8743_v6  ;;  %v8826_v5 = vld [vmem:[#allocation10 + $0x234] ss:$44 sps:$4 sm:$0xff]  }
 0x157   :  { %1925 = vmatprep.subr.bf16.mxu1 %v8746_v7  ;;  %v8827_v7 = vld [vmem:[#allocation10 + $0x4f8] ss:$44 sps:$4 sm:$0xff]  }
 0x159   :  { %1844 = vmatpush1.bf16.msra.mxu0 %v8741_v8  ;;  %v8824_v8 = vld [vmem:[#allocation10 + $0x230] ss:$44 sps:$4 sm:$0xff]  }
 0x15a   :  { %1926 = vmatpush1.bf16.msra.mxu1 %v8744_v9  ;;  %1845 = vmatprep.subr.bf16.mxu0 %v8749_v10  ;;  %v8828_v9 = vld [vmem:[#allocation10 + $0x238] ss:$44 sps:$4 sm:$0xff]   ;;  %v8831_v10 = vld [vmem:[#allocation10 + $0x1dc] ss:$44 sps:$4 sm:$0xff]  }
 0x15b   :  { %1927 = vmatprep.subr.bf16.mxu1 %v8752_v11  ;;  %v8832_v11 = vld [vmem:[#allocation10 + $0x4a0] ss:$44 sps:$4 sm:$0xff]  }
 0x15d   :  { %1846 = vmatpush2.bf16.msra.mxu0 %v8747_v12  ;;  %v8829_v12 = vld [vmem:[#allocation10 + $0x1d8] ss:$44 sps:$4 sm:$0xff]  }
 0x15e   :  { %1928 = vmatpush2.bf16.msra.mxu1 %v8750_v13  ;;  %1847 = vmatprep.subr.bf16.mxu0 %v8755_v14  ;;  %v8833_v13 = vld [vmem:[#allocation10 + $0x1e0] ss:$44 sps:$4 sm:$0xff]   ;;  %v8836_v14 = vld [vmem:[#allocation10 + $0x184] ss:$44 sps:$4 sm:$0xff]  }
 0x15f   :  { %1929 = vmatprep.subr.bf16.mxu1 %v8758_v15  ;;  %v8837_v15 = vld [vmem:[#allocation10 + $0x448] ss:$44 sps:$4 sm:$0xff]  }
 0x161   :  { %1848 = vmatpush2.bf16.msra.mxu0 %v8753_v16  ;;  %v8834_v16 = vld [vmem:[#allocation10 + $0x180] ss:$44 sps:$4 sm:$0xff]  }
 0x162   :  { %1930 = vmatpush2.bf16.msra.mxu1 %v8756_v17  ;;  %1849 = vmatprep.subr.bf16.mxu0 %v8761_v18  ;;  %v8838_v17 = vld [vmem:[#allocation10 + $0x188] ss:$44 sps:$4 sm:$0xff]   ;;  %v8841_v18 = vld [vmem:[#allocation10 + $0x12c] ss:$44 sps:$4 sm:$0xff]  }
 0x163   :  { %1931 = vmatprep.subr.bf16.mxu1 %v8764_v19  ;;  %v8842_v19 = vld [vmem:[#allocation10 + $0x3f0] ss:$44 sps:$4 sm:$0xff]  }
 0x165   :  { %1850 = vmatpush2.bf16.msra.mxu0 %v8759_v21  ;;  %v8839_v21 = vld [vmem:[#allocation10 + $0x128] ss:$44 sps:$4 sm:$0xff]  }
 0x166   :  { %1932 = vmatpush2.bf16.msra.mxu1 %v8762_v22  ;;  %1851 = vmatprep.subr.bf16.mxu0 %v8767_v23  ;;  %v8846_v22 = vld [vmem:[#allocation10 + $0xd4] ss:$44 sps:$4 sm:$0xff]   ;;  %v8847_v23 = vld [vmem:[#allocation10 + $0x398] ss:$44 sps:$4 sm:$0xff]  }
 0x167   :  { %1933 = vmatprep.subr.bf16.mxu1 %v8770_v24  ;;  %v8844_v24 = vld [vmem:[#allocation10 + $0xd0] ss:$44 sps:$4 sm:$0xff]  }
 0x169   :  { %1852 = vmatpush2.bf16.msra.mxu0 %v8765_v25  ;;  %v8848_v25 = vld [vmem:[#allocation10 + $0xd8] ss:$44 sps:$4 sm:$0xff]  }
 0x16a   :  { %1934 = vmatpush2.bf16.msra.mxu1 %v8768_v28  ;;  %1853 = vmatprep.subr.bf16.mxu0 %v8773_v29  ;;  %v8851_v28 = vld [vmem:[#allocation10 + $0x7c] ss:$44 sps:$4 sm:$0xff]   ;;  %v8852_v29 = vld [vmem:[#allocation10 + $0x340] ss:$44 sps:$4 sm:$0xff]  }
 0x16b   :  { %1935 = vmatprep.subr.bf16.mxu1 %v8776_v30  ;;  %v8849_v30 = vld [vmem:[#allocation10 + $0x78] ss:$44 sps:$4 sm:$0xff]  }
 0x16d   :  { %1854 = vmatpush2.bf16.msra.mxu0 %v8771_v31  ;;  %v8853_v31 = vld [vmem:[#allocation10 + $0x80] ss:$44 sps:$4 sm:$0xff]  }
 0x16e   :  { %1936 = vmatpush2.bf16.msra.mxu1 %v8774_v32  ;;  %1855 = vmatprep.subr.bf16.mxu0 %v8779_v33  ;;  %v8856_v32 = vld [vmem:[#allocation10 + $0x24] ss:$44 sps:$4 sm:$0xff]   ;;  %v8857_v33 = vld [vmem:[#allocation10 + $0x2e8] ss:$44 sps:$4 sm:$0xff]  }
 0x16f   :  { %1937 = vmatprep.subr.bf16.mxu1 %v8782_v34  ;;  %v8854_v34 = vld [vmem:[#allocation10 + $0x20] ss:$44 sps:$4 sm:$0xff]  }
 0x171   :  { %1856 = vmatpush2.bf16.msra.mxu0 %v8777_v35  ;;  %v8858_v35 = vld [vmem:[#allocation10 + $0x28] ss:$44 sps:$4 sm:$0xff]  }
 0x172   :  { %1938 = vmatpush2.bf16.msra.mxu1 %v8780_v36  ;;  %1857 = vmatprep.subr.bf16.mxu0 %v8785_v37  ;;  %v8861_v36 = vld [vmem:[#allocation10 + $0x54c] ss:$44 sps:$4 sm:$0xff]   ;;  %v8859_v37 = vld [vmem:[#allocation10 + $0x548] ss:$44 sps:$4 sm:$0xff]  }
 0x173   :  { %1939 = vmatprep.subr.bf16.mxu1 %v8788_v38  ;;  %v8862_v38 = vld [vmem:[#allocation10 + $0x6b0] ss:$44 sps:$4 sm:$0xff]  }
 0x175   :  { %1858 = vmatpush2.bf16.msra.mxu0 %v8783_v39  ;;  %v8865_v39 = vld [vmem:[#allocation10 + $0x4f4] ss:$44 sps:$4 sm:$0xff]  }
 0x176   :  { %1940 = vmatpush2.bf16.msra.mxu1 %v8786_v40  ;;  %1859 = vmatprep.subr.bf16.mxu0 %v8791_v41  ;;  %v12087_v40 = vmov 0.0   ;;  %v8863_v41 = vld [vmem:[#allocation10 + $0x4f0] ss:$44 sps:$4 sm:$0xff]  }
 0x177   :  { %1941 = vmatprep.subr.bf16.mxu1 %v8794_v42  ;;  %v8866_v42 = vld [vmem:[#allocation10 + $0x658] ss:$44 sps:$4 sm:$0xff]  }
 0x179   :  { %1860 = vmatpush2.bf16.msra.mxu0 %v8789_v43  ;;  %v8869_v43 = vld [vmem:[#allocation10 + $0x49c] ss:$44 sps:$4 sm:$0xff]  }
 0x17a   :  { %1942 = vmatpush2.bf16.msra.mxu1 %v8792_v44  ;;  %1960 = vmatprep.subr.bf16.mxu0 %v8797_v45  ;;  %v8867_v44 = vld [vmem:[#allocation10 + $0x498] ss:$44 sps:$4 sm:$0xff]   ;;  %v8870_v45 = vld [vmem:[#allocation10 + $0x600] ss:$44 sps:$4 sm:$0xff]  }
 0x17b   :  { %2042 = vmatprep.subr.bf16.mxu1 %v8800_v46  ;;  %v8873_v46 = vld [vmem:[#allocation10 + $0x444] ss:$44 sps:$4 sm:$0xff]  }
 0x17c   :  { %1862 = vmatmul.mubr.bf16.vlgmr.msra.gmra.mxu0 %v10365_v26 }
 0x17d   :  { %1944 = vmatmul.mubr.bf16.vlgmr.msra.gmra.mxu1 %v10365_v26  ;;  %1961 = vmatpush1.bf16.msra.mxu0 %v8795_v47  ;;  %v8871_v47 = vld [vmem:[#allocation10 + $0x440] ss:$44 sps:$4 sm:$0xff]  }
 0x17e   :  { %2043 = vmatpush1.bf16.msra.mxu1 %v8798_v48  ;;  %1962 = vmatprep.subr.bf16.mxu0 %v8803_v49  ;;  %v8874_v48 = vld [vmem:[#allocation10 + $0x5a8] ss:$44 sps:$4 sm:$0xff]   ;;  %v8877_v49 = vld [vmem:[#allocation10 + $0x3ec] ss:$44 sps:$4 sm:$0xff]  }
 0x17f   :  { %2044 = vmatprep.subr.bf16.mxu1 %v8806_v50  ;;  %1984 = vmatprep.mubr.bf16.mxu0 %v12085_v0  ;;  %v8875_v50 = vld [vmem:[#allocation10 + $0x3e8] ss:$44 sps:$4 sm:$0xff]  }
 0x180   :  { %2066 = vmatprep.mubr.bf16.mxu1 %v12085_v0 }
 0x181   :  { %1963 = vmatpush1.bf16.msra.mxu0 %v8801_v51  ;;  %v8880_v51 = vld [vmem:[#allocation10 + $0x394] ss:$44 sps:$4 sm:$0xff]  }
 0x182   :  { %2045 = vmatpush1.bf16.msra.mxu1 %v8804_v52  ;;  %1964 = vmatprep.subr.bf16.mxu0 %v8809_v53  ;;  %v10385_v60 = vpop.f32.mrf.mxu1  ;;  %v8878_v52 = vld [vmem:[#allocation10 + $0x390] ss:$44 sps:$4 sm:$0xff]  }
 0x183   :  { %2046 = vmatprep.subr.bf16.mxu1 %v8812_v54  ;;  %v8883_v53 = vld [vmem:[#allocation10 + $0x33c] ss:$44 sps:$4 sm:$0xff]   ;;  %v8881_v54 = vld [vmem:[#allocation10 + $0x338] ss:$44 sps:$4 sm:$0xff]  }
 0x184   :  { %v10387_v1 = vpop.f32.mrf.mxu1 }
 0x185   :  { %1965 = vmatpush1.bf16.msra.mxu0 %v8807_v55  ;;  %v8886_v55 = vld [vmem:[#allocation10 + $0x2e4] ss:$44 sps:$4 sm:$0xff]  }
 0x186   :  { %2047 = vmatpush1.bf16.msra.mxu1 %v8810_v56  ;;  %1966 = vmatprep.subr.bf16.mxu0 %v8815_v57  ;;  %v1744_v3 = vpop.f32.mrf.mxu1  ;;  %v8884_v56 = vld [vmem:[#allocation10 + $0x2e0] ss:$44 sps:$4 sm:$0xff]   ;;  %v487_v57 = vlaneseq }
 0x187   :  { %2048 = vmatprep.subr.bf16.mxu1 %v8818_v58 }
 0x188   :  { %v1745_v6 = vpop.f32.mrf.mxu1 }
 0x189   :  { %1967 = vmatpush1.bf16.msra.mxu0 %v8813_v59  ;;  %v10412_v6 = vld [vmem:[#allocation12] sm:$0xff] }
 0x18a   :  { %2049 = vmatpush1.bf16.msra.mxu1 %v8816_v61  ;;  %1993 = vmatprep.subr.bf16.mxu0 %v8821_v62 }
 0x18b   :  { %8274 = vmatprep.subr.bf16.mxu1 %v8822_v63 }
 0x18c   :  { %7799 = vmatmul.mubr.msk.bf16.vlgmr.msra.gmra.mxu0 %vm237_vm0, %v10359_v20 }
 0x18d   :  { %7800 = vmatmul.mubr.msk.bf16.vlgmr.msra.gmra.mxu1 %vm237_vm0, %v10359_v20  ;;  %1994 = vmatpush1.bf16.msra.mxu0 %v8819_v2 }
 0x18e   :  { %2025 = vmatprep.mubr.bf16.mxu0 %v10367_v27  ;;  %8275 = vmatpush3.bf16.msra.mxu1 %v8823_v4 }
 0x18f   :  { %2107 = vmatprep.mubr.bf16.mxu1 %v10367_v27  ;;  %1995 = vmatprep.subr.bf16.mxu0 %v8826_v5  ;;  %v8843_v27 = vld [vmem:[#allocation10 + $0x130] ss:$44 sps:$4 sm:$0xff]  }
 0x190   :  { %8276 = vmatprep.subr.bf16.mxu1 %v8827_v7 }
 0x191   :  { %1996 = vmatpush1.bf16.msra.mxu0 %v8824_v8 }
 0x192   :  { %8277 = vmatpush3.bf16.msra.mxu1 %v8828_v9  ;;  %1997 = vmatprep.subr.bf16.mxu0 %v8831_v10 }
 0x193   :  { %8278 = vmatprep.subr.bf16.mxu1 %v8832_v11 }
 0x195   :  { %1998 = vmatpush1.bf16.msra.mxu0 %v8829_v12 }
 0x196   :  { %8279 = vmatpush3.bf16.msra.mxu1 %v8833_v13  ;;  %1999 = vmatprep.subr.bf16.mxu0 %v8836_v14 }
 0x197   :  { %8280 = vmatprep.subr.bf16.mxu1 %v8837_v15 }
 0x199   :  { %2000 = vmatpush1.bf16.msra.mxu0 %v8834_v16 }
 0x19a   :  { %8281 = vmatpush3.bf16.msra.mxu1 %v8838_v17  ;;  %2001 = vmatprep.subr.bf16.mxu0 %v8841_v18 }
 0x19b   :  { %8282 = vmatprep.subr.bf16.mxu1 %v8842_v19 }
 0x19d   :  { %2002 = vmatpush1.bf16.msra.mxu0 %v8839_v21 }
 0x19e   :  { %8283 = vmatpush3.bf16.msra.mxu1 %v8843_v27  ;;  %2003 = vmatprep.subr.bf16.mxu0 %v8846_v22 }
 0x19f   :  { %8284 = vmatprep.subr.bf16.mxu1 %v8847_v23 }
 0x1a1   :  { %2004 = vmatpush1.bf16.msra.mxu0 %v8844_v24 }
 0x1a2   :  { %8285 = vmatpush3.bf16.msra.mxu1 %v8848_v25  ;;  %2005 = vmatprep.subr.bf16.mxu0 %v8851_v28 }
 0x1a3   :  { %8286 = vmatprep.subr.bf16.mxu1 %v8852_v29 }
 0x1a5   :  { %2006 = vmatpush1.bf16.msra.mxu0 %v8849_v30 }
 0x1a6   :  { %8287 = vmatpush3.bf16.msra.mxu1 %v8853_v31  ;;  %2007 = vmatprep.subr.bf16.mxu0 %v8856_v32 }
 0x1a7   :  { %8288 = vmatprep.subr.bf16.mxu1 %v8857_v33 }
 0x1a9   :  { %2008 = vmatpush1.bf16.msra.mxu0 %v8854_v34 }
 0x1aa   :  { %8289 = vmatpush3.bf16.msra.mxu1 %v8858_v35  ;;  %2009 = vmatprep.subr.bf16.mxu0 %v8861_v36 }
 0x1ab   :  { %8425 = vmatprep.subr.bf16.mxu1 %v12087_v40 }
 0x1ad   :  { %2108 = vmatmul.mubr.bf16.vlgmr.msra.gmra.mxu1 %v10365_v26  ;;  %2010 = vmatpush2.bf16.msra.mxu0 %v8859_v37 }
 0x1ae   :  { %8426 = vmatpush3.bf16.msra.mxu1 %v8862_v38  ;;  %2011 = vmatprep.subr.bf16.mxu0 %v8865_v39 }
 0x1af   :  { %8427 = vmatprep.subr.bf16.mxu1 %v12087_v40  ;;  %8433 = vmatprep.mubr.msk.bf16.mxu1 %vm10214_vm1, %v12087_v40 }
 0x1b1   :  { %2012 = vmatpush2.bf16.msra.mxu0 %v8863_v41 }
 0x1b2   :  { %8428 = vmatpush3.bf16.msra.mxu1 %v8866_v42  ;;  %2013 = vmatprep.subr.bf16.mxu0 %v8869_v43 }
 0x1b3   :  { %8429 = vmatprep.subr.bf16.mxu1 %v12087_v40 }
 0x1b5   :  { %2014 = vmatpush2.bf16.msra.mxu0 %v8867_v44 }
 0x1b6   :  { %8430 = vmatpush3.bf16.msra.mxu1 %v8870_v45  ;;  %2015 = vmatprep.subr.bf16.mxu0 %v8873_v46 }
 0x1b7   :  { %8431 = vmatprep.subr.bf16.mxu1 %v12087_v40 }
 0x1b9   :  { %2016 = vmatpush2.bf16.msra.mxu0 %v8871_v47 }
 0x1ba   :  { %8432 = vmatpush3.bf16.msra.mxu1 %v8874_v48  ;;  %2017 = vmatprep.subr.bf16.mxu0 %v8877_v49 }
 0x1bd   :  { %8434 = vmatmul.mubr.msk.bf16.vlgmr.msra.gmra.mxu1 %vm237_vm0, %v10359_v20  ;;  %2018 = vmatpush2.bf16.msra.mxu0 %v8875_v50  ;;  %v10407_v20 = vshrl.u32 %v487_v57, 7 }
 0x1be   :  { %2019 = vmatprep.subr.bf16.mxu0 %v8880_v51  ;;  %3939 = vmatprep.mubr.bf16.mxu1 %v12085_v0 }
 0x1bf   :  { %v10410_v5 = vsub.s32 2, %v10407_v20  ;;  %v10415_v7 = vsub.s32 3, %v10407_v20  ;;  %v10422_v23 = vsub.s32 0, %v10407_v20  ;;  %v10425_v25 = vsub.s32 1, %v10407_v20 }
 0x1c0   :  { %v10434_v44 = vsub.s32 4, %v10407_v20  ;;  %v10437_v45 = vsub.s32 5, %v10407_v20 }
 0x1c1   :  { %2020 = vmatpush2.bf16.msra.mxu0 %v8878_v52  ;;  %12328 = vst [vmem:[#allocation32_spill] sm:$0xff] %v10410_v5  ;;  %12329 = vst [vmem:[#allocation33_spill] sm:$0xff] %v10415_v7  ;;  %v502_v8 = vrot.slane %v10412_v6, %v10415_v7  ;;  %v490_v30 = vrot.slane %v10412_v6, %v10422_v23  ;;  %v494_v32 = vrot.slane %v10412_v6, %v10425_v25 }
 0x1c2   :  { %2021 = vmatprep.subr.bf16.mxu0 %v8883_v53  ;;  %12330 = vst [vmem:[#allocation34_spill] sm:$0xff] %v10425_v25  ;;  %12331 = vst [vmem:[#allocation35_spill] sm:$0xff] %v10437_v45  ;;  %v506_v46 = vrot.slane %v10412_v6, %v10434_v44 }
 0x1c5   :  { %2022 = vmatpush2.bf16.msra.mxu0 %v8881_v54 }
 0x1c6   :  { %2023 = vmatprep.subr.bf16.mxu0 %v8886_v55 }
 0x1c9   :  { %2024 = vmatpush2.bf16.msra.mxu0 %v8884_v56 }
 0x1cc   :  { %2026 = vmatmul.mubr.bf16.vlgmr.msra.gmra.mxu0 %v10365_v26  ;;  %v498_v26 = vrot.slane %v10412_v6, %v10410_v5 }
 0x1ec   :  { %v1699_v58 = vpop.f32.mrf.mxu0  ;;  %v1781_v59 = vpop.f32.mrf.mxu1 }
 0x1ed   :  { %v1782_v9 = vadd.f32 %v1781_v59, %v498_v26  ;;  %v1700_v33 = vadd.f32 %v1699_v58, %v490_v30 }
 0x1ee   :  { %v1701_v61 = vpop.f32.mrf.mxu0  ;;  %v1783_v62 = vpop.f32.mrf.mxu1 }
 0x1ef   :  { %v1784_v12 = vadd.f32 %v1783_v62, %v502_v8  ;;  %v1702_v34 = vadd.f32 %v1701_v61, %v494_v32  ;;  %v1741_v35 = vadd.f32 %v10385_v60, %v1700_v33  ;;  %v510_v60 = vrot.slane %v10412_v6, %v10437_v45 }
 0x1f0   :  { %v1703_v63 = vpop.f32.mrf.mxu0  ;;  %v1785_v2 = vpop.f32.mrf.mxu1 }
 0x1f1   :  { %v1743_v36 = vadd.f32 %v10387_v1, %v1702_v34  ;;  %v2155_v37 = vmax.f32 %v1741_v35, 0.0 }
 0x1f2   :  { %v1704_v3 = vpop.f32.mrf.mxu0  ;;  %v1786_v4 = vpop.f32.mrf.mxu1 }
 0x1f3   :  { %v2156_v39 = vmax.f32 %v1743_v36, 0.0  ;;  %v10448_v4 = vsub.s32 7, %v10407_v20 }
 0x1f5   :  { %12332 = vst [vmem:[#allocation36_spill] sm:$0xff] %v10448_v4  ;;  %v518_v26 = vrot.slane %v10412_v6, %v10448_v4 }
 0x1fc   :  { %v1822_v10 = vpop.f32.mrf.mxu0  ;;  %v1904_v11 = vpop.f32.mrf.mxu1 }
 0x1fd   :  { %v1823_v13 = vadd.f32 %v1822_v10, %v1782_v9 }
 0x1fe   :  { %v1824_v14 = vpop.f32.mrf.mxu0  ;;  %v1906_v15 = vpop.f32.mrf.mxu1 }
 0x1ff   :  { %v7802_v16 = vmul.f32 -1.442695, %v1823_v13  ;;  %v1825_v17 = vadd.f32 %v1824_v14, %v1784_v12 }
 0x200   :  { %v1826_v18 = vpop.f32.mrf.mxu0  ;;  %v1908_v19 = vpop.f32.mrf.mxu1 }
 0x201   :  { %9511 = vpow2.f32 %v7802_v16  ;;  %v7803_v21 = vmul.f32 -1.442695, %v1825_v17 }
 0x202   :  { %v1827_v27 = vpop.f32.mrf.mxu0  ;;  %v1909_v22 = vpop.f32.mrf.mxu1 }
 0x203   :  { %9513 = vpow2.f32 %v7803_v21  ;;  %v484_v22 = vld [vmem:[#allocation12 + $0x8] sm:$0x7] }
 0x20e   :  { %v9512_v24 = vpop.eup %9511 }
 0x20f   :  { %v2163_v28 = vadd.f32 1.0, %v9512_v24  ;;  %v10455_v24 = vsub.s32 6, %v10407_v20  ;;  %v522_v20 = vrot.slane %v484_v22, %v10422_v23 }
 0x210   :  { %v9514_v29 = vpop.eup %9513 }
 0x211   :  { %9515 = vrcp.f32 %v2163_v28  ;;  %v2164_v31 = vadd.f32 1.0, %v9514_v29  ;;  %12333 = vst [vmem:[#allocation37_spill] sm:$0xff] %v10455_v24  ;;  %v530_v29 = vrot.slane %v484_v22, %v10410_v5  ;;  %v514_v30 = vrot.slane %v10412_v6, %v10455_v24 }
 0x213   :  { %9517 = vrcp.f32 %v2164_v31 }
 0x21e   :  { %v9516_v38 = vpop.eup %9515 }
 0x21f   :  { %v2169_v41 = vmul.f32 %v9516_v38, %v2155_v37  ;;  %v2171_v51 = vsub.f32 1.0, %v9516_v38 }
 0x220   :  { %v9518_v42 = vpop.eup %9517 }
 0x221   :  { %v2170_v43 = vmul.f32 %v9518_v42, %v2156_v39  ;;  %v2172_v58 = vsub.f32 1.0, %v9518_v42  ;;  %v526_v39 = vrot.slane %v484_v22, %v10425_v25  ;;  %v8905_v22 = vld [vmem:[#allocation13 + $0x48] ss:$36 sps:$4 sm:$0xff]  }
 0x23c   :  { %v1863_v47 = vpop.f32.mrf.mxu0 }
 0x23d   :  { %v1864_v1 = vadd.f32 %v1863_v47, %v506_v46  ;;  %v1945_v48 = vpop.f32.mrf.mxu1 }
 0x23e   :  { %v1865_v49 = vpop.f32.mrf.mxu0  ;;  %v1946_v35 = vadd.f32 %v1945_v48, %v514_v30  ;;  %v8929_v30 = vld [vmem:[#allocation13 + $0x5a0] ss:$36 sps:$4 sm:$0xff]  }
 0x23f   :  { %v1905_v50 = vadd.f32 %v1904_v11, %v1864_v1  ;;  %v1866_v52 = vadd.f32 %v1865_v49, %v510_v60  ;;  %v1947_v53 = vpop.f32.mrf.mxu1 }
 0x240   :  { %v1867_v54 = vpop.f32.mrf.mxu0  ;;  %v1948_v9 = vadd.f32 %v1947_v53, %v518_v26  ;;  %v8895_v26 = vld [vmem:[#allocation13 + $0x16c] ss:$36 sps:$4 sm:$0xff]  }
 0x241   :  { %v2173_v55 = vmul.f32 %v2171_v51, %v1905_v50  ;;  %v1907_v56 = vadd.f32 %v1906_v15, %v1866_v52  ;;  %v1949_v59 = vpop.f32.mrf.mxu1  ;;  %v8029_v54 = vld [vmem:[#allocation19] ss:$0 sm:$0xff] }
 0x242   :  { %v1868_v61 = vpop.f32.mrf.mxu0  ;;  %v8889_v59 = vld [vmem:[#allocation13 + $0x1fc] ss:$36 sps:$4 sm:$0xff]  }
 0x243   :  { %v10443_v62 = vadd.f32 %v2173_v55, %v2169_v41  ;;  %v2174_v63 = vmul.f32 %v2172_v58, %v1907_v56  ;;  %v1950_v2 = vpop.f32.mrf.mxu1  ;;  %v4399_v55 = vmul.f32 0.0, %v8029_v54  ;;  %v8887_v58 = vld [vmem:[#allocation13 + $0x1f8] ss:$36 sps:$4 sm:$0xff]   ;;  %3866 = vmatprep.subr.bf16.mxu0 %v8889_v59  ;;  %v8955_v54 = vld [vmem:[#allocation13 + $0x484] ss:$36 sps:$4 sm:$0xff]  }
 0x244   :  { %v8892_v61 = vld [vmem:[#allocation13 + $0x1b4] ss:$36 sps:$4 sm:$0xff]   ;;  %3867 = vmatpush1.bf16.msra.mxu0 %v8887_v58  ;;  %v8893_v2 = vld [vmem:[#allocation13 + $0x168] ss:$36 sps:$4 sm:$0xff]   ;;  %v8956_v58 = vld [vmem:[#allocation13 + $0x240] ss:$36 sps:$4 sm:$0xff]  }
 0x245   :  { %v10445_v3 = vadd.f32 %v2174_v63, %v2170_v43  ;;  %v4401_v56 = vsel %vm4400_vm2, %v4399_v55, 0.0  ;;  %v8890_v63 = vld [vmem:[#allocation13 + $0x1b0] ss:$36 sps:$4 sm:$0xff]   ;;  %3868 = vmatprep.subr.bf16.mxu0 %v8892_v61  ;;  %v8953_v55 = vld [vmem:[#allocation13 + $0x480] ss:$36 sps:$4 sm:$0xff]  }
 0x246   :  { %v8961_v61 = vld [vmem:[#allocation13 + $0x204] ss:$36 sps:$4 sm:$0xff]  }
 0x248   :  { %3869 = vmatpush1.bf16.msra.mxu0 %v8890_v63 }
 0x249   :  { %3870 = vmatprep.subr.bf16.mxu0 %v8895_v26  ;;  %v8964_v26 = vld [vmem:[#allocation13 + $0x684] ss:$36 sps:$4 sm:$0xff]  }
 0x24c   :  { %v1986_v8 = vpop.f32.mrf.mxu0  ;;  %3871 = vmatpush1.bf16.msra.mxu0 %v8893_v2 }
 0x24d   :  { %v2068_v10 = vpop.f32.mrf.mxu1  ;;  %v10461_v37 = vadd.f32 %v1986_v8, %v1946_v35  ;;  %v8896_v8 = vld [vmem:[#allocation13 + $0x120] ss:$36 sps:$4 sm:$0xff]   ;;  %v8914_v35 = vld [vmem:[#allocation13 + $0x438] ss:$36 sps:$4 sm:$0xff]  }
 0x24e   :  { %v1988_v11 = vpop.f32.mrf.mxu0 }
 0x24f   :  { %v10452_v12 = vadd.f32 %v1988_v11, %v1948_v9  ;;  %v2070_v13 = vpop.f32.mrf.mxu1  ;;  %v8898_v9 = vld [vmem:[#allocation13 + $0x124] ss:$36 sps:$4 sm:$0xff]   ;;  %v8899_v11 = vld [vmem:[#allocation13 + $0xd8] ss:$36 sps:$4 sm:$0xff]  }
 0x250   :  { %v1990_v14 = vpop.f32.mrf.mxu0  ;;  %3872 = vmatprep.subr.bf16.mxu0 %v8898_v9 }
 0x251   :  { %v2072_v15 = vpop.f32.mrf.mxu1  ;;  %3873 = vmatpush1.bf16.msra.mxu0 %v8896_v8  ;;  %v8913_v14 = vld [vmem:[#allocation13 + $0x67c] ss:$36 sps:$4 sm:$0xff]  }
 0x252   :  { %v1991_v16 = vpop.f32.mrf.mxu0  ;;  %v8904_v15 = vld [vmem:[#allocation13 + $0x94] ss:$36 sps:$4 sm:$0xff]   ;;  %3907 = vmatprep.subr.bf16.mxu1 %v8913_v14 }
 0x253   :  { %v2073_v17 = vpop.f32.mrf.mxu1  ;;  %v8919_v16 = vld [vmem:[#allocation13 + $0x634] ss:$36 sps:$4 sm:$0xff]  }
 0x254   :  { %v8917_v17 = vld [vmem:[#allocation13 + $0x630] ss:$36 sps:$4 sm:$0xff]  }
 0x26d   :  { %v8290_v18 = vpop.f32.mrf.mxu1 }
 0x26f   :  { %v8291_v19 = vpop.f32.mrf.mxu1 }
 0x270   :  { %v8292_v28 = vadd.f32 %v8291_v19, %v8290_v18  ;;  %v8902_v18 = vld [vmem:[#allocation13 + $0x90] ss:$36 sps:$4 sm:$0xff]  }
 0x271   :  { %v8293_v21 = vpop.f32.mrf.mxu1  ;;  %v8925_v19 = vld [vmem:[#allocation13 + $0x5ec] ss:$36 sps:$4 sm:$0xff]  }
 0x272   :  { %v2110_v31 = vadd.f32 %v8292_v28, %v530_v29  ;;  %v8907_v21 = vld [vmem:[#allocation13 + $0x4c] ss:$36 sps:$4 sm:$0xff]   ;;  %v8931_v28 = vld [vmem:[#allocation13 + $0x5a4] ss:$36 sps:$4 sm:$0xff]  }
 0x273   :  { %v8294_v27 = vpop.f32.mrf.mxu1  ;;  %v8910_v29 = vld [vmem:[#allocation13 + $0x4] ss:$36 sps:$4 sm:$0xff]  }
 0x274   :  { %v8923_v27 = vld [vmem:[#allocation13 + $0x5e8] ss:$36 sps:$4 sm:$0xff]  }
 0x27d   :  { %v2149_v32 = vpop.f32.mrf.mxu1 }
 0x27e   :  { %v2150_v33 = vadd.f32 %v2149_v32, %v2110_v31  ;;  %v8908_v31 = vld [vmem:[#allocation13] ss:$36 sps:$4 sm:$0xff]  }
 0x27f   :  { %v8435_v34 = vpop.f32.mrf.mxu1  ;;  %v8937_v32 = vld [vmem:[#allocation13 + $0x55c] ss:$36 sps:$4 sm:$0xff]  }
 0x280   :  { %2195 = vrot.lane.b32.xlu1 %v2150_v33, %s10212_s13  ;;  %v8916_v33 = vld [vmem:[#allocation13 + $0x43c] ss:$36 sps:$4 sm:$0xff]  }
 0x281   :  { %v2152_v36 = vpop.f32.mrf.mxu1  ;;  %v8935_v34 = vld [vmem:[#allocation13 + $0x558] ss:$36 sps:$4 sm:$0xff]  }
 0x282   :  { %v8943_v36 = vld [vmem:[#allocation13 + $0x514] ss:$36 sps:$4 sm:$0xff]  }
 0x283   :  { %v8436_v38 = vpop.f32.mrf.mxu1 }
 0x284   :  { %2178 = vrot.lane.b32.xlu1 %v10461_v37, %s10212_s13  ;;  %v8922_v38 = vld [vmem:[#allocation13 + $0x3f4] ss:$36 sps:$4 sm:$0xff]  }
 0x28c   :  { %v2027_v41 = vpop.f32.mrf.mxu0 }
 0x28d   :  { %v2028_v6 = vadd.f32 %v2027_v41, %v522_v20  ;;  %v8941_v20 = vld [vmem:[#allocation13 + $0x510] ss:$36 sps:$4 sm:$0xff]  }
 0x28e   :  { %v2029_v42 = vpop.f32.mrf.mxu0  ;;  %v8949_v41 = vld [vmem:[#allocation13 + $0x4cc] ss:$36 sps:$4 sm:$0xff]  }
 0x28f   :  { %v2069_v43 = vadd.f32 %v2068_v10, %v2028_v6  ;;  %v2030_v46 = vadd.f32 %v2029_v42, %v526_v39  ;;  %v8901_v10 = vld [vmem:[#allocation13 + $0xdc] ss:$36 sps:$4 sm:$0xff]   ;;  %v8920_v39 = vld [vmem:[#allocation13 + $0x3f0] ss:$36 sps:$4 sm:$0xff]   ;;  %v8947_v42 = vld [vmem:[#allocation13 + $0x4c8] ss:$36 sps:$4 sm:$0xff]  }
 0x290   :  { %v2031_v60 = vpop.f32.mrf.mxu0  ;;  %3874 = vmatprep.subr.bf16.mxu0 %v8901_v10  ;;  %v8928_v6 = vld [vmem:[#allocation13 + $0x3ac] ss:$36 sps:$4 sm:$0xff]  }
 0x291   :  { %2189 = vrot.lane.b32.xlu0 %v2069_v43, %s10212_s13  ;;  %v2071_v47 = vadd.f32 %v2070_v13, %v2030_v46  ;;  %v8911_v13 = vld [vmem:[#allocation13 + $0x678] ss:$36 sps:$4 sm:$0xff]   ;;  %3875 = vmatpush1.bf16.msra.mxu0 %v8899_v11  ;;  %v8934_v46 = vld [vmem:[#allocation13 + $0x364] ss:$36 sps:$4 sm:$0xff]  }
 0x292   :  { %v2032_v1 = vpop.f32.mrf.mxu0  ;;  %3908 = vmatpush1.bf16.msra.mxu1 %v8911_v13  ;;  %3876 = vmatprep.subr.bf16.mxu0 %v8904_v15  ;;  %v8932_v60 = vld [vmem:[#allocation13 + $0x360] ss:$36 sps:$4 sm:$0xff]   ;;  %v8030_v15 = vld [vmem:[#allocation21] ss:$0 sm:$0xff] }
 0x293   :  { %3909 = vmatprep.subr.bf16.mxu1 %v8919_v16  ;;  %v8938_v1 = vld [vmem:[#allocation13 + $0x318] ss:$36 sps:$4 sm:$0xff]  }
 0x295   :  { %3877 = vmatpush1.bf16.msra.mxu0 %v8902_v18 }
 0x296   :  { %3910 = vmatpush1.bf16.msra.mxu1 %v8917_v17  ;;  %3878 = vmatprep.subr.bf16.mxu0 %v8907_v21 }
 0x297   :  { %3911 = vmatprep.subr.bf16.mxu1 %v8925_v19 }
 0x299   :  { %3879 = vmatpush1.bf16.msra.mxu0 %v8905_v22 }
 0x29a   :  { %3912 = vmatpush1.bf16.msra.mxu1 %v8923_v27  ;;  %3880 = vmatprep.subr.bf16.mxu0 %v8910_v29 }
 0x29b   :  { %3913 = vmatprep.subr.bf16.mxu1 %v8931_v28 }
 0x29d   :  { %3881 = vmatpush1.bf16.msra.mxu0 %v8908_v31 }
 0x29e   :  { %3914 = vmatpush1.bf16.msra.mxu1 %v8929_v30  ;;  %3882 = vmatprep.subr.bf16.mxu0 %v8916_v33 }
 0x29f   :  { %3915 = vmatprep.subr.bf16.mxu1 %v8937_v32  ;;  %v8959_v32 = vld [vmem:[#allocation13 + $0x200] ss:$36 sps:$4 sm:$0xff]  }
 0x2a1   :  { %3883 = vmatpush2.bf16.msra.mxu0 %v8914_v35  ;;  %v8962_v35 = vld [vmem:[#allocation13 + $0x680] ss:$36 sps:$4 sm:$0xff]  }
 0x2a2   :  { %3916 = vmatpush1.bf16.msra.mxu1 %v8935_v34  ;;  %3884 = vmatprep.subr.bf16.mxu0 %v8922_v38  ;;  %v8967_v38 = vld [vmem:[#allocation13 + $0x1bc] ss:$36 sps:$4 sm:$0xff]  }
 0x2a3   :  { %3917 = vmatprep.subr.bf16.mxu1 %v8943_v36  ;;  %v10485_v36 = vpack.c.bf16 %v10443_v62, %v10443_v62  ;;  %v8971_v62 = vld [vmem:[#allocation13 + $0x170] ss:$36 sps:$4 sm:$0xff]  }
 0x2a5   :  { %3885 = vmatpush2.bf16.msra.mxu0 %v8920_v39  ;;  %v8968_v39 = vld [vmem:[#allocation13 + $0x638] ss:$36 sps:$4 sm:$0xff]  }
 0x2a6   :  { %3918 = vmatpush1.bf16.msra.mxu1 %v8941_v20  ;;  %3886 = vmatprep.subr.bf16.mxu0 %v8928_v6  ;;  %v8970_v20 = vld [vmem:[#allocation13 + $0x63c] ss:$36 sps:$4 sm:$0xff]   ;;  %v8976_v6 = vld [vmem:[#allocation13 + $0x5f4] ss:$36 sps:$4 sm:$0xff]  }
 0x2a7   :  { %3919 = vmatprep.subr.bf16.mxu1 %v8949_v41  ;;  %v8973_v41 = vld [vmem:[#allocation13 + $0x174] ss:$36 sps:$4 sm:$0xff]  }
 0x2aa   :  { %3920 = vmatpush1.bf16.msra.mxu1 %v8947_v42  ;;  %v8974_v42 = vld [vmem:[#allocation13 + $0x5f0] ss:$36 sps:$4 sm:$0xff]  }
 0x2ab   :  { %3921 = vmatprep.subr.bf16.mxu1 %v8955_v54  ;;  %v8992_v54 = vld [vmem:[#allocation13 + $0x518] ss:$36 sps:$4 sm:$0xff]  }
 0x2ae   :  { %3922 = vmatpush1.bf16.msra.mxu1 %v8953_v55  ;;  %v8997_v55 = vld [vmem:[#allocation13 + $0x54] ss:$36 sps:$4 sm:$0xff]  }
 0x2af   :  { %3948 = vmatprep.subr.bf16.mxu1 %v8961_v61  ;;  %v9003_v61 = vld [vmem:[#allocation13 + $0xc] ss:$36 sps:$4 sm:$0xff]  }
 0x2f2   :  { %v2196_v48 = vpop.permute.xlu1 %2195 }
 0x2f3   :  { %v2198_v49 = vmax.f32 %v2071_v47, %v2196_v48  ;;  %v8946_v48 = vld [vmem:[#allocation13 + $0x2d4] ss:$36 sps:$4 sm:$0xff]  }
 0x2f5   :  { %2204 = vrot.lane.b32.xlu1 %v2198_v49, %s10212_s13  ;;  %v8944_v49 = vld [vmem:[#allocation13 + $0x2d0] ss:$36 sps:$4 sm:$0xff]  }
 0x303   :  { %v2190_v50 = vpop.permute.xlu0 %2189 }
 0x304   :  { %v2192_v51 = vmax.f32 %v2069_v43, %v2190_v50  ;;  %v8926_v43 = vld [vmem:[#allocation13 + $0x3a8] ss:$36 sps:$4 sm:$0xff]  }
 0x305   :  { %3887 = vmatpush2.bf16.msra.mxu0 %v8926_v43  ;;  %v8952_v50 = vld [vmem:[#allocation13 + $0x28c] ss:$36 sps:$4 sm:$0xff]  }
 0x306   :  { %v2193_v52 = vmax.f32 %v2192_v51, %v2071_v47  ;;  %3888 = vmatprep.subr.bf16.mxu0 %v8934_v46  ;;  %v8940_v47 = vld [vmem:[#allocation13 + $0x31c] ss:$36 sps:$4 sm:$0xff]   ;;  %v8950_v51 = vld [vmem:[#allocation13 + $0x288] ss:$36 sps:$4 sm:$0xff]  }
 0x307   :  { %v8979_v43 = vld [vmem:[#allocation13 + $0x12c] ss:$36 sps:$4 sm:$0xff]  }
 0x308   :  { %v8546_v53 = vpack.i.bf16 %v2193_v52, %v10452_v12  ;;  %v2179_v52 = vpop.permute.xlu1 %2178  ;;  %v8982_v46 = vld [vmem:[#allocation13 + $0x5ac] ss:$36 sps:$4 sm:$0xff]  }
 0x309   :  { %3889 = vmatpush2.bf16.msra.mxu0 %v8932_v60  ;;  %v8977_v60 = vld [vmem:[#allocation13 + $0x128] ss:$36 sps:$4 sm:$0xff]  }
 0x30a   :  { %8547 = vrot.lane.b32.xlu0 %v8546_v53, %s10212_s13  ;;  %3890 = vmatprep.subr.bf16.mxu0 %v8940_v47  ;;  %v2181_v53 = vmax.f32 %v10461_v37, %v2179_v52  ;;  %v8980_v47 = vld [vmem:[#allocation13 + $0x5a8] ss:$36 sps:$4 sm:$0xff]   ;;  %v8994_v52 = vld [vmem:[#allocation13 + $0x51c] ss:$36 sps:$4 sm:$0xff]  }
 0x30c   :  { %v2182_v63 = vmax.f32 %v2181_v53, %v10452_v12  ;;  %v8989_v53 = vld [vmem:[#allocation13 + $0x98] ss:$36 sps:$4 sm:$0xff]  }
 0x30d   :  { %3891 = vmatpush2.bf16.msra.mxu0 %v8938_v1  ;;  %v8985_v1 = vld [vmem:[#allocation13 + $0xe4] ss:$36 sps:$4 sm:$0xff]  }
 0x30e   :  { %3892 = vmatprep.subr.bf16.mxu0 %v8946_v48  ;;  %v8988_v48 = vld [vmem:[#allocation13 + $0x564] ss:$36 sps:$4 sm:$0xff]  }
 0x311   :  { %3893 = vmatpush2.bf16.msra.mxu0 %v8944_v49  ;;  %v8983_v49 = vld [vmem:[#allocation13 + $0xe0] ss:$36 sps:$4 sm:$0xff]  }
 0x312   :  { %3894 = vmatprep.subr.bf16.mxu0 %v8952_v50  ;;  %v8986_v50 = vld [vmem:[#allocation13 + $0x560] ss:$36 sps:$4 sm:$0xff]  }
 0x315   :  { %3895 = vmatpush2.bf16.msra.mxu0 %v8950_v51  ;;  %v8991_v51 = vld [vmem:[#allocation13 + $0x9c] ss:$36 sps:$4 sm:$0xff]  }
 0x319   :  { %4402 = vadd.xlane.f32.xlu1 %v4401_v56  ;;  %v8958_v56 = vld [vmem:[#allocation13 + $0x244] ss:$36 sps:$4 sm:$0xff]  }
 0x31a   :  { %3896 = vmatprep.subr.bf16.mxu0 %v8958_v56  ;;  %v9000_v56 = vld [vmem:[#allocation13 + $0x4d4] ss:$36 sps:$4 sm:$0xff]  }
 0x31b   :  { %3897 = vmatpush2.bf16.msra.mxu0 %v8956_v58  ;;  %v8995_v58 = vld [vmem:[#allocation13 + $0x50] ss:$36 sps:$4 sm:$0xff]  }
 0x31c   :  { %3989 = vmatprep.subr.bf16.mxu0 %v8964_v26  ;;  %v9004_v26 = vld [vmem:[#allocation13 + $0x488] ss:$36 sps:$4 sm:$0xff]  }
 0x367   :  { %v2205_v8 = vpop.permute.xlu1 %2204 }
 0x368   :  { %v2209_v11 = vmax.f32 %v2205_v8, 0.0  ;;  %v9009_v8 = vld [vmem:[#allocation13 + $0x444] ss:$36 sps:$4 sm:$0xff]  }
 0x37c   :  { %v8548_v59 = vpop.permute.xlu0 %8547 }
 0x37d   :  { %v8549_v2 = vunpack.i.l.bf16 %v8548_v59  ;;  %v8550_v9 = vunpack.i.h.bf16 %v8548_v59  ;;  %v8998_v59 = vld [vmem:[#allocation13 + $0x4d0] ss:$36 sps:$4 sm:$0xff]  }
 0x37f   :  { %v2187_v10 = vmax.f32 %v2182_v63, %v8549_v2  ;;  %v9006_v63 = vld [vmem:[#allocation13 + $0x48c] ss:$36 sps:$4 sm:$0xff]  }
 0x380   :  { %v9001_v2 = vld [vmem:[#allocation13 + $0x8] ss:$36 sps:$4 sm:$0xff]  }
 0x381   :  { %v2207_v37 = vsel %vm237_vm0, %v2187_v10, %v8550_v9  ;;  %v9012_v9 = vld [vmem:[#allocation13 + $0x20c] ss:$36 sps:$4 sm:$0xff]   ;;  %v9007_v10 = vld [vmem:[#allocation13 + $0x440] ss:$36 sps:$4 sm:$0xff]  }
 0x382   :  { %v2208_v13 = vmax.f32 %v2207_v37, 0.0  ;;  %v9010_v37 = vld [vmem:[#allocation13 + $0x208] ss:$36 sps:$4 sm:$0xff]  }
 0x384   :  { %v8551_v14 = vpack.i.bf16 %v2209_v11, %v2208_v13  ;;  %v9015_v11 = vld [vmem:[#allocation13 + $0x3fc] ss:$36 sps:$4 sm:$0xff]   ;;  %v9018_v13 = vld [vmem:[#allocation13 + $0x1c4] ss:$36 sps:$4 sm:$0xff]  }
 0x386   :  { %8552 = vrot.lane.b32.xlu0 %v8551_v14, %s10212_s13  ;;  %v9013_v14 = vld [vmem:[#allocation13 + $0x3f8] ss:$36 sps:$4 sm:$0xff]  }
 0x3a2   :  { %v4403_v16 = vpop.xlane.xlu1 %4402 }
 0x3a3   :  { %v4410_v17 = vadd.f32 %v8030_v15, %v4403_v16  ;;  %v9016_v15 = vld [vmem:[#allocation13 + $0x1c0] ss:$36 sps:$4 sm:$0xff]   ;;  %v9021_v16 = vld [vmem:[#allocation13 + $0x3b4] ss:$36 sps:$4 sm:$0xff]  }
 0x3a5   :  { %v8031_v18 = vmul.f32 -1.442695, %v4410_v17  ;;  %v9024_v17 = vld [vmem:[#allocation13 + $0x17c] ss:$36 sps:$4 sm:$0xff]  }
 0x3a7   :  { %9519 = vpow2.f32 %v8031_v18  ;;  %v9019_v18 = vld [vmem:[#allocation13 + $0x3b0] ss:$36 sps:$4 sm:$0xff]  }
 0x3b4   :  { %v9520_v12 = vpop.eup %9519 }
 0x3b5   :  { %v4414_v19 = vadd.f32 1.0, %v9520_v12  ;;  %v9022_v12 = vld [vmem:[#allocation13 + $0x178] ss:$36 sps:$4 sm:$0xff]  }
 0x3b7   :  { %9521 = vrcp.f32 %v4414_v19  ;;  %v9027_v19 = vld [vmem:[#allocation13 + $0x36c] ss:$36 sps:$4 sm:$0xff]  }
 0x3c4   :  { %v9522_v21 = vpop.eup %9521 }
 0x3c5   :  { %4422 = vperm.xlu0 %8556, %v9522_v21   ;;  %v4426_v27 = vsub.f32 1.0, %v9522_v21  ;;  %v9030_v21 = vld [vmem:[#allocation13 + $0x134] ss:$36 sps:$4 sm:$0xff]  }
 0x3c9   :  { %4429 = vperm.xlu0 %8556, %v4426_v27   ;;  %v9025_v27 = vld [vmem:[#allocation13 + $0x368] ss:$36 sps:$4 sm:$0xff]  }
 0x3f8   :  { %v8553_v22 = vpop.permute.xlu0 %8552 }
 0x3f9   :  { %v8555_v28 = vunpack.i.h.bf16 %v8553_v22  ;;  %v8554_v29 = vunpack.i.l.bf16 %v8553_v22  ;;  %v9028_v22 = vld [vmem:[#allocation13 + $0x130] ss:$36 sps:$4 sm:$0xff]  }
 0x3fb   :  { %v2216_v30 = vsel %vm237_vm0, %v8554_v29, %v8555_v28  ;;  %v2219_v31 = vsel %vm237_vm0, %v10445_v3, %v8554_v29  ;;  %v8965_v3 = vld [vmem:[#allocation13 + $0x1b8] ss:$36 sps:$4 sm:$0xff]   ;;  %v9033_v28 = vld [vmem:[#allocation13 + $0x324] ss:$36 sps:$4 sm:$0xff]   ;;  %v9036_v29 = vld [vmem:[#allocation13 + $0xec] ss:$36 sps:$4 sm:$0xff]  }
 0x3fc   :  { %v10479_v33 = vpack.c.bf16 %v2219_v31, %v2219_v31  ;;  %v10481_v34 = vpack.c.bf16 %v2216_v30, %v2216_v30  ;;  %v9031_v30 = vld [vmem:[#allocation13 + $0x320] ss:$36 sps:$4 sm:$0xff]   ;;  %v9034_v31 = vld [vmem:[#allocation13 + $0xe8] ss:$36 sps:$4 sm:$0xff]  }
 0x3fe   :  { %3898 = vmatprep.mubr.bf16.mxu0 %v10479_v33  ;;  %3940 = vmatmul.mubr.bf16.vlgmr.msra.gmra.mxu1 %v10481_v34 }
 0x3ff   :  { %3949 = vmatpush1.bf16.msra.mxu1 %v8959_v32  ;;  %3899 = vmatmul.mubr.bf16.vlgmr.msra.gmra.mxu0 %v10485_v36  ;;  %v9039_v32 = vld [vmem:[#allocation13 + $0x2dc] ss:$36 sps:$4 sm:$0xff]  }
 0x400   :  { %3980 = vmatprep.mubr.bf16.mxu1 %v10479_v33  ;;  %3990 = vmatpush1.bf16.msra.mxu0 %v8962_v35  ;;  %v9042_v35 = vld [vmem:[#allocation13 + $0xa4] ss:$36 sps:$4 sm:$0xff]  }
 0x401   :  { %3950 = vmatprep.subr.bf16.mxu1 %v8967_v38  ;;  %3991 = vmatprep.subr.bf16.mxu0 %v8970_v20  ;;  %v9037_v38 = vld [vmem:[#allocation13 + $0x2d8] ss:$36 sps:$4 sm:$0xff]   ;;  %v9040_v20 = vld [vmem:[#allocation13 + $0xa0] ss:$36 sps:$4 sm:$0xff]  }
 0x402   :  { %4021 = vmatprep.mubr.bf16.mxu0 %v12085_v0 }
 0x403   :  { %3951 = vmatpush1.bf16.msra.mxu1 %v8965_v3  ;;  %v9045_v3 = vld [vmem:[#allocation13 + $0x294] ss:$36 sps:$4 sm:$0xff]  }
 0x404   :  { %3992 = vmatpush1.bf16.msra.mxu0 %v8968_v39  ;;  %3952 = vmatprep.subr.bf16.mxu1 %v8973_v41  ;;  %v9048_v39 = vld [vmem:[#allocation13 + $0x5c] ss:$36 sps:$4 sm:$0xff]   ;;  %v9043_v41 = vld [vmem:[#allocation13 + $0x290] ss:$36 sps:$4 sm:$0xff]  }
 0x405   :  { %3993 = vmatprep.subr.bf16.mxu0 %v8976_v6  ;;  %v9046_v6 = vld [vmem:[#allocation13 + $0x58] ss:$36 sps:$4 sm:$0xff]  }
 0x407   :  { %3953 = vmatpush1.bf16.msra.mxu1 %v8971_v62  ;;  %v9051_v62 = vld [vmem:[#allocation13 + $0x24c] ss:$36 sps:$4 sm:$0xff]  }
 0x408   :  { %3994 = vmatpush1.bf16.msra.mxu0 %v8974_v42  ;;  %3954 = vmatprep.subr.bf16.mxu1 %v8979_v43  ;;  %v9054_v42 = vld [vmem:[#allocation13 + $0x14] ss:$36 sps:$4 sm:$0xff]   ;;  %v9049_v43 = vld [vmem:[#allocation13 + $0x248] ss:$36 sps:$4 sm:$0xff]  }
 0x409   :  { %3995 = vmatprep.subr.bf16.mxu0 %v8982_v46  ;;  %v9052_v46 = vld [vmem:[#allocation13 + $0x10] ss:$36 sps:$4 sm:$0xff]  }
 0x40b   :  { %3955 = vmatpush1.bf16.msra.mxu1 %v8977_v60  ;;  %v9057_v60 = vld [vmem:[#allocation13 + $0x68c] ss:$36 sps:$4 sm:$0xff]  }
 0x40c   :  { %3996 = vmatpush1.bf16.msra.mxu0 %v8980_v47  ;;  %3956 = vmatprep.subr.bf16.mxu1 %v8985_v1  ;;  %v9060_v47 = vld [vmem:[#allocation13 + $0x44c] ss:$36 sps:$4 sm:$0xff]  }
 0x40d   :  { %3997 = vmatprep.subr.bf16.mxu0 %v8988_v48  ;;  %v9055_v1 = vld [vmem:[#allocation13 + $0x688] ss:$36 sps:$4 sm:$0xff]   ;;  %v10495_v48 = vand.u32 127, %v487_v57  ;;  %v9069_v57 = vld [vmem:[#allocation13 + $0x5fc] ss:$36 sps:$4 sm:$0xff]  }
 0x40f   :  { %3957 = vmatpush1.bf16.msra.mxu1 %v8983_v49  ;;  %12334 = vst [vmem:[#allocation38_spill] sm:$0xff] %v10495_v48  ;;  %v9058_v49 = vld [vmem:[#allocation13 + $0x448] ss:$36 sps:$4 sm:$0xff]   ;;  %vm4417_vm3 = vcmp.eq.s32.totalorder %v10495_v48, 0  ;;  %v10761_v48 = vld [vmem:[#allocation15 + $0x260] ss:$36 sps:$4 sm:$0xff]  }
 0x410   :  { %3998 = vmatpush1.bf16.msra.mxu0 %v8986_v50  ;;  %3958 = vmatprep.subr.bf16.mxu1 %v8991_v51  ;;  %v9063_v50 = vld [vmem:[#allocation13 + $0x644] ss:$36 sps:$4 sm:$0xff]   ;;  %12359 = vst [vmem:[#allocation63_spill] sm:$0xff] %v10761_v48 }
 0x411   :  { %3999 = vmatprep.subr.bf16.mxu0 %v8994_v52  ;;  %v9066_v51 = vld [vmem:[#allocation13 + $0x404] ss:$36 sps:$4 sm:$0xff]  }
 0x412   :  { %v9061_v52 = vld [vmem:[#allocation13 + $0x640] ss:$36 sps:$4 sm:$0xff]  }
 0x413   :  { %3959 = vmatpush1.bf16.msra.mxu1 %v8989_v53 }
 0x414   :  { %4000 = vmatpush1.bf16.msra.mxu0 %v8992_v54  ;;  %3960 = vmatprep.subr.bf16.mxu1 %v8997_v55  ;;  %v9064_v54 = vld [vmem:[#allocation13 + $0x400] ss:$36 sps:$4 sm:$0xff]  }
 0x415   :  { %4001 = vmatprep.subr.bf16.mxu0 %v9000_v56  ;;  %v9072_v55 = vld [vmem:[#allocation13 + $0x3bc] ss:$36 sps:$4 sm:$0xff]   ;;  %v10501_v56 = vsel %vm4417_vm3, 1.0, %v12087_v40 }
 0x417   :  { %3961 = vmatpush1.bf16.msra.mxu1 %v8995_v58 }
 0x418   :  { %4002 = vmatpush1.bf16.msra.mxu0 %v8998_v59  ;;  %3962 = vmatprep.subr.bf16.mxu1 %v9003_v61  ;;  %v9067_v59 = vld [vmem:[#allocation13 + $0x5f8] ss:$36 sps:$4 sm:$0xff]  }
 0x419   :  { %4003 = vmatprep.subr.bf16.mxu0 %v9006_v63  ;;  %v9070_v63 = vld [vmem:[#allocation13 + $0x3b8] ss:$36 sps:$4 sm:$0xff]  }
 0x41b   :  { %3963 = vmatpush1.bf16.msra.mxu1 %v9001_v2  ;;  %v9075_v2 = vld [vmem:[#allocation13 + $0x5b4] ss:$36 sps:$4 sm:$0xff]  }
 0x41c   :  { %4004 = vmatpush1.bf16.msra.mxu0 %v9004_v26  ;;  %3964 = vmatprep.subr.bf16.mxu1 %v9009_v8  ;;  %v9078_v8 = vld [vmem:[#allocation13 + $0x374] ss:$36 sps:$4 sm:$0xff]  }
 0x41d   :  { %4030 = vmatprep.subr.bf16.mxu0 %v9012_v9 }
 0x41f   :  { %3965 = vmatpush2.bf16.msra.mxu1 %v9007_v10  ;;  %4022 = vmatmul.mubr.bf16.vlgmr.msra.gmra.mxu0 %v10481_v34  ;;  %v9073_v10 = vld [vmem:[#allocation13 + $0x5b0] ss:$36 sps:$4 sm:$0xff]  }
 0x420   :  { %4031 = vmatpush1.bf16.msra.mxu0 %v9010_v37  ;;  %4062 = vmatprep.mubr.bf16.mxu0 %v10479_v33  ;;  %v9076_v37 = vld [vmem:[#allocation13 + $0x370] ss:$36 sps:$4 sm:$0xff]  }
 0x421   :  { %3966 = vmatprep.subr.bf16.mxu1 %v9015_v11  ;;  %4032 = vmatprep.subr.bf16.mxu0 %v9018_v13  ;;  %v9081_v11 = vld [vmem:[#allocation13 + $0x56c] ss:$36 sps:$4 sm:$0xff]  }
 0x422   :  { %v9084_v13 = vld [vmem:[#allocation13 + $0x32c] ss:$36 sps:$4 sm:$0xff]  }
 0x423   :  { %3967 = vmatpush2.bf16.msra.mxu1 %v9013_v14  ;;  %v9079_v14 = vld [vmem:[#allocation13 + $0x568] ss:$36 sps:$4 sm:$0xff]  }
 0x424   :  { %4033 = vmatpush1.bf16.msra.mxu0 %v9016_v15  ;;  %3968 = vmatprep.subr.bf16.mxu1 %v9021_v16  ;;  %v9082_v15 = vld [vmem:[#allocation13 + $0x328] ss:$36 sps:$4 sm:$0xff]  }
 0x425   :  { %4034 = vmatprep.subr.bf16.mxu0 %v9024_v17  ;;  %v9087_v16 = vld [vmem:[#allocation13 + $0x524] ss:$36 sps:$4 sm:$0xff]  }
 0x426   :  { %v9090_v17 = vld [vmem:[#allocation13 + $0x2e4] ss:$36 sps:$4 sm:$0xff]  }
 0x427   :  { %3969 = vmatpush2.bf16.msra.mxu1 %v9019_v18  ;;  %v9085_v18 = vld [vmem:[#allocation13 + $0x520] ss:$36 sps:$4 sm:$0xff]  }
 0x428   :  { %4035 = vmatpush1.bf16.msra.mxu0 %v9022_v12  ;;  %3970 = vmatprep.subr.bf16.mxu1 %v9027_v19  ;;  %v9088_v12 = vld [vmem:[#allocation13 + $0x2e0] ss:$36 sps:$4 sm:$0xff]  }
 0x429   :  { %4036 = vmatprep.subr.bf16.mxu0 %v9030_v21  ;;  %v9093_v19 = vld [vmem:[#allocation13 + $0x4dc] ss:$36 sps:$4 sm:$0xff]  }
 0x42a   :  { %v9096_v21 = vld [vmem:[#allocation13 + $0x29c] ss:$36 sps:$4 sm:$0xff]  }
 0x42b   :  { %3971 = vmatpush2.bf16.msra.mxu1 %v9025_v27  ;;  %v9091_v27 = vld [vmem:[#allocation13 + $0x4d8] ss:$36 sps:$4 sm:$0xff]  }
 0x42c   :  { %4037 = vmatpush1.bf16.msra.mxu0 %v9028_v22  ;;  %3972 = vmatprep.subr.bf16.mxu1 %v9033_v28  ;;  %v9094_v22 = vld [vmem:[#allocation13 + $0x298] ss:$36 sps:$4 sm:$0xff]  }
 0x42d   :  { %4038 = vmatprep.subr.bf16.mxu0 %v9036_v29  ;;  %v9099_v28 = vld [vmem:[#allocation13 + $0x494] ss:$36 sps:$4 sm:$0xff]  }
 0x42e   :  { %v9102_v29 = vld [vmem:[#allocation13 + $0x254] ss:$36 sps:$4 sm:$0xff]  }
 0x42f   :  { %3973 = vmatpush2.bf16.msra.mxu1 %v9031_v30  ;;  %v9097_v30 = vld [vmem:[#allocation13 + $0x490] ss:$36 sps:$4 sm:$0xff]  }
 0x430   :  { %4039 = vmatpush1.bf16.msra.mxu0 %v9034_v31  ;;  %3974 = vmatprep.subr.bf16.mxu1 %v9039_v32  ;;  %v9100_v31 = vld [vmem:[#allocation13 + $0x250] ss:$36 sps:$4 sm:$0xff]  }
 0x431   :  { %4040 = vmatprep.subr.bf16.mxu0 %v9042_v35  ;;  %v9105_v32 = vld [vmem:[#allocation13 + $0x214] ss:$36 sps:$4 sm:$0xff]  }
 0x432   :  { %v9108_v35 = vld [vmem:[#allocation13 + $0x694] ss:$36 sps:$4 sm:$0xff]  }
 0x433   :  { %3975 = vmatpush2.bf16.msra.mxu1 %v9037_v38  ;;  %v9103_v38 = vld [vmem:[#allocation13 + $0x210] ss:$36 sps:$4 sm:$0xff]  }
 0x434   :  { %4041 = vmatpush1.bf16.msra.mxu0 %v9040_v20  ;;  %3976 = vmatprep.subr.bf16.mxu1 %v9045_v3  ;;  %v9106_v20 = vld [vmem:[#allocation13 + $0x690] ss:$36 sps:$4 sm:$0xff]  }
 0x435   :  { %4042 = vmatprep.subr.bf16.mxu0 %v9048_v39  ;;  %v9111_v3 = vld [vmem:[#allocation13 + $0x1cc] ss:$36 sps:$4 sm:$0xff]  }
 0x436   :  { %v9114_v39 = vld [vmem:[#allocation13 + $0x64c] ss:$36 sps:$4 sm:$0xff]  }
 0x437   :  { %3977 = vmatpush2.bf16.msra.mxu1 %v9043_v41  ;;  %v9109_v41 = vld [vmem:[#allocation13 + $0x1c8] ss:$36 sps:$4 sm:$0xff]  }
 0x438   :  { %4043 = vmatpush1.bf16.msra.mxu0 %v9046_v6  ;;  %3978 = vmatprep.subr.bf16.mxu1 %v9051_v62  ;;  %v9112_v6 = vld [vmem:[#allocation13 + $0x648] ss:$36 sps:$4 sm:$0xff]  }
 0x439   :  { %4044 = vmatprep.subr.bf16.mxu0 %v9054_v42  ;;  %v9117_v62 = vld [vmem:[#allocation13 + $0x184] ss:$36 sps:$4 sm:$0xff]  }
 0x43a   :  { %v9120_v42 = vld [vmem:[#allocation13 + $0x604] ss:$36 sps:$4 sm:$0xff]  }
 0x43b   :  { %3979 = vmatpush2.bf16.msra.mxu1 %v9049_v43  ;;  %v9115_v43 = vld [vmem:[#allocation13 + $0x180] ss:$36 sps:$4 sm:$0xff]  }
 0x43c   :  { %4045 = vmatpush1.bf16.msra.mxu0 %v9052_v46  ;;  %4071 = vmatprep.subr.bf16.mxu1 %v9057_v60  ;;  %v9118_v46 = vld [vmem:[#allocation13 + $0x600] ss:$36 sps:$4 sm:$0xff]  }
 0x43d   :  { %4046 = vmatprep.subr.bf16.mxu0 %v9060_v47  ;;  %v9123_v60 = vld [vmem:[#allocation13 + $0x13c] ss:$36 sps:$4 sm:$0xff]  }
 0x43e   :  { %3981 = vmatmul.mubr.bf16.vlgmr.msra.gmra.mxu1 %v10485_v36  ;;  %v9126_v47 = vld [vmem:[#allocation13 + $0x5bc] ss:$36 sps:$4 sm:$0xff]  }
 0x43f   :  { %4072 = vmatpush1.bf16.msra.mxu1 %v9055_v1  ;;  %4103 = vmatprep.mubr.bf16.mxu1 %v12085_v0  ;;  %v9121_v1 = vld [vmem:[#allocation13 + $0x138] ss:$36 sps:$4 sm:$0xff]  }
 0x440   :  { %v4423_v53 = vpop.permute.xlu0 %4422  ;;  %4047 = vmatpush2.bf16.msra.mxu0 %v9058_v49  ;;  %4073 = vmatprep.subr.bf16.mxu1 %v9063_v50  ;;  %v9124_v49 = vld [vmem:[#allocation13 + $0x5b8] ss:$36 sps:$4 sm:$0xff]  }
 0x441   :  { %4048 = vmatprep.subr.bf16.mxu0 %v9066_v51  ;;  %v4425_v58 = vmul.f32 0.0, %v4423_v53  ;;  %v9129_v50 = vld [vmem:[#allocation13 + $0xf4] ss:$36 sps:$4 sm:$0xff]  }
 0x442   :  { %v9132_v51 = vld [vmem:[#allocation13 + $0x574] ss:$36 sps:$4 sm:$0xff]  }
 0x443   :  { %4074 = vmatpush1.bf16.msra.mxu1 %v9061_v52  ;;  %v9127_v52 = vld [vmem:[#allocation13 + $0xf0] ss:$36 sps:$4 sm:$0xff]  }
 0x444   :  { %v4430_v61 = vpop.permute.xlu0 %4429  ;;  %4049 = vmatpush2.bf16.msra.mxu0 %v9064_v54  ;;  %4075 = vmatprep.subr.bf16.mxu1 %v9069_v57  ;;  %v9130_v53 = vld [vmem:[#allocation13 + $0x570] ss:$36 sps:$4 sm:$0xff]  }
 0x445   :  { %v4432_v26 = vmul.f32 %v10501_v56, %v4430_v61  ;;  %4050 = vmatprep.subr.bf16.mxu0 %v9072_v55  ;;  %v9135_v54 = vld [vmem:[#allocation13 + $0xac] ss:$36 sps:$4 sm:$0xff]   ;;  %v9144_v61 = vld [vmem:[#allocation13 + $0x4e4] ss:$36 sps:$4 sm:$0xff]  }
 0x446   :  { %v9138_v57 = vld [vmem:[#allocation13 + $0x52c] ss:$36 sps:$4 sm:$0xff]  }
 0x447   :  { %v4433_v9 = vadd.f32 %v4432_v26, %v4425_v58  ;;  %4076 = vmatpush1.bf16.msra.mxu1 %v9067_v59  ;;  %v9133_v55 = vld [vmem:[#allocation13 + $0xa8] ss:$36 sps:$4 sm:$0xff]   ;;  %v9147_v26 = vld [vmem:[#allocation13 + $0x1c] ss:$36 sps:$4 sm:$0xff]  }
 0x448   :  { %4051 = vmatpush2.bf16.msra.mxu0 %v9070_v63  ;;  %4077 = vmatprep.subr.bf16.mxu1 %v9075_v2  ;;  %v9136_v58 = vld [vmem:[#allocation13 + $0x528] ss:$36 sps:$4 sm:$0xff]   ;;  %v9139_v63 = vld [vmem:[#allocation13 + $0x60] ss:$36 sps:$4 sm:$0xff]  }
 0x449   :  { %4445 = vperm.xlu0 %8556, %v4433_v9   ;;  %4052 = vmatprep.subr.bf16.mxu0 %v9078_v8  ;;  %v9141_v59 = vld [vmem:[#allocation13 + $0x64] ss:$36 sps:$4 sm:$0xff]   ;;  %v9150_v8 = vld [vmem:[#allocation13 + $0x49c] ss:$36 sps:$4 sm:$0xff]  }
 0x44a   :  { %v9142_v2 = vld [vmem:[#allocation13 + $0x4e0] ss:$36 sps:$4 sm:$0xff]   ;;  %v9145_v9 = vld [vmem:[#allocation13 + $0x18] ss:$36 sps:$4 sm:$0xff]  }
 0x44b   :  { %4078 = vmatpush1.bf16.msra.mxu1 %v9073_v10  ;;  %v9148_v10 = vld [vmem:[#allocation13 + $0x498] ss:$36 sps:$4 sm:$0xff]  }
 0x44c   :  { %4053 = vmatpush2.bf16.msra.mxu0 %v9076_v37  ;;  %4079 = vmatprep.subr.bf16.mxu1 %v9081_v11  ;;  %v9153_v37 = vld [vmem:[#allocation13 + $0x454] ss:$36 sps:$4 sm:$0xff]  }
 0x44d   :  { %4054 = vmatprep.subr.bf16.mxu0 %v9084_v13  ;;  %v9154_v11 = vld [vmem:[#allocation13 + $0x458] ss:$36 sps:$4 sm:$0xff]   ;;  %v9151_v13 = vld [vmem:[#allocation13 + $0x450] ss:$36 sps:$4 sm:$0xff]  }
 0x44f   :  { %4080 = vmatpush1.bf16.msra.mxu1 %v9079_v14  ;;  %v9155_v14 = vld [vmem:[#allocation13 + $0x218] ss:$36 sps:$4 sm:$0xff]  }
 0x450   :  { %4055 = vmatpush2.bf16.msra.mxu0 %v9082_v15  ;;  %4081 = vmatprep.subr.bf16.mxu1 %v9087_v16  ;;  %v9158_v15 = vld [vmem:[#allocation13 + $0x40c] ss:$36 sps:$4 sm:$0xff]  }
 0x451   :  { %4056 = vmatprep.subr.bf16.mxu0 %v9090_v17  ;;  %v9159_v16 = vld [vmem:[#allocation13 + $0x410] ss:$36 sps:$4 sm:$0xff]   ;;  %v9156_v17 = vld [vmem:[#allocation13 + $0x408] ss:$36 sps:$4 sm:$0xff]  }
 0x453   :  { %4082 = vmatpush1.bf16.msra.mxu1 %v9085_v18  ;;  %v9160_v18 = vld [vmem:[#allocation13 + $0x1d0] ss:$36 sps:$4 sm:$0xff]  }
 0x454   :  { %4057 = vmatpush2.bf16.msra.mxu0 %v9088_v12  ;;  %4083 = vmatprep.subr.bf16.mxu1 %v9093_v19  ;;  %v9163_v12 = vld [vmem:[#allocation13 + $0x3c4] ss:$36 sps:$4 sm:$0xff]  }
 0x455   :  { %4058 = vmatprep.subr.bf16.mxu0 %v9096_v21  ;;  %v9164_v19 = vld [vmem:[#allocation13 + $0x3c8] ss:$36 sps:$4 sm:$0xff]   ;;  %v9161_v21 = vld [vmem:[#allocation13 + $0x3c0] ss:$36 sps:$4 sm:$0xff]  }
 0x457   :  { %4084 = vmatpush1.bf16.msra.mxu1 %v9091_v27  ;;  %v9165_v27 = vld [vmem:[#allocation13 + $0x188] ss:$36 sps:$4 sm:$0xff]  }
 0x458   :  { %4059 = vmatpush2.bf16.msra.mxu0 %v9094_v22  ;;  %4085 = vmatprep.subr.bf16.mxu1 %v9099_v28  ;;  %v9168_v22 = vld [vmem:[#allocation13 + $0x37c] ss:$36 sps:$4 sm:$0xff]  }
 0x459   :  { %4060 = vmatprep.subr.bf16.mxu0 %v9102_v29  ;;  %v9169_v28 = vld [vmem:[#allocation13 + $0x380] ss:$36 sps:$4 sm:$0xff]   ;;  %v9166_v29 = vld [vmem:[#allocation13 + $0x378] ss:$36 sps:$4 sm:$0xff]  }
 0x45b   :  { %4086 = vmatpush1.bf16.msra.mxu1 %v9097_v30  ;;  %v9170_v30 = vld [vmem:[#allocation13 + $0x140] ss:$36 sps:$4 sm:$0xff]  }
 0x45c   :  { %4061 = vmatpush2.bf16.msra.mxu0 %v9100_v31  ;;  %4112 = vmatprep.subr.bf16.mxu1 %v9105_v32  ;;  %v9173_v31 = vld [vmem:[#allocation13 + $0x334] ss:$36 sps:$4 sm:$0xff]  }
 0x45d   :  { %4153 = vmatprep.subr.bf16.mxu0 %v9108_v35  ;;  %v9171_v32 = vld [vmem:[#allocation13 + $0x330] ss:$36 sps:$4 sm:$0xff]   ;;  %v9175_v35 = vld [vmem:[#allocation13 + $0xf8] ss:$36 sps:$4 sm:$0xff]  }
 0x45e   :  { %4104 = vmatmul.mubr.bf16.vlgmr.msra.gmra.mxu1 %v10481_v34 }
 0x45f   :  { %4063 = vmatmul.mubr.bf16.vlgmr.msra.gmra.mxu0 %v10485_v36  ;;  %4113 = vmatpush1.bf16.msra.mxu1 %v9103_v38  ;;  %v9178_v38 = vld [vmem:[#allocation13 + $0x2ec] ss:$36 sps:$4 sm:$0xff]  }
 0x460   :  { %4144 = vmatprep.mubr.bf16.mxu1 %v10479_v33  ;;  %4154 = vmatpush1.bf16.msra.mxu0 %v9106_v20  ;;  %v9179_v20 = vld [vmem:[#allocation13 + $0x2f0] ss:$36 sps:$4 sm:$0xff]  }
 0x461   :  { %4114 = vmatprep.subr.bf16.mxu1 %v9111_v3  ;;  %4155 = vmatprep.subr.bf16.mxu0 %v9114_v39  ;;  %v9176_v3 = vld [vmem:[#allocation13 + $0x2e8] ss:$36 sps:$4 sm:$0xff]   ;;  %v9180_v39 = vld [vmem:[#allocation13 + $0xb0] ss:$36 sps:$4 sm:$0xff]  }
 0x462   :  { %4185 = vmatprep.mubr.bf16.mxu0 %v12085_v0 }
 0x463   :  { %4115 = vmatpush1.bf16.msra.mxu1 %v9109_v41  ;;  %v9183_v41 = vld [vmem:[#allocation13 + $0x2a4] ss:$36 sps:$4 sm:$0xff]  }
 0x464   :  { %4156 = vmatpush1.bf16.msra.mxu0 %v9112_v6  ;;  %4116 = vmatprep.subr.bf16.mxu1 %v9117_v62  ;;  %v9184_v6 = vld [vmem:[#allocation13 + $0x2a8] ss:$36 sps:$4 sm:$0xff]   ;;  %v9181_v62 = vld [vmem:[#allocation13 + $0x2a0] ss:$36 sps:$4 sm:$0xff]  }
 0x465   :  { %4157 = vmatprep.subr.bf16.mxu0 %v9120_v42  ;;  %v9185_v42 = vld [vmem:[#allocation13 + $0x68] ss:$36 sps:$4 sm:$0xff]  }
 0x467   :  { %4117 = vmatpush1.bf16.msra.mxu1 %v9115_v43  ;;  %v9188_v43 = vld [vmem:[#allocation13 + $0x25c] ss:$36 sps:$4 sm:$0xff]  }
 0x468   :  { %4158 = vmatpush1.bf16.msra.mxu0 %v9118_v46  ;;  %4118 = vmatprep.subr.bf16.mxu1 %v9123_v60  ;;  %v9189_v46 = vld [vmem:[#allocation13 + $0x260] ss:$36 sps:$4 sm:$0xff]   ;;  %v9186_v60 = vld [vmem:[#allocation13 + $0x258] ss:$36 sps:$4 sm:$0xff]  }
 0x469   :  { %4159 = vmatprep.subr.bf16.mxu0 %v9126_v47  ;;  %v9190_v47 = vld [vmem:[#allocation13 + $0x20] ss:$36 sps:$4 sm:$0xff]  }
 0x46b   :  { %4119 = vmatpush1.bf16.msra.mxu1 %v9121_v1  ;;  %v9191_v1 = vld [vmem:[#allocation13 + $0x698] ss:$36 sps:$4 sm:$0xff]  }
 0x46c   :  { %4160 = vmatpush1.bf16.msra.mxu0 %v9124_v49  ;;  %4120 = vmatprep.subr.bf16.mxu1 %v9129_v50  ;;  %v9192_v49 = vld [vmem:[#allocation13 + $0x650] ss:$36 sps:$4 sm:$0xff]   ;;  %v9193_v50 = vld [vmem:[#allocation13 + $0x608] ss:$36 sps:$4 sm:$0xff]  }
 0x46d   :  { %4161 = vmatprep.subr.bf16.mxu0 %v9132_v51  ;;  %v9194_v51 = vld [vmem:[#allocation13 + $0x5c0] ss:$36 sps:$4 sm:$0xff]  }
 0x46f   :  { %4121 = vmatpush1.bf16.msra.mxu1 %v9127_v52  ;;  %v9195_v52 = vld [vmem:[#allocation13 + $0x578] ss:$36 sps:$4 sm:$0xff]  }
 0x470   :  { %4162 = vmatpush1.bf16.msra.mxu0 %v9130_v53  ;;  %4122 = vmatprep.subr.bf16.mxu1 %v9135_v54  ;;  %v9197_v53 = vld [vmem:[#allocation13 + $0x4e8] ss:$36 sps:$4 sm:$0xff]   ;;  %v9198_v54 = vld [vmem:[#allocation13 + $0x4a0] ss:$36 sps:$4 sm:$0xff]  }
 0x471   :  { %4163 = vmatprep.subr.bf16.mxu0 %v9138_v57  ;;  %v9199_v57 = vld [vmem:[#allocation15 + $0x1f8] ss:$36 sps:$4 sm:$0xff]  }
 0x473   :  { %4123 = vmatpush1.bf16.msra.mxu1 %v9133_v55  ;;  %v9201_v55 = vld [vmem:[#allocation15 + $0x1fc] ss:$36 sps:$4 sm:$0xff]  }
 0x474   :  { %4164 = vmatpush1.bf16.msra.mxu0 %v9136_v58  ;;  %4124 = vmatprep.subr.bf16.mxu1 %v9141_v59  ;;  %v10525_v58 = vld [vmem:[%s12075_s8] sm:$0xff]  ;;  %v9204_v59 = vld [vmem:[#allocation15 + $0x1b4] ss:$36 sps:$4 sm:$0xff]  }
 0x475   :  { %4165 = vmatprep.subr.bf16.mxu0 %v9144_v61  ;;  %v9202_v61 = vld [vmem:[#allocation15 + $0x1b0] ss:$36 sps:$4 sm:$0xff]  }
 0x477   :  { %4125 = vmatpush1.bf16.msra.mxu1 %v9139_v63  ;;  %v2720_v63 = vrot.slane %v10525_v58, %v10422_v23 }
 0x478   :  { %4166 = vmatpush1.bf16.msra.mxu0 %v9142_v2  ;;  %4126 = vmatprep.subr.bf16.mxu1 %v9147_v26  ;;  %v2724_v26 = vrot.slane %v10525_v58, %v10425_v25 }
 0x479   :  { %4167 = vmatprep.subr.bf16.mxu0 %v9150_v8 }
 0x47b   :  { %4127 = vmatpush1.bf16.msra.mxu1 %v9145_v9 }
 0x47c   :  { %4168 = vmatpush1.bf16.msra.mxu0 %v9148_v10  ;;  %4128 = vmatprep.subr.bf16.mxu1 %v9153_v37  ;;  %v9207_v37 = vld [vmem:[#allocation15 + $0x16c] ss:$36 sps:$4 sm:$0xff]  }
 0x47d   :  { %8301 = vmatprep.subr.bf16.mxu0 %v9154_v11 }
 0x47f   :  { %4129 = vmatpush2.bf16.msra.mxu1 %v9151_v13  ;;  %4186 = vmatmul.mubr.bf16.vlgmr.msra.gmra.mxu0 %v10481_v34  ;;  %v9205_v13 = vld [vmem:[#allocation15 + $0x168] ss:$36 sps:$4 sm:$0xff]  }
 0x480   :  { %8302 = vmatpush3.bf16.msra.mxu0 %v9155_v14  ;;  %4226 = vmatprep.mubr.bf16.mxu0 %v10479_v33  ;;  %v9174_v33 = vld [vmem:[#allocation13 + $0x338] ss:$36 sps:$4 sm:$0xff]  }
 0x481   :  { %4130 = vmatprep.subr.bf16.mxu1 %v9158_v15  ;;  %8303 = vmatprep.subr.bf16.mxu0 %v9159_v16 }
 0x483   :  { %4131 = vmatpush2.bf16.msra.mxu1 %v9156_v17 }
 0x484   :  { %8304 = vmatpush3.bf16.msra.mxu0 %v9160_v18  ;;  %4132 = vmatprep.subr.bf16.mxu1 %v9163_v12  ;;  %v9210_v12 = vld [vmem:[#allocation15 + $0x124] ss:$36 sps:$4 sm:$0xff]  }
 0x485   :  { %8305 = vmatprep.subr.bf16.mxu0 %v9164_v19 }
 0x487   :  { %4133 = vmatpush2.bf16.msra.mxu1 %v9161_v21  ;;  %v9208_v21 = vld [vmem:[#allocation15 + $0x120] ss:$36 sps:$4 sm:$0xff]  }
 0x488   :  { %8306 = vmatpush3.bf16.msra.mxu0 %v9165_v27  ;;  %4134 = vmatprep.subr.bf16.mxu1 %v9168_v22  ;;  %v9213_v27 = vld [vmem:[#allocation15 + $0xdc] ss:$36 sps:$4 sm:$0xff]  }
 0x489   :  { %8307 = vmatprep.subr.bf16.mxu0 %v9169_v28  ;;  %v9211_v22 = vld [vmem:[#allocation15 + $0xd8] ss:$36 sps:$4 sm:$0xff]  }
 0x48a   :  { %v9216_v28 = vld [vmem:[#allocation15 + $0x94] ss:$36 sps:$4 sm:$0xff]  }
 0x48b   :  { %4135 = vmatpush2.bf16.msra.mxu1 %v9166_v29  ;;  %v9214_v29 = vld [vmem:[#allocation15 + $0x90] ss:$36 sps:$4 sm:$0xff]  }
 0x48c   :  { %8308 = vmatpush3.bf16.msra.mxu0 %v9170_v30  ;;  %4136 = vmatprep.subr.bf16.mxu1 %v9173_v31  ;;  %v9219_v30 = vld [vmem:[#allocation15 + $0x4c] ss:$36 sps:$4 sm:$0xff]  }
 0x48d   :  { %8309 = vmatprep.subr.bf16.mxu0 %v9174_v33  ;;  %v9217_v31 = vld [vmem:[#allocation15 + $0x48] ss:$36 sps:$4 sm:$0xff]  }
 0x48e   :  { %v9222_v33 = vld [vmem:[#allocation15 + $0x4] ss:$36 sps:$4 sm:$0xff]  }
 0x48f   :  { %4137 = vmatpush2.bf16.msra.mxu1 %v9171_v32  ;;  %v9220_v32 = vld [vmem:[#allocation15] ss:$36 sps:$4 sm:$0xff]  }
 0x490   :  { %8310 = vmatpush3.bf16.msra.mxu0 %v9175_v35  ;;  %4138 = vmatprep.subr.bf16.mxu1 %v9178_v38  ;;  %v9225_v35 = vld [vmem:[#allocation15 + $0x43c] ss:$36 sps:$4 sm:$0xff]  }
 0x491   :  { %8311 = vmatprep.subr.bf16.mxu0 %v9179_v20  ;;  %v9223_v38 = vld [vmem:[#allocation15 + $0x438] ss:$36 sps:$4 sm:$0xff]  }
 0x492   :  { %v9228_v20 = vld [vmem:[#allocation15 + $0x3f4] ss:$36 sps:$4 sm:$0xff]  }
 0x493   :  { %4139 = vmatpush2.bf16.msra.mxu1 %v9176_v3  ;;  %v9226_v3 = vld [vmem:[#allocation15 + $0x3f0] ss:$36 sps:$4 sm:$0xff]  }
 0x494   :  { %8312 = vmatpush3.bf16.msra.mxu0 %v9180_v39  ;;  %4140 = vmatprep.subr.bf16.mxu1 %v9183_v41  ;;  %v9231_v41 = vld [vmem:[#allocation15 + $0x3ac] ss:$36 sps:$4 sm:$0xff]  }
 0x495   :  { %8313 = vmatprep.subr.bf16.mxu0 %v9184_v6 }
 0x497   :  { %4141 = vmatpush2.bf16.msra.mxu1 %v9181_v62  ;;  %v9229_v62 = vld [vmem:[#allocation15 + $0x3a8] ss:$36 sps:$4 sm:$0xff]  }
 0x498   :  { %8314 = vmatpush3.bf16.msra.mxu0 %v9185_v42  ;;  %4142 = vmatprep.subr.bf16.mxu1 %v9188_v43  ;;  %v9234_v43 = vld [vmem:[#allocation15 + $0x364] ss:$36 sps:$4 sm:$0xff]  }
 0x499   :  { %8315 = vmatprep.subr.bf16.mxu0 %v9189_v46 }
 0x49b   :  { %4143 = vmatpush2.bf16.msra.mxu1 %v9186_v60  ;;  %v9232_v60 = vld [vmem:[#allocation15 + $0x360] ss:$36 sps:$4 sm:$0xff]  }
 0x49c   :  { %8316 = vmatpush3.bf16.msra.mxu0 %v9190_v47  ;;  %8437 = vmatprep.subr.bf16.mxu1 %v12087_v40  ;;  %v9235_v47 = vld [vmem:[#allocation15 + $0x318] ss:$36 sps:$4 sm:$0xff]  }
 0x49d   :  { %5659 = vmatprep.subr.bf16.mxu0 %v9201_v55  ;;  %v9249_v55 = vld [vmem:[#allocation15 + $0x244] ss:$36 sps:$4 sm:$0xff]  }
 0x49e   :  { %4145 = vmatmul.mubr.bf16.vlgmr.msra.gmra.mxu1 %v10485_v36 }
 0x49f   :  { %4227 = vmatmul.mubr.bf16.vlgmr.msra.gmra.mxu0 %v10485_v36  ;;  %8438 = vmatpush3.bf16.msra.mxu1 %v9191_v1  ;;  %v9196_v36 = vld [vmem:[#allocation13 + $0x530] ss:$36 sps:$4 sm:$0xff]   ;;  %v9237_v1 = vld [vmem:[#allocation15 + $0x31c] ss:$36 sps:$4 sm:$0xff]  }
 0x4a0   :  { %8439 = vmatprep.subr.bf16.mxu1 %v12087_v40  ;;  %8453 = vmatprep.mubr.msk.bf16.mxu1 %vm10214_vm1, %v12087_v40 }
 0x4a1   :  { %5660 = vmatpush1.bf16.msra.mxu0 %v9199_v57  ;;  %v9241_v57 = vld [vmem:[#allocation15 + $0x288] ss:$36 sps:$4 sm:$0xff]  }
 0x4a2   :  { %5661 = vmatprep.subr.bf16.mxu0 %v9204_v59  ;;  %v9247_v59 = vld [vmem:[#allocation15 + $0x240] ss:$36 sps:$4 sm:$0xff]  }
 0x4a3   :  { %8440 = vmatpush3.bf16.msra.mxu1 %v9192_v49  ;;  %v9240_v49 = vld [vmem:[#allocation15 + $0x2d4] ss:$36 sps:$4 sm:$0xff]  }
 0x4a4   :  { %8441 = vmatprep.subr.bf16.mxu1 %v12087_v40 }
 0x4a5   :  { %5662 = vmatpush1.bf16.msra.mxu0 %v9202_v61  ;;  %v9255_v61 = vld [vmem:[#allocation15 + $0x684] ss:$36 sps:$4 sm:$0xff]  }
 0x4a6   :  { %5663 = vmatprep.subr.bf16.mxu0 %v9207_v37  ;;  %v9264_v37 = vld [vmem:[#allocation15 + $0x5a4] ss:$36 sps:$4 sm:$0xff]  }
 0x4a7   :  { %8442 = vmatpush3.bf16.msra.mxu1 %v9193_v50  ;;  %v9244_v50 = vld [vmem:[#allocation15 + $0x678] ss:$36 sps:$4 sm:$0xff]  }
 0x4a8   :  { %8443 = vmatprep.subr.bf16.mxu1 %v12087_v40 }
 0x4a9   :  { %5664 = vmatpush1.bf16.msra.mxu0 %v9205_v13  ;;  %v9262_v13 = vld [vmem:[#allocation15 + $0x5a0] ss:$36 sps:$4 sm:$0xff]  }
 0x4aa   :  { %5665 = vmatprep.subr.bf16.mxu0 %v9210_v12  ;;  %v9270_v12 = vld [vmem:[#allocation15 + $0x55c] ss:$36 sps:$4 sm:$0xff]  }
 0x4ab   :  { %8444 = vmatpush3.bf16.msra.mxu1 %v9194_v51  ;;  %v9246_v51 = vld [vmem:[#allocation15 + $0x67c] ss:$36 sps:$4 sm:$0xff]  }
 0x4ac   :  { %8445 = vmatprep.subr.bf16.mxu1 %v12087_v40 }
 0x4ad   :  { %5666 = vmatpush1.bf16.msra.mxu0 %v9208_v21  ;;  %v9268_v21 = vld [vmem:[#allocation15 + $0x558] ss:$36 sps:$4 sm:$0xff]  }
 0x4ae   :  { %5667 = vmatprep.subr.bf16.mxu0 %v9213_v27  ;;  %v9274_v27 = vld [vmem:[#allocation15 + $0x510] ss:$36 sps:$4 sm:$0xff]  }
 0x4af   :  { %8446 = vmatpush3.bf16.msra.mxu1 %v9195_v52  ;;  %v9252_v52 = vld [vmem:[#allocation15 + $0x634] ss:$36 sps:$4 sm:$0xff]  }
 0x4b0   :  { %8447 = vmatprep.subr.bf16.mxu1 %v12087_v40 }
 0x4b1   :  { %5668 = vmatpush1.bf16.msra.mxu0 %v9211_v22  ;;  %v9276_v22 = vld [vmem:[#allocation15 + $0x514] ss:$36 sps:$4 sm:$0xff]  }
 0x4b2   :  { %5669 = vmatprep.subr.bf16.mxu0 %v9216_v28  ;;  %v9280_v28 = vld [vmem:[#allocation15 + $0x4c8] ss:$36 sps:$4 sm:$0xff]  }
 0x4b3   :  { %8448 = vmatpush3.bf16.msra.mxu1 %v9196_v36  ;;  %v9238_v36 = vld [vmem:[#allocation15 + $0x2d0] ss:$36 sps:$4 sm:$0xff]  }
 0x4b4   :  { %8449 = vmatprep.subr.bf16.mxu1 %v12087_v40 }
 0x4b5   :  { %5670 = vmatpush1.bf16.msra.mxu0 %v9214_v29  ;;  %v9282_v29 = vld [vmem:[#allocation15 + $0x4cc] ss:$36 sps:$4 sm:$0xff]  }
 0x4b6   :  { %5671 = vmatprep.subr.bf16.mxu0 %v9219_v30  ;;  %v9286_v30 = vld [vmem:[#allocation15 + $0x480] ss:$36 sps:$4 sm:$0xff]  }
 0x4b7   :  { %8450 = vmatpush3.bf16.msra.mxu1 %v9197_v53  ;;  %v9243_v53 = vld [vmem:[#allocation15 + $0x28c] ss:$36 sps:$4 sm:$0xff]  }
 0x4b8   :  { %8451 = vmatprep.subr.bf16.mxu1 %v12087_v40  ;;  %v10740_v40 = vld [vmem:[#allocation15 + $0x60] ss:$36 sps:$4 sm:$0xff]  }
 0x4b9   :  { %5672 = vmatpush1.bf16.msra.mxu0 %v9217_v31  ;;  %v9288_v31 = vld [vmem:[#allocation15 + $0x484] ss:$36 sps:$4 sm:$0xff]   ;;  %12352 = vst [vmem:[#allocation56_spill] sm:$0xff] %v10740_v40 }
 0x4ba   :  { %5673 = vmatprep.subr.bf16.mxu0 %v9222_v33  ;;  %v9294_v33 = vld [vmem:[#allocation15 + $0x204] ss:$36 sps:$4 sm:$0xff]  }
 0x4bb   :  { %8452 = vmatpush3.bf16.msra.mxu1 %v9198_v54  ;;  %v9250_v54 = vld [vmem:[#allocation15 + $0x630] ss:$36 sps:$4 sm:$0xff]  }
 0x4bc   :  { %5700 = vmatprep.subr.bf16.mxu1 %v9246_v51 }
 0x4bd   :  { %5674 = vmatpush1.bf16.msra.mxu0 %v9220_v32 }
 0x4be   :  { %8454 = vmatmul.mubr.bf16.vlgmr.msra.gmra.mxu1 %v10481_v34  ;;  %v3941_v2 = vpop.f32.mrf.mxu1  ;;  %5675 = vmatprep.subr.bf16.mxu0 %v9225_v35  ;;  %v2740_v35 = vrot.slane %v10525_v58, %v10437_v45  ;;  %v10758_v45 = vld [vmem:[#allocation15 + $0x454] ss:$36 sps:$4 sm:$0xff]  }
 0x4bf   :  { %v3900_v8 = vpop.f32.mrf.mxu0  ;;  %5732 = vmatprep.mubr.bf16.mxu1 %v12085_v0  ;;  %5701 = vmatpush1.bf16.msra.mxu1 %v9244_v50  ;;  %12358 = vst [vmem:[#allocation62_spill] sm:$0xff] %v10758_v45 }
 0x4c0   :  { %v3901_v9 = vadd.f32 %v3900_v8, %v2720_v63  ;;  %v3943_v10 = vpop.f32.mrf.mxu1  ;;  %5702 = vmatprep.subr.bf16.mxu1 %v9252_v52  ;;  %v2728_v63 = vrot.slane %v10525_v58, %v10410_v5  ;;  %v2732_v8 = vrot.slane %v10525_v58, %v10415_v7  ;;  %v10746_v7 = vld [vmem:[#allocation15 + $0x1c] ss:$36 sps:$4 sm:$0xff]  }
 0x4c1   :  { %v3902_v11 = vpop.f32.mrf.mxu0  ;;  %5676 = vmatpush2.bf16.msra.mxu0 %v9223_v38  ;;  %12354 = vst [vmem:[#allocation58_spill] sm:$0xff] %v10746_v7 }
 0x4c2   :  { %v10533_v14 = vadd.f32 %v3941_v2, %v3901_v9  ;;  %v3903_v15 = vadd.f32 %v3902_v11, %v2724_v26  ;;  %v3945_v16 = vpop.f32.mrf.mxu1  ;;  %5677 = vmatprep.subr.bf16.mxu0 %v9228_v20  ;;  %v9256_v2 = vld [vmem:[#allocation15 + $0x5e8] ss:$36 sps:$4 sm:$0xff]  }
 0x4c3   :  { %v3904_v17 = vpop.f32.mrf.mxu0  ;;  %5703 = vmatpush1.bf16.msra.mxu1 %v9250_v54  ;;  %v9258_v26 = vld [vmem:[#allocation15 + $0x5ec] ss:$36 sps:$4 sm:$0xff]  }
 0x4c4   :  { %12335 = vst [vmem:[#allocation39_spill] sm:$0xff] %v10533_v14  ;;  %v10535_v34 = vadd.f32 %v3943_v10, %v3903_v15  ;;  %v3946_v18 = vpop.f32.mrf.mxu1  ;;  %5704 = vmatprep.subr.bf16.mxu1 %v9258_v26 }
 0x4c5   :  { %v3905_v19 = vpop.f32.mrf.mxu0  ;;  %5678 = vmatpush2.bf16.msra.mxu0 %v9226_v3 }
 0x4c6   :  { %12336 = vst [vmem:[#allocation40_spill] sm:$0xff] %v10535_v34  ;;  %5679 = vmatprep.subr.bf16.mxu0 %v9231_v41 }
 0x4c7   :  { %5705 = vmatpush1.bf16.msra.mxu1 %v9256_v2  ;;  %v4274_v2 = vld [vmem:[#allocation16] sm:$0x7] }
 0x4c8   :  { %5706 = vmatprep.subr.bf16.mxu1 %v9264_v37  ;;  %v2748_v37 = vrot.slane %v10525_v58, %v10448_v4  ;;  %v10744_v4 = vld [vmem:[#allocation15 + $0xb0] ss:$36 sps:$4 sm:$0xff]  }
 0x4c9   :  { %5680 = vmatpush2.bf16.msra.mxu0 %v9229_v62  ;;  %12353 = vst [vmem:[#allocation57_spill] sm:$0xff] %v10744_v4 }
 0x4ca   :  { %5681 = vmatprep.subr.bf16.mxu0 %v9234_v43 }
 0x4cb   :  { %5707 = vmatpush1.bf16.msra.mxu1 %v9262_v13 }
 0x4cc   :  { %5708 = vmatprep.subr.bf16.mxu1 %v9270_v12 }
 0x4cd   :  { %5682 = vmatpush2.bf16.msra.mxu0 %v9232_v60  ;;  %v8022_v60 = vmul.f32 -1.442695, %v10535_v34 }
 0x4ce   :  { %5683 = vmatprep.subr.bf16.mxu0 %v9237_v1 }
 0x4cf   :  { %5709 = vmatpush1.bf16.msra.mxu1 %v9268_v21  ;;  %v10566_v21 = vrot.slane %v4274_v2, %v10425_v25  ;;  %v10756_v25 = vld [vmem:[#allocation15 + $0x68] ss:$36 sps:$4 sm:$0xff]  }
 0x4d0   :  { %5710 = vmatprep.subr.bf16.mxu1 %v9276_v22  ;;  %12357 = vst [vmem:[#allocation61_spill] sm:$0xff] %v10756_v25 }
 0x4d1   :  { %5684 = vmatpush2.bf16.msra.mxu0 %v9235_v47  ;;  %v2736_v47 = vrot.slane %v10525_v58, %v10434_v44 }
 0x4d2   :  { %5685 = vmatprep.subr.bf16.mxu0 %v9240_v49 }
 0x4d3   :  { %5711 = vmatpush1.bf16.msra.mxu1 %v9274_v27 }
 0x4d4   :  { %5712 = vmatprep.subr.bf16.mxu1 %v9282_v29 }
 0x4d5   :  { %5686 = vmatpush2.bf16.msra.mxu0 %v9238_v36 }
 0x4d6   :  { %5687 = vmatprep.subr.bf16.mxu0 %v9243_v53 }
 0x4d7   :  { %5713 = vmatpush1.bf16.msra.mxu1 %v9280_v28 }
 0x4d8   :  { %5714 = vmatprep.subr.bf16.mxu1 %v9288_v31 }
 0x4d9   :  { %5688 = vmatpush2.bf16.msra.mxu0 %v9241_v57 }
 0x4da   :  { %5689 = vmatprep.subr.bf16.mxu0 %v9249_v55 }
 0x4db   :  { %5715 = vmatpush1.bf16.msra.mxu1 %v9286_v30 }
 0x4dc   :  { %5741 = vmatprep.subr.bf16.mxu1 %v9294_v33 }
 0x4dd   :  { %5690 = vmatpush2.bf16.msra.mxu0 %v9247_v59 }
 0x4de   :  { %5782 = vmatprep.subr.bf16.mxu0 %v9255_v61 }
 0x4df   :  { %v4023_v39 = vpop.f32.mrf.mxu0 }
 0x4e1   :  { %v4025_v6 = vpop.f32.mrf.mxu0 }
 0x4e3   :  { %v4027_v42 = vpop.f32.mrf.mxu0 }
 0x4e5   :  { %v4028_v46 = vpop.f32.mrf.mxu0 }
 0x4e6   :  { %v8021_v46 = vmul.f32 -1.442695, %v10533_v14 }
 0x4e8   :  { %9523 = vpow2.f32 %v8021_v46 }
 0x4e9   :  { %9525 = vpow2.f32 %v8022_v60 }
 0x4f5   :  { %v9524_v53 = vpop.eup %9523 }
 0x4f6   :  { %v9526_v55 = vpop.eup %9525  ;;  %v4302_v59 = vadd.f32 1.0, %v9524_v53  ;;  %v9253_v53 = vld [vmem:[#allocation15 + $0x680] ss:$36 sps:$4 sm:$0xff]  }
 0x4f7   :  { %v4303_v61 = vadd.f32 1.0, %v9526_v55  ;;  %v9261_v55 = vld [vmem:[#allocation15 + $0x63c] ss:$36 sps:$4 sm:$0xff]  }
 0x4fe   :  { %v3982_v9 = vpop.f32.mrf.mxu1 }
 0x4ff   :  { %v3983_v10 = vadd.f32 %v3982_v9, %v2728_v63 }
 0x500   :  { %v3984_v11 = vpop.f32.mrf.mxu1 }
 0x501   :  { %v10541_v15 = vadd.f32 %v4023_v39, %v3983_v10  ;;  %v3985_v16 = vadd.f32 %v3984_v11, %v2732_v8  ;;  %v2744_v8 = vrot.slane %v10525_v58, %v10455_v24  ;;  %v10561_v10 = vrot.slane %v4274_v2, %v10422_v23  ;;  %v10749_v24 = vld [vmem:[#allocation15 + $0x2a8] ss:$36 sps:$4 sm:$0xff]  }
 0x502   :  { %v3986_v17 = vpop.f32.mrf.mxu1  ;;  %12355 = vst [vmem:[#allocation59_spill] sm:$0xff] %v10749_v24 }
 0x503   :  { %12337 = vst [vmem:[#allocation41_spill] sm:$0xff] %v10541_v15  ;;  %v10543_v18 = vadd.f32 %v4025_v6, %v3985_v16  ;;  %v8023_v63 = vmul.f32 -1.442695, %v10541_v15 }
 0x504   :  { %v3987_v19 = vpop.f32.mrf.mxu1 }
 0x505   :  { %v8024_v54 = vmul.f32 -1.442695, %v10543_v18 }
 0x507   :  { %9527 = vpow2.f32 %v8024_v54 }
 0x514   :  { %v9528_v26 = vpop.eup %9527 }
 0x515   :  { %v4320_v13 = vadd.f32 1.0, %v9528_v26  ;;  %v9259_v26 = vld [vmem:[#allocation15 + $0x638] ss:$36 sps:$4 sm:$0xff]  }
 0x51e   :  { %v4105_v32 = vpop.f32.mrf.mxu1 }
 0x51f   :  { %v4064_v38 = vpop.f32.mrf.mxu0 }
 0x520   :  { %v4107_v20 = vpop.f32.mrf.mxu1  ;;  %v4065_v50 = vadd.f32 %v4064_v38, %v2736_v47 }
 0x521   :  { %v4066_v3 = vpop.f32.mrf.mxu0 }
 0x522   :  { %v4067_v39 = vadd.f32 %v4066_v3, %v2740_v35  ;;  %v4109_v41 = vpop.f32.mrf.mxu1  ;;  %v10553_v36 = vadd.f32 %v4105_v32, %v4065_v50 }
 0x523   :  { %v4068_v6 = vpop.f32.mrf.mxu0 }
 0x524   :  { %v10547_v62 = vadd.f32 %v4107_v20, %v4067_v39  ;;  %v4110_v42 = vpop.f32.mrf.mxu1  ;;  %v8025_v57 = vmul.f32 -1.442695, %v10553_v36 }
 0x525   :  { %v4069_v43 = vpop.f32.mrf.mxu0 }
 0x526   :  { %9529 = vpow2.f32 %v8025_v57  ;;  %v8026_v41 = vmul.f32 -1.442695, %v10547_v62 }
 0x527   :  { %9531 = vrcp.f32 %v4302_v59 }
 0x528   :  { %9533 = vrcp.f32 %v4303_v61  ;;  %v7804_v61 = vld [vmem:[%s12075_s8 + $0x8] ss:$0 sm:$0xff] }
 0x529   :  { %9535 = vpow2.f32 %v8023_v63 }
 0x52a   :  { %9537 = vrcp.f32 %v4320_v13 }
 0x533   :  { %v9530_v9 = vpop.eup %9529 }
 0x534   :  { %v9532_v11 = vpop.eup %9531  ;;  %v4321_v17 = vadd.f32 1.0, %v9530_v9 }
 0x535   :  { %v9534_v27 = vpop.eup %9533  ;;  %v4329_v29 = vmul.f32 %v9532_v11, %v10561_v10 }
 0x536   :  { %9539 = vrcp.f32 %v4321_v17  ;;  %v4330_v35 = vmul.f32 %v9534_v27, %v10566_v21  ;;  %v9536_v6 = vpop.eup %9535  ;;  %v9273_v27 = vld [vmem:[#allocation15 + $0x5ac] ss:$36 sps:$4 sm:$0xff]  }
 0x537   :  { %v4304_v42 = vadd.f32 1.0, %v9536_v6  ;;  %v9538_v43 = vpop.eup %9537 }
 0x538   :  { %v4338_v47 = vsub.f32 1.0, %v9538_v43  ;;  %v9291_v43 = vld [vmem:[#allocation15 + $0x4d4] ss:$36 sps:$4 sm:$0xff]  }
 0x53f   :  { %v4187_v1 = vpop.f32.mrf.mxu0 }
 0x541   :  { %v4189_v49 = vpop.f32.mrf.mxu0 }
 0x543   :  { %v4191_v51 = vpop.f32.mrf.mxu0  ;;  %v9540_v46 = vpop.eup %9539 }
 0x545   :  { %v4192_v52 = vpop.f32.mrf.mxu0 }
 0x55e   :  { %v4146_v16 = vpop.f32.mrf.mxu1 }
 0x55f   :  { %v4147_v12 = vadd.f32 %v4146_v16, %v2744_v8  ;;  %v8317_v19 = vpop.f32.mrf.mxu0  ;;  %v10595_v8 = vrot.slane %v4274_v2, %v10410_v5  ;;  %v10752_v5 = vld [vmem:[#allocation15 + $0x18] ss:$36 sps:$4 sm:$0xff]  }
 0x560   :  { %v4148_v22 = vpop.f32.mrf.mxu1  ;;  %12356 = vst [vmem:[#allocation60_spill] sm:$0xff] %v10752_v5 }
 0x561   :  { %v10568_v28 = vadd.f32 %v4187_v1, %v4147_v12  ;;  %v4149_v30 = vadd.f32 %v4148_v22, %v2748_v37  ;;  %v8318_v31 = vpop.f32.mrf.mxu0  ;;  %v4339_v1 = vsub.f32 1.0, %v9540_v46  ;;  %v9267_v37 = vld [vmem:[#allocation15 + $0x5f4] ss:$36 sps:$4 sm:$0xff]  }
 0x562   :  { %v4150_v33 = vpop.f32.mrf.mxu1  ;;  %v8319_v59 = vadd.f32 %v8318_v31, %v8317_v19  ;;  %v9265_v12 = vld [vmem:[#allocation15 + $0x5f0] ss:$36 sps:$4 sm:$0xff]   ;;  %v9279_v31 = vld [vmem:[#allocation15 + $0x564] ss:$36 sps:$4 sm:$0xff]  }
 0x563   :  { %v4332_v58 = vadd.f32 %v4329_v29, %v10568_v28  ;;  %v10572_v32 = vadd.f32 %v4189_v49, %v4149_v30  ;;  %v8320_v38 = vpop.f32.mrf.mxu0  ;;  %v9271_v29 = vld [vmem:[#allocation15 + $0x5a8] ss:$36 sps:$4 sm:$0xff]   ;;  %v2467_v33 = vld [vmem:[%s12081_s14] sm:$0xff] }
 0x564   :  { %v4151_v20 = vpop.f32.mrf.mxu1  ;;  %v4229_v11 = vadd.f32 %v8319_v59, %v7804_v61  ;;  %v9285_v38 = vld [vmem:[#allocation15 + $0x51c] ss:$36 sps:$4 sm:$0xff]  }
 0x565   :  { %9541 = vtanh.f32 %v4332_v58  ;;  %v4333_v3 = vadd.f32 %v4330_v35, %v10572_v32  ;;  %v8321_v39 = vpop.f32.mrf.mxu0  ;;  %v9277_v58 = vld [vmem:[#allocation15 + $0x560] ss:$36 sps:$4 sm:$0xff]   ;;  %v4353_v35 = vrot.slane %v2467_v33, %v10434_v44 }
 0x566   :  { %v2468_v20 = vld [vmem:[%s12081_s14 + $0x8] sm:$0xf]  ;;  %v9283_v39 = vld [vmem:[#allocation15 + $0x518] ss:$36 sps:$4 sm:$0xff]  }
 0x567   :  { %9543 = vtanh.f32 %v4333_v3  ;;  %v4349_v3 = vrot.slane %v2467_v33, %v10422_v23  ;;  %v4368_v6 = vrot.slane %v4353_v35, %v10422_v23  ;;  %v9292_v61 = vld [vmem:[#allocation15 + $0x200] ss:$36 sps:$4 sm:$0xff]   ;;  %v9310_v33 = vld [vmem:[#allocation15 + $0x128] ss:$36 sps:$4 sm:$0xff]  }
 0x568   :  { %9545 = vpow2.f32 %v8026_v41  ;;  %v4357_v41 = vrot.slane %v2468_v20, %v10422_v23  ;;  %v9318_v35 = vld [vmem:[#allocation15 + $0xe4] ss:$36 sps:$4 sm:$0xff]  }
 0x569   :  { %9547 = vrcp.f32 %v4304_v42  ;;  %v4364_v46 = vrot.slane %v4349_v3, %v10422_v23  ;;  %v9316_v20 = vld [vmem:[#allocation15 + $0xe0] ss:$36 sps:$4 sm:$0xff]   ;;  %v9319_v3 = vld [vmem:[#allocation15 + $0x130] ss:$36 sps:$4 sm:$0xff]  }
 0x572   :  { %v9542_v60 = vpop.eup %9541 }
 0x573   :  { %v10577_v50 = vmul.f32 %v9542_v60, %v4338_v47  ;;  %v9289_v60 = vld [vmem:[#allocation15 + $0x4d0] ss:$36 sps:$4 sm:$0xff]  }
 0x574   :  { %v9544_v49 = vpop.eup %9543 }
 0x575   :  { %v10579_v51 = vmul.f32 %v9544_v49, %v4339_v1  ;;  %v9546_v54 = vpop.eup %9545  ;;  %v10587_v57 = vpack.c.bf16 %v10577_v50, %v10577_v50  ;;  %v4372_v1 = vrot.slane %v4357_v41, %v10422_v23  ;;  %v4373_v59 = vmul.f32 %v4364_v46, %v10577_v50  ;;  %v9327_v41 = vld [vmem:[#allocation15 + $0xec] ss:$36 sps:$4 sm:$0xff]   ;;  %v9333_v46 = vld [vmem:[#allocation15 + $0xa4] ss:$36 sps:$4 sm:$0xff]  }
 0x576   :  { %v4322_v63 = vadd.f32 1.0, %v9546_v54  ;;  %v9548_v9 = vpop.eup %9547  ;;  %v9297_v54 = vld [vmem:[#allocation15 + $0x48c] ss:$36 sps:$4 sm:$0xff]  }
 0x577   :  { %v10583_v52 = vpack.c.bf16 %v10579_v51, %v10579_v51  ;;  %v4331_v17 = vmul.f32 %v9548_v9, %v10595_v8  ;;  %v4374_v49 = vmul.f32 %v4368_v6, %v10579_v51  ;;  %v9322_v6 = vld [vmem:[#allocation15 + $0x98] ss:$36 sps:$4 sm:$0xff]  }
 0x578   :  { %9549 = vrcp.f32 %v4322_v63 }
 0x579   :  { %5691 = vmatprep.mubr.bf16.mxu0 %v10583_v52 }
 0x57a   :  { %5692 = vmatmul.mubr.bf16.vlgmr.msra.gmra.mxu0 %v10587_v57 }
 0x57b   :  { %5783 = vmatpush1.bf16.msra.mxu0 %v9253_v53  ;;  %5814 = vmatprep.mubr.bf16.mxu0 %v12085_v0 }
 0x57c   :  { %5784 = vmatprep.subr.bf16.mxu0 %v9261_v55 }
 0x57e   :  { %v4268_v13 = vpop.f32.mrf.mxu1 }
 0x57f   :  { %v10598_v16 = vadd.f32 %v4268_v13, %v4229_v11  ;;  %5785 = vmatpush1.bf16.msra.mxu0 %v9259_v26  ;;  %v9295_v26 = vld [vmem:[#allocation15 + $0x488] ss:$36 sps:$4 sm:$0xff]   ;;  %v9300_v11 = vld [vmem:[#allocation15 + $0x1bc] ss:$36 sps:$4 sm:$0xff]  }
 0x580   :  { %v8455_v19 = vpop.f32.mrf.mxu1  ;;  %5786 = vmatprep.subr.bf16.mxu0 %v9267_v37  ;;  %v4376_v37 = vadd.f32 %v4374_v49, %v4373_v59  ;;  %v9303_v13 = vld [vmem:[#allocation15 + $0x20c] ss:$36 sps:$4 sm:$0xff]   ;;  %v9339_v49 = vld [vmem:[#allocation15 + $0x5c] ss:$36 sps:$4 sm:$0xff]   ;;  %v9342_v59 = vld [vmem:[#allocation15 + $0x444] ss:$36 sps:$4 sm:$0xff]  }
 0x581   :  { %v4334_v2 = vadd.f32 %v4331_v17, %v10598_v16  ;;  %v9301_v19 = vld [vmem:[#allocation15 + $0x208] ss:$36 sps:$4 sm:$0xff]  }
 0x582   :  { %v4271_v22 = vpop.f32.mrf.mxu1 }
 0x583   :  { %9551 = vtanh.f32 %v4334_v2  ;;  %5787 = vmatpush1.bf16.msra.mxu0 %v9265_v12  ;;  %v9298_v12 = vld [vmem:[#allocation15 + $0x1b8] ss:$36 sps:$4 sm:$0xff]   ;;  %v9309_v2 = vld [vmem:[#allocation15 + $0x1c4] ss:$36 sps:$4 sm:$0xff]   ;;  %v9304_v22 = vld [vmem:[#allocation15 + $0x170] ss:$36 sps:$4 sm:$0xff]  }
 0x584   :  { %v8456_v30 = vpop.f32.mrf.mxu1  ;;  %5788 = vmatprep.subr.bf16.mxu0 %v9273_v27  ;;  %v9306_v27 = vld [vmem:[#allocation15 + $0x174] ss:$36 sps:$4 sm:$0xff]  }
 0x585   :  { %v9550_v42 = vpop.eup %9549  ;;  %v9312_v30 = vld [vmem:[#allocation15 + $0x12c] ss:$36 sps:$4 sm:$0xff]  }
 0x586   :  { %v4340_v47 = vsub.f32 1.0, %v9550_v42  ;;  %v9325_v42 = vld [vmem:[#allocation15 + $0xe8] ss:$36 sps:$4 sm:$0xff]  }
 0x587   :  { %5789 = vmatpush1.bf16.msra.mxu0 %v9271_v29  ;;  %v9307_v29 = vld [vmem:[#allocation15 + $0x1c0] ss:$36 sps:$4 sm:$0xff]  }
 0x588   :  { %5790 = vmatprep.subr.bf16.mxu0 %v9279_v31  ;;  %v9315_v31 = vld [vmem:[#allocation15 + $0x17c] ss:$36 sps:$4 sm:$0xff]  }
 0x58b   :  { %5791 = vmatpush1.bf16.msra.mxu0 %v9277_v58  ;;  %v9313_v58 = vld [vmem:[#allocation15 + $0x178] ss:$36 sps:$4 sm:$0xff]  }
 0x58c   :  { %5792 = vmatprep.subr.bf16.mxu0 %v9285_v38  ;;  %v9321_v38 = vld [vmem:[#allocation15 + $0x134] ss:$36 sps:$4 sm:$0xff]  }
 0x58f   :  { %5793 = vmatpush1.bf16.msra.mxu0 %v9283_v39  ;;  %v9324_v39 = vld [vmem:[#allocation15 + $0x9c] ss:$36 sps:$4 sm:$0xff]  }
 0x590   :  { %v9552_v53 = vpop.eup %9551  ;;  %5794 = vmatprep.subr.bf16.mxu0 %v9291_v43  ;;  %v9330_v43 = vld [vmem:[#allocation15 + $0x54] ss:$36 sps:$4 sm:$0xff]  }
 0x591   :  { %v10615_v55 = vmul.f32 %v9552_v53, %v4340_v47  ;;  %v9331_v47 = vld [vmem:[#allocation15 + $0xa0] ss:$36 sps:$4 sm:$0xff]   ;;  %v9334_v53 = vld [vmem:[#allocation15 + $0x8] ss:$36 sps:$4 sm:$0xff]  }
 0x593   :  { %5795 = vmatpush1.bf16.msra.mxu0 %v9289_v60  ;;  %v10620_v63 = vpack.c.bf16 %v10615_v55, %v10615_v55  ;;  %v4375_v9 = vmul.f32 %v4372_v1, %v10615_v55  ;;  %v9328_v60 = vld [vmem:[#allocation15 + $0x50] ss:$36 sps:$4 sm:$0xff]  }
 0x594   :  { %5796 = vmatprep.subr.bf16.mxu0 %v9297_v54  ;;  %v9336_v1 = vld [vmem:[#allocation15 + $0xc] ss:$36 sps:$4 sm:$0xff]   ;;  %v9337_v54 = vld [vmem:[#allocation15 + $0x58] ss:$36 sps:$4 sm:$0xff]  }
 0x595   :  { %5733 = vmatmul.mubr.bf16.vlgmr.msra.gmra.mxu1 %v10620_v63  ;;  %v4377_v17 = vadd.f32 %v4376_v37, %v4375_v9  ;;  %v9343_v9 = vld [vmem:[#allocation15 + $0x10] ss:$36 sps:$4 sm:$0xff]   ;;  %v9348_v37 = vld [vmem:[#allocation15 + $0x3fc] ss:$36 sps:$4 sm:$0xff]  }
 0x596   :  { %5742 = vmatpush1.bf16.msra.mxu1 %v9292_v61  ;;  %5773 = vmatprep.mubr.bf16.mxu1 %v10583_v52  ;;  %v9345_v61 = vld [vmem:[#allocation15 + $0x14] ss:$36 sps:$4 sm:$0xff]  }
 0x597   :  { %5797 = vmatpush1.bf16.msra.mxu0 %v9295_v26  ;;  %4378 = vadd.xlane.f32.xlu0 %v4377_v17  ;;  %v9340_v26 = vld [vmem:[#allocation15 + $0x440] ss:$36 sps:$4 sm:$0xff]   ;;  %v9349_v17 = vld [vmem:[#allocation15 + $0x448] ss:$36 sps:$4 sm:$0xff]  }
 0x598   :  { %5743 = vmatprep.subr.bf16.mxu1 %v9300_v11  ;;  %5823 = vmatprep.subr.bf16.mxu0 %v9303_v13  ;;  %v9351_v11 = vld [vmem:[#allocation15 + $0x44c] ss:$36 sps:$4 sm:$0xff]   ;;  %v9346_v13 = vld [vmem:[#allocation15 + $0x3f8] ss:$36 sps:$4 sm:$0xff]  }
 0x59a   :  { %5744 = vmatpush1.bf16.msra.mxu1 %v9298_v12  ;;  %5815 = vmatmul.mubr.bf16.vlgmr.msra.gmra.mxu0 %v10620_v63  ;;  %v9354_v12 = vld [vmem:[#allocation15 + $0x3b4] ss:$36 sps:$4 sm:$0xff]  }
 0x59b   :  { %5824 = vmatpush1.bf16.msra.mxu0 %v9301_v19  ;;  %5855 = vmatprep.mubr.bf16.mxu0 %v10583_v52  ;;  %v9357_v19 = vld [vmem:[#allocation15 + $0x404] ss:$36 sps:$4 sm:$0xff]  }
 0x59c   :  { %5745 = vmatprep.subr.bf16.mxu1 %v9306_v27  ;;  %5825 = vmatprep.subr.bf16.mxu0 %v9309_v2  ;;  %v9352_v27 = vld [vmem:[#allocation15 + $0x3b0] ss:$36 sps:$4 sm:$0xff]   ;;  %v9355_v2 = vld [vmem:[#allocation15 + $0x400] ss:$36 sps:$4 sm:$0xff]  }
 0x59e   :  { %5746 = vmatpush1.bf16.msra.mxu1 %v9304_v22  ;;  %v9360_v22 = vld [vmem:[#allocation15 + $0x36c] ss:$36 sps:$4 sm:$0xff]  }
 0x59f   :  { %5826 = vmatpush1.bf16.msra.mxu0 %v9307_v29  ;;  %5747 = vmatprep.subr.bf16.mxu1 %v9312_v30  ;;  %v9363_v29 = vld [vmem:[#allocation15 + $0x3bc] ss:$36 sps:$4 sm:$0xff]   ;;  %v9358_v30 = vld [vmem:[#allocation15 + $0x368] ss:$36 sps:$4 sm:$0xff]  }
 0x5a0   :  { %5827 = vmatprep.subr.bf16.mxu0 %v9315_v31  ;;  %v9361_v31 = vld [vmem:[#allocation15 + $0x3b8] ss:$36 sps:$4 sm:$0xff]  }
 0x5a2   :  { %5748 = vmatpush1.bf16.msra.mxu1 %v9310_v33  ;;  %v9366_v33 = vld [vmem:[#allocation15 + $0x324] ss:$36 sps:$4 sm:$0xff]  }
 0x5a3   :  { %5828 = vmatpush1.bf16.msra.mxu0 %v9313_v58  ;;  %5749 = vmatprep.subr.bf16.mxu1 %v9318_v35  ;;  %v9369_v58 = vld [vmem:[#allocation15 + $0x374] ss:$36 sps:$4 sm:$0xff]   ;;  %v9364_v35 = vld [vmem:[#allocation15 + $0x320] ss:$36 sps:$4 sm:$0xff]  }
 0x5a4   :  { %5829 = vmatprep.subr.bf16.mxu0 %v9321_v38  ;;  %v9367_v38 = vld [vmem:[#allocation15 + $0x370] ss:$36 sps:$4 sm:$0xff]  }
 0x5a6   :  { %5750 = vmatpush1.bf16.msra.mxu1 %v9316_v20  ;;  %v9372_v20 = vld [vmem:[#allocation15 + $0x2dc] ss:$36 sps:$4 sm:$0xff]  }
 0x5a7   :  { %5830 = vmatpush1.bf16.msra.mxu0 %v9319_v3  ;;  %5751 = vmatprep.subr.bf16.mxu1 %v9324_v39  ;;  %v9375_v3 = vld [vmem:[#allocation15 + $0x32c] ss:$36 sps:$4 sm:$0xff]   ;;  %v9370_v39 = vld [vmem:[#allocation15 + $0x2d8] ss:$36 sps:$4 sm:$0xff]  }
 0x5a8   :  { %5831 = vmatprep.subr.bf16.mxu0 %v9327_v41  ;;  %v9373_v41 = vld [vmem:[#allocation15 + $0x328] ss:$36 sps:$4 sm:$0xff]  }
 0x5aa   :  { %5752 = vmatpush1.bf16.msra.mxu1 %v9322_v6  ;;  %v9378_v6 = vld [vmem:[#allocation15 + $0x294] ss:$36 sps:$4 sm:$0xff]  }
 0x5ab   :  { %5832 = vmatpush1.bf16.msra.mxu0 %v9325_v42  ;;  %5753 = vmatprep.subr.bf16.mxu1 %v9330_v43  ;;  %v9381_v42 = vld [vmem:[#allocation15 + $0x2e4] ss:$36 sps:$4 sm:$0xff]   ;;  %v9376_v43 = vld [vmem:[#allocation15 + $0x290] ss:$36 sps:$4 sm:$0xff]  }
 0x5ac   :  { %5833 = vmatprep.subr.bf16.mxu0 %v9333_v46  ;;  %v9379_v46 = vld [vmem:[#allocation15 + $0x2e0] ss:$36 sps:$4 sm:$0xff]  }
 0x5ae   :  { %5754 = vmatpush1.bf16.msra.mxu1 %v9328_v60  ;;  %v9384_v60 = vld [vmem:[#allocation15 + $0x24c] ss:$36 sps:$4 sm:$0xff]  }
 0x5af   :  { %5834 = vmatpush1.bf16.msra.mxu0 %v9331_v47  ;;  %5755 = vmatprep.subr.bf16.mxu1 %v9336_v1  ;;  %v9387_v47 = vld [vmem:[#allocation15 + $0x29c] ss:$36 sps:$4 sm:$0xff]   ;;  %v9382_v1 = vld [vmem:[#allocation15 + $0x248] ss:$36 sps:$4 sm:$0xff]  }
 0x5b0   :  { %5835 = vmatprep.subr.bf16.mxu0 %v9339_v49  ;;  %v9385_v49 = vld [vmem:[#allocation15 + $0x298] ss:$36 sps:$4 sm:$0xff]  }
 0x5b2   :  { %5756 = vmatpush1.bf16.msra.mxu1 %v9334_v53  ;;  %v9390_v53 = vld [vmem:[#allocation15 + $0x68c] ss:$36 sps:$4 sm:$0xff]  }
 0x5b3   :  { %5836 = vmatpush1.bf16.msra.mxu0 %v9337_v54  ;;  %5757 = vmatprep.subr.bf16.mxu1 %v9342_v59  ;;  %v9393_v54 = vld [vmem:[#allocation15 + $0x254] ss:$36 sps:$4 sm:$0xff]   ;;  %v9388_v59 = vld [vmem:[#allocation15 + $0x688] ss:$36 sps:$4 sm:$0xff]  }
 0x5b4   :  { %5837 = vmatprep.subr.bf16.mxu0 %v9345_v61  ;;  %v9391_v61 = vld [vmem:[#allocation15 + $0x250] ss:$36 sps:$4 sm:$0xff]  }
 0x5b6   :  { %5758 = vmatpush2.bf16.msra.mxu1 %v9340_v26  ;;  %v9396_v26 = vld [vmem:[#allocation15 + $0x644] ss:$36 sps:$4 sm:$0xff]  }
 0x5b7   :  { %5838 = vmatpush1.bf16.msra.mxu0 %v9343_v9  ;;  %5759 = vmatprep.subr.bf16.mxu1 %v9348_v37  ;;  %v9399_v9 = vld [vmem:[#allocation15 + $0x694] ss:$36 sps:$4 sm:$0xff]   ;;  %v9394_v37 = vld [vmem:[#allocation15 + $0x640] ss:$36 sps:$4 sm:$0xff]  }
 0x5b8   :  { %5839 = vmatprep.subr.bf16.mxu0 %v9351_v11  ;;  %v9397_v11 = vld [vmem:[#allocation15 + $0x690] ss:$36 sps:$4 sm:$0xff]  }
 0x5ba   :  { %5760 = vmatpush2.bf16.msra.mxu1 %v9346_v13  ;;  %v9402_v13 = vld [vmem:[#allocation15 + $0x5fc] ss:$36 sps:$4 sm:$0xff]  }
 0x5bb   :  { %5840 = vmatpush2.bf16.msra.mxu0 %v9349_v17  ;;  %5761 = vmatprep.subr.bf16.mxu1 %v9354_v12  ;;  %v9405_v17 = vld [vmem:[#allocation15 + $0x64c] ss:$36 sps:$4 sm:$0xff]   ;;  %v9400_v12 = vld [vmem:[#allocation15 + $0x5f8] ss:$36 sps:$4 sm:$0xff]  }
 0x5bc   :  { %5841 = vmatprep.subr.bf16.mxu0 %v9357_v19  ;;  %v9403_v19 = vld [vmem:[#allocation15 + $0x648] ss:$36 sps:$4 sm:$0xff]  }
 0x5be   :  { %5762 = vmatpush2.bf16.msra.mxu1 %v9352_v27  ;;  %v9408_v27 = vld [vmem:[#allocation15 + $0x5b4] ss:$36 sps:$4 sm:$0xff]  }
 0x5bf   :  { %5842 = vmatpush2.bf16.msra.mxu0 %v9355_v2  ;;  %5763 = vmatprep.subr.bf16.mxu1 %v9360_v22  ;;  %v9411_v2 = vld [vmem:[#allocation15 + $0x604] ss:$36 sps:$4 sm:$0xff]   ;;  %v9406_v22 = vld [vmem:[#allocation15 + $0x5b0] ss:$36 sps:$4 sm:$0xff]  }
 0x5c0   :  { %5843 = vmatprep.subr.bf16.mxu0 %v9363_v29  ;;  %v9409_v29 = vld [vmem:[#allocation15 + $0x600] ss:$36 sps:$4 sm:$0xff]  }
 0x5c2   :  { %5764 = vmatpush2.bf16.msra.mxu1 %v9358_v30  ;;  %v9414_v30 = vld [vmem:[#allocation15 + $0x56c] ss:$36 sps:$4 sm:$0xff]  }
 0x5c3   :  { %5844 = vmatpush2.bf16.msra.mxu0 %v9361_v31  ;;  %5765 = vmatprep.subr.bf16.mxu1 %v9366_v33  ;;  %v9417_v31 = vld [vmem:[#allocation15 + $0x5bc] ss:$36 sps:$4 sm:$0xff]   ;;  %v9412_v33 = vld [vmem:[#allocation15 + $0x568] ss:$36 sps:$4 sm:$0xff]  }
 0x5c4   :  { %5845 = vmatprep.subr.bf16.mxu0 %v9369_v58  ;;  %v9415_v58 = vld [vmem:[#allocation15 + $0x5b8] ss:$36 sps:$4 sm:$0xff]  }
 0x5c6   :  { %5766 = vmatpush2.bf16.msra.mxu1 %v9364_v35  ;;  %v9420_v35 = vld [vmem:[#allocation15 + $0x524] ss:$36 sps:$4 sm:$0xff]  }
 0x5c7   :  { %5846 = vmatpush2.bf16.msra.mxu0 %v9367_v38  ;;  %5767 = vmatprep.subr.bf16.mxu1 %v9372_v20  ;;  %v10631_v38 = vld [vmem:[#allocation15 + $0x574] ss:$36 sps:$4 sm:$0xff]   ;;  %v9418_v20 = vld [vmem:[#allocation15 + $0x520] ss:$36 sps:$4 sm:$0xff]  }
 0x5c8   :  { %5847 = vmatprep.subr.bf16.mxu0 %v9375_v3  ;;  %v10633_v3 = vld [vmem:[#allocation15 + $0x570] ss:$36 sps:$4 sm:$0xff]  }
 0x5ca   :  { %5768 = vmatpush2.bf16.msra.mxu1 %v9370_v39  ;;  %v10635_v39 = vld [vmem:[#allocation15 + $0x4dc] ss:$36 sps:$4 sm:$0xff]  }
 0x5cb   :  { %5848 = vmatpush2.bf16.msra.mxu0 %v9373_v41  ;;  %5769 = vmatprep.subr.bf16.mxu1 %v9378_v6  ;;  %v10638_v41 = vld [vmem:[#allocation15 + $0x52c] ss:$36 sps:$4 sm:$0xff]   ;;  %v10640_v6 = vld [vmem:[#allocation15 + $0x4d8] ss:$36 sps:$4 sm:$0xff]  }
 0x5cc   :  { %5849 = vmatprep.subr.bf16.mxu0 %v9381_v42  ;;  %v10644_v42 = vld [vmem:[#allocation15 + $0x528] ss:$36 sps:$4 sm:$0xff]  }
 0x5ce   :  { %5770 = vmatpush2.bf16.msra.mxu1 %v9376_v43  ;;  %v10646_v43 = vld [vmem:[#allocation15 + $0x494] ss:$36 sps:$4 sm:$0xff]  }
 0x5cf   :  { %5850 = vmatpush2.bf16.msra.mxu0 %v9379_v46  ;;  %5771 = vmatprep.subr.bf16.mxu1 %v9384_v60  ;;  %v10649_v46 = vld [vmem:[#allocation15 + $0x4e4] ss:$36 sps:$4 sm:$0xff]   ;;  %v10652_v60 = vld [vmem:[#allocation15 + $0x490] ss:$36 sps:$4 sm:$0xff]  }
 0x5d0   :  { %5851 = vmatprep.subr.bf16.mxu0 %v9387_v47  ;;  %v10656_v47 = vld [vmem:[#allocation15 + $0x4e0] ss:$36 sps:$4 sm:$0xff]  }
 0x5d2   :  { %5772 = vmatpush2.bf16.msra.mxu1 %v9382_v1  ;;  %v10658_v1 = vld [vmem:[#allocation15 + $0x214] ss:$36 sps:$4 sm:$0xff]  }
 0x5d3   :  { %5852 = vmatpush2.bf16.msra.mxu0 %v9385_v49  ;;  %5864 = vmatprep.subr.bf16.mxu1 %v9390_v53  ;;  %v10661_v49 = vld [vmem:[#allocation15 + $0x49c] ss:$36 sps:$4 sm:$0xff]   ;;  %v10664_v53 = vld [vmem:[#allocation15 + $0x210] ss:$36 sps:$4 sm:$0xff]  }
 0x5d4   :  { %5853 = vmatprep.subr.bf16.mxu0 %v9393_v54  ;;  %v10668_v54 = vld [vmem:[#allocation15 + $0x498] ss:$36 sps:$4 sm:$0xff]  }
 0x5d5   :  { %5774 = vmatmul.mubr.bf16.vlgmr.msra.gmra.mxu1 %v10587_v57 }
 0x5d6   :  { %5865 = vmatpush1.bf16.msra.mxu1 %v9388_v59  ;;  %5896 = vmatprep.mubr.bf16.mxu1 %v12085_v0  ;;  %v10670_v59 = vld [vmem:[#allocation15 + $0x1cc] ss:$36 sps:$4 sm:$0xff]  }
 0x5d7   :  { %5854 = vmatpush2.bf16.msra.mxu0 %v9391_v61  ;;  %5866 = vmatprep.subr.bf16.mxu1 %v9396_v26  ;;  %v10673_v61 = vld [vmem:[#allocation15 + $0x458] ss:$36 sps:$4 sm:$0xff]   ;;  %v10678_v26 = vld [vmem:[#allocation15 + $0x1c8] ss:$36 sps:$4 sm:$0xff]  }
 0x5d8   :  { %5946 = vmatprep.subr.bf16.mxu0 %v9399_v9  ;;  %v10682_v9 = vld [vmem:[#allocation15 + $0x218] ss:$36 sps:$4 sm:$0xff]  }
 0x5da   :  { %5856 = vmatmul.mubr.bf16.vlgmr.msra.gmra.mxu0 %v10587_v57  ;;  %5867 = vmatpush1.bf16.msra.mxu1 %v9394_v37  ;;  %v10685_v37 = vld [vmem:[#allocation15 + $0x184] ss:$36 sps:$4 sm:$0xff]  }
 0x5db   :  { %5947 = vmatpush1.bf16.msra.mxu0 %v9397_v11  ;;  %5868 = vmatprep.subr.bf16.mxu1 %v9402_v13  ;;  %v10687_v11 = vld [vmem:[#allocation15 + $0x410] ss:$36 sps:$4 sm:$0xff]   ;;  %v10691_v13 = vld [vmem:[#allocation15 + $0x180] ss:$36 sps:$4 sm:$0xff]  }
 0x5dc   :  { %5948 = vmatprep.subr.bf16.mxu0 %v9405_v17  ;;  %5978 = vmatprep.mubr.bf16.mxu0 %v12085_v0  ;;  %v10695_v17 = vld [vmem:[#allocation15 + $0x1d0] ss:$36 sps:$4 sm:$0xff]  }
 0x5dd   :  { %v10737_v0 = vld [vmem:[#allocation15 + $0x2f0] ss:$36 sps:$4 sm:$0xff]  }
 0x5de   :  { %5869 = vmatpush1.bf16.msra.mxu1 %v9400_v12  ;;  %v10697_v12 = vld [vmem:[#allocation15 + $0x13c] ss:$36 sps:$4 sm:$0xff]   ;;  %12351 = vst [vmem:[#allocation55_spill] sm:$0xff] %v10737_v0 }
 0x5df   :  { %5949 = vmatpush1.bf16.msra.mxu0 %v9403_v19  ;;  %5870 = vmatprep.subr.bf16.mxu1 %v9408_v27  ;;  %12338 = vst [vmem:[#allocation42_spill] sm:$0xff] %v10697_v12  ;;  %v10701_v19 = vld [vmem:[#allocation15 + $0x3c8] ss:$36 sps:$4 sm:$0xff]   ;;  %v10704_v27 = vld [vmem:[#allocation15 + $0x138] ss:$36 sps:$4 sm:$0xff]  }
 0x5e0   :  { %5950 = vmatprep.subr.bf16.mxu0 %v9411_v2  ;;  %12339 = vst [vmem:[#allocation43_spill] sm:$0xff] %v10701_v19  ;;  %12340 = vst [vmem:[#allocation44_spill] sm:$0xff] %v10704_v27  ;;  %v10708_v2 = vld [vmem:[#allocation15 + $0x188] ss:$36 sps:$4 sm:$0xff]  }
 0x5e1   :  { %12341 = vst [vmem:[#allocation45_spill] sm:$0xff] %v10708_v2 }
 0x5e2   :  { %5871 = vmatpush1.bf16.msra.mxu1 %v9406_v22  ;;  %v10713_v22 = vld [vmem:[#allocation15 + $0x380] ss:$36 sps:$4 sm:$0xff]  }
 0x5e3   :  { %5951 = vmatpush1.bf16.msra.mxu0 %v9409_v29  ;;  %5872 = vmatprep.subr.bf16.mxu1 %v9414_v30  ;;  %12343 = vst [vmem:[#allocation47_spill] sm:$0xff] %v10713_v22  ;;  %v10716_v29 = vld [vmem:[#allocation15 + $0xf0] ss:$36 sps:$4 sm:$0xff]   ;;  %v10720_v30 = vld [vmem:[#allocation15 + $0x140] ss:$36 sps:$4 sm:$0xff]  }
 0x5e4   :  { %5952 = vmatprep.subr.bf16.mxu0 %v9417_v31  ;;  %12344 = vst [vmem:[#allocation48_spill] sm:$0xff] %v10716_v29  ;;  %12345 = vst [vmem:[#allocation49_spill] sm:$0xff] %v10720_v30  ;;  %v10722_v31 = vld [vmem:[#allocation15 + $0xac] ss:$36 sps:$4 sm:$0xff]  }
 0x5e5   :  { %12346 = vst [vmem:[#allocation50_spill] sm:$0xff] %v10722_v31 }
 0x5e6   :  { %5873 = vmatpush1.bf16.msra.mxu1 %v9412_v33  ;;  %v10725_v33 = vld [vmem:[#allocation15 + $0x338] ss:$36 sps:$4 sm:$0xff]  }
 0x5e7   :  { %5953 = vmatpush1.bf16.msra.mxu0 %v9415_v58  ;;  %5874 = vmatprep.subr.bf16.mxu1 %v9420_v35  ;;  %12347 = vst [vmem:[#allocation51_spill] sm:$0xff] %v10725_v33  ;;  %v10728_v58 = vld [vmem:[#allocation15 + $0xa8] ss:$36 sps:$4 sm:$0xff]   ;;  %v10732_v35 = vld [vmem:[#allocation15 + $0xf8] ss:$36 sps:$4 sm:$0xff]  }
 0x5e8   :  { %5954 = vmatprep.subr.bf16.mxu0 %v10631_v38  ;;  %12348 = vst [vmem:[#allocation52_spill] sm:$0xff] %v10728_v58  ;;  %12349 = vst [vmem:[#allocation53_spill] sm:$0xff] %v10732_v35 }
 0x5ea   :  { %5875 = vmatpush1.bf16.msra.mxu1 %v9418_v20  ;;  %v10734_v20 = vld [vmem:[#allocation15 + $0x64] ss:$36 sps:$4 sm:$0xff]  }
 0x5eb   :  { %5955 = vmatpush1.bf16.msra.mxu0 %v10633_v3  ;;  %5876 = vmatprep.subr.bf16.mxu1 %v10635_v39  ;;  %12350 = vst [vmem:[#allocation54_spill] sm:$0xff] %v10734_v20 }
 0x5ec   :  { %5956 = vmatprep.subr.bf16.mxu0 %v10638_v41 }
 0x5ee   :  { %5877 = vmatpush1.bf16.msra.mxu1 %v10640_v6 }
 0x5ef   :  { %5957 = vmatpush1.bf16.msra.mxu0 %v10644_v42  ;;  %5878 = vmatprep.subr.bf16.mxu1 %v10646_v43 }
 0x5f0   :  { %5958 = vmatprep.subr.bf16.mxu0 %v10649_v46 }
 0x5f2   :  { %5879 = vmatpush1.bf16.msra.mxu1 %v10652_v60 }
 0x5f3   :  { %5959 = vmatpush1.bf16.msra.mxu0 %v10656_v47  ;;  %5905 = vmatprep.subr.bf16.mxu1 %v10658_v1 }
 0x5f4   :  { %5960 = vmatprep.subr.bf16.mxu0 %v10661_v49 }
 0x5f5   :  { %5897 = vmatmul.mubr.bf16.vlgmr.msra.gmra.mxu1 %v10620_v63 }
 0x5f6   :  { %5906 = vmatpush1.bf16.msra.mxu1 %v10664_v53  ;;  %5937 = vmatprep.mubr.bf16.mxu1 %v10583_v52 }
 0x5f7   :  { %5961 = vmatpush1.bf16.msra.mxu0 %v10668_v54  ;;  %5907 = vmatprep.subr.bf16.mxu1 %v10670_v59 }
 0x5f8   :  { %8332 = vmatprep.subr.bf16.mxu0 %v10673_v61 }
 0x5fa   :  { %5908 = vmatpush1.bf16.msra.mxu1 %v10678_v26  ;;  %5979 = vmatmul.mubr.bf16.vlgmr.msra.gmra.mxu0 %v10620_v63 }
 0x5fb   :  { %8333 = vmatpush3.bf16.msra.mxu0 %v10682_v9  ;;  %6019 = vmatprep.mubr.bf16.mxu0 %v10583_v52  ;;  %v10710_v52 = vld [vmem:[#allocation15 + $0xf4] ss:$36 sps:$4 sm:$0xff]  }
 0x5fc   :  { %5909 = vmatprep.subr.bf16.mxu1 %v10685_v37  ;;  %8334 = vmatprep.subr.bf16.mxu0 %v10687_v11  ;;  %12342 = vst [vmem:[#allocation46_spill] sm:$0xff] %v10710_v52 }
 0x5fe   :  { %5910 = vmatpush1.bf16.msra.mxu1 %v10691_v13 }
 0x5ff   :  { %8335 = vmatpush3.bf16.msra.mxu0 %v10695_v17  ;;  %5911 = vmatprep.subr.bf16.mxu1 %v10697_v12 }
 0x600   :  { %8336 = vmatprep.subr.bf16.mxu0 %v10701_v19 }
 0x602   :  { %5912 = vmatpush1.bf16.msra.mxu1 %v10704_v27 }
 0x603   :  { %8337 = vmatpush3.bf16.msra.mxu0 %v10708_v2  ;;  %5913 = vmatprep.subr.bf16.mxu1 %v10710_v52 }
 0x604   :  { %8338 = vmatprep.subr.bf16.mxu0 %v10713_v22 }
 0x606   :  { %5914 = vmatpush1.bf16.msra.mxu1 %v10716_v29 }
 0x607   :  { %8339 = vmatpush3.bf16.msra.mxu0 %v10720_v30  ;;  %5915 = vmatprep.subr.bf16.mxu1 %v10722_v31 }
 0x608   :  { %8340 = vmatprep.subr.bf16.mxu0 %v10725_v33 }
 0x60a   :  { %5916 = vmatpush1.bf16.msra.mxu1 %v10728_v58 }
 0x60b   :  { %8341 = vmatpush3.bf16.msra.mxu0 %v10732_v35  ;;  %5917 = vmatprep.subr.bf16.mxu1 %v10734_v20  ;;  %v10764_v20 = vld [vmem:[#allocation15 + $0x450] ss:$36 sps:$4 sm:$0xff]   ;;  %v10819_v35 = vld [vmem:[#allocation15 + $0x168] ss:$36 sps:$4 sm:$0xff]  }
 0x60c   :  { %8342 = vmatprep.subr.bf16.mxu0 %v10737_v0  ;;  %12360 = vst [vmem:[#allocation64_spill] sm:$0xff] %v10764_v20  ;;  %v10807_v0 = vld [vmem:[#allocation15 + $0x16c] ss:$36 sps:$4 sm:$0xff]   ;;  %12377 = vst [vmem:[#allocation81_spill] sm:$0xff] %v10819_v35 }
 0x60d   :  { %12373 = vst [vmem:[#allocation77_spill] sm:$0xff] %v10807_v0 }
 0x60e   :  { %5918 = vmatpush1.bf16.msra.mxu1 %v10740_v40  ;;  %v10768_v40 = vld [vmem:[#allocation15 + $0x20] ss:$36 sps:$4 sm:$0xff]  }
 0x60f   :  { %8343 = vmatpush3.bf16.msra.mxu0 %v10744_v4  ;;  %5919 = vmatprep.subr.bf16.mxu1 %v10746_v7  ;;  %12361 = vst [vmem:[#allocation65_spill] sm:$0xff] %v10768_v40  ;;  %v10770_v4 = vld [vmem:[#allocation15 + $0x40c] ss:$36 sps:$4 sm:$0xff]  }
 0x610   :  { %8344 = vmatprep.subr.bf16.mxu0 %v10749_v24  ;;  %12362 = vst [vmem:[#allocation66_spill] sm:$0xff] %v10770_v4  ;;  %v10774_v7 = vld [vmem:[#allocation15 + $0x408] ss:$36 sps:$4 sm:$0xff]   ;;  %v10780_v24 = vld [vmem:[#allocation15 + $0x1fc] ss:$36 sps:$4 sm:$0xff]  }
 0x611   :  { %12363 = vst [vmem:[#allocation67_spill] sm:$0xff] %v10774_v7  ;;  %12365 = vst [vmem:[#allocation69_spill] sm:$0xff] %v10780_v24 }
 0x612   :  { %5920 = vmatpush1.bf16.msra.mxu1 %v10752_v5  ;;  %v10778_v5 = vld [vmem:[#allocation15 + $0x3c4] ss:$36 sps:$4 sm:$0xff]  }
 0x613   :  { %8345 = vmatpush3.bf16.msra.mxu0 %v10756_v25  ;;  %5921 = vmatprep.subr.bf16.mxu1 %v10758_v45  ;;  %12364 = vst [vmem:[#allocation68_spill] sm:$0xff] %v10778_v5  ;;  %v10785_v45 = vld [vmem:[#allocation15 + $0x3c0] ss:$36 sps:$4 sm:$0xff]   ;;  %v10804_v25 = vld [vmem:[#allocation15 + $0x1b0] ss:$36 sps:$4 sm:$0xff]  }
 0x614   :  { %8346 = vmatprep.subr.bf16.mxu0 %v10761_v48  ;;  %12366 = vst [vmem:[#allocation70_spill] sm:$0xff] %v10785_v45  ;;  %v10790_v48 = vld [vmem:[#allocation15 + $0x1f8] ss:$36 sps:$4 sm:$0xff]   ;;  %12372 = vst [vmem:[#allocation76_spill] sm:$0xff] %v10804_v25 }
 0x615   :  { %12368 = vst [vmem:[#allocation72_spill] sm:$0xff] %v10790_v48 }
 0x616   :  { %5922 = vmatpush2.bf16.msra.mxu1 %v10764_v20  ;;  %v10788_v20 = vld [vmem:[#allocation15 + $0x37c] ss:$36 sps:$4 sm:$0xff]  }
 0x617   :  { %8347 = vmatpush3.bf16.msra.mxu0 %v10768_v40  ;;  %5923 = vmatprep.subr.bf16.mxu1 %v10770_v4  ;;  %12367 = vst [vmem:[#allocation71_spill] sm:$0xff] %v10788_v20  ;;  %v10793_v4 = vpop.permute.xlu0 %4445  ;;  %v10795_v40 = vld [vmem:[#allocation15 + $0x1b4] ss:$36 sps:$4 sm:$0xff]  }
 0x618   :  { %6340 = vmatprep.subr.bf16.mxu0 %v10780_v24  ;;  %12369 = vst [vmem:[#allocation73_spill] sm:$0xff] %v10795_v40  ;;  %v8027_v24 = vld [vmem:[#allocation22] ss:$0 sm:$0xff] }
 0x61a   :  { %5924 = vmatpush2.bf16.msra.mxu1 %v10774_v7  ;;  %6020 = vmatmul.mubr.bf16.vlgmr.msra.gmra.mxu0 %v10587_v57  ;;  %v10799_v7 = vld [vmem:[#allocation15 + $0x378] ss:$36 sps:$4 sm:$0xff]  }
 0x61b   :  { %5925 = vmatprep.subr.bf16.mxu1 %v10778_v5  ;;  %6341 = vmatpush1.bf16.msra.mxu0 %v10790_v48  ;;  %12370 = vst [vmem:[#allocation74_spill] sm:$0xff] %v10799_v7  ;;  %v10802_v5 = vld [vmem:[#allocation15 + $0x334] ss:$36 sps:$4 sm:$0xff]  }
 0x61c   :  { %6342 = vmatprep.subr.bf16.mxu0 %v10795_v40  ;;  %12371 = vst [vmem:[#allocation75_spill] sm:$0xff] %v10802_v5 }
 0x61e   :  { %5926 = vmatpush2.bf16.msra.mxu1 %v10785_v45  ;;  %v10813_v45 = vld [vmem:[#allocation15 + $0x330] ss:$36 sps:$4 sm:$0xff]  }
 0x61f   :  { %5927 = vmatprep.subr.bf16.mxu1 %v10788_v20  ;;  %6343 = vmatpush1.bf16.msra.mxu0 %v10804_v25  ;;  %12375 = vst [vmem:[#allocation79_spill] sm:$0xff] %v10813_v45  ;;  %v10817_v20 = vld [vmem:[#allocation15 + $0x2ec] ss:$36 sps:$4 sm:$0xff]   ;;  %v10822_v25 = vld [vmem:[#allocation15 + $0x124] ss:$36 sps:$4 sm:$0xff]  }
 0x620   :  { %v4379_v48 = vpop.xlane.xlu0 %4378  ;;  %6344 = vmatprep.subr.bf16.mxu0 %v10807_v0  ;;  %12376 = vst [vmem:[#allocation80_spill] sm:$0xff] %v10817_v20  ;;  %12378 = vst [vmem:[#allocation82_spill] sm:$0xff] %v10822_v25  ;;  %v10977_v0 = vld [vmem:[#allocation15 + $0x5ec] ss:$36 sps:$4 sm:$0xff]  }
 0x621   :  { %v10810_v58 = vadd.f32 %v8027_v24, %v4379_v48  ;;  %v10826_v24 = vld [vmem:[#allocation15 + $0x2e8] ss:$36 sps:$4 sm:$0xff]   ;;  %12425 = vst [vmem:[#allocation127_spill] sm:$0xff] %v10977_v0 }
 0x622   :  { %5928 = vmatpush2.bf16.msra.mxu1 %v10799_v7  ;;  %12379 = vst [vmem:[#allocation83_spill] sm:$0xff] %v10826_v24  ;;  %v10829_v48 = vld [vmem:[#allocation15 + $0x2a4] ss:$36 sps:$4 sm:$0xff]   ;;  %v12391_v7 = vmov 0.0  }
 0x623   :  { %12374 = vst [vmem:[#allocation78_spill] sm:$0xff] %v10810_v58  ;;  %v8028_v40 = vmul.f32 -1.442695, %v10810_v58  ;;  %5929 = vmatprep.subr.bf16.mxu1 %v10802_v5  ;;  %6345 = vmatpush1.bf16.msra.mxu0 %v10819_v35  ;;  %12380 = vst [vmem:[#allocation84_spill] sm:$0xff] %v10829_v48  ;;  %v10831_v58 = vld [vmem:[#allocation15 + $0x120] ss:$36 sps:$4 sm:$0xff]  }
 0x624   :  { %6346 = vmatprep.subr.bf16.mxu0 %v10822_v25  ;;  %12381 = vst [vmem:[#allocation85_spill] sm:$0xff] %v10831_v58  ;;  %v10834_v5 = vld [vmem:[#allocation15 + $0xdc] ss:$36 sps:$4 sm:$0xff]   ;;  %v10899_v35 = vld [vmem:[#allocation15 + $0x3ac] ss:$36 sps:$4 sm:$0xff]  }
 0x625   :  { %9553 = vpow2.f32 %v8028_v40  ;;  %12382 = vst [vmem:[#allocation86_spill] sm:$0xff] %v10834_v5  ;;  %v10838_v25 = vld [vmem:[#allocation15 + $0x2a0] ss:$36 sps:$4 sm:$0xff]   ;;  %12402 = vst [vmem:[#allocation105_spill] sm:$0xff] %v10899_v35 }
 0x626   :  { %5930 = vmatpush2.bf16.msra.mxu1 %v10813_v45  ;;  %12383 = vst [vmem:[#allocation87_spill] sm:$0xff] %v10838_v25  ;;  %v10841_v40 = vld [vmem:[#allocation15 + $0x25c] ss:$36 sps:$4 sm:$0xff]  }
 0x627   :  { %5931 = vmatprep.subr.bf16.mxu1 %v10817_v20  ;;  %6347 = vmatpush1.bf16.msra.mxu0 %v10831_v58  ;;  %12384 = vst [vmem:[#allocation88_spill] sm:$0xff] %v10841_v40  ;;  %v10843_v45 = vld [vmem:[#allocation15 + $0xd8] ss:$36 sps:$4 sm:$0xff]  }
 0x628   :  { %6348 = vmatprep.subr.bf16.mxu0 %v10834_v5  ;;  %12385 = vst [vmem:[#allocation89_spill] sm:$0xff] %v10843_v45  ;;  %v10846_v20 = vld [vmem:[#allocation15 + $0x94] ss:$36 sps:$4 sm:$0xff]  }
 0x629   :  { %12386 = vst [vmem:[#allocation90_spill] sm:$0xff] %v10846_v20  ;;  %v10850_v58 = vld [vmem:[#allocation15 + $0x258] ss:$36 sps:$4 sm:$0xff]  }
 0x62a   :  { %5932 = vmatpush2.bf16.msra.mxu1 %v10826_v24  ;;  %12387 = vst [vmem:[#allocation91_spill] sm:$0xff] %v10850_v58  ;;  %v10853_v24 = vld [vmem:[#allocation15 + $0x90] ss:$36 sps:$4 sm:$0xff]  }
 0x62b   :  { %5933 = vmatprep.subr.bf16.mxu1 %v10829_v48  ;;  %6349 = vmatpush1.bf16.msra.mxu0 %v10843_v45  ;;  %12388 = vst [vmem:[#allocation92_spill] sm:$0xff] %v10853_v24  ;;  %v10856_v48 = vld [vmem:[#allocation15 + $0x4c] ss:$36 sps:$4 sm:$0xff]   ;;  %v10860_v45 = vld [vmem:[#allocation15 + $0x698] ss:$36 sps:$4 sm:$0xff]  }
 0x62c   :  { %6350 = vmatprep.subr.bf16.mxu0 %v10846_v20  ;;  %12389 = vst [vmem:[#allocation93_spill] sm:$0xff] %v10856_v48  ;;  %12390 = vst [vmem:[#allocation94_spill] sm:$0xff] %v10860_v45 }
 0x62e   :  { %5934 = vmatpush2.bf16.msra.mxu1 %v10838_v25  ;;  %v10863_v25 = vld [vmem:[#allocation15 + $0x48] ss:$36 sps:$4 sm:$0xff]  }
 0x62f   :  { %5935 = vmatprep.subr.bf16.mxu1 %v10841_v40  ;;  %6351 = vmatpush1.bf16.msra.mxu0 %v10853_v24  ;;  %12392 = vst [vmem:[#allocation95_spill] sm:$0xff] %v10863_v25  ;;  %v10866_v40 = vld [vmem:[#allocation15 + $0x4] ss:$36 sps:$4 sm:$0xff]  }
 0x630   :  { %6352 = vmatprep.subr.bf16.mxu0 %v10856_v48  ;;  %12393 = vst [vmem:[#allocation96_spill] sm:$0xff] %v10866_v40  ;;  %v10871_v48 = vld [vmem:[#allocation15 + $0x650] ss:$36 sps:$4 sm:$0xff]  }
 0x631   :  { %12394 = vst [vmem:[#allocation97_spill] sm:$0xff] %v10871_v48 }
 0x632   :  { %v9554_v5 = vpop.eup %9553  ;;  %5936 = vmatpush2.bf16.msra.mxu1 %v10850_v58  ;;  %v10879_v58 = vld [vmem:[#allocation15 + $0x43c] ss:$36 sps:$4 sm:$0xff]  }
 0x633   :  { %v4390_v20 = vadd.f32 1.0, %v9554_v5  ;;  %8457 = vmatprep.subr.bf16.mxu1 %v12391_v7  ;;  %6353 = vmatpush1.bf16.msra.mxu0 %v10863_v25  ;;  %v10876_v5 = vld [vmem:[#allocation15] ss:$36 sps:$4 sm:$0xff]   ;;  %12396 = vst [vmem:[#allocation99_spill] sm:$0xff] %v10879_v58  ;;  %v10889_v25 = vld [vmem:[#allocation15 + $0x3f4] ss:$36 sps:$4 sm:$0xff]  }
 0x634   :  { %6354 = vmatprep.subr.bf16.mxu0 %v10866_v40  ;;  %12395 = vst [vmem:[#allocation98_spill] sm:$0xff] %v10876_v5  ;;  %12399 = vst [vmem:[#allocation102_spill] sm:$0xff] %v10889_v25 }
 0x635   :  { %9555 = vrcp.f32 %v4390_v20  ;;  %5938 = vmatmul.mubr.bf16.vlgmr.msra.gmra.mxu1 %v10587_v57  ;;  %v10883_v20 = vld [vmem:[#allocation15 + $0x608] ss:$36 sps:$4 sm:$0xff]  }
 0x636   :  { %8458 = vmatpush3.bf16.msra.mxu1 %v10860_v45  ;;  %8473 = vmatprep.mubr.msk.bf16.mxu1 %vm10214_vm1, %v12391_v7  ;;  %12397 = vst [vmem:[#allocation100_spill] sm:$0xff] %v10883_v20  ;;  %v10886_v45 = vld [vmem:[#allocation15 + $0x438] ss:$36 sps:$4 sm:$0xff]  }
 0x637   :  { %8459 = vmatprep.subr.bf16.mxu1 %v12391_v7  ;;  %6355 = vmatpush1.bf16.msra.mxu0 %v10876_v5  ;;  %12398 = vst [vmem:[#allocation101_spill] sm:$0xff] %v10886_v45 }
 0x638   :  { %6356 = vmatprep.subr.bf16.mxu0 %v10879_v58  ;;  %v10893_v58 = vld [vmem:[#allocation15 + $0x5c0] ss:$36 sps:$4 sm:$0xff]  }
 0x639   :  { %12400 = vst [vmem:[#allocation103_spill] sm:$0xff] %v10893_v58 }
 0x63a   :  { %8460 = vmatpush3.bf16.msra.mxu1 %v10871_v48  ;;  %v5693_v57 = vpop.f32.mrf.mxu0  ;;  %v10896_v48 = vld [vmem:[#allocation15 + $0x3f0] ss:$36 sps:$4 sm:$0xff]  }
 0x63b   :  { %8461 = vmatprep.subr.bf16.mxu1 %v12391_v7  ;;  %6357 = vmatpush2.bf16.msra.mxu0 %v10886_v45  ;;  %12401 = vst [vmem:[#allocation104_spill] sm:$0xff] %v10896_v48 }
 0x63c   :  { %v5695_v40 = vpop.f32.mrf.mxu0  ;;  %6358 = vmatprep.subr.bf16.mxu0 %v10889_v25  ;;  %v10905_v25 = vld [vmem:[#allocation15 + $0x578] ss:$36 sps:$4 sm:$0xff]  }
 0x63d   :  { %12404 = vst [vmem:[#allocation107_spill] sm:$0xff] %v10905_v25 }
 0x63e   :  { %8462 = vmatpush3.bf16.msra.mxu1 %v10883_v20  ;;  %v5697_v5 = vpop.f32.mrf.mxu0  ;;  %v10913_v20 = vld [vmem:[#allocation15 + $0x364] ss:$36 sps:$4 sm:$0xff]  }
 0x63f   :  { %8463 = vmatprep.subr.bf16.mxu1 %v12391_v7  ;;  %6359 = vmatpush2.bf16.msra.mxu0 %v10896_v48  ;;  %v10909_v5 = vld [vmem:[#allocation15 + $0x3a8] ss:$36 sps:$4 sm:$0xff]   ;;  %12406 = vst [vmem:[#allocation109_spill] sm:$0xff] %v10913_v20  ;;  %v10963_v48 = vld [vmem:[#allocation15 + $0x240] ss:$36 sps:$4 sm:$0xff]  }
 0x640   :  { %v5698_v24 = vpop.f32.mrf.mxu0  ;;  %6360 = vmatprep.subr.bf16.mxu0 %v10899_v35  ;;  %12405 = vst [vmem:[#allocation108_spill] sm:$0xff] %v10909_v5  ;;  %v10920_v35 = vld [vmem:[#allocation15 + $0x360] ss:$36 sps:$4 sm:$0xff]   ;;  %12421 = vst [vmem:[#allocation123_spill] sm:$0xff] %v10963_v48 }
 0x641   :  { %12408 = vst [vmem:[#allocation111_spill] sm:$0xff] %v10920_v35 }
 0x642   :  { %v10902_v45 = vpop.eup %9555  ;;  %8464 = vmatpush3.bf16.msra.mxu1 %v10893_v58  ;;  %v10917_v58 = vld [vmem:[#allocation15 + $0x530] ss:$36 sps:$4 sm:$0xff]  }
 0x643   :  { %12403 = vst [vmem:[#allocation106_spill] sm:$0xff] %v10902_v45  ;;  %8465 = vmatprep.subr.bf16.mxu1 %v12391_v7  ;;  %vm4434_vm4 = vcmp.gt.f32.partialorder %v10902_v45, 0.5  ;;  %6361 = vmatpush2.bf16.msra.mxu0 %v10909_v5  ;;  %12407 = vst [vmem:[#allocation110_spill] sm:$0xff] %v10917_v58  ;;  %v10923_v45 = vld [vmem:[#allocation15 + $0x31c] ss:$36 sps:$4 sm:$0xff]  }
 0x644   :  { %v4435_v24 = vsel %vm4434_vm4, 1.0, %v12391_v7  ;;  %6362 = vmatprep.subr.bf16.mxu0 %v10913_v20  ;;  %12409 = vst [vmem:[#allocation112_spill] sm:$0xff] %v10923_v45  ;;  %v10927_v5 = vld [vmem:[#allocation15 + $0x4e8] ss:$36 sps:$4 sm:$0xff]  }
 0x645   :  { %4438 = vperm.xlu1 %8557, %v4435_v24   ;;  %12410 = vst [vmem:[#allocation113_spill] sm:$0xff] %v10927_v5  ;;  %v10930_v24 = vld [vmem:[#allocation15 + $0x318] ss:$36 sps:$4 sm:$0xff]  }
 0x646   :  { %8466 = vmatpush3.bf16.msra.mxu1 %v10905_v25  ;;  %12411 = vst [vmem:[#allocation114_spill] sm:$0xff] %v10930_v24  ;;  %v10933_v25 = vld [vmem:[#allocation15 + $0x2d4] ss:$36 sps:$4 sm:$0xff]  }
 0x647   :  { %8467 = vmatprep.subr.bf16.mxu1 %v12391_v7  ;;  %6363 = vmatpush2.bf16.msra.mxu0 %v10920_v35  ;;  %12412 = vst [vmem:[#allocation115_spill] sm:$0xff] %v10933_v25  ;;  %v10937_v35 = vld [vmem:[#allocation15 + $0x4a0] ss:$36 sps:$4 sm:$0xff]  }
 0x648   :  { %6364 = vmatprep.subr.bf16.mxu0 %v10923_v45  ;;  %12413 = vst [vmem:[#allocation116_spill] sm:$0xff] %v10937_v35  ;;  %v10940_v45 = vld [vmem:[#allocation15 + $0x2d0] ss:$36 sps:$4 sm:$0xff]  }
 0x649   :  { %12414 = vst [vmem:[#allocation117_spill] sm:$0xff] %v10940_v45 }
 0x64a   :  { %8468 = vmatpush3.bf16.msra.mxu1 %v10917_v58  ;;  %v10943_v58 = vld [vmem:[#allocation15 + $0x28c] ss:$36 sps:$4 sm:$0xff]  }
 0x64b   :  { %8469 = vmatprep.subr.bf16.mxu1 %v12391_v7  ;;  %6365 = vmatpush2.bf16.msra.mxu0 %v10930_v24  ;;  %12415 = vst [vmem:[#allocation118_spill] sm:$0xff] %v10943_v58  ;;  %v10947_v24 = vld [vmem:[#allocation15 + $0x288] ss:$36 sps:$4 sm:$0xff]  }
 0x64c   :  { %6366 = vmatprep.subr.bf16.mxu0 %v10933_v25  ;;  %12416 = vst [vmem:[#allocation119_spill] sm:$0xff] %v10947_v24  ;;  %v10950_v25 = vld [vmem:[#allocation15 + $0x67c] ss:$36 sps:$4 sm:$0xff]  }
 0x64d   :  { %12417 = vst [vmem:[#allocation120_spill] sm:$0xff] %v10950_v25 }
 0x64e   :  { %8470 = vmatpush3.bf16.msra.mxu1 %v10927_v5  ;;  %v10953_v5 = vld [vmem:[#allocation15 + $0x244] ss:$36 sps:$4 sm:$0xff]  }
 0x64f   :  { %8471 = vmatprep.subr.bf16.mxu1 %v12391_v7  ;;  %6367 = vmatpush2.bf16.msra.mxu0 %v10940_v45  ;;  %12418 = vst [vmem:[#allocation121_spill] sm:$0xff] %v10953_v5 }
 0x650   :  { %6368 = vmatprep.subr.bf16.mxu0 %v10943_v58  ;;  %v10959_v58 = vld [vmem:[#allocation15 + $0x678] ss:$36 sps:$4 sm:$0xff]  }
 0x651   :  { %12419 = vst [vmem:[#allocation122_spill] sm:$0xff] %v10959_v58 }
 0x652   :  { %8472 = vmatpush3.bf16.msra.mxu1 %v10937_v35  ;;  %v12420_v35 = vmov 0  }
 0x653   :  { %6369 = vmatpush2.bf16.msra.mxu0 %v10947_v24  ;;  %6381 = vmatprep.subr.bf16.mxu1 %v10950_v25  ;;  %v10966_v25 = vld [vmem:[#allocation15 + $0x634] ss:$36 sps:$4 sm:$0xff]  }
 0x654   :  { %6370 = vmatprep.subr.bf16.mxu0 %v10953_v5  ;;  %12422 = vst [vmem:[#allocation124_spill] sm:$0xff] %v10966_v25 }
 0x655   :  { %8474 = vmatmul.mubr.bf16.vlgmr.msra.gmra.mxu1 %v10620_v63  ;;  %v5734_v45 = vpop.f32.mrf.mxu1  ;;  %v10971_v63 = vld [vmem:[#allocation15 + $0x684] ss:$36 sps:$4 sm:$0xff]  }
 0x656   :  { %v10957_v20 = vadd.f32 %v5734_v45, %v5693_v57  ;;  %6382 = vmatpush1.bf16.msra.mxu1 %v10959_v58  ;;  %6413 = vmatprep.mubr.bf16.mxu1 %v12420_v35  ;;  %12423 = vst [vmem:[#allocation125_spill] sm:$0xff] %v10971_v63  ;;  %v10974_v58 = vld [vmem:[#allocation15 + $0x630] ss:$36 sps:$4 sm:$0xff]  }
 0x657   :  { %v5736_v24 = vpop.f32.mrf.mxu1  ;;  %6371 = vmatpush2.bf16.msra.mxu0 %v10963_v48  ;;  %6383 = vmatprep.subr.bf16.mxu1 %v10966_v25  ;;  %12424 = vst [vmem:[#allocation126_spill] sm:$0xff] %v10974_v58  ;;  %v10980_v25 = vld [vmem:[#allocation15 + $0x5e8] ss:$36 sps:$4 sm:$0xff]  }
 0x658   :  { %v10969_v5 = vadd.f32 %v5736_v24, %v5695_v40  ;;  %6463 = vmatprep.subr.bf16.mxu0 %v10971_v63  ;;  %12426 = vst [vmem:[#allocation128_spill] sm:$0xff] %v10980_v25  ;;  %v10983_v40 = vld [vmem:[#allocation15 + $0x5a4] ss:$36 sps:$4 sm:$0xff]  }
 0x659   :  { %v5738_v45 = vpop.f32.mrf.mxu1  ;;  %12427 = vst [vmem:[#allocation129_spill] sm:$0xff] %v10983_v40 }
 0x65a   :  { %v5816_v57 = vpop.f32.mrf.mxu0  ;;  %6384 = vmatpush1.bf16.msra.mxu1 %v10974_v58  ;;  %v10986_v45 = vld [vmem:[#allocation15 + $0x5a0] ss:$36 sps:$4 sm:$0xff]  }
 0x65b   :  { %v5739_v7 = vpop.f32.mrf.mxu1  ;;  %6385 = vmatprep.subr.bf16.mxu1 %v10977_v0  ;;  %12428 = vst [vmem:[#allocation130_spill] sm:$0xff] %v10986_v45  ;;  %v10992_v0 = vld [vmem:[#allocation15 + $0x558] ss:$36 sps:$4 sm:$0xff]  }
 0x65c   :  { %v5818_v48 = vpop.f32.mrf.mxu0  ;;  %v10989_v7 = vld [vmem:[#allocation15 + $0x55c] ss:$36 sps:$4 sm:$0xff]   ;;  %12430 = vst [vmem:[#allocation132_spill] sm:$0xff] %v10992_v0 }
 0x65d   :  { %12429 = vst [vmem:[#allocation131_spill] sm:$0xff] %v10989_v7 }
 0x65e   :  { %v5820_v31 = vpop.f32.mrf.mxu0  ;;  %6386 = vmatpush1.bf16.msra.mxu1 %v10980_v25  ;;  %v10998_v25 = vld [vmem:[#allocation15 + $0x510] ss:$36 sps:$4 sm:$0xff]  }
 0x65f   :  { %6387 = vmatprep.subr.bf16.mxu1 %v10983_v40  ;;  %v10995_v31 = vld [vmem:[#allocation15 + $0x514] ss:$36 sps:$4 sm:$0xff]   ;;  %12432 = vst [vmem:[#allocation134_spill] sm:$0xff] %v10998_v25 }
 0x660   :  { %v5821_v24 = vpop.f32.mrf.mxu0  ;;  %12431 = vst [vmem:[#allocation133_spill] sm:$0xff] %v10995_v31 }
 0x661   :  { %v11001_v24 = vld [vmem:[#allocation15 + $0x4cc] ss:$36 sps:$4 sm:$0xff]  }
 0x662   :  { %6388 = vmatpush1.bf16.msra.mxu1 %v10986_v45  ;;  %12433 = vst [vmem:[#allocation135_spill] sm:$0xff] %v11001_v24  ;;  %v11004_v45 = vld [vmem:[#allocation15 + $0x4c8] ss:$36 sps:$4 sm:$0xff]  }
 0x663   :  { %6389 = vmatprep.subr.bf16.mxu1 %v10989_v7  ;;  %12434 = vst [vmem:[#allocation136_spill] sm:$0xff] %v11004_v45  ;;  %v11007_v7 = vld [vmem:[#allocation15 + $0x484] ss:$36 sps:$4 sm:$0xff]  }
 0x664   :  { %12435 = vst [vmem:[#allocation137_spill] sm:$0xff] %v11007_v7 }
 0x666   :  { %6390 = vmatpush1.bf16.msra.mxu1 %v10992_v0  ;;  %v11010_v0 = vld [vmem:[#allocation15 + $0x480] ss:$36 sps:$4 sm:$0xff]  }
 0x667   :  { %6391 = vmatprep.subr.bf16.mxu1 %v10995_v31  ;;  %12436 = vst [vmem:[#allocation138_spill] sm:$0xff] %v11010_v0  ;;  %v11013_v31 = vld [vmem:[#allocation15 + $0x204] ss:$36 sps:$4 sm:$0xff]  }
 0x668   :  { %12437 = vst [vmem:[#allocation139_spill] sm:$0xff] %v11013_v31 }
 0x66a   :  { %6392 = vmatpush1.bf16.msra.mxu1 %v10998_v25 }
 0x66b   :  { %6393 = vmatprep.subr.bf16.mxu1 %v11001_v24 }
 0x66e   :  { %6394 = vmatpush1.bf16.msra.mxu1 %v11004_v45 }
 0x66f   :  { %6395 = vmatprep.subr.bf16.mxu1 %v11007_v7 }
 0x672   :  { %6396 = vmatpush1.bf16.msra.mxu1 %v11010_v0 }
 0x673   :  { %6422 = vmatprep.subr.bf16.mxu1 %v11013_v31 }
 0x695   :  { %v5775_v25 = vpop.f32.mrf.mxu1 }
 0x696   :  { %v11016_v40 = vadd.f32 %v5816_v57, %v5775_v25  ;;  %v11024_v57 = vld [vmem:[#allocation18] sm:$0xff] }
 0x697   :  { %v5777_v24 = vpop.f32.mrf.mxu1  ;;  %12438 = vst [vmem:[#allocation140_spill] sm:$0xff] %v11024_v57 }
 0x698   :  { %v5819_v58 = vadd.f32 %v5818_v48, %v5777_v24 }
 0x699   :  { %v5779_v63 = vpop.f32.mrf.mxu1 }
 0x69a   :  { %v5857_v33 = vpop.f32.mrf.mxu0 }
 0x69b   :  { %v5780_v45 = vpop.f32.mrf.mxu1 }
 0x69c   :  { %v5859_v29 = vpop.f32.mrf.mxu0 }
 0x69e   :  { %v5861_v30 = vpop.f32.mrf.mxu0 }
 0x69f   :  { %v9717_v30 = vld [vmem:[#allocation19] ss:$0 sm:$0xff] }
 0x6a0   :  { %v5862_v52 = vpop.f32.mrf.mxu0 }
 0x6a1   :  { %v4456_v52 = vrot.slane %v11024_v57, %v10422_v23 }
 0x6b5   :  { %v5898_v7 = vpop.f32.mrf.mxu1 }
 0x6b7   :  { %v5900_v22 = vpop.f32.mrf.mxu1 }
 0x6b8   :  { %v11018_v27 = vadd.f32 %v5900_v22, %v5859_v29  ;;  %v11036_v29 = vrot.slane %v4456_v52, %v10422_v23 }
 0x6b9   :  { %v5902_v0 = vpop.f32.mrf.mxu1 }
 0x6ba   :  { %v11020_v2 = vpop.f32.mrf.mxu0  ;;  %v4460_v0 = vrot.slane %v11024_v57, %v10434_v44  ;;  %12440 = vst [vmem:[#allocation142_spill] sm:$0xff] %v11036_v29 }
 0x6bb   :  { %v5903_v12 = vpop.f32.mrf.mxu1 }
 0x6bc   :  { %v11022_v31 = vpop.f32.mrf.mxu0  ;;  %v11039_v24 = vrot.slane %v4460_v0, %v10422_v23 }
 0x6be   :  { %v5984_v25 = vpop.f32.mrf.mxu0  ;;  %12441 = vst [vmem:[#allocation143_spill] sm:$0xff] %v11039_v24 }
 0x6bf   :  { %v4535_v25 = vmul.f32 %v11039_v24, %v10793_v4 }
 0x6c0   :  { %v5985_v48 = vpop.f32.mrf.mxu0  ;;  %v4439_v63 = vpop.permute.xlu1 %4438 }
 0x6c1   :  { %v11027_v45 = vmul.f32 %v10501_v56, %v4439_v63  ;;  %v4534_v56 = vmul.f32 %v11036_v29, %v10793_v4  ;;  %v11046_v63 = vld [vmem:[#allocation18 + $0x8] sm:$0xff]  ;;  %v4544_v52 = vadd.f32 %v4535_v25, %v10535_v34 }
 0x6c2   :  { %v4468_v0 = vrot.slane %v11046_v63, %v10434_v44 }
 0x6c3   :  { %12439 = vst [vmem:[#allocation141_spill] sm:$0xff] %v11027_v45  ;;  %v6174_v22 = vmul.f32 %v9717_v30, %v11027_v45  ;;  %v4543_v48 = vadd.f32 %v4534_v56, %v10533_v14  ;;  %v11048_v30 = vld [vmem:[#allocation18 + $0x10] sm:$0xff] }
 0x6c4   :  { %v4472_v29 = vrot.slane %v11048_v30, %v10422_v23  ;;  %v11058_v24 = vrot.slane %v4468_v0, %v10422_v23 }
 0x6c5   :  { %v6175_v12 = vsel %vm4400_vm2, %v6174_v22, 0.0  ;;  %v6067_v22 = vadd.f32 %v10957_v20, %v4543_v48 }
 0x6c6   :  { %6176 = vadd.xlane.f32.xlu0 %v6175_v12  ;;  %v6068_v12 = vadd.f32 %v10969_v5, %v4544_v52  ;;  %12442 = vst [vmem:[#allocation144_spill] sm:$0xff] %v11058_v24  ;;  %v11061_v14 = vrot.slane %v4472_v29, %v10422_v23  ;;  %v4537_v20 = vmul.f32 %v11058_v24, %v10793_v4 }
 0x6c7   :  { %v8249_v57 = vmul.f32 -1.442695, %v6067_v22  ;;  %v5899_v22 = vadd.f32 %v5898_v7, %v5857_v33  ;;  %v4464_v24 = vrot.slane %v11046_v63, %v10422_v23 }
 0x6c8   :  { %v8250_v56 = vmul.f32 -1.442695, %v6068_v12  ;;  %12443 = vst [vmem:[#allocation145_spill] sm:$0xff] %v11061_v14  ;;  %v4538_v25 = vmul.f32 %v11061_v14, %v10793_v4  ;;  %v4546_v48 = vadd.f32 %v4537_v20, %v10543_v18 }
 0x6c9   :  { %9557 = vpow2.f32 %v8249_v57  ;;  %v11076_v14 = vrot.slane %v4464_v24, %v10422_v23  ;;  %v4476_v24 = vrot.slane %v11048_v30, %v10434_v44 }
 0x6ca   :  { %9559 = vpow2.f32 %v8250_v56  ;;  %v6088_v0 = vadd.f32 %v5819_v58, %v4546_v48  ;;  %v4547_v12 = vadd.f32 %v4538_v25, %v10553_v36  ;;  %v11080_v25 = vld [vmem:[#allocation18 + $0x18] sm:$0xff] }
 0x6cb   :  { %v4536_v58 = vmul.f32 %v11076_v14, %v10793_v4  ;;  %12444 = vst [vmem:[#allocation146_spill] sm:$0xff] %v11080_v25 }
 0x6cc   :  { %v6089_v34 = vadd.f32 %v5899_v22, %v4547_v12  ;;  %v8252_v56 = vmul.f32 -1.442695, %v6088_v0  ;;  %v11094_v12 = vrot.slane %v4476_v24, %v10422_v23 }
 0x6cd   :  { %v4545_v48 = vadd.f32 %v4536_v58, %v10541_v15 }
 0x6ce   :  { %v8253_v45 = vmul.f32 -1.442695, %v6089_v34  ;;  %9561 = vpow2.f32 %v8252_v56  ;;  %v4480_v34 = vrot.slane %v11080_v25, %v10422_v23  ;;  %12446 = vst [vmem:[#allocation148_spill] sm:$0xff] %v11094_v12  ;;  %v4539_v58 = vmul.f32 %v11094_v12, %v10793_v4 }
 0x6d0   :  { %9563 = vpow2.f32 %v8253_v45  ;;  %v6069_v45 = vadd.f32 %v11016_v40, %v4545_v48  ;;  %v11091_v22 = vrot.slane %v4480_v34, %v10422_v23  ;;  %v4548_v12 = vadd.f32 %v4539_v58, %v10547_v62 }
 0x6d2   :  { %12445 = vst [vmem:[#allocation147_spill] sm:$0xff] %v11091_v22  ;;  %v8251_v56 = vmul.f32 -1.442695, %v6069_v45  ;;  %v4540_v40 = vmul.f32 %v11091_v22, %v10793_v4 }
 0x6d4   :  { %v4549_v22 = vadd.f32 %v4540_v40, %v10568_v28 }
 0x6d6   :  { %v9558_v19 = vpop.eup %9557 }
 0x6d7   :  { %v9560_v20 = vpop.eup %9559  ;;  %v6079_v33 = vadd.f32 1.0, %v9558_v19  ;;  %v4484_v19 = vrot.slane %v11080_v25, %v10434_v44 }
 0x6d8   :  { %v6080_v7 = vadd.f32 1.0, %v9560_v20 }
 0x6d9   :  { %9565 = vrcp.f32 %v6079_v33 }
 0x6da   :  { %v11067_v5 = vpop.f32.mrf.mxu0  ;;  %9567 = vrcp.f32 %v6080_v7 }
 0x6db   :  { %v9562_v0 = vpop.eup %9561  ;;  %9569 = vpow2.f32 %v8251_v56 }
 0x6dc   :  { %v11070_v52 = vpop.f32.mrf.mxu0  ;;  %v6100_v33 = vadd.f32 1.0, %v9562_v0 }
 0x6dd   :  { %v9564_v20 = vpop.eup %9563 }
 0x6de   :  { %v8351_v29 = vpop.f32.mrf.mxu0  ;;  %v6101_v24 = vadd.f32 1.0, %v9564_v20  ;;  %9571 = vrcp.f32 %v6100_v33 }
 0x6df   :  { %v11097_v29 = vrot.slane %v4484_v19, %v10422_v23 }
 0x6e0   :  { %v8352_v57 = vpop.f32.mrf.mxu0  ;;  %9573 = vrcp.f32 %v6101_v24 }
 0x6e1   :  { %12447 = vst [vmem:[#allocation149_spill] sm:$0xff] %v11097_v29  ;;  %v12217_v57 = vmov 1   ;;  %v4541_v48 = vmul.f32 %v11097_v29, %v10793_v4 }
 0x6e2   :  { %8558 = vset.pattern.permute.xlu1 %v12217_v57  ;;  %8559 = vset.pattern.permute.xlu0 %v12217_v57 }
 0x6e3   :  { %v4550_v56 = vadd.f32 %v4541_v48, %v10572_v32  ;;  %v11116_v48 = vld [vmem:[#allocation18 + $0x20] sm:$0xf] }
 0x6e6   :  { %v9566_v57 = vpop.eup %9565 }
 0x6f5   :  { %v5939_v44 = vpop.f32.mrf.mxu1 }
 0x6f6   :  { %v5981_v7 = vadd.f32 %v11020_v2, %v5939_v44  ;;  %v9568_v44 = vpop.eup %9567 }
 0x6f7   :  { %v5941_v34 = vpop.f32.mrf.mxu1 }
 0x6f8   :  { %v6109_v19 = vadd.f32 %v5981_v7, %v10561_v10  ;;  %v5983_v45 = vadd.f32 %v11022_v31, %v5941_v34  ;;  %v6090_v7 = vadd.f32 %v11018_v27, %v4548_v12  ;;  %v9570_v34 = vpop.eup %9569 }
 0x6f9   :  { %v5943_v0 = vpop.f32.mrf.mxu1  ;;  %v6081_v40 = vadd.f32 1.0, %v9570_v34  ;;  %v11140_v34 = vld [vmem:[#allocation15 + $0x680] ss:$36 sps:$4 sm:$0xff]  }
 0x6fa   :  { %v6112_v25 = vmul.f32 %v9566_v57, %v6109_v19  ;;  %v6110_v2 = vadd.f32 %v5983_v45, %v10566_v21  ;;  %v8254_v33 = vmul.f32 -1.442695, %v6090_v7  ;;  %v9572_v57 = vpop.eup %9571 }
 0x6fb   :  { %v5944_v15 = vpop.f32.mrf.mxu1  ;;  %v9574_v19 = vpop.eup %9573  ;;  %v6121_v45 = vsub.f32 1.0, %v9572_v57 }
 0x6fc   :  { %v6115_v29 = vadd.f32 %v6112_v25, %v4549_v22  ;;  %v6113_v20 = vmul.f32 %v9568_v44, %v6110_v2  ;;  %v6122_v15 = vsub.f32 1.0, %v9574_v19  ;;  %v6127_v25 = vmul.f32 %v9572_v57, %v10577_v50 }
 0x6fd   :  { %v6128_v12 = vmul.f32 %v9574_v19, %v10579_v51  ;;  %v4488_v2 = vrot.slane %v11116_v48, %v10422_v23 }
 0x6fe   :  { %9575 = vtanh.f32 %v6115_v29  ;;  %v6116_v31 = vadd.f32 %v6113_v20, %v4550_v56  ;;  %v8350_v20 = vadd.f32 %v11070_v52, %v11067_v5 }
 0x6ff   :  { %v11137_v51 = vrot.slane %v4488_v2, %v10422_v23  ;;  %v11166_v2 = vld [vmem:[#allocation15 + $0x564] ss:$36 sps:$4 sm:$0xff]  }
 0x700   :  { %9577 = vtanh.f32 %v6116_v31 }
 0x701   :  { %9579 = vpow2.f32 %v8254_v33  ;;  %v4542_v23 = vmul.f32 %v11137_v51, %v10793_v4  ;;  %v11157_v4 = vld [vmem:[#allocation15 + $0x5f0] ss:$36 sps:$4 sm:$0xff]  }
 0x702   :  { %9581 = vrcp.f32 %v6081_v40  ;;  %v11144_v40 = vld [vmem:[#allocation15 + $0x63c] ss:$36 sps:$4 sm:$0xff]  }
 0x70b   :  { %v9576_v0 = vpop.eup %9575 }
 0x70c   :  { %v6124_v58 = vmul.f32 %v9576_v0, %v6121_v45  ;;  %v4551_v45 = vadd.f32 %v4542_v23, %v10598_v16  ;;  %v11178_v23 = vld [vmem:[#allocation15 + $0x4d4] ss:$36 sps:$4 sm:$0xff]  }
 0x70d   :  { %v9578_v22 = vpop.eup %9577 }
 0x70e   :  { %v6125_v27 = vmul.f32 %v9578_v22, %v6122_v15  ;;  %v11119_v29 = vadd.f32 %v6127_v25, %v6124_v58  ;;  %v9580_v56 = vpop.eup %9579  ;;  %v11151_v15 = vld [vmem:[#allocation15 + $0x638] ss:$36 sps:$4 sm:$0xff]  }
 0x70f   :  { %v6102_v31 = vadd.f32 1.0, %v9580_v56  ;;  %v9582_v52 = vpop.eup %9581  ;;  %v11154_v25 = vld [vmem:[#allocation15 + $0x5f4] ss:$36 sps:$4 sm:$0xff]   ;;  %v11169_v56 = vld [vmem:[#allocation15 + $0x560] ss:$36 sps:$4 sm:$0xff]  }
 0x710   :  { %v11121_v24 = vadd.f32 %v6128_v12, %v6125_v27  ;;  %v11131_v50 = vpack.c.bf16 %v11119_v29, %v11119_v29  ;;  %v11160_v27 = vld [vmem:[#allocation15 + $0x5ac] ss:$36 sps:$4 sm:$0xff]  }
 0x711   :  { %9583 = vrcp.f32 %v6102_v31  ;;  %v11163_v12 = vld [vmem:[#allocation15 + $0x5a8] ss:$36 sps:$4 sm:$0xff]   ;;  %v11175_v31 = vld [vmem:[#allocation15 + $0x518] ss:$36 sps:$4 sm:$0xff]  }
 0x712   :  { %v11127_v44 = vpack.c.bf16 %v11121_v24, %v11121_v24 }
 0x714   :  { %6372 = vmatprep.mubr.bf16.mxu0 %v11127_v44 }
 0x715   :  { %v6061_v7 = vpop.f32.mrf.mxu1  ;;  %6373 = vmatmul.mubr.bf16.vlgmr.msra.gmra.mxu0 %v11131_v50 }
 0x716   :  { %v6062_v33 = vadd.f32 %v8350_v20, %v6061_v7  ;;  %6464 = vmatpush1.bf16.msra.mxu0 %v11140_v34  ;;  %6495 = vmatprep.mubr.bf16.mxu0 %v12420_v35  ;;  %v11172_v7 = vld [vmem:[#allocation15 + $0x51c] ss:$36 sps:$4 sm:$0xff]  }
 0x717   :  { %v8475_v57 = vpop.f32.mrf.mxu1  ;;  %6465 = vmatprep.subr.bf16.mxu0 %v11144_v40 }
 0x718   :  { %v6111_v5 = vadd.f32 %v6062_v33, %v10595_v8 }
 0x719   :  { %v6064_v19 = vpop.f32.mrf.mxu1 }
 0x71a   :  { %v6114_v0 = vmul.f32 %v9582_v52, %v6111_v5  ;;  %6466 = vmatpush1.bf16.msra.mxu0 %v11151_v15  ;;  %v11182_v19 = vld [vmem:[#allocation15 + $0x4d0] ss:$36 sps:$4 sm:$0xff]  }
 0x71b   :  { %v8476_v58 = vpop.f32.mrf.mxu1  ;;  %6467 = vmatprep.subr.bf16.mxu0 %v11154_v25  ;;  %12448 = vst [vmem:[#allocation150_spill] sm:$0xff] %v11182_v19 }
 0x71c   :  { %v6117_v22 = vadd.f32 %v6114_v0, %v4551_v45  ;;  %v11187_v0 = vld [vmem:[#allocation15 + $0x48c] ss:$36 sps:$4 sm:$0xff]  }
 0x71d   :  { %12449 = vst [vmem:[#allocation151_spill] sm:$0xff] %v11187_v0 }
 0x71e   :  { %9585 = vtanh.f32 %v6117_v22  ;;  %6468 = vmatpush1.bf16.msra.mxu0 %v11157_v4  ;;  %v9584_v20 = vpop.eup %9583  ;;  %v11194_v22 = vld [vmem:[#allocation15 + $0x488] ss:$36 sps:$4 sm:$0xff]  }
 0x71f   :  { %6469 = vmatprep.subr.bf16.mxu0 %v11160_v27  ;;  %v6123_v33 = vsub.f32 1.0, %v9584_v20  ;;  %v6129_v52 = vmul.f32 %v9584_v20, %v10615_v55  ;;  %12450 = vst [vmem:[#allocation152_spill] sm:$0xff] %v11194_v22  ;;  %v11198_v55 = vld [vmem:[#allocation15 + $0x200] ss:$36 sps:$4 sm:$0xff]   ;;  %v11202_v20 = vld [vmem:[#allocation15 + $0x20c] ss:$36 sps:$4 sm:$0xff]  }
 0x720   :  { %12451 = vst [vmem:[#allocation153_spill] sm:$0xff] %v11198_v55  ;;  %12452 = vst [vmem:[#allocation154_spill] sm:$0xff] %v11202_v20 }
 0x722   :  { %6470 = vmatpush1.bf16.msra.mxu0 %v11163_v12 }
 0x723   :  { %6471 = vmatprep.subr.bf16.mxu0 %v11166_v2 }
 0x726   :  { %6472 = vmatpush1.bf16.msra.mxu0 %v11169_v56 }
 0x727   :  { %6473 = vmatprep.subr.bf16.mxu0 %v11172_v7 }
 0x72a   :  { %6474 = vmatpush1.bf16.msra.mxu0 %v11175_v31 }
 0x72b   :  { %v9586_v57 = vpop.eup %9585  ;;  %6475 = vmatprep.subr.bf16.mxu0 %v11178_v23 }
 0x72c   :  { %v6126_v5 = vmul.f32 %v9586_v57, %v6123_v33  ;;  %v11205_v33 = vld [vmem:[#allocation15 + $0x1bc] ss:$36 sps:$4 sm:$0xff]   ;;  %v11209_v57 = vld [vmem:[#allocation15 + $0x208] ss:$36 sps:$4 sm:$0xff]  }
 0x72d   :  { %12453 = vst [vmem:[#allocation155_spill] sm:$0xff] %v11205_v33  ;;  %12454 = vst [vmem:[#allocation156_spill] sm:$0xff] %v11209_v57 }
 0x72e   :  { %6476 = vmatpush1.bf16.msra.mxu0 %v11182_v19  ;;  %v11185_v45 = vadd.f32 %v6129_v52, %v6126_v5  ;;  %v11213_v5 = vld [vmem:[#allocation15 + $0x1b8] ss:$36 sps:$4 sm:$0xff]   ;;  %v11216_v52 = vld [vmem:[#allocation15 + $0x1c4] ss:$36 sps:$4 sm:$0xff]  }
 0x72f   :  { %6477 = vmatprep.subr.bf16.mxu0 %v11187_v0  ;;  %12455 = vst [vmem:[#allocation157_spill] sm:$0xff] %v11213_v5  ;;  %12456 = vst [vmem:[#allocation158_spill] sm:$0xff] %v11216_v52  ;;  %v11225_v0 = vld [vmem:[#allocation15 + $0x170] ss:$36 sps:$4 sm:$0xff]   ;;  %v9763_v19 = vld [vmem:[#allocation21] ss:$0 sm:$0xff] }
 0x730   :  { %v11192_v58 = vpack.c.bf16 %v11185_v45, %v11185_v45  ;;  %12459 = vst [vmem:[#allocation161_spill] sm:$0xff] %v11225_v0 }
 0x732   :  { %6478 = vmatpush1.bf16.msra.mxu0 %v11194_v22  ;;  %6414 = vmatmul.mubr.bf16.vlgmr.msra.gmra.mxu1 %v11192_v58  ;;  %v11222_v22 = vld [vmem:[#allocation15 + $0x1c0] ss:$36 sps:$4 sm:$0xff]  }
 0x733   :  { %6423 = vmatpush1.bf16.msra.mxu1 %v11198_v55  ;;  %6454 = vmatprep.mubr.bf16.mxu1 %v11127_v44  ;;  %12458 = vst [vmem:[#allocation160_spill] sm:$0xff] %v11222_v22  ;;  %v11294_v55 = vld [vmem:[#allocation15 + $0x10] ss:$36 sps:$4 sm:$0xff]  }
 0x734   :  { %6504 = vmatprep.subr.bf16.mxu0 %v11202_v20  ;;  %6424 = vmatprep.subr.bf16.mxu1 %v11205_v33  ;;  %v11219_v20 = vld [vmem:[#allocation15 + $0x174] ss:$36 sps:$4 sm:$0xff]   ;;  %12482 = vst [vmem:[#allocation184_spill] sm:$0xff] %v11294_v55 }
 0x735   :  { %6496 = vmatmul.mubr.bf16.vlgmr.msra.gmra.mxu0 %v11192_v58  ;;  %12457 = vst [vmem:[#allocation159_spill] sm:$0xff] %v11219_v20 }
 0x736   :  { %6505 = vmatpush1.bf16.msra.mxu0 %v11209_v57  ;;  %6536 = vmatprep.mubr.bf16.mxu0 %v11127_v44  ;;  %v11228_v57 = vld [vmem:[#allocation15 + $0x17c] ss:$36 sps:$4 sm:$0xff]  }
 0x737   :  { %6425 = vmatpush1.bf16.msra.mxu1 %v11213_v5  ;;  %6506 = vmatprep.subr.bf16.mxu0 %v11216_v52  ;;  %12460 = vst [vmem:[#allocation162_spill] sm:$0xff] %v11228_v57  ;;  %v11231_v5 = vld [vmem:[#allocation15 + $0x12c] ss:$36 sps:$4 sm:$0xff]   ;;  %v11234_v52 = vld [vmem:[#allocation15 + $0x178] ss:$36 sps:$4 sm:$0xff]  }
 0x738   :  { %6426 = vmatprep.subr.bf16.mxu1 %v11219_v20  ;;  %12461 = vst [vmem:[#allocation163_spill] sm:$0xff] %v11231_v5  ;;  %12462 = vst [vmem:[#allocation164_spill] sm:$0xff] %v11234_v52  ;;  %v11237_v20 = vld [vmem:[#allocation15 + $0x128] ss:$36 sps:$4 sm:$0xff]  }
 0x739   :  { %12463 = vst [vmem:[#allocation165_spill] sm:$0xff] %v11237_v20 }
 0x73a   :  { %6507 = vmatpush1.bf16.msra.mxu0 %v11222_v22  ;;  %v11240_v22 = vld [vmem:[#allocation15 + $0x134] ss:$36 sps:$4 sm:$0xff]  }
 0x73b   :  { %6427 = vmatpush1.bf16.msra.mxu1 %v11225_v0  ;;  %6508 = vmatprep.subr.bf16.mxu0 %v11228_v57  ;;  %12464 = vst [vmem:[#allocation166_spill] sm:$0xff] %v11240_v22  ;;  %v11243_v0 = vld [vmem:[#allocation15 + $0xe4] ss:$36 sps:$4 sm:$0xff]   ;;  %v11246_v57 = vld [vmem:[#allocation15 + $0x130] ss:$36 sps:$4 sm:$0xff]  }
 0x73c   :  { %6428 = vmatprep.subr.bf16.mxu1 %v11231_v5  ;;  %12465 = vst [vmem:[#allocation167_spill] sm:$0xff] %v11243_v0  ;;  %12466 = vst [vmem:[#allocation168_spill] sm:$0xff] %v11246_v57  ;;  %v11249_v5 = vld [vmem:[#allocation15 + $0xe0] ss:$36 sps:$4 sm:$0xff]  }
 0x73d   :  { %12467 = vst [vmem:[#allocation169_spill] sm:$0xff] %v11249_v5 }
 0x73e   :  { %6509 = vmatpush1.bf16.msra.mxu0 %v11234_v52  ;;  %v11252_v52 = vld [vmem:[#allocation15 + $0xec] ss:$36 sps:$4 sm:$0xff]  }
 0x73f   :  { %6429 = vmatpush1.bf16.msra.mxu1 %v11237_v20  ;;  %6510 = vmatprep.subr.bf16.mxu0 %v11240_v22  ;;  %12468 = vst [vmem:[#allocation170_spill] sm:$0xff] %v11252_v52  ;;  %v11255_v20 = vld [vmem:[#allocation15 + $0x9c] ss:$36 sps:$4 sm:$0xff]   ;;  %v11258_v22 = vld [vmem:[#allocation15 + $0xe8] ss:$36 sps:$4 sm:$0xff]  }
 0x740   :  { %6430 = vmatprep.subr.bf16.mxu1 %v11243_v0  ;;  %12469 = vst [vmem:[#allocation171_spill] sm:$0xff] %v11255_v20  ;;  %12470 = vst [vmem:[#allocation172_spill] sm:$0xff] %v11258_v22  ;;  %v11261_v0 = vld [vmem:[#allocation15 + $0x98] ss:$36 sps:$4 sm:$0xff]  }
 0x741   :  { %12471 = vst [vmem:[#allocation173_spill] sm:$0xff] %v11261_v0 }
 0x742   :  { %6511 = vmatpush1.bf16.msra.mxu0 %v11246_v57  ;;  %v11264_v57 = vld [vmem:[#allocation15 + $0xa4] ss:$36 sps:$4 sm:$0xff]  }
 0x743   :  { %6431 = vmatpush1.bf16.msra.mxu1 %v11249_v5  ;;  %6512 = vmatprep.subr.bf16.mxu0 %v11252_v52  ;;  %12472 = vst [vmem:[#allocation174_spill] sm:$0xff] %v11264_v57  ;;  %v11267_v5 = vld [vmem:[#allocation15 + $0x54] ss:$36 sps:$4 sm:$0xff]   ;;  %v11270_v52 = vld [vmem:[#allocation15 + $0xa0] ss:$36 sps:$4 sm:$0xff]  }
 0x744   :  { %6432 = vmatprep.subr.bf16.mxu1 %v11255_v20  ;;  %12473 = vst [vmem:[#allocation175_spill] sm:$0xff] %v11267_v5  ;;  %12474 = vst [vmem:[#allocation176_spill] sm:$0xff] %v11270_v52  ;;  %v11273_v20 = vld [vmem:[#allocation15 + $0x50] ss:$36 sps:$4 sm:$0xff]  }
 0x745   :  { %12475 = vst [vmem:[#allocation177_spill] sm:$0xff] %v11273_v20 }
 0x746   :  { %6513 = vmatpush1.bf16.msra.mxu0 %v11258_v22  ;;  %v11276_v22 = vld [vmem:[#allocation15 + $0x5c] ss:$36 sps:$4 sm:$0xff]  }
 0x747   :  { %6433 = vmatpush1.bf16.msra.mxu1 %v11261_v0  ;;  %6514 = vmatprep.subr.bf16.mxu0 %v11264_v57  ;;  %12476 = vst [vmem:[#allocation178_spill] sm:$0xff] %v11276_v22  ;;  %v11279_v0 = vld [vmem:[#allocation15 + $0xc] ss:$36 sps:$4 sm:$0xff]   ;;  %v11282_v57 = vld [vmem:[#allocation15 + $0x58] ss:$36 sps:$4 sm:$0xff]  }
 0x748   :  { %6434 = vmatprep.subr.bf16.mxu1 %v11267_v5  ;;  %12477 = vst [vmem:[#allocation179_spill] sm:$0xff] %v11279_v0  ;;  %12478 = vst [vmem:[#allocation180_spill] sm:$0xff] %v11282_v57  ;;  %v11285_v5 = vld [vmem:[#allocation15 + $0x8] ss:$36 sps:$4 sm:$0xff]  }
 0x749   :  { %12479 = vst [vmem:[#allocation181_spill] sm:$0xff] %v11285_v5 }
 0x74a   :  { %6515 = vmatpush1.bf16.msra.mxu0 %v11270_v52  ;;  %v11288_v52 = vld [vmem:[#allocation15 + $0x14] ss:$36 sps:$4 sm:$0xff]  }
 0x74b   :  { %6435 = vmatpush1.bf16.msra.mxu1 %v11273_v20  ;;  %6516 = vmatprep.subr.bf16.mxu0 %v11276_v22  ;;  %12480 = vst [vmem:[#allocation182_spill] sm:$0xff] %v11288_v52  ;;  %v11291_v22 = vld [vmem:[#allocation15 + $0x444] ss:$36 sps:$4 sm:$0xff]  }
 0x74c   :  { %6436 = vmatprep.subr.bf16.mxu1 %v11279_v0  ;;  %12481 = vst [vmem:[#allocation183_spill] sm:$0xff] %v11291_v22 }
 0x74e   :  { %6517 = vmatpush1.bf16.msra.mxu0 %v11282_v57  ;;  %v11297_v57 = vld [vmem:[#allocation15 + $0x440] ss:$36 sps:$4 sm:$0xff]  }
 0x74f   :  { %6437 = vmatpush1.bf16.msra.mxu1 %v11285_v5  ;;  %6518 = vmatprep.subr.bf16.mxu0 %v11288_v52  ;;  %v6177_v20 = vpop.xlane.xlu0 %6176  ;;  %12483 = vst [vmem:[#allocation185_spill] sm:$0xff] %v11297_v57  ;;  %v11300_v5 = vld [vmem:[#allocation15 + $0x44c] ss:$36 sps:$4 sm:$0xff]   ;;  %v11303_v52 = vld [vmem:[#allocation15 + $0x3fc] ss:$36 sps:$4 sm:$0xff]  }
 0x750   :  { %v6178_v33 = vadd.f32 %v9763_v19, %v6177_v20  ;;  %6438 = vmatprep.subr.bf16.mxu1 %v11291_v22  ;;  %12484 = vst [vmem:[#allocation186_spill] sm:$0xff] %v11300_v5  ;;  %12485 = vst [vmem:[#allocation187_spill] sm:$0xff] %v11303_v52  ;;  %v11306_v19 = vld [vmem:[#allocation15 + $0x448] ss:$36 sps:$4 sm:$0xff]   ;;  %v11309_v20 = vld [vmem:[#allocation15 + $0x3f8] ss:$36 sps:$4 sm:$0xff]  }
 0x751   :  { %12486 = vst [vmem:[#allocation188_spill] sm:$0xff] %v11306_v19  ;;  %12487 = vst [vmem:[#allocation189_spill] sm:$0xff] %v11309_v20 }
 0x752   :  { %v8256_v0 = vmul.f32 -1.442695, %v6178_v33  ;;  %6519 = vmatpush1.bf16.msra.mxu0 %v11294_v55  ;;  %v11312_v33 = vld [vmem:[#allocation15 + $0x404] ss:$36 sps:$4 sm:$0xff]   ;;  %v11315_v55 = vld [vmem:[#allocation15 + $0x3b4] ss:$36 sps:$4 sm:$0xff]  }
 0x753   :  { %6439 = vmatpush2.bf16.msra.mxu1 %v11297_v57  ;;  %6520 = vmatprep.subr.bf16.mxu0 %v11300_v5  ;;  %12488 = vst [vmem:[#allocation190_spill] sm:$0xff] %v11312_v33  ;;  %12489 = vst [vmem:[#allocation191_spill] sm:$0xff] %v11315_v55  ;;  %v11321_v5 = vld [vmem:[#allocation15 + $0x3b0] ss:$36 sps:$4 sm:$0xff]  }
 0x754   :  { %9587 = vpow2.f32 %v8256_v0  ;;  %6440 = vmatprep.subr.bf16.mxu1 %v11303_v52  ;;  %v11318_v0 = vld [vmem:[#allocation15 + $0x400] ss:$36 sps:$4 sm:$0xff]   ;;  %12491 = vst [vmem:[#allocation193_spill] sm:$0xff] %v11321_v5  ;;  %v11342_v57 = vld [vmem:[#allocation15 + $0x370] ss:$36 sps:$4 sm:$0xff]  }
 0x755   :  { %12490 = vst [vmem:[#allocation192_spill] sm:$0xff] %v11318_v0  ;;  %12498 = vst [vmem:[#allocation200_spill] sm:$0xff] %v11342_v57 }
 0x756   :  { %6521 = vmatpush2.bf16.msra.mxu0 %v11306_v19  ;;  %v11324_v19 = vld [vmem:[#allocation15 + $0x3bc] ss:$36 sps:$4 sm:$0xff]  }
 0x757   :  { %6441 = vmatpush2.bf16.msra.mxu1 %v11309_v20  ;;  %6522 = vmatprep.subr.bf16.mxu0 %v11312_v33  ;;  %12492 = vst [vmem:[#allocation194_spill] sm:$0xff] %v11324_v19  ;;  %v11327_v20 = vld [vmem:[#allocation15 + $0x36c] ss:$36 sps:$4 sm:$0xff]   ;;  %v11330_v33 = vld [vmem:[#allocation15 + $0x3b8] ss:$36 sps:$4 sm:$0xff]  }
 0x758   :  { %6442 = vmatprep.subr.bf16.mxu1 %v11315_v55  ;;  %12493 = vst [vmem:[#allocation195_spill] sm:$0xff] %v11327_v20  ;;  %12494 = vst [vmem:[#allocation196_spill] sm:$0xff] %v11330_v33  ;;  %v11333_v55 = vld [vmem:[#allocation15 + $0x368] ss:$36 sps:$4 sm:$0xff]  }
 0x759   :  { %12495 = vst [vmem:[#allocation197_spill] sm:$0xff] %v11333_v55 }
 0x75a   :  { %6523 = vmatpush2.bf16.msra.mxu0 %v11318_v0  ;;  %v11336_v0 = vld [vmem:[#allocation15 + $0x374] ss:$36 sps:$4 sm:$0xff]  }
 0x75b   :  { %6443 = vmatpush2.bf16.msra.mxu1 %v11321_v5  ;;  %6524 = vmatprep.subr.bf16.mxu0 %v11324_v19  ;;  %12496 = vst [vmem:[#allocation198_spill] sm:$0xff] %v11336_v0  ;;  %v11339_v5 = vld [vmem:[#allocation15 + $0x324] ss:$36 sps:$4 sm:$0xff]  }
 0x75c   :  { %6444 = vmatprep.subr.bf16.mxu1 %v11327_v20  ;;  %12497 = vst [vmem:[#allocation199_spill] sm:$0xff] %v11339_v5  ;;  %v11345_v20 = vld [vmem:[#allocation15 + $0x320] ss:$36 sps:$4 sm:$0xff]  }
 0x75d   :  { %12499 = vst [vmem:[#allocation201_spill] sm:$0xff] %v11345_v20 }
 0x75e   :  { %6525 = vmatpush2.bf16.msra.mxu0 %v11330_v33  ;;  %v11348_v33 = vld [vmem:[#allocation15 + $0x32c] ss:$36 sps:$4 sm:$0xff]  }
 0x75f   :  { %6445 = vmatpush2.bf16.msra.mxu1 %v11333_v55  ;;  %6526 = vmatprep.subr.bf16.mxu0 %v11336_v0  ;;  %12500 = vst [vmem:[#allocation202_spill] sm:$0xff] %v11348_v33  ;;  %v11351_v0 = vld [vmem:[#allocation15 + $0x2dc] ss:$36 sps:$4 sm:$0xff]   ;;  %v12647_v55 = vld [vmem:[#allocation144_spill] sm:$0xff] }
 0x760   :  { %6446 = vmatprep.subr.bf16.mxu1 %v11339_v5  ;;  %12501 = vst [vmem:[#allocation203_spill] sm:$0xff] %v11351_v0  ;;  %v11354_v5 = vld [vmem:[#allocation15 + $0x328] ss:$36 sps:$4 sm:$0xff]  }
 0x761   :  { %v9588_v19 = vpop.eup %9587  ;;  %12502 = vst [vmem:[#allocation204_spill] sm:$0xff] %v11354_v5 }
 0x762   :  { %v6182_v52 = vadd.f32 1.0, %v9588_v19  ;;  %6527 = vmatpush2.bf16.msra.mxu0 %v11342_v57  ;;  %v11357_v19 = vld [vmem:[#allocation15 + $0x2d8] ss:$36 sps:$4 sm:$0xff]   ;;  %v11360_v57 = vld [vmem:[#allocation15 + $0x2e4] ss:$36 sps:$4 sm:$0xff]  }
 0x763   :  { %6447 = vmatpush2.bf16.msra.mxu1 %v11345_v20  ;;  %6528 = vmatprep.subr.bf16.mxu0 %v11348_v33  ;;  %12503 = vst [vmem:[#allocation205_spill] sm:$0xff] %v11357_v19  ;;  %12504 = vst [vmem:[#allocation206_spill] sm:$0xff] %v11360_v57  ;;  %v11363_v20 = vld [vmem:[#allocation15 + $0x294] ss:$36 sps:$4 sm:$0xff]  }
 0x764   :  { %9589 = vrcp.f32 %v6182_v52  ;;  %6448 = vmatprep.subr.bf16.mxu1 %v11351_v0  ;;  %12505 = vst [vmem:[#allocation207_spill] sm:$0xff] %v11363_v20  ;;  %v11366_v52 = vld [vmem:[#allocation15 + $0x2e0] ss:$36 sps:$4 sm:$0xff]   ;;  %v11369_v33 = vld [vmem:[#allocation15 + $0x290] ss:$36 sps:$4 sm:$0xff]  }
 0x765   :  { %12506 = vst [vmem:[#allocation208_spill] sm:$0xff] %v11366_v52  ;;  %12507 = vst [vmem:[#allocation209_spill] sm:$0xff] %v11369_v33  ;;  %v11394_v0 = vld [vmem:[#allocation15 + $0x688] ss:$36 sps:$4 sm:$0xff]  }
 0x766   :  { %6529 = vmatpush2.bf16.msra.mxu0 %v11354_v5  ;;  %v11372_v5 = vld [vmem:[#allocation15 + $0x29c] ss:$36 sps:$4 sm:$0xff]   ;;  %12515 = vst [vmem:[#allocation217_spill] sm:$0xff] %v11394_v0 }
 0x767   :  { %6449 = vmatpush2.bf16.msra.mxu1 %v11357_v19  ;;  %6530 = vmatprep.subr.bf16.mxu0 %v11360_v57  ;;  %12508 = vst [vmem:[#allocation210_spill] sm:$0xff] %v11372_v5  ;;  %v11375_v19 = vld [vmem:[#allocation15 + $0x24c] ss:$36 sps:$4 sm:$0xff]   ;;  %v11378_v57 = vld [vmem:[#allocation15 + $0x298] ss:$36 sps:$4 sm:$0xff]  }
 0x768   :  { %6450 = vmatprep.subr.bf16.mxu1 %v11363_v20  ;;  %12509 = vst [vmem:[#allocation211_spill] sm:$0xff] %v11375_v19  ;;  %12510 = vst [vmem:[#allocation212_spill] sm:$0xff] %v11378_v57  ;;  %v11381_v20 = vld [vmem:[#allocation15 + $0x248] ss:$36 sps:$4 sm:$0xff]  }
 0x769   :  { %12511 = vst [vmem:[#allocation213_spill] sm:$0xff] %v11381_v20 }
 0x76a   :  { %6531 = vmatpush2.bf16.msra.mxu0 %v11366_v52  ;;  %v11384_v52 = vld [vmem:[#allocation15 + $0x254] ss:$36 sps:$4 sm:$0xff]  }
 0x76b   :  { %6451 = vmatpush2.bf16.msra.mxu1 %v11369_v33  ;;  %6532 = vmatprep.subr.bf16.mxu0 %v11372_v5  ;;  %12512 = vst [vmem:[#allocation214_spill] sm:$0xff] %v11384_v52  ;;  %v11387_v33 = vld [vmem:[#allocation15 + $0x68c] ss:$36 sps:$4 sm:$0xff]  }
 0x76c   :  { %6452 = vmatprep.subr.bf16.mxu1 %v11375_v19  ;;  %12513 = vst [vmem:[#allocation215_spill] sm:$0xff] %v11387_v33  ;;  %v11391_v19 = vld [vmem:[#allocation15 + $0x250] ss:$36 sps:$4 sm:$0xff]  }
 0x76d   :  { %12514 = vst [vmem:[#allocation216_spill] sm:$0xff] %v11391_v19 }
 0x76e   :  { %6533 = vmatpush2.bf16.msra.mxu0 %v11378_v57 }
 0x76f   :  { %6453 = vmatpush2.bf16.msra.mxu1 %v11381_v20  ;;  %6534 = vmatprep.subr.bf16.mxu0 %v11384_v52  ;;  %v11397_v20 = vld [vmem:[#allocation15 + $0x694] ss:$36 sps:$4 sm:$0xff]   ;;  %v11400_v52 = vld [vmem:[#allocation15 + $0x644] ss:$36 sps:$4 sm:$0xff]  }
 0x770   :  { %6545 = vmatprep.subr.bf16.mxu1 %v11387_v33  ;;  %12516 = vst [vmem:[#allocation218_spill] sm:$0xff] %v11397_v20  ;;  %12517 = vst [vmem:[#allocation219_spill] sm:$0xff] %v11400_v52  ;;  %v11404_v33 = vld [vmem:[#allocation15 + $0x690] ss:$36 sps:$4 sm:$0xff]  }
 0x771   :  { %v9590_v5 = vpop.eup %9589  ;;  %12518 = vst [vmem:[#allocation220_spill] sm:$0xff] %v11404_v33 }
 0x772   :  { %6455 = vmatmul.mubr.bf16.vlgmr.msra.gmra.mxu1 %v11131_v50  ;;  %6535 = vmatpush2.bf16.msra.mxu0 %v11391_v19  ;;  %v6194_v57 = vsub.f32 1.0, %v9590_v5  ;;  %v11408_v19 = vld [vmem:[#allocation15 + $0x640] ss:$36 sps:$4 sm:$0xff]  }
 0x773   :  { %6546 = vmatpush1.bf16.msra.mxu1 %v11394_v0  ;;  %6190 = vperm.xlu1 %8558, %v9590_v5   ;;  %12519 = vst [vmem:[#allocation221_spill] sm:$0xff] %v11408_v19  ;;  %v11411_v5 = vld [vmem:[#allocation15 + $0x64c] ss:$36 sps:$4 sm:$0xff]  }
 0x774   :  { %6627 = vmatprep.subr.bf16.mxu0 %v11397_v20  ;;  %6547 = vmatprep.subr.bf16.mxu1 %v11400_v52  ;;  %12520 = vst [vmem:[#allocation222_spill] sm:$0xff] %v11411_v5  ;;  %v11414_v20 = vld [vmem:[#allocation15 + $0x5fc] ss:$36 sps:$4 sm:$0xff]   ;;  %v11434_v52 = vld [vmem:[#allocation15 + $0x5b0] ss:$36 sps:$4 sm:$0xff]  }
 0x775   :  { %6537 = vmatmul.mubr.bf16.vlgmr.msra.gmra.mxu0 %v11131_v50  ;;  %6197 = vperm.xlu0 %8559, %v6194_v57   ;;  %12521 = vst [vmem:[#allocation223_spill] sm:$0xff] %v11414_v20  ;;  %v11419_v57 = vld [vmem:[#allocation15 + $0x648] ss:$36 sps:$4 sm:$0xff]   ;;  %12527 = vst [vmem:[#allocation229_spill] sm:$0xff] %v11434_v52 }
 0x776   :  { %6628 = vmatpush1.bf16.msra.mxu0 %v11404_v33  ;;  %6577 = vmatprep.mubr.bf16.mxu1 %v12420_v35  ;;  %12522 = vst [vmem:[#allocation224_spill] sm:$0xff] %v11419_v57  ;;  %v11422_v33 = vld [vmem:[#allocation15 + $0x5f8] ss:$36 sps:$4 sm:$0xff]  }
 0x777   :  { %6548 = vmatpush1.bf16.msra.mxu1 %v11408_v19  ;;  %6629 = vmatprep.subr.bf16.mxu0 %v11411_v5  ;;  %12523 = vst [vmem:[#allocation225_spill] sm:$0xff] %v11422_v33  ;;  %v11425_v19 = vld [vmem:[#allocation15 + $0x604] ss:$36 sps:$4 sm:$0xff]   ;;  %v11428_v5 = vld [vmem:[#allocation15 + $0x5b4] ss:$36 sps:$4 sm:$0xff]  }
 0x778   :  { %6549 = vmatprep.subr.bf16.mxu1 %v11414_v20  ;;  %6659 = vmatprep.mubr.bf16.mxu0 %v12420_v35  ;;  %12524 = vst [vmem:[#allocation226_spill] sm:$0xff] %v11425_v19  ;;  %12525 = vst [vmem:[#allocation227_spill] sm:$0xff] %v11428_v5  ;;  %v11431_v20 = vld [vmem:[#allocation15 + $0x600] ss:$36 sps:$4 sm:$0xff]  }
 0x779   :  { %8560 = vset.pattern.permute.xlu1 %v12420_v35  ;;  %12526 = vst [vmem:[#allocation228_spill] sm:$0xff] %v11431_v20 }
 0x77a   :  { %6630 = vmatpush1.bf16.msra.mxu0 %v11419_v57  ;;  %v11437_v57 = vld [vmem:[#allocation15 + $0x5bc] ss:$36 sps:$4 sm:$0xff]  }
 0x77b   :  { %6550 = vmatpush1.bf16.msra.mxu1 %v11422_v33  ;;  %6631 = vmatprep.subr.bf16.mxu0 %v11425_v19  ;;  %12528 = vst [vmem:[#allocation230_spill] sm:$0xff] %v11437_v57  ;;  %v11440_v33 = vld [vmem:[#allocation15 + $0x56c] ss:$36 sps:$4 sm:$0xff]   ;;  %v11443_v19 = vld [vmem:[#allocation15 + $0x5b8] ss:$36 sps:$4 sm:$0xff]  }
 0x77c   :  { %6551 = vmatprep.subr.bf16.mxu1 %v11428_v5  ;;  %12529 = vst [vmem:[#allocation231_spill] sm:$0xff] %v11440_v33  ;;  %12530 = vst [vmem:[#allocation232_spill] sm:$0xff] %v11443_v19  ;;  %v11446_v5 = vld [vmem:[#allocation15 + $0x568] ss:$36 sps:$4 sm:$0xff]  }
 0x77d   :  { %12531 = vst [vmem:[#allocation233_spill] sm:$0xff] %v11446_v5 }
 0x77e   :  { %6632 = vmatpush1.bf16.msra.mxu0 %v11431_v20  ;;  %v11450_v20 = vld [vmem:[#allocation15 + $0x524] ss:$36 sps:$4 sm:$0xff]  }
 0x77f   :  { %6552 = vmatpush1.bf16.msra.mxu1 %v11434_v52  ;;  %6633 = vmatprep.subr.bf16.mxu0 %v11437_v57  ;;  %12532 = vst [vmem:[#allocation234_spill] sm:$0xff] %v11450_v20  ;;  %v11454_v57 = vld [vmem:[#allocation15 + $0x520] ss:$36 sps:$4 sm:$0xff]  }
 0x780   :  { %6553 = vmatprep.subr.bf16.mxu1 %v11440_v33  ;;  %12533 = vst [vmem:[#allocation235_spill] sm:$0xff] %v11454_v57 }
 0x782   :  { %6634 = vmatpush1.bf16.msra.mxu0 %v11443_v19 }
 0x783   :  { %6554 = vmatpush1.bf16.msra.mxu1 %v11446_v5  ;;  %6635 = vmatprep.subr.bf16.mxu0 %v10631_v38  ;;  %v12534_v38 = vld [vmem:[#allocation43_spill] sm:$0xff] }
 0x784   :  { %6555 = vmatprep.subr.bf16.mxu1 %v11450_v20 }
 0x786   :  { %6636 = vmatpush1.bf16.msra.mxu0 %v10633_v3  ;;  %v12535_v3 = vld [vmem:[#allocation42_spill] sm:$0xff] }
 0x787   :  { %6556 = vmatpush1.bf16.msra.mxu1 %v11454_v57  ;;  %6637 = vmatprep.subr.bf16.mxu0 %v10638_v41  ;;  %v12537_v41 = vld [vmem:[#allocation44_spill] sm:$0xff] }
 0x788   :  { %6557 = vmatprep.subr.bf16.mxu1 %v10635_v39  ;;  %v12536_v39 = vld [vmem:[#allocation45_spill] sm:$0xff] }
 0x78a   :  { %6638 = vmatpush1.bf16.msra.mxu0 %v10644_v42  ;;  %v12539_v42 = vld [vmem:[#allocation46_spill] sm:$0xff] }
 0x78b   :  { %6558 = vmatpush1.bf16.msra.mxu1 %v10640_v6  ;;  %6639 = vmatprep.subr.bf16.mxu0 %v10649_v46  ;;  %v12538_v6 = vld [vmem:[#allocation47_spill] sm:$0xff]  ;;  %v12541_v46 = vld [vmem:[#allocation48_spill] sm:$0xff] }
 0x78c   :  { %6559 = vmatprep.subr.bf16.mxu1 %v10646_v43  ;;  %v12540_v43 = vld [vmem:[#allocation49_spill] sm:$0xff] }
 0x78e   :  { %6640 = vmatpush1.bf16.msra.mxu0 %v10656_v47  ;;  %v12543_v47 = vld [vmem:[#allocation50_spill] sm:$0xff] }
 0x78f   :  { %6560 = vmatpush1.bf16.msra.mxu1 %v10652_v60  ;;  %6641 = vmatprep.subr.bf16.mxu0 %v10661_v49  ;;  %v12542_v60 = vld [vmem:[#allocation51_spill] sm:$0xff]  ;;  %v12545_v49 = vld [vmem:[#allocation52_spill] sm:$0xff] }
 0x790   :  { %6586 = vmatprep.subr.bf16.mxu1 %v10658_v1  ;;  %v12544_v1 = vld [vmem:[#allocation53_spill] sm:$0xff] }
 0x792   :  { %6578 = vmatmul.mubr.bf16.vlgmr.msra.gmra.mxu1 %v11192_v58  ;;  %6642 = vmatpush1.bf16.msra.mxu0 %v10668_v54  ;;  %v12547_v54 = vld [vmem:[#allocation54_spill] sm:$0xff] }
 0x793   :  { %6587 = vmatpush1.bf16.msra.mxu1 %v10664_v53  ;;  %6618 = vmatprep.mubr.bf16.mxu1 %v11127_v44  ;;  %v12546_v53 = vld [vmem:[#allocation55_spill] sm:$0xff] }
 0x794   :  { %8363 = vmatprep.subr.bf16.mxu0 %v10673_v61  ;;  %6588 = vmatprep.subr.bf16.mxu1 %v10670_v59  ;;  %v12548_v59 = vld [vmem:[#allocation57_spill] sm:$0xff]  ;;  %v12549_v61 = vld [vmem:[#allocation56_spill] sm:$0xff] }
 0x795   :  { %6660 = vmatmul.mubr.bf16.vlgmr.msra.gmra.mxu0 %v11192_v58 }
 0x796   :  { %8364 = vmatpush3.bf16.msra.mxu0 %v10682_v9  ;;  %6700 = vmatprep.mubr.bf16.mxu0 %v11127_v44  ;;  %v12551_v9 = vld [vmem:[#allocation58_spill] sm:$0xff]  ;;  %v12556_v44 = vld [vmem:[#allocation65_spill] sm:$0xff] }
 0x797   :  { %6589 = vmatpush1.bf16.msra.mxu1 %v10678_v26  ;;  %8365 = vmatprep.subr.bf16.mxu0 %v10687_v11  ;;  %v12550_v26 = vld [vmem:[#allocation59_spill] sm:$0xff]  ;;  %v12553_v11 = vld [vmem:[#allocation60_spill] sm:$0xff] }
 0x798   :  { %6590 = vmatprep.subr.bf16.mxu1 %v10685_v37  ;;  %v12552_v37 = vld [vmem:[#allocation61_spill] sm:$0xff] }
 0x79a   :  { %8366 = vmatpush3.bf16.msra.mxu0 %v10695_v17  ;;  %v12555_v17 = vld [vmem:[#allocation62_spill] sm:$0xff] }
 0x79b   :  { %6591 = vmatpush1.bf16.msra.mxu1 %v10691_v13  ;;  %8367 = vmatprep.subr.bf16.mxu0 %v12534_v38  ;;  %v12554_v13 = vld [vmem:[#allocation63_spill] sm:$0xff]  ;;  %v12557_v38 = vld [vmem:[#allocation64_spill] sm:$0xff] }
 0x79c   :  { %6592 = vmatprep.subr.bf16.mxu1 %v12535_v3  ;;  %v12558_v3 = vld [vmem:[#allocation69_spill] sm:$0xff] }
 0x79e   :  { %8368 = vmatpush3.bf16.msra.mxu0 %v12536_v39  ;;  %v12559_v39 = vld [vmem:[#allocation66_spill] sm:$0xff] }
 0x79f   :  { %6593 = vmatpush1.bf16.msra.mxu1 %v12537_v41  ;;  %8369 = vmatprep.subr.bf16.mxu0 %v12538_v6  ;;  %v12560_v41 = vld [vmem:[#allocation72_spill] sm:$0xff]  ;;  %v12561_v6 = vld [vmem:[#allocation67_spill] sm:$0xff] }
 0x7a0   :  { %6594 = vmatprep.subr.bf16.mxu1 %v12539_v42  ;;  %v12562_v42 = vld [vmem:[#allocation73_spill] sm:$0xff] }
 0x7a2   :  { %8370 = vmatpush3.bf16.msra.mxu0 %v12540_v43  ;;  %v12563_v43 = vld [vmem:[#allocation68_spill] sm:$0xff] }
 0x7a3   :  { %6595 = vmatpush1.bf16.msra.mxu1 %v12541_v46  ;;  %8371 = vmatprep.subr.bf16.mxu0 %v12542_v60  ;;  %v12564_v46 = vld [vmem:[#allocation76_spill] sm:$0xff]  ;;  %v12565_v60 = vld [vmem:[#allocation70_spill] sm:$0xff] }
 0x7a4   :  { %6596 = vmatprep.subr.bf16.mxu1 %v12543_v47  ;;  %v12566_v47 = vld [vmem:[#allocation77_spill] sm:$0xff] }
 0x7a6   :  { %8372 = vmatpush3.bf16.msra.mxu0 %v12544_v1  ;;  %v12567_v1 = vld [vmem:[#allocation71_spill] sm:$0xff] }
 0x7a7   :  { %6597 = vmatpush1.bf16.msra.mxu1 %v12545_v49  ;;  %8373 = vmatprep.subr.bf16.mxu0 %v12546_v53  ;;  %v12568_v49 = vld [vmem:[#allocation81_spill] sm:$0xff]  ;;  %v12569_v53 = vld [vmem:[#allocation74_spill] sm:$0xff] }
 0x7a8   :  { %6598 = vmatprep.subr.bf16.mxu1 %v12547_v54  ;;  %v12570_v54 = vld [vmem:[#allocation82_spill] sm:$0xff] }
 0x7aa   :  { %8374 = vmatpush3.bf16.msra.mxu0 %v12548_v59  ;;  %v12571_v59 = vld [vmem:[#allocation75_spill] sm:$0xff] }
 0x7ab   :  { %6599 = vmatpush1.bf16.msra.mxu1 %v12549_v61  ;;  %8375 = vmatprep.subr.bf16.mxu0 %v12550_v26  ;;  %v12572_v61 = vld [vmem:[#allocation85_spill] sm:$0xff]  ;;  %v12573_v26 = vld [vmem:[#allocation79_spill] sm:$0xff] }
 0x7ac   :  { %6600 = vmatprep.subr.bf16.mxu1 %v12551_v9  ;;  %v12574_v9 = vld [vmem:[#allocation86_spill] sm:$0xff] }
 0x7ae   :  { %8376 = vmatpush3.bf16.msra.mxu0 %v12552_v37  ;;  %v12575_v37 = vld [vmem:[#allocation80_spill] sm:$0xff] }
 0x7af   :  { %6601 = vmatpush1.bf16.msra.mxu1 %v12553_v11  ;;  %8377 = vmatprep.subr.bf16.mxu0 %v12554_v13  ;;  %v12576_v11 = vld [vmem:[#allocation89_spill] sm:$0xff]  ;;  %v12577_v13 = vld [vmem:[#allocation83_spill] sm:$0xff] }
 0x7b0   :  { %6602 = vmatprep.subr.bf16.mxu1 %v12555_v17  ;;  %v12578_v17 = vld [vmem:[#allocation90_spill] sm:$0xff] }
 0x7b2   :  { %8378 = vmatpush3.bf16.msra.mxu0 %v12556_v44  ;;  %v12579_v44 = vld [vmem:[#allocation84_spill] sm:$0xff] }
 0x7b3   :  { %6603 = vmatpush2.bf16.msra.mxu1 %v12557_v38  ;;  %7034 = vmatprep.subr.bf16.mxu0 %v12558_v3  ;;  %v12580_v38 = vld [vmem:[#allocation92_spill] sm:$0xff]  ;;  %v12581_v3 = vld [vmem:[#allocation87_spill] sm:$0xff] }
 0x7b4   :  { %6604 = vmatprep.subr.bf16.mxu1 %v12559_v39  ;;  %v12582_v39 = vld [vmem:[#allocation93_spill] sm:$0xff] }
 0x7b5   :  { %6701 = vmatmul.mubr.bf16.vlgmr.msra.gmra.mxu0 %v11131_v50 }
 0x7b6   :  { %7035 = vmatpush1.bf16.msra.mxu0 %v12560_v41  ;;  %v12583_v41 = vld [vmem:[#allocation88_spill] sm:$0xff] }
 0x7b7   :  { %6605 = vmatpush2.bf16.msra.mxu1 %v12561_v6  ;;  %7036 = vmatprep.subr.bf16.mxu0 %v12562_v42  ;;  %v12584_v6 = vld [vmem:[#allocation95_spill] sm:$0xff] }
 0x7b8   :  { %6606 = vmatprep.subr.bf16.mxu1 %v12563_v43  ;;  %v12585_v42 = vld [vmem:[#allocation91_spill] sm:$0xff]  ;;  %v12586_v43 = vld [vmem:[#allocation96_spill] sm:$0xff] }
 0x7ba   :  { %7037 = vmatpush1.bf16.msra.mxu0 %v12564_v46  ;;  %v12587_v46 = vmov 0.0  }
 0x7bb   :  { %6607 = vmatpush2.bf16.msra.mxu1 %v12565_v60  ;;  %7038 = vmatprep.subr.bf16.mxu0 %v12566_v47  ;;  %v12588_v60 = vld [vmem:[#allocation98_spill] sm:$0xff] }
 0x7bc   :  { %6608 = vmatprep.subr.bf16.mxu1 %v12567_v1  ;;  %v12589_v47 = vld [vmem:[#allocation94_spill] sm:$0xff]  ;;  %v12590_v1 = vld [vmem:[#allocation99_spill] sm:$0xff] }
 0x7be   :  { %7039 = vmatpush1.bf16.msra.mxu0 %v12568_v49 }
 0x7bf   :  { %6609 = vmatpush2.bf16.msra.mxu1 %v12569_v53  ;;  %7040 = vmatprep.subr.bf16.mxu0 %v12570_v54  ;;  %v12591_v53 = vld [vmem:[#allocation101_spill] sm:$0xff] }
 0x7c0   :  { %6610 = vmatprep.subr.bf16.mxu1 %v12571_v59  ;;  %v12592_v54 = vld [vmem:[#allocation97_spill] sm:$0xff] }
 0x7c2   :  { %7041 = vmatpush1.bf16.msra.mxu0 %v12572_v61  ;;  %v12593_v61 = vld [vmem:[#allocation102_spill] sm:$0xff] }
 0x7c3   :  { %6611 = vmatpush2.bf16.msra.mxu1 %v12573_v26  ;;  %7042 = vmatprep.subr.bf16.mxu0 %v12574_v9  ;;  %v12594_v26 = vld [vmem:[#allocation104_spill] sm:$0xff] }
 0x7c4   :  { %6612 = vmatprep.subr.bf16.mxu1 %v12575_v37  ;;  %v12595_v9 = vld [vmem:[#allocation100_spill] sm:$0xff] }
 0x7c6   :  { %7043 = vmatpush1.bf16.msra.mxu0 %v12576_v11  ;;  %v12596_v11 = vld [vmem:[#allocation105_spill] sm:$0xff] }
 0x7c7   :  { %6613 = vmatpush2.bf16.msra.mxu1 %v12577_v13  ;;  %7044 = vmatprep.subr.bf16.mxu0 %v12578_v17  ;;  %v12597_v13 = vld [vmem:[#allocation108_spill] sm:$0xff]  ;;  %v12598_v17 = vld [vmem:[#allocation103_spill] sm:$0xff] }
 0x7c8   :  { %6614 = vmatprep.subr.bf16.mxu1 %v12579_v44  ;;  %v12599_v44 = vld [vmem:[#allocation109_spill] sm:$0xff] }
 0x7ca   :  { %7045 = vmatpush1.bf16.msra.mxu0 %v12580_v38  ;;  %v12600_v38 = vld [vmem:[#allocation111_spill] sm:$0xff] }
 0x7cb   :  { %6615 = vmatpush2.bf16.msra.mxu1 %v12581_v3  ;;  %7046 = vmatprep.subr.bf16.mxu0 %v12582_v39  ;;  %v12601_v3 = vld [vmem:[#allocation107_spill] sm:$0xff]  ;;  %v12602_v39 = vld [vmem:[#allocation112_spill] sm:$0xff] }
 0x7cc   :  { %6616 = vmatprep.subr.bf16.mxu1 %v12583_v41  ;;  %v12603_v41 = vld [vmem:[#allocation114_spill] sm:$0xff] }
 0x7ce   :  { %7047 = vmatpush1.bf16.msra.mxu0 %v12584_v6  ;;  %v12604_v6 = vld [vmem:[#allocation110_spill] sm:$0xff] }
 0x7cf   :  { %6617 = vmatpush2.bf16.msra.mxu1 %v12585_v42  ;;  %7048 = vmatprep.subr.bf16.mxu0 %v12586_v43  ;;  %v12605_v42 = vld [vmem:[#allocation115_spill] sm:$0xff]  ;;  %v12606_v43 = vld [vmem:[#allocation117_spill] sm:$0xff] }
 0x7d0   :  { %8477 = vmatprep.subr.bf16.mxu1 %v12587_v46 }
 0x7d2   :  { %6619 = vmatmul.mubr.bf16.vlgmr.msra.gmra.mxu1 %v11131_v50  ;;  %7049 = vmatpush1.bf16.msra.mxu0 %v12588_v60  ;;  %v12607_v60 = vld [vmem:[#allocation113_spill] sm:$0xff] }
 0x7d3   :  { %8478 = vmatpush3.bf16.msra.mxu1 %v12589_v47  ;;  %8493 = vmatprep.mubr.msk.bf16.mxu1 %vm10214_vm1, %v12587_v46  ;;  %v12608_v47 = vld [vmem:[#allocation38_spill] sm:$0xff] }
 0x7d4   :  { %8479 = vmatprep.subr.bf16.mxu1 %v12587_v46  ;;  %7050 = vmatprep.subr.bf16.mxu0 %v12590_v1  ;;  %vm6185_vm5 = vcmp.eq.s32.totalorder %v12608_v47, 1  ;;  %v12609_v1 = vld [vmem:[#allocation118_spill] sm:$0xff] }
 0x7d5   :  { %v6374_v49 = vpop.f32.mrf.mxu0 }
 0x7d6   :  { %7051 = vmatpush2.bf16.msra.mxu0 %v12591_v53 }
 0x7d7   :  { %8480 = vmatpush3.bf16.msra.mxu1 %v12592_v54  ;;  %v6376_v59 = vpop.f32.mrf.mxu0  ;;  %7052 = vmatprep.subr.bf16.mxu0 %v12593_v61  ;;  %v11569_v54 = vsel %vm6185_vm5, 1.0, %v12587_v46  ;;  %v12611_v61 = vld [vmem:[#allocation119_spill] sm:$0xff] }
 0x7d8   :  { %8481 = vmatprep.subr.bf16.mxu1 %v12587_v46  ;;  %12610 = vst [vmem:[#allocation43_spill] sm:$0xff] %v11569_v54 }
 0x7d9   :  { %v6378_v50 = vpop.f32.mrf.mxu0 }
 0x7da   :  { %7053 = vmatpush2.bf16.msra.mxu0 %v12594_v26  ;;  %v12612_v50 = vld [vmem:[#allocation116_spill] sm:$0xff]  ;;  %v12613_v26 = vld [vmem:[#allocation121_spill] sm:$0xff] }
 0x7db   :  { %8482 = vmatpush3.bf16.msra.mxu1 %v12595_v9  ;;  %v6379_v37 = vpop.f32.mrf.mxu0  ;;  %7054 = vmatprep.subr.bf16.mxu0 %v12596_v11  ;;  %v12615_v11 = vld [vmem:[#allocation141_spill] sm:$0xff] }
 0x7dc   :  { %8483 = vmatprep.subr.bf16.mxu1 %v12587_v46  ;;  %v12614_v37 = vld [vmem:[#allocation120_spill] sm:$0xff] }
 0x7de   :  { %7055 = vmatpush2.bf16.msra.mxu0 %v12597_v13 }
 0x7df   :  { %8484 = vmatpush3.bf16.msra.mxu1 %v12598_v17  ;;  %7056 = vmatprep.subr.bf16.mxu0 %v12599_v44 }
 0x7e0   :  { %8485 = vmatprep.subr.bf16.mxu1 %v12587_v46 }
 0x7e2   :  { %7057 = vmatpush2.bf16.msra.mxu0 %v12600_v38  ;;  %v12616_v38 = vld [vmem:[#allocation123_spill] sm:$0xff] }
 0x7e3   :  { %8486 = vmatpush3.bf16.msra.mxu1 %v12601_v3  ;;  %7058 = vmatprep.subr.bf16.mxu0 %v12602_v39 }
 0x7e4   :  { %8487 = vmatprep.subr.bf16.mxu1 %v12587_v46 }
 0x7e6   :  { %7059 = vmatpush2.bf16.msra.mxu0 %v12603_v41  ;;  %v12617_v41 = vld [vmem:[#allocation122_spill] sm:$0xff] }
 0x7e7   :  { %8488 = vmatpush3.bf16.msra.mxu1 %v12604_v6  ;;  %7060 = vmatprep.subr.bf16.mxu0 %v12605_v42  ;;  %v12618_v42 = vld [vmem:[#allocation124_spill] sm:$0xff] }
 0x7e8   :  { %8489 = vmatprep.subr.bf16.mxu1 %v12587_v46 }
 0x7ea   :  { %7061 = vmatpush2.bf16.msra.mxu0 %v12606_v43 }
 0x7eb   :  { %8490 = vmatpush3.bf16.msra.mxu1 %v12607_v60  ;;  %7062 = vmatprep.subr.bf16.mxu0 %v12609_v1 }
 0x7ec   :  { %8491 = vmatprep.subr.bf16.mxu1 %v12587_v46 }
 0x7ee   :  { %v6191_v53 = vpop.permute.xlu1 %6190  ;;  %7063 = vmatpush2.bf16.msra.mxu0 %v12611_v61 }
 0x7ef   :  { %8492 = vmatpush3.bf16.msra.mxu1 %v12612_v50  ;;  %7064 = vmatprep.subr.bf16.mxu0 %v12613_v26  ;;  %v6193_v13 = vmul.f32 %v6191_v53, %v12615_v11  ;;  %v12619_v53 = vld [vmem:[#allocation125_spill] sm:$0xff] }
 0x7f0   :  { %v6198_v9 = vpop.permute.xlu0 %6197  ;;  %7075 = vmatprep.subr.bf16.mxu1 %v12614_v37 }
 0x7f1   :  { %v6200_v17 = vmul.f32 %v11569_v54, %v6198_v9  ;;  %v12622_v9 = vmov 1  }
 0x7f2   :  { %8494 = vmatmul.mubr.bf16.vlgmr.msra.gmra.mxu1 %v11192_v58  ;;  %v6415_v44 = vpop.f32.mrf.mxu1  ;;  %7065 = vmatpush2.bf16.msra.mxu0 %v12616_v38  ;;  %v12620_v58 = vld [vmem:[#allocation126_spill] sm:$0xff]  ;;  %v12627_v38 = vld [vmem:[#allocation132_spill] sm:$0xff] }
 0x7f3   :  { %v6201_v3 = vadd.f32 %v6200_v17, %v6193_v13  ;;  %v11579_v39 = vadd.f32 %v6415_v44, %v6374_v49  ;;  %7076 = vmatpush1.bf16.msra.mxu1 %v12617_v41  ;;  %7157 = vmatprep.subr.bf16.mxu0 %v12619_v53  ;;  %v12621_v49 = vld [vmem:[#allocation127_spill] sm:$0xff]  ;;  %v12624_v13 = vld [vmem:[#allocation129_spill] sm:$0xff]  ;;  %v12625_v17 = vld [vmem:[#allocation130_spill] sm:$0xff] }
 0x7f4   :  { %v6417_v6 = vpop.f32.mrf.mxu1  ;;  %7077 = vmatprep.subr.bf16.mxu1 %v12618_v42  ;;  %7107 = vmatprep.mubr.bf16.mxu1 %v12420_v35  ;;  %v12626_v44 = vld [vmem:[#allocation131_spill] sm:$0xff]  ;;  %v12628_v41 = vld [vmem:[#allocation133_spill] sm:$0xff] }
 0x7f5   :  { %v11583_v43 = vadd.f32 %v6417_v6, %v6376_v59  ;;  %v6497_v60 = vpop.f32.mrf.mxu0  ;;  %6213 = vperm.xlu1 %8560, %v6201_v3   ;;  %v12623_v59 = vld [vmem:[#allocation128_spill] sm:$0xff]  ;;  %v12629_v6 = vld [vmem:[#allocation134_spill] sm:$0xff]  ;;  %v12630_v42 = vld [vmem:[#allocation135_spill] sm:$0xff] }
 0x7f6   :  { %v6419_v1 = vpop.f32.mrf.mxu1  ;;  %v11603_v53 = vld [vmem:[%s12081_s14] sm:$0xff] }
 0x7f7   :  { %v6499_v61 = vpop.f32.mrf.mxu0  ;;  %7078 = vmatpush1.bf16.msra.mxu1 %v12620_v58  ;;  %v12631_v1 = vld [vmem:[#allocation136_spill] sm:$0xff]  ;;  %12633 = vst [vmem:[#allocation42_spill] sm:$0xff] %v11603_v53  ;;  %v12634_v58 = vld [vmem:[#allocation35_spill] sm:$0xff] }
 0x7f8   :  { %v6420_v50 = vpop.f32.mrf.mxu1  ;;  %7079 = vmatprep.subr.bf16.mxu1 %v12621_v49  ;;  %v12635_v49 = vld [vmem:[#allocation138_spill] sm:$0xff] }
 0x7f9   :  { %v6501_v26 = vpop.f32.mrf.mxu0  ;;  %8561 = vset.pattern.permute.xlu1 %v12622_v9  ;;  %v6140_v50 = vrot.slane %v11603_v53, %v12634_v58 }
 0x7fa   :  { %6235 = vperm.xlu1 %8561, %v6201_v3   ;;  %v12632_v3 = vld [vmem:[#allocation137_spill] sm:$0xff]  ;;  %v12636_v26 = vld [vmem:[#allocation34_spill] sm:$0xff] }
 0x7fb   :  { %v6502_v37 = vpop.f32.mrf.mxu0  ;;  %7080 = vmatpush1.bf16.msra.mxu1 %v12623_v59  ;;  %v11613_v59 = vld [vmem:[%s12081_s14 + $0x8] sm:$0xf] }
 0x7fc   :  { %7081 = vmatprep.subr.bf16.mxu1 %v12624_v13  ;;  %v6136_v37 = vrot.slane %v11603_v53, %v12636_v26  ;;  %12637 = vst [vmem:[#allocation45_spill] sm:$0xff] %v11613_v59  ;;  %v6144_v13 = vrot.slane %v11613_v59, %v12636_v26 }
 0x7ff   :  { %7082 = vmatpush1.bf16.msra.mxu1 %v12625_v17  ;;  %v12638_v17 = vld [vmem:[#allocation139_spill] sm:$0xff] }
 0x800   :  { %7083 = vmatprep.subr.bf16.mxu1 %v12626_v44  ;;  %v6155_v44 = vrot.slane %v6140_v50, %v12636_v26 }
 0x803   :  { %7084 = vmatpush1.bf16.msra.mxu1 %v12627_v38  ;;  %v6151_v38 = vrot.slane %v6136_v37, %v12636_v26 }
 0x804   :  { %7085 = vmatprep.subr.bf16.mxu1 %v12628_v41  ;;  %v6159_v41 = vrot.slane %v6144_v13, %v12636_v26 }
 0x807   :  { %7086 = vmatpush1.bf16.msra.mxu1 %v12629_v6  ;;  %v6161_v6 = vmul.f32 %v6155_v44, %v11121_v24 }
 0x808   :  { %7087 = vmatprep.subr.bf16.mxu1 %v12630_v42  ;;  %v6160_v42 = vmul.f32 %v6151_v38, %v11119_v29 }
 0x80b   :  { %7088 = vmatpush1.bf16.msra.mxu1 %v12631_v1  ;;  %v6162_v1 = vmul.f32 %v6159_v41, %v11185_v45 }
 0x80c   :  { %7089 = vmatprep.subr.bf16.mxu1 %v12632_v3  ;;  %v6163_v3 = vadd.f32 %v6161_v6, %v6160_v42 }
 0x80f   :  { %7090 = vmatpush1.bf16.msra.mxu1 %v12635_v49  ;;  %v6164_v49 = vadd.f32 %v6163_v3, %v6162_v1  ;;  %v12640_v3 = vld [vmem:[#allocation142_spill] sm:$0xff] }
 0x810   :  { %7116 = vmatprep.subr.bf16.mxu1 %v12638_v17 }
 0x81e   :  { %6165 = vadd.xlane.f32.xlu1 %v6164_v49  ;;  %v12641_v49 = vld [vmem:[#allocation143_spill] sm:$0xff] }
 0x832   :  { %v6456_v53 = vpop.f32.mrf.mxu1 }
 0x833   :  { %v11624_v9 = vadd.f32 %v6497_v60, %v6456_v53 }
 0x834   :  { %v6458_v59 = vpop.f32.mrf.mxu1 }
 0x835   :  { %v6500_v17 = vadd.f32 %v6499_v61, %v6458_v59  ;;  %v6538_v47 = vpop.f32.mrf.mxu0  ;;  %v12639_v61 = vld [vmem:[#allocation140_spill] sm:$0xff] }
 0x836   :  { %v6460_v50 = vpop.f32.mrf.mxu1  ;;  %v6241_v59 = vrot.slane %v12639_v61, %v12636_v26  ;;  %v6245_v1 = vrot.slane %v12639_v61, %v12634_v58 }
 0x837   :  { %v6540_v11 = vpop.f32.mrf.mxu0 }
 0x838   :  { %v6461_v37 = vpop.f32.mrf.mxu1 }
 0x839   :  { %v6542_v54 = vpop.f32.mrf.mxu0  ;;  %v11643_v37 = vrot.slane %v6241_v59, %v12636_v26 }
 0x83b   :  { %v6543_v13 = vpop.f32.mrf.mxu0  ;;  %12642 = vst [vmem:[#allocation44_spill] sm:$0xff] %v11643_v37 }
 0x83c   :  { %v11646_v13 = vrot.slane %v6245_v1, %v12636_v26 }
 0x83e   :  { %12643 = vst [vmem:[#allocation47_spill] sm:$0xff] %v11646_v13 }
 0x852   :  { %v6579_v19 = vpop.f32.mrf.mxu1 }
 0x854   :  { %v6581_v44 = vpop.f32.mrf.mxu1 }
 0x855   :  { %v11626_v57 = vadd.f32 %v6581_v44, %v6540_v11  ;;  %v11628_v38 = vpop.f32.mrf.mxu0  ;;  %v6253_v44 = vrot.slane %v11046_v63, %v12634_v58 }
 0x856   :  { %v6583_v41 = vpop.f32.mrf.mxu1 }
 0x857   :  { %v11630_v6 = vpop.f32.mrf.mxu0  ;;  %v6257_v41 = vrot.slane %v11048_v30, %v12636_v26  ;;  %v11663_v20 = vrot.slane %v6253_v44, %v12636_v26 }
 0x858   :  { %v6584_v42 = vpop.f32.mrf.mxu1 }
 0x859   :  { %v6665_v60 = vpop.f32.mrf.mxu0  ;;  %v11668_v33 = vrot.slane %v6257_v41, %v12636_v26 }
 0x85b   :  { %v6666_v53 = vpop.f32.mrf.mxu0  ;;  %12646 = vst [vmem:[#allocation46_spill] sm:$0xff] %v11668_v33 }
 0x85c   :  { %v12644_v53 = vld [vmem:[#allocation39_spill] sm:$0xff] }
 0x870   :  { %v11636_v54 = vpop.permute.xlu1 %6213 }
 0x871   :  { %v6216_v11 = vmul.f32 %v11636_v54, %v12640_v3  ;;  %v6217_v50 = vmul.f32 %v11636_v54, %v12641_v49  ;;  %v12645_v3 = vld [vmem:[#allocation40_spill] sm:$0xff] }
 0x873   :  { %v6225_v61 = vadd.f32 %v6216_v11, %v12644_v53  ;;  %v6226_v49 = vadd.f32 %v6217_v50, %v12645_v3  ;;  %v6219_v11 = vmul.f32 %v11636_v54, %v12647_v55  ;;  %v12648_v3 = vld [vmem:[#allocation145_spill] sm:$0xff] }
 0x875   :  { %v11652_v42 = vpop.f32.mrf.mxu0  ;;  %v11654_v60 = vpop.permute.xlu1 %6235 }
 0x876   :  { %v6319_v59 = vmul.f32 %v11643_v37, %v11654_v60  ;;  %v6320_v1 = vmul.f32 %v11646_v13, %v11654_v60  ;;  %v6220_v37 = vmul.f32 %v11636_v54, %v12648_v3  ;;  %v6322_v44 = vmul.f32 %v11663_v20, %v11654_v60 }
 0x877   :  { %v11665_v5 = vpop.f32.mrf.mxu0  ;;  %v6323_v41 = vmul.f32 %v11668_v33, %v11654_v60 }
 0x878   :  { %v6328_v52 = vadd.f32 %v6319_v59, %v6225_v61  ;;  %v6329_v0 = vadd.f32 %v6320_v1, %v6226_v49  ;;  %v6228_v49 = vadd.f32 %v6219_v11, %v10543_v18  ;;  %v6249_v61 = vrot.slane %v11046_v63, %v12636_v26 }
 0x879   :  { %v8382_v50 = vpop.f32.mrf.mxu0  ;;  %v6229_v1 = vadd.f32 %v6220_v37, %v10553_v36 }
 0x87a   :  { %v6748_v53 = vadd.f32 %v11579_v39, %v6328_v52  ;;  %v6749_v13 = vadd.f32 %v11583_v43, %v6329_v0  ;;  %v6331_v3 = vadd.f32 %v6322_v44, %v6228_v49  ;;  %v11685_v0 = vrot.slane %v6249_v61, %v12636_v26  ;;  %v12650_v61 = vld [vmem:[#allocation148_spill] sm:$0xff] }
 0x87b   :  { %v8383_v22 = vpop.f32.mrf.mxu0  ;;  %v6332_v52 = vadd.f32 %v6323_v41, %v6229_v1  ;;  %v6580_v39 = vadd.f32 %v6579_v19, %v6538_v47  ;;  %v6261_v41 = vrot.slane %v11048_v30, %v12634_v58 }
 0x87c   :  { %v8258_v59 = vmul.f32 -1.442695, %v6748_v53  ;;  %v8259_v50 = vmul.f32 -1.442695, %v6749_v13  ;;  %v6218_v22 = vmul.f32 %v11636_v54, %v11076_v14  ;;  %v6769_v43 = vadd.f32 %v6500_v17, %v6331_v3  ;;  %v12649_v53 = vld [vmem:[#allocation41_spill] sm:$0xff] }
 0x87d   :  { %v6770_v11 = vadd.f32 %v6580_v39, %v6332_v52  ;;  %v6321_v63 = vmul.f32 %v11685_v0, %v11654_v60  ;;  %v11696_v49 = vrot.slane %v6261_v41, %v12636_v26  ;;  %v12651_v52 = vld [vmem:[#allocation146_spill] sm:$0xff] }
 0x87e   :  { %9591 = vpow2.f32 %v8258_v59  ;;  %v6227_v33 = vadd.f32 %v6218_v22, %v12649_v53  ;;  %v8261_v37 = vmul.f32 -1.442695, %v6769_v43  ;;  %v6221_v59 = vmul.f32 %v11636_v54, %v12650_v61 }
 0x87f   :  { %9593 = vpow2.f32 %v8259_v50  ;;  %v8262_v13 = vmul.f32 -1.442695, %v6770_v11  ;;  %v6269_v22 = vrot.slane %v12651_v52, %v12634_v58 }
 0x880   :  { %v6330_v44 = vadd.f32 %v6321_v63, %v6227_v33  ;;  %9595 = vpow2.f32 %v8261_v37  ;;  %v6324_v33 = vmul.f32 %v11696_v49, %v11654_v60  ;;  %v6230_v39 = vadd.f32 %v6221_v59, %v10547_v62  ;;  %v12655_v59 = vld [vmem:[#allocation149_spill] sm:$0xff] }
 0x881   :  { %9597 = vpow2.f32 %v8262_v13 }
 0x882   :  { %v6750_v19 = vadd.f32 %v11624_v9, %v6330_v44  ;;  %v6265_v9 = vrot.slane %v12651_v52, %v12636_v26  ;;  %v6333_v11 = vadd.f32 %v6324_v33, %v6230_v39  ;;  %v11711_v44 = vrot.slane %v6269_v22, %v12636_v26 }
 0x884   :  { %v8260_v50 = vmul.f32 -1.442695, %v6750_v19  ;;  %v11708_v37 = vrot.slane %v6265_v9, %v12636_v26  ;;  %12653 = vst [vmem:[#allocation48_spill] sm:$0xff] %v11711_v44  ;;  %v6771_v58 = vadd.f32 %v11626_v57, %v6333_v11  ;;  %v6326_v9 = vmul.f32 %v11711_v44, %v11654_v60 }
 0x886   :  { %12652 = vst [vmem:[#allocation49_spill] sm:$0xff] %v11708_v37  ;;  %v6325_v33 = vmul.f32 %v11708_v37, %v11654_v60 }
 0x88b   :  { %v9592_v47 = vpop.eup %9591 }
 0x88c   :  { %v9594_v17 = vpop.eup %9593  ;;  %v6760_v3 = vadd.f32 1.0, %v9592_v47  ;;  %v12654_v47 = vld [vmem:[#allocation147_spill] sm:$0xff] }
 0x88d   :  { %v6761_v1 = vadd.f32 1.0, %v9594_v17  ;;  %v9596_v13 = vpop.eup %9595  ;;  %v6222_v17 = vmul.f32 %v11636_v54, %v12654_v47 }
 0x88e   :  { %9599 = vrcp.f32 %v6760_v3  ;;  %v9598_v19 = vpop.eup %9597  ;;  %v6781_v52 = vadd.f32 1.0, %v9596_v13 }
 0x88f   :  { %9601 = vrcp.f32 %v6761_v1  ;;  %v6223_v1 = vmul.f32 %v11636_v54, %v12655_v59  ;;  %v6782_v39 = vadd.f32 1.0, %v9598_v19  ;;  %v6231_v22 = vadd.f32 %v6222_v17, %v10568_v28 }
 0x890   :  { %9603 = vpow2.f32 %v8260_v50 }
 0x891   :  { %v6232_v57 = vadd.f32 %v6223_v1, %v10572_v32  ;;  %9605 = vrcp.f32 %v6781_v52 }
 0x892   :  { %v6620_v30 = vpop.f32.mrf.mxu1  ;;  %9607 = vrcp.f32 %v6782_v39 }
 0x893   :  { %v6662_v3 = vadd.f32 %v11628_v38, %v6620_v30  ;;  %v8263_v30 = vmul.f32 -1.442695, %v6771_v58  ;;  %v6335_v37 = vadd.f32 %v6326_v9, %v6232_v57  ;;  %v11728_v58 = vld [vmem:[#allocation22] ss:$0 sm:$0xff] }
 0x894   :  { %v6622_v43 = vpop.f32.mrf.mxu1 }
 0x895   :  { %v6664_v50 = vadd.f32 %v11630_v6, %v6622_v43  ;;  %v6334_v6 = vadd.f32 %v6325_v33, %v6231_v22  ;;  %9609 = vpow2.f32 %v8263_v30  ;;  %v6273_v33 = vrot.slane %v11116_v48, %v12636_v26 }
 0x896   :  { %v6624_v63 = vpop.f32.mrf.mxu1  ;;  %v6224_v30 = vmul.f32 %v11636_v54, %v11137_v51 }
 0x897   :  { %v6790_v63 = vadd.f32 %v6662_v3, %v10561_v10  ;;  %v6791_v11 = vadd.f32 %v6664_v50, %v10566_v21 }
 0x898   :  { %v6625_v41 = vpop.f32.mrf.mxu1 }
 0x89b   :  { %v9600_v38 = vpop.eup %9599 }
 0x89c   :  { %v9602_v41 = vpop.eup %9601  ;;  %v6793_v43 = vmul.f32 %v9600_v38, %v6790_v63  ;;  %v8381_v38 = vadd.f32 %v11665_v5, %v11652_v42  ;;  %v6233_v5 = vadd.f32 %v6224_v30, %v10598_v16  ;;  %v12662_v30 = vld [vmem:[#allocation152_spill] sm:$0xff] }
 0x89d   :  { %v6794_v13 = vmul.f32 %v9602_v41, %v6791_v11  ;;  %v9604_v44 = vpop.eup %9603 }
 0x89e   :  { %v6796_v59 = vadd.f32 %v6793_v43, %v6334_v6  ;;  %v6762_v17 = vadd.f32 1.0, %v9604_v44  ;;  %v9606_v52 = vpop.eup %9605 }
 0x89f   :  { %v6797_v19 = vadd.f32 %v6794_v13, %v6335_v37  ;;  %v9608_v9 = vpop.eup %9607  ;;  %v11737_v37 = vrot.slane %v6273_v33, %v12636_v26  ;;  %v6802_v44 = vsub.f32 1.0, %v9606_v52  ;;  %v6808_v48 = vmul.f32 %v9606_v52, %v11119_v29 }
 0x8a0   :  { %9611 = vtanh.f32 %v6796_v59  ;;  %v6803_v22 = vsub.f32 1.0, %v9608_v9  ;;  %v6809_v6 = vmul.f32 %v9608_v9, %v11121_v24 }
 0x8a1   :  { %9613 = vtanh.f32 %v6797_v19  ;;  %v6327_v26 = vmul.f32 %v11737_v37, %v11654_v60 }
 0x8a2   :  { %9615 = vrcp.f32 %v6762_v17  ;;  %v9610_v39 = vpop.eup %9609 }
 0x8a3   :  { %v6783_v19 = vadd.f32 1.0, %v9610_v39 }
 0x8a7   :  { %v6166_v3 = vpop.xlane.xlu1 %6165 }
 0x8a8   :  { %v11731_v1 = vadd.f32 %v11728_v58, %v6166_v3 }
 0x8aa   :  { %v8255_v50 = vmul.f32 -1.442695, %v11731_v1 }
 0x8ac   :  { %9617 = vpow2.f32 %v8255_v50  ;;  %v6336_v50 = vadd.f32 %v6327_v26, %v6233_v5  ;;  %v12670_v26 = vld [vmem:[#allocation160_spill] sm:$0xff] }
 0x8ad   :  { %v9612_v59 = vpop.eup %9611  ;;  %9619 = vrcp.f32 %v6783_v19  ;;  %v12672_v19 = vld [vmem:[#allocation169_spill] sm:$0xff]  ;;  %v12674_v5 = vld [vmem:[#allocation164_spill] sm:$0xff] }
 0x8ae   :  { %v9614_v63 = vpop.eup %9613  ;;  %v6805_v57 = vmul.f32 %v9612_v59, %v6802_v44 }
 0x8af   :  { %v6806_v41 = vmul.f32 %v9614_v63, %v6803_v22  ;;  %v9616_v42 = vpop.eup %9615 }
 0x8b0   :  { %v11747_v13 = vadd.f32 %v6808_v48, %v6805_v57  ;;  %v12665_v57 = vld [vmem:[#allocation163_spill] sm:$0xff]  ;;  %v12666_v48 = vld [vmem:[#allocation156_spill] sm:$0xff] }
 0x8b1   :  { %v11749_v3 = vadd.f32 %v6809_v6, %v6806_v41  ;;  %v12668_v41 = vld [vmem:[#allocation165_spill] sm:$0xff]  ;;  %v12669_v6 = vld [vmem:[#allocation167_spill] sm:$0xff] }
 0x8b2   :  { %v6742_v11 = vpop.f32.mrf.mxu1  ;;  %v11755_v29 = vpack.c.bf16 %v11747_v13, %v11747_v13 }
 0x8b3   :  { %v6743_v43 = vadd.f32 %v8381_v38, %v6742_v11  ;;  %v11759_v24 = vpack.c.bf16 %v11749_v3, %v11749_v3  ;;  %v12667_v11 = vld [vmem:[#allocation158_spill] sm:$0xff] }
 0x8b4   :  { %v8495_v17 = vpop.f32.mrf.mxu1 }
 0x8b5   :  { %v6792_v54 = vadd.f32 %v6743_v43, %v10595_v8  ;;  %7066 = vmatprep.mubr.bf16.mxu0 %v11759_v24  ;;  %v12671_v43 = vld [vmem:[#allocation162_spill] sm:$0xff]  ;;  %v12673_v17 = vld [vmem:[#allocation171_spill] sm:$0xff] }
 0x8b6   :  { %v6745_v60 = vpop.f32.mrf.mxu1  ;;  %7067 = vmatmul.mubr.bf16.vlgmr.msra.gmra.mxu0 %v11755_v29 }
 0x8b7   :  { %v6795_v33 = vmul.f32 %v9616_v42, %v6792_v54  ;;  %7158 = vmatpush1.bf16.msra.mxu0 %v11140_v34  ;;  %7189 = vmatprep.mubr.bf16.mxu0 %v12420_v35  ;;  %v12675_v54 = vld [vmem:[#allocation166_spill] sm:$0xff]  ;;  %v12676_v42 = vld [vmem:[#allocation173_spill] sm:$0xff]  ;;  %v12677_v60 = vld [vmem:[#allocation175_spill] sm:$0xff] }
 0x8b8   :  { %v8496_v52 = vpop.f32.mrf.mxu1  ;;  %7159 = vmatprep.subr.bf16.mxu0 %v11144_v40 }
 0x8b9   :  { %v9618_v9 = vpop.eup %9617  ;;  %v6798_v39 = vadd.f32 %v6795_v33, %v6336_v50  ;;  %v12678_v50 = vld [vmem:[#allocation168_spill] sm:$0xff]  ;;  %v12679_v33 = vld [vmem:[#allocation170_spill] sm:$0xff]  ;;  %v12680_v52 = vld [vmem:[#allocation177_spill] sm:$0xff] }
 0x8ba   :  { %v6171_v44 = vadd.f32 1.0, %v9618_v9  ;;  %v9620_v59 = vpop.eup %9619  ;;  %v12681_v9 = vld [vmem:[#allocation179_spill] sm:$0xff] }
 0x8bb   :  { %9621 = vtanh.f32 %v6798_v39  ;;  %7160 = vmatpush1.bf16.msra.mxu0 %v11151_v15  ;;  %v6804_v34 = vsub.f32 1.0, %v9620_v59  ;;  %v6810_v40 = vmul.f32 %v9620_v59, %v11185_v45  ;;  %v12661_v45 = vld [vmem:[#allocation159_spill] sm:$0xff]  ;;  %v12682_v39 = vld [vmem:[#allocation172_spill] sm:$0xff]  ;;  %v12684_v59 = vld [vmem:[#allocation181_spill] sm:$0xff] }
 0x8bc   :  { %9623 = vrcp.f32 %v6171_v44  ;;  %7161 = vmatprep.subr.bf16.mxu0 %v11154_v25  ;;  %v12683_v44 = vld [vmem:[#allocation174_spill] sm:$0xff] }
 0x8bf   :  { %7162 = vmatpush1.bf16.msra.mxu0 %v11157_v4 }
 0x8c0   :  { %7163 = vmatprep.subr.bf16.mxu0 %v11160_v27  ;;  %v12656_v27 = vld [vmem:[#allocation153_spill] sm:$0xff] }
 0x8c3   :  { %7164 = vmatpush1.bf16.msra.mxu0 %v11163_v12  ;;  %v12657_v12 = vld [vmem:[#allocation155_spill] sm:$0xff] }
 0x8c4   :  { %7165 = vmatprep.subr.bf16.mxu0 %v11166_v2  ;;  %v12658_v2 = vld [vmem:[#allocation150_spill] sm:$0xff] }
 0x8c7   :  { %7166 = vmatpush1.bf16.msra.mxu0 %v11169_v56  ;;  %v12659_v56 = vld [vmem:[#allocation151_spill] sm:$0xff] }
 0x8c8   :  { %v9622_v22 = vpop.eup %9621  ;;  %7167 = vmatprep.subr.bf16.mxu0 %v11172_v7  ;;  %v12660_v7 = vld [vmem:[#allocation157_spill] sm:$0xff] }
 0x8c9   :  { %v11772_v63 = vpop.eup %9623  ;;  %v6807_v38 = vmul.f32 %v9622_v22, %v6804_v34  ;;  %v12685_v34 = vld [vmem:[#allocation183_spill] sm:$0xff]  ;;  %v12686_v22 = vld [vmem:[#allocation176_spill] sm:$0xff] }
 0x8ca   :  { %vm6202_vm6 = vcmp.gt.f32.partialorder %v11772_v63, 0.5 }
 0x8cb   :  { %v6203_v15 = vsel %vm6202_vm6, 1.0, %v12587_v46  ;;  %v11779_v25 = vadd.f32 %v6810_v40, %v6807_v38  ;;  %7168 = vmatpush1.bf16.msra.mxu0 %v11175_v31  ;;  %v12663_v31 = vld [vmem:[#allocation154_spill] sm:$0xff]  ;;  %v12688_v40 = vld [vmem:[#allocation185_spill] sm:$0xff] }
 0x8cc   :  { %6206 = vperm.xlu0 %8559, %v6203_v15   ;;  %7169 = vmatprep.subr.bf16.mxu0 %v11178_v23  ;;  %v12664_v23 = vld [vmem:[#allocation161_spill] sm:$0xff]  ;;  %v12687_v38 = vld [vmem:[#allocation178_spill] sm:$0xff]  ;;  %v12689_v15 = vld [vmem:[#allocation187_spill] sm:$0xff] }
 0x8cd   :  { %v11783_v4 = vpack.c.bf16 %v11779_v25, %v11779_v25 }
 0x8cf   :  { %7108 = vmatmul.mubr.bf16.vlgmr.msra.gmra.mxu1 %v11783_v4  ;;  %7170 = vmatpush1.bf16.msra.mxu0 %v12658_v2  ;;  %v12692_v2 = vld [vmem:[#allocation189_spill] sm:$0xff] }
 0x8d0   :  { %7117 = vmatpush1.bf16.msra.mxu1 %v12656_v27  ;;  %7148 = vmatprep.mubr.bf16.mxu1 %v11759_v24  ;;  %v12690_v27 = vld [vmem:[#allocation180_spill] sm:$0xff] }
 0x8d1   :  { %7118 = vmatprep.subr.bf16.mxu1 %v12657_v12  ;;  %7171 = vmatprep.subr.bf16.mxu0 %v12659_v56  ;;  %v12691_v12 = vld [vmem:[#allocation182_spill] sm:$0xff]  ;;  %v12693_v56 = vld [vmem:[#allocation191_spill] sm:$0xff] }
 0x8d3   :  { %7172 = vmatpush1.bf16.msra.mxu0 %v12662_v30  ;;  %v12696_v30 = vld [vmem:[#allocation193_spill] sm:$0xff] }
 0x8d4   :  { %7119 = vmatpush1.bf16.msra.mxu1 %v12660_v7  ;;  %7198 = vmatprep.subr.bf16.mxu0 %v12663_v31  ;;  %v12694_v7 = vld [vmem:[#allocation184_spill] sm:$0xff]  ;;  %v12697_v31 = vld [vmem:[#allocation195_spill] sm:$0xff] }
 0x8d5   :  { %7120 = vmatprep.subr.bf16.mxu1 %v12661_v45  ;;  %v12695_v45 = vld [vmem:[#allocation186_spill] sm:$0xff] }
 0x8d6   :  { %7190 = vmatmul.mubr.bf16.vlgmr.msra.gmra.mxu0 %v11783_v4 }
 0x8d7   :  { %7199 = vmatpush1.bf16.msra.mxu0 %v12666_v48  ;;  %7230 = vmatprep.mubr.bf16.mxu0 %v11759_v24  ;;  %v12700_v48 = vld [vmem:[#allocation197_spill] sm:$0xff] }
 0x8d8   :  { %7121 = vmatpush1.bf16.msra.mxu1 %v12664_v23  ;;  %7200 = vmatprep.subr.bf16.mxu0 %v12667_v11  ;;  %v12698_v23 = vld [vmem:[#allocation188_spill] sm:$0xff]  ;;  %v12701_v11 = vld [vmem:[#allocation199_spill] sm:$0xff] }
 0x8d9   :  { %7122 = vmatprep.subr.bf16.mxu1 %v12665_v57  ;;  %v12699_v57 = vld [vmem:[#allocation190_spill] sm:$0xff] }
 0x8db   :  { %7201 = vmatpush1.bf16.msra.mxu0 %v12670_v26  ;;  %v12704_v26 = vld [vmem:[#allocation201_spill] sm:$0xff] }
 0x8dc   :  { %7123 = vmatpush1.bf16.msra.mxu1 %v12668_v41  ;;  %7202 = vmatprep.subr.bf16.mxu0 %v12671_v43  ;;  %v12702_v41 = vld [vmem:[#allocation192_spill] sm:$0xff]  ;;  %v12705_v43 = vld [vmem:[#allocation203_spill] sm:$0xff] }
 0x8dd   :  { %7124 = vmatprep.subr.bf16.mxu1 %v12669_v6  ;;  %v12703_v6 = vld [vmem:[#allocation194_spill] sm:$0xff] }
 0x8df   :  { %7203 = vmatpush1.bf16.msra.mxu0 %v12674_v5  ;;  %v12708_v5 = vld [vmem:[#allocation205_spill] sm:$0xff] }
 0x8e0   :  { %7125 = vmatpush1.bf16.msra.mxu1 %v12672_v19  ;;  %7204 = vmatprep.subr.bf16.mxu0 %v12675_v54  ;;  %v12706_v19 = vld [vmem:[#allocation196_spill] sm:$0xff]  ;;  %v12709_v54 = vld [vmem:[#allocation207_spill] sm:$0xff] }
 0x8e1   :  { %7126 = vmatprep.subr.bf16.mxu1 %v12673_v17  ;;  %v12707_v17 = vld [vmem:[#allocation198_spill] sm:$0xff] }
 0x8e3   :  { %7205 = vmatpush1.bf16.msra.mxu0 %v12678_v50  ;;  %v12712_v50 = vld [vmem:[#allocation209_spill] sm:$0xff] }
 0x8e4   :  { %7127 = vmatpush1.bf16.msra.mxu1 %v12676_v42  ;;  %7206 = vmatprep.subr.bf16.mxu0 %v12679_v33  ;;  %v12710_v42 = vld [vmem:[#allocation200_spill] sm:$0xff]  ;;  %v12713_v33 = vld [vmem:[#allocation211_spill] sm:$0xff] }
 0x8e5   :  { %7128 = vmatprep.subr.bf16.mxu1 %v12677_v60  ;;  %v12711_v60 = vld [vmem:[#allocation202_spill] sm:$0xff] }
 0x8e7   :  { %7207 = vmatpush1.bf16.msra.mxu0 %v12682_v39  ;;  %v12716_v39 = vld [vmem:[#allocation213_spill] sm:$0xff] }
 0x8e8   :  { %7129 = vmatpush1.bf16.msra.mxu1 %v12680_v52  ;;  %7208 = vmatprep.subr.bf16.mxu0 %v12683_v44  ;;  %v12714_v52 = vld [vmem:[#allocation204_spill] sm:$0xff]  ;;  %v12717_v44 = vld [vmem:[#allocation215_spill] sm:$0xff] }
 0x8e9   :  { %7130 = vmatprep.subr.bf16.mxu1 %v12681_v9  ;;  %v12715_v9 = vld [vmem:[#allocation206_spill] sm:$0xff] }
 0x8eb   :  { %7209 = vmatpush1.bf16.msra.mxu0 %v12686_v22  ;;  %v12720_v22 = vld [vmem:[#allocation217_spill] sm:$0xff] }
 0x8ec   :  { %7131 = vmatpush1.bf16.msra.mxu1 %v12684_v59  ;;  %7210 = vmatprep.subr.bf16.mxu0 %v12687_v38  ;;  %v12718_v59 = vld [vmem:[#allocation208_spill] sm:$0xff]  ;;  %v12721_v38 = vld [vmem:[#allocation219_spill] sm:$0xff] }
 0x8ed   :  { %7132 = vmatprep.subr.bf16.mxu1 %v12685_v34  ;;  %v12719_v34 = vld [vmem:[#allocation210_spill] sm:$0xff] }
 0x8ef   :  { %7211 = vmatpush1.bf16.msra.mxu0 %v12690_v27  ;;  %v12724_v27 = vld [vmem:[#allocation221_spill] sm:$0xff] }
 0x8f0   :  { %7133 = vmatpush2.bf16.msra.mxu1 %v12688_v40  ;;  %7212 = vmatprep.subr.bf16.mxu0 %v12691_v12  ;;  %v12722_v40 = vld [vmem:[#allocation212_spill] sm:$0xff]  ;;  %v12725_v12 = vld [vmem:[#allocation223_spill] sm:$0xff] }
 0x8f1   :  { %7134 = vmatprep.subr.bf16.mxu1 %v12689_v15  ;;  %v12723_v15 = vld [vmem:[#allocation214_spill] sm:$0xff] }
 0x8f3   :  { %7213 = vmatpush1.bf16.msra.mxu0 %v12694_v7  ;;  %v12728_v7 = vld [vmem:[#allocation225_spill] sm:$0xff] }
 0x8f4   :  { %7135 = vmatpush2.bf16.msra.mxu1 %v12692_v2  ;;  %7214 = vmatprep.subr.bf16.mxu0 %v12695_v45  ;;  %v12726_v2 = vld [vmem:[#allocation216_spill] sm:$0xff]  ;;  %v12729_v45 = vld [vmem:[#allocation227_spill] sm:$0xff] }
 0x8f5   :  { %7136 = vmatprep.subr.bf16.mxu1 %v12693_v56  ;;  %v12727_v56 = vld [vmem:[#allocation218_spill] sm:$0xff] }
 0x8f7   :  { %7215 = vmatpush2.bf16.msra.mxu0 %v12698_v23  ;;  %v12732_v23 = vld [vmem:[#allocation229_spill] sm:$0xff] }
 0x8f8   :  { %7137 = vmatpush2.bf16.msra.mxu1 %v12696_v30  ;;  %7216 = vmatprep.subr.bf16.mxu0 %v12699_v57  ;;  %v12730_v30 = vld [vmem:[#allocation220_spill] sm:$0xff]  ;;  %v12733_v57 = vld [vmem:[#allocation231_spill] sm:$0xff] }
 0x8f9   :  { %7138 = vmatprep.subr.bf16.mxu1 %v12697_v31  ;;  %v12731_v31 = vld [vmem:[#allocation222_spill] sm:$0xff] }
 0x8fb   :  { %7217 = vmatpush2.bf16.msra.mxu0 %v12702_v41  ;;  %v12736_v41 = vld [vmem:[#allocation233_spill] sm:$0xff] }
 0x8fc   :  { %7139 = vmatpush2.bf16.msra.mxu1 %v12700_v48  ;;  %7218 = vmatprep.subr.bf16.mxu0 %v12703_v6  ;;  %v12734_v48 = vld [vmem:[#allocation224_spill] sm:$0xff]  ;;  %v12737_v6 = vld [vmem:[#allocation234_spill] sm:$0xff] }
 0x8fd   :  { %7140 = vmatprep.subr.bf16.mxu1 %v12701_v11  ;;  %v12735_v11 = vld [vmem:[#allocation226_spill] sm:$0xff] }
 0x8ff   :  { %7219 = vmatpush2.bf16.msra.mxu0 %v12706_v19  ;;  %v12740_v19 = vld [vmem:[#allocation235_spill] sm:$0xff] }
 0x900   :  { %7141 = vmatpush2.bf16.msra.mxu1 %v12704_v26  ;;  %7220 = vmatprep.subr.bf16.mxu0 %v12707_v17  ;;  %v12738_v26 = vld [vmem:[#allocation228_spill] sm:$0xff]  ;;  %v9820_v17 = vld [vmem:[#allocation15 + $0x4dc] ss:$36 sps:$4 sm:$0xff]  }
 0x901   :  { %7142 = vmatprep.subr.bf16.mxu1 %v12705_v43  ;;  %v12739_v43 = vld [vmem:[#allocation230_spill] sm:$0xff] }
 0x903   :  { %7221 = vmatpush2.bf16.msra.mxu0 %v12710_v42  ;;  %v9822_v42 = vld [vmem:[#allocation15 + $0x4d8] ss:$36 sps:$4 sm:$0xff]  }
 0x904   :  { %7143 = vmatpush2.bf16.msra.mxu1 %v12708_v5  ;;  %7222 = vmatprep.subr.bf16.mxu0 %v12711_v60  ;;  %v12741_v5 = vld [vmem:[#allocation232_spill] sm:$0xff] }
 0x905   :  { %7144 = vmatprep.subr.bf16.mxu1 %v12709_v54  ;;  %v9821_v54 = vld [vmem:[#allocation15 + $0x574] ss:$36 sps:$4 sm:$0xff]  }
 0x906   :  { %v9823_v60 = vld [vmem:[#allocation15 + $0x494] ss:$36 sps:$4 sm:$0xff]  }
 0x907   :  { %7223 = vmatpush2.bf16.msra.mxu0 %v12714_v52  ;;  %v9826_v52 = vld [vmem:[#allocation15 + $0x490] ss:$36 sps:$4 sm:$0xff]  }
 0x908   :  { %7145 = vmatpush2.bf16.msra.mxu1 %v12712_v50  ;;  %7224 = vmatprep.subr.bf16.mxu0 %v12715_v9  ;;  %v9824_v50 = vld [vmem:[#allocation15 + $0x570] ss:$36 sps:$4 sm:$0xff]  }
 0x909   :  { %7146 = vmatprep.subr.bf16.mxu1 %v12713_v33  ;;  %v9825_v33 = vld [vmem:[#allocation15 + $0x52c] ss:$36 sps:$4 sm:$0xff]   ;;  %v9827_v9 = vld [vmem:[#allocation15 + $0x214] ss:$36 sps:$4 sm:$0xff]  }
 0x90b   :  { %7225 = vmatpush2.bf16.msra.mxu0 %v12718_v59  ;;  %v9830_v59 = vld [vmem:[#allocation15 + $0x210] ss:$36 sps:$4 sm:$0xff]  }
 0x90c   :  { %7147 = vmatpush2.bf16.msra.mxu1 %v12716_v39  ;;  %7226 = vmatprep.subr.bf16.mxu0 %v12719_v34  ;;  %v9828_v39 = vld [vmem:[#allocation15 + $0x528] ss:$36 sps:$4 sm:$0xff]  }
 0x90d   :  { %7239 = vmatprep.subr.bf16.mxu1 %v12717_v44  ;;  %v9829_v44 = vld [vmem:[#allocation15 + $0x4e4] ss:$36 sps:$4 sm:$0xff]   ;;  %v9831_v34 = vld [vmem:[#allocation15 + $0x1cc] ss:$36 sps:$4 sm:$0xff]  }
 0x90f   :  { %7149 = vmatmul.mubr.bf16.vlgmr.msra.gmra.mxu1 %v11755_v29  ;;  %7227 = vmatpush2.bf16.msra.mxu0 %v12722_v40  ;;  %v9834_v40 = vld [vmem:[#allocation15 + $0x1c8] ss:$36 sps:$4 sm:$0xff]  }
 0x910   :  { %7240 = vmatpush1.bf16.msra.mxu1 %v12720_v22  ;;  %7271 = vmatprep.mubr.bf16.mxu1 %v12420_v35  ;;  %v9832_v22 = vld [vmem:[#allocation15 + $0x4e0] ss:$36 sps:$4 sm:$0xff]  }
 0x911   :  { %7241 = vmatprep.subr.bf16.mxu1 %v12721_v38  ;;  %7228 = vmatprep.subr.bf16.mxu0 %v12723_v15  ;;  %v9833_v38 = vld [vmem:[#allocation15 + $0x49c] ss:$36 sps:$4 sm:$0xff]   ;;  %v9835_v15 = vld [vmem:[#allocation15 + $0x184] ss:$36 sps:$4 sm:$0xff]  }
 0x913   :  { %7229 = vmatpush2.bf16.msra.mxu0 %v12726_v2  ;;  %v9838_v2 = vld [vmem:[#allocation15 + $0x180] ss:$36 sps:$4 sm:$0xff]  }
 0x914   :  { %7242 = vmatpush1.bf16.msra.mxu1 %v12724_v27  ;;  %7321 = vmatprep.subr.bf16.mxu0 %v12727_v56  ;;  %v9836_v27 = vld [vmem:[#allocation15 + $0x498] ss:$36 sps:$4 sm:$0xff]  }
 0x915   :  { %7243 = vmatprep.subr.bf16.mxu1 %v12725_v12  ;;  %v9837_v12 = vld [vmem:[#allocation15 + $0x458] ss:$36 sps:$4 sm:$0xff]  }
 0x916   :  { %7231 = vmatmul.mubr.bf16.vlgmr.msra.gmra.mxu0 %v11755_v29  ;;  %v9839_v56 = vld [vmem:[#allocation15 + $0x13c] ss:$36 sps:$4 sm:$0xff]  }
 0x917   :  { %7322 = vmatpush1.bf16.msra.mxu0 %v12730_v30  ;;  %7353 = vmatprep.mubr.bf16.mxu0 %v12420_v35  ;;  %v9842_v30 = vld [vmem:[#allocation15 + $0x138] ss:$36 sps:$4 sm:$0xff]  }
 0x918   :  { %7244 = vmatpush1.bf16.msra.mxu1 %v12728_v7  ;;  %7323 = vmatprep.subr.bf16.mxu0 %v12731_v31  ;;  %v9840_v7 = vld [vmem:[#allocation15 + $0x218] ss:$36 sps:$4 sm:$0xff]  }
 0x919   :  { %7245 = vmatprep.subr.bf16.mxu1 %v12729_v45  ;;  %v9841_v45 = vld [vmem:[#allocation15 + $0x410] ss:$36 sps:$4 sm:$0xff]  }
 0x91a   :  { %v9843_v31 = vld [vmem:[#allocation15 + $0xf4] ss:$36 sps:$4 sm:$0xff]  }
 0x91b   :  { %7324 = vmatpush1.bf16.msra.mxu0 %v12734_v48  ;;  %v9846_v48 = vld [vmem:[#allocation15 + $0xf0] ss:$36 sps:$4 sm:$0xff]  }
 0x91c   :  { %7246 = vmatpush1.bf16.msra.mxu1 %v12732_v23  ;;  %7325 = vmatprep.subr.bf16.mxu0 %v12735_v11  ;;  %v9844_v23 = vld [vmem:[#allocation15 + $0x1d0] ss:$36 sps:$4 sm:$0xff]  }
 0x91d   :  { %7247 = vmatprep.subr.bf16.mxu1 %v12733_v57  ;;  %v9845_v57 = vld [vmem:[#allocation15 + $0x3c8] ss:$36 sps:$4 sm:$0xff]  }
 0x91e   :  { %v9847_v11 = vld [vmem:[#allocation15 + $0xac] ss:$36 sps:$4 sm:$0xff]  }
 0x91f   :  { %7326 = vmatpush1.bf16.msra.mxu0 %v12738_v26  ;;  %v9850_v26 = vld [vmem:[#allocation15 + $0xa8] ss:$36 sps:$4 sm:$0xff]  }
 0x920   :  { %7248 = vmatpush1.bf16.msra.mxu1 %v12736_v41  ;;  %7327 = vmatprep.subr.bf16.mxu0 %v12739_v43  ;;  %v9848_v41 = vld [vmem:[#allocation15 + $0x188] ss:$36 sps:$4 sm:$0xff]   ;;  %v9852_v43 = vld [vmem:[#allocation15 + $0x140] ss:$36 sps:$4 sm:$0xff]  }
 0x921   :  { %7249 = vmatprep.subr.bf16.mxu1 %v12737_v6  ;;  %v9849_v6 = vld [vmem:[#allocation15 + $0x380] ss:$36 sps:$4 sm:$0xff]  }
 0x923   :  { %7328 = vmatpush1.bf16.msra.mxu0 %v12741_v5  ;;  %v9854_v5 = vld [vmem:[#allocation15 + $0x60] ss:$36 sps:$4 sm:$0xff]  }
 0x924   :  { %7250 = vmatpush1.bf16.msra.mxu1 %v12740_v19  ;;  %7329 = vmatprep.subr.bf16.mxu0 %v9821_v54  ;;  %v9853_v19 = vld [vmem:[#allocation15 + $0x338] ss:$36 sps:$4 sm:$0xff]   ;;  %v12742_v54 = vld [vmem:[#allocation43_spill] sm:$0xff] }
 0x925   :  { %7251 = vmatprep.subr.bf16.mxu1 %v9820_v17 }
 0x927   :  { %7330 = vmatpush1.bf16.msra.mxu0 %v9824_v50  ;;  %v9856_v50 = vld [vmem:[#allocation15 + $0xf8] ss:$36 sps:$4 sm:$0xff]  }
 0x928   :  { %7252 = vmatpush1.bf16.msra.mxu1 %v9822_v42  ;;  %7331 = vmatprep.subr.bf16.mxu0 %v9825_v33  ;;  %v12743_v33 = vld [vmem:[#allocation141_spill] sm:$0xff] }
 0x929   :  { %7253 = vmatprep.subr.bf16.mxu1 %v9823_v60  ;;  %v9855_v60 = vld [vmem:[#allocation15 + $0x1c] ss:$36 sps:$4 sm:$0xff]  }
 0x92b   :  { %7332 = vmatpush1.bf16.msra.mxu0 %v9828_v39  ;;  %v9858_v39 = vld [vmem:[#allocation15 + $0x18] ss:$36 sps:$4 sm:$0xff]  }
 0x92c   :  { %7254 = vmatpush1.bf16.msra.mxu1 %v9826_v52  ;;  %7333 = vmatprep.subr.bf16.mxu0 %v9829_v44  ;;  %v9859_v44 = vld [vmem:[#allocation19] ss:$0 sm:$0xff] }
 0x92d   :  { %7280 = vmatprep.subr.bf16.mxu1 %v9827_v9  ;;  %v9857_v9 = vld [vmem:[#allocation15 + $0x2f0] ss:$36 sps:$4 sm:$0xff]  }
 0x92f   :  { %7272 = vmatmul.mubr.bf16.vlgmr.msra.gmra.mxu1 %v11783_v4  ;;  %7334 = vmatpush1.bf16.msra.mxu0 %v9832_v22  ;;  %v9861_v22 = vld [vmem:[#allocation15 + $0xb0] ss:$36 sps:$4 sm:$0xff]  }
 0x930   :  { %7281 = vmatpush1.bf16.msra.mxu1 %v9830_v59  ;;  %7312 = vmatprep.mubr.bf16.mxu1 %v11759_v24 }
 0x931   :  { %7282 = vmatprep.subr.bf16.mxu1 %v9831_v34  ;;  %7335 = vmatprep.subr.bf16.mxu0 %v9833_v38  ;;  %v9860_v34 = vld [vmem:[#allocation15 + $0x454] ss:$36 sps:$4 sm:$0xff]  }
 0x933   :  { %7336 = vmatpush1.bf16.msra.mxu0 %v9836_v27  ;;  %v9864_v27 = vld [vmem:[#allocation15 + $0x40c] ss:$36 sps:$4 sm:$0xff]  }
 0x934   :  { %7283 = vmatpush1.bf16.msra.mxu1 %v9834_v40  ;;  %8394 = vmatprep.subr.bf16.mxu0 %v9837_v12  ;;  %v9862_v40 = vld [vmem:[#allocation15 + $0x2a8] ss:$36 sps:$4 sm:$0xff]  }
 0x935   :  { %7284 = vmatprep.subr.bf16.mxu1 %v9835_v15  ;;  %v9863_v15 = vld [vmem:[#allocation15 + $0x450] ss:$36 sps:$4 sm:$0xff]   ;;  %v9865_v12 = vld [vmem:[#allocation15 + $0x68] ss:$36 sps:$4 sm:$0xff]  }
 0x936   :  { %7354 = vmatmul.mubr.bf16.vlgmr.msra.gmra.mxu0 %v11783_v4 }
 0x937   :  { %8395 = vmatpush3.bf16.msra.mxu0 %v9840_v7  ;;  %7394 = vmatprep.mubr.bf16.mxu0 %v11759_v24  ;;  %v9851_v24 = vld [vmem:[#allocation15 + $0x64] ss:$36 sps:$4 sm:$0xff]  }
 0x938   :  { %7285 = vmatpush1.bf16.msra.mxu1 %v9838_v2  ;;  %8396 = vmatprep.subr.bf16.mxu0 %v9841_v45  ;;  %v9866_v2 = vld [vmem:[#allocation15 + $0x260] ss:$36 sps:$4 sm:$0xff]  }
 0x939   :  { %7286 = vmatprep.subr.bf16.mxu1 %v9839_v56  ;;  %v9867_v56 = vld [vmem:[#allocation15 + $0x408] ss:$36 sps:$4 sm:$0xff]   ;;  %v9869_v45 = vld [vmem:[#allocation15 + $0x20] ss:$36 sps:$4 sm:$0xff]  }
 0x93a   :  { %v9868_v7 = vld [vmem:[#allocation15 + $0x3c4] ss:$36 sps:$4 sm:$0xff]  }
 0x93b   :  { %8397 = vmatpush3.bf16.msra.mxu0 %v9844_v23  ;;  %v9872_v23 = vld [vmem:[#allocation15 + $0x378] ss:$36 sps:$4 sm:$0xff]  }
 0x93c   :  { %7287 = vmatpush1.bf16.msra.mxu1 %v9842_v30  ;;  %8398 = vmatprep.subr.bf16.mxu0 %v9845_v57  ;;  %v9870_v30 = vld [vmem:[#allocation15 + $0x3c0] ss:$36 sps:$4 sm:$0xff]   ;;  %v9873_v57 = vld [vmem:[#allocation15 + $0x334] ss:$36 sps:$4 sm:$0xff]  }
 0x93d   :  { %7288 = vmatprep.subr.bf16.mxu1 %v9843_v31  ;;  %v9871_v31 = vld [vmem:[#allocation15 + $0x37c] ss:$36 sps:$4 sm:$0xff]  }
 0x93f   :  { %8399 = vmatpush3.bf16.msra.mxu0 %v9848_v41  ;;  %v9876_v41 = vld [vmem:[#allocation15 + $0x2e8] ss:$36 sps:$4 sm:$0xff]  }
 0x940   :  { %7289 = vmatpush1.bf16.msra.mxu1 %v9846_v48  ;;  %8400 = vmatprep.subr.bf16.mxu0 %v9849_v6  ;;  %v9874_v48 = vld [vmem:[#allocation15 + $0x330] ss:$36 sps:$4 sm:$0xff]   ;;  %v9877_v6 = vld [vmem:[#allocation15 + $0x2a4] ss:$36 sps:$4 sm:$0xff]  }
 0x941   :  { %7290 = vmatprep.subr.bf16.mxu1 %v9847_v11  ;;  %v9875_v11 = vld [vmem:[#allocation15 + $0x2ec] ss:$36 sps:$4 sm:$0xff]  }
 0x943   :  { %8401 = vmatpush3.bf16.msra.mxu0 %v9852_v43  ;;  %v9880_v43 = vld [vmem:[#allocation15 + $0x258] ss:$36 sps:$4 sm:$0xff]  }
 0x944   :  { %7291 = vmatpush1.bf16.msra.mxu1 %v9850_v26  ;;  %8402 = vmatprep.subr.bf16.mxu0 %v9853_v19  ;;  %v9878_v26 = vld [vmem:[#allocation15 + $0x2a0] ss:$36 sps:$4 sm:$0xff]   ;;  %v9881_v19 = vld [vmem:[#allocation15 + $0x698] ss:$36 sps:$4 sm:$0xff]  }
 0x945   :  { %7292 = vmatprep.subr.bf16.mxu1 %v9851_v24  ;;  %v9879_v24 = vld [vmem:[#allocation15 + $0x25c] ss:$36 sps:$4 sm:$0xff]  }
 0x947   :  { %v6207_v17 = vpop.permute.xlu0 %6206  ;;  %8403 = vmatpush3.bf16.msra.mxu0 %v9856_v50 }
 0x948   :  { %7293 = vmatpush1.bf16.msra.mxu1 %v9854_v5  ;;  %v6209_v42 = vmul.f32 %v12742_v54, %v6207_v17  ;;  %8404 = vmatprep.subr.bf16.mxu0 %v9857_v9  ;;  %v9882_v17 = vld [vmem:[#allocation15 + $0x650] ss:$36 sps:$4 sm:$0xff]   ;;  %v9883_v5 = vld [vmem:[#allocation15 + $0x608] ss:$36 sps:$4 sm:$0xff]   ;;  %v10216_v9 = vmov 2  }
 0x949   :  { %7294 = vmatprep.subr.bf16.mxu1 %v9855_v60  ;;  %v9884_v60 = vld [vmem:[#allocation15 + $0x5c0] ss:$36 sps:$4 sm:$0xff]   ;;  %8562 = vset.pattern.permute.xlu0 %v10216_v9 }
 0x94a   :  { %v11887_v52 = vadd.f32 %v6209_v42, %v12743_v33  ;;  %v9885_v33 = vld [vmem:[#allocation15 + $0x578] ss:$36 sps:$4 sm:$0xff]   ;;  %8563 = vset.pattern.permute.xlu1 %v10216_v9 }
 0x94b   :  { %8405 = vmatpush3.bf16.msra.mxu0 %v9861_v22 }
 0x94c   :  { %7295 = vmatpush1.bf16.msra.mxu1 %v9858_v39  ;;  %v6855_v59 = vmul.f32 %v9859_v44, %v11887_v52  ;;  %8406 = vmatprep.subr.bf16.mxu0 %v9862_v40  ;;  %v9886_v39 = vld [vmem:[#allocation15 + $0x530] ss:$36 sps:$4 sm:$0xff]   ;;  %v9887_v44 = vld [vmem:[#allocation15 + $0x4e8] ss:$36 sps:$4 sm:$0xff]  }
 0x94d   :  { %7296 = vmatprep.subr.bf16.mxu1 %v9860_v34 }
 0x94e   :  { %v6856_v38 = vsel %vm4400_vm2, %v6855_v59, 0.0  ;;  %v9888_v59 = vld [vmem:[#allocation15 + $0x4a0] ss:$36 sps:$4 sm:$0xff]  }
 0x94f   :  { %6857 = vadd.xlane.f32.xlu1 %v6856_v38  ;;  %8407 = vmatpush3.bf16.msra.mxu0 %v9865_v12 }
 0x950   :  { %7297 = vmatpush2.bf16.msra.mxu1 %v9863_v15  ;;  %8408 = vmatprep.subr.bf16.mxu0 %v9866_v2 }
 0x951   :  { %7298 = vmatprep.subr.bf16.mxu1 %v9864_v27 }
 0x953   :  { %8409 = vmatpush3.bf16.msra.mxu0 %v9869_v45 }
 0x954   :  { %7299 = vmatpush2.bf16.msra.mxu1 %v9867_v56 }
 0x955   :  { %7300 = vmatprep.subr.bf16.mxu1 %v9868_v7 }
 0x956   :  { %7395 = vmatmul.mubr.bf16.vlgmr.msra.gmra.mxu0 %v11755_v29 }
 0x958   :  { %7301 = vmatpush2.bf16.msra.mxu1 %v9870_v30 }
 0x959   :  { %7302 = vmatprep.subr.bf16.mxu1 %v9871_v31 }
 0x95c   :  { %7303 = vmatpush2.bf16.msra.mxu1 %v9872_v23 }
 0x95d   :  { %7304 = vmatprep.subr.bf16.mxu1 %v9873_v57 }
 0x960   :  { %7305 = vmatpush2.bf16.msra.mxu1 %v9874_v48 }
 0x961   :  { %7306 = vmatprep.subr.bf16.mxu1 %v9875_v11 }
 0x964   :  { %7307 = vmatpush2.bf16.msra.mxu1 %v9876_v41  ;;  %v9889_v41 = vld [vmem:[#allocation21] ss:$0 sm:$0xff] }
 0x965   :  { %7308 = vmatprep.subr.bf16.mxu1 %v9877_v6 }
 0x968   :  { %7309 = vmatpush2.bf16.msra.mxu1 %v9878_v26 }
 0x969   :  { %7310 = vmatprep.subr.bf16.mxu1 %v9879_v24 }
 0x96c   :  { %7311 = vmatpush2.bf16.msra.mxu1 %v9880_v43 }
 0x96d   :  { %8497 = vmatprep.subr.bf16.mxu1 %v12587_v46 }
 0x96f   :  { %7313 = vmatmul.mubr.bf16.vlgmr.msra.gmra.mxu1 %v11755_v29 }
 0x970   :  { %8498 = vmatpush3.bf16.msra.mxu1 %v9881_v19  ;;  %8513 = vmatprep.mubr.msk.bf16.mxu1 %vm10214_vm1, %v12587_v46 }
 0x971   :  { %8499 = vmatprep.subr.bf16.mxu1 %v12587_v46 }
 0x974   :  { %8500 = vmatpush3.bf16.msra.mxu1 %v9882_v17 }
 0x975   :  { %8501 = vmatprep.subr.bf16.mxu1 %v12587_v46 }
 0x976   :  { %v7068_v54 = vpop.f32.mrf.mxu0 }
 0x978   :  { %8502 = vmatpush3.bf16.msra.mxu1 %v9883_v5  ;;  %v7070_v42 = vpop.f32.mrf.mxu0 }
 0x979   :  { %8503 = vmatprep.subr.bf16.mxu1 %v12587_v46 }
 0x97a   :  { %v7072_v29 = vpop.f32.mrf.mxu0 }
 0x97c   :  { %8504 = vmatpush3.bf16.msra.mxu1 %v9884_v60  ;;  %v7073_v50 = vpop.f32.mrf.mxu0 }
 0x97d   :  { %8505 = vmatprep.subr.bf16.mxu1 %v12587_v46 }
 0x980   :  { %8506 = vmatpush3.bf16.msra.mxu1 %v9885_v33 }
 0x981   :  { %8507 = vmatprep.subr.bf16.mxu1 %v12587_v46 }
 0x984   :  { %8508 = vmatpush3.bf16.msra.mxu1 %v9886_v39 }
 0x985   :  { %8509 = vmatprep.subr.bf16.mxu1 %v12587_v46 }
 0x988   :  { %8510 = vmatpush3.bf16.msra.mxu1 %v9887_v44 }
 0x989   :  { %8511 = vmatprep.subr.bf16.mxu1 %v12587_v46 }
 0x98c   :  { %8512 = vmatpush3.bf16.msra.mxu1 %v9888_v59 }
 0x98f   :  { %8514 = vmatmul.mubr.bf16.vlgmr.msra.gmra.mxu1 %v11783_v4  ;;  %v7109_v34 = vpop.f32.mrf.mxu1 }
 0x990   :  { %v11906_v22 = vadd.f32 %v7109_v34, %v7068_v54 }
 0x991   :  { %v7111_v38 = vpop.f32.mrf.mxu1 }
 0x992   :  { %v11908_v40 = vadd.f32 %v7111_v38, %v7070_v42 }
 0x993   :  { %v7113_v15 = vpop.f32.mrf.mxu1 }
 0x995   :  { %v7114_v27 = vpop.f32.mrf.mxu1 }
 0x996   :  { %v7191_v12 = vpop.f32.mrf.mxu0 }
 0x998   :  { %v7193_v2 = vpop.f32.mrf.mxu0 }
 0x99a   :  { %v7195_v56 = vpop.f32.mrf.mxu0 }
 0x99c   :  { %v7196_v7 = vpop.f32.mrf.mxu0 }
 0x9cf   :  { %v7150_v45 = vpop.f32.mrf.mxu1 }
 0x9d0   :  { %v11910_v30 = vadd.f32 %v7191_v12, %v7150_v45 }
 0x9d1   :  { %v7152_v31 = vpop.f32.mrf.mxu1 }
 0x9d2   :  { %v11912_v23 = vadd.f32 %v7193_v2, %v7152_v31 }
 0x9d3   :  { %v7154_v57 = vpop.f32.mrf.mxu1 }
 0x9d5   :  { %v7155_v4 = vpop.f32.mrf.mxu1 }
 0x9d6   :  { %v7232_v11 = vpop.f32.mrf.mxu0 }
 0x9d8   :  { %v6858_v48 = vpop.xlane.xlu1 %6857  ;;  %v7234_v26 = vpop.f32.mrf.mxu0 }
 0x9d9   :  { %v6859_v6 = vadd.f32 %v9889_v41, %v6858_v48 }
 0x9da   :  { %v7236_v43 = vpop.f32.mrf.mxu0 }
 0x9db   :  { %v8265_v24 = vmul.f32 -1.442695, %v6859_v6 }
 0x9dc   :  { %v7237_v19 = vpop.f32.mrf.mxu0 }
 0x9dd   :  { %9625 = vpow2.f32 %v8265_v24 }
 0x9ea   :  { %v9626_v17 = vpop.eup %9625 }
 0x9eb   :  { %v6863_v5 = vadd.f32 1.0, %v9626_v17 }
 0x9ed   :  { %9627 = vrcp.f32 %v6863_v5 }
 0x9ef   :  { %v7273_v54 = vpop.f32.mrf.mxu1 }
 0x9f0   :  { %v11914_v42 = vadd.f32 %v7273_v54, %v7232_v11 }
 0x9f1   :  { %v7275_v60 = vpop.f32.mrf.mxu1 }
 0x9f2   :  { %v11916_v29 = vadd.f32 %v7275_v60, %v7234_v26 }
 0x9f3   :  { %v7277_v50 = vpop.f32.mrf.mxu1 }
 0x9f5   :  { %v7278_v33 = vpop.f32.mrf.mxu1 }
 0x9f6   :  { %v7355_v39 = vpop.f32.mrf.mxu0  ;;  %v12745_v33 = vmov 1  }
 0x9f8   :  { %v7357_v59 = vpop.f32.mrf.mxu0 }
 0x9fa   :  { %v9628_v44 = vpop.eup %9627  ;;  %v7359_v38 = vpop.f32.mrf.mxu0 }
 0x9fb   :  { %6871 = vperm.xlu0 %8562, %v9628_v44   ;;  %v6875_v34 = vsub.f32 1.0, %v9628_v44  ;;  %v12747_v44 = vld [vmem:[#allocation42_spill] sm:$0xff] }
 0x9fc   :  { %v7360_v15 = vpop.f32.mrf.mxu0 }
 0x9fd   :  { %6878 = vperm.xlu1 %8563, %v6875_v34   ;;  %v12748_v34 = vld [vmem:[#allocation37_spill] sm:$0xff] }
 0x9fe   :  { %v6821_v38 = vrot.slane %v12747_v44, %v12748_v34 }
 0x9ff   :  { %8564 = vset.pattern.permute.xlu0 %v12420_v35  ;;  %v12744_v35 = vld [vmem:[#allocation38_spill] sm:$0xff] }
 0xa00   :  { %vm6866_vm7 = vcmp.eq.s32.totalorder %v12744_v35, 2 }
 0xa01   :  { %v8266_v17 = vsel %vm6866_vm7, 1.0, %v12587_v46  ;;  %v12749_v46 = vld [vmem:[#allocation45_spill] sm:$0xff] }
 0xa16   :  { %v8410_v27 = vpop.f32.mrf.mxu0 }
 0xa18   :  { %v8411_v12 = vpop.f32.mrf.mxu0 }
 0xa19   :  { %v8412_v2 = vadd.f32 %v8411_v12, %v8410_v27 }
 0xa1a   :  { %v8413_v56 = vpop.f32.mrf.mxu0 }
 0xa1c   :  { %v8414_v7 = vpop.f32.mrf.mxu0 }
 0xa2f   :  { %v7314_v45 = vpop.f32.mrf.mxu1 }
 0xa30   :  { %v11919_v31 = vadd.f32 %v7355_v39, %v7314_v45  ;;  %v12746_v39 = vld [vmem:[#allocation32_spill] sm:$0xff] }
 0xa31   :  { %v7316_v57 = vpop.f32.mrf.mxu1  ;;  %v6825_v15 = vrot.slane %v12749_v46, %v12746_v39  ;;  %v6836_v27 = vrot.slane %v6821_v38, %v12746_v39 }
 0xa32   :  { %v11921_v4 = vadd.f32 %v7357_v59, %v7316_v57  ;;  %v6817_v59 = vrot.slane %v12747_v44, %v12746_v39  ;;  %v9890_v57 = vld [vmem:[#allocation18] sm:$0xff] }
 0xa33   :  { %v7318_v48 = vpop.f32.mrf.mxu1  ;;  %v6840_v12 = vrot.slane %v6825_v15, %v12746_v39  ;;  %v6842_v56 = vmul.f32 %v6836_v27, %v11749_v3 }
 0xa34   :  { %v6935_v48 = vrot.slane %v9890_v57, %v12746_v39 }
 0xa35   :  { %v7319_v11 = vpop.f32.mrf.mxu1 }
 0xa36   :  { %v6980_v35 = vrot.slane %v6935_v48, %v12746_v39  ;;  %v12755_v48 = vld [vmem:[#allocation44_spill] sm:$0xff] }
 0xa4f   :  { %v7436_v41 = vpop.f32.mrf.mxu1 }
 0xa50   :  { %v11923_v6 = vadd.f32 %v8412_v2, %v7436_v41  ;;  %v6939_v41 = vrot.slane %v9890_v57, %v12748_v34 }
 0xa51   :  { %v8515_v26 = vpop.f32.mrf.mxu1 }
 0xa52   :  { %v9891_v26 = vld [vmem:[#allocation18 + $0x8] sm:$0xff] }
 0xa53   :  { %v7439_v24 = vpop.f32.mrf.mxu1 }
 0xa54   :  { %v6943_v24 = vrot.slane %v9891_v26, %v12746_v39 }
 0xa55   :  { %v8516_v43 = vpop.f32.mrf.mxu1 }
 0xa56   :  { %v6947_v43 = vrot.slane %v9891_v26, %v12748_v34  ;;  %v6988_v38 = vrot.slane %v6943_v24, %v12746_v39  ;;  %v12756_v26 = vld [vmem:[#allocation47_spill] sm:$0xff] }
 0xa58   :  { %v6992_v27 = vrot.slane %v6947_v43, %v12746_v39 }
 0xa76   :  { %v6872_v19 = vpop.permute.xlu0 %6871 }
 0xa77   :  { %v6874_v54 = vmul.f32 %v6872_v19, %v11887_v52  ;;  %v6832_v52 = vrot.slane %v6817_v59, %v12746_v39  ;;  %v6984_v59 = vrot.slane %v6939_v41, %v12746_v39 }
 0xa78   :  { %v6879_v5 = vpop.permute.xlu1 %6878 }
 0xa79   :  { %v6881_v60 = vmul.f32 %v8266_v17, %v6879_v5  ;;  %v6841_v2 = vmul.f32 %v6832_v52, %v11747_v13  ;;  %v12750_v17 = vld [vmem:[#allocation142_spill] sm:$0xff] }
 0xa7b   :  { %v6882_v50 = vadd.f32 %v6881_v60, %v6874_v54  ;;  %v6844_v7 = vadd.f32 %v6842_v56, %v6841_v2  ;;  %v12751_v54 = vld [vmem:[#allocation143_spill] sm:$0xff]  ;;  %v12752_v2 = vld [vmem:[#allocation145_spill] sm:$0xff] }
 0xa7d   :  { %6929 = vperm.xlu1 %8563, %v6882_v50   ;;  %6885 = vperm.xlu0 %8564, %v6882_v50  }
 0xa81   :  { %8565 = vset.pattern.permute.xlu0 %v12745_v33  ;;  %v9892_v33 = vld [vmem:[#allocation18 + $0x10] sm:$0xff] }
 0xa82   :  { %6907 = vperm.xlu0 %8565, %v6882_v50   ;;  %v6951_v44 = vrot.slane %v9892_v33, %v12746_v39  ;;  %v6955_v52 = vrot.slane %v9892_v33, %v12748_v34 }
 0xa86   :  { %8566 = vset.pattern.permute.xlu0 %v10216_v9  ;;  %v6843_v9 = vmul.f32 %v6840_v12, %v11779_v25 }
 0xa88   :  { %v6845_v45 = vadd.f32 %v6844_v7, %v6843_v9  ;;  %v12753_v9 = vld [vmem:[#allocation39_spill] sm:$0xff] }
 0xaa1   :  { %6846 = vadd.xlane.f32.xlu1 %v6845_v45  ;;  %v12754_v45 = vld [vmem:[#allocation40_spill] sm:$0xff] }
 0xaf8   :  { %v11943_v11 = vpop.permute.xlu0 %6885  ;;  %v11949_v19 = vpop.permute.xlu1 %6929 }
 0xaf9   :  { %v6888_v5 = vmul.f32 %v11943_v11, %v12750_v17  ;;  %v6889_v60 = vmul.f32 %v11943_v11, %v12751_v54  ;;  %v6890_v50 = vmul.f32 %v11943_v11, %v11076_v14  ;;  %v6891_v46 = vmul.f32 %v11943_v11, %v12647_v55  ;;  %v12757_v54 = vld [vmem:[#allocation46_spill] sm:$0xff] }
 0xafa   :  { %v7013_v12 = vmul.f32 %v6980_v35, %v11949_v19  ;;  %v6892_v14 = vmul.f32 %v11943_v11, %v12752_v2  ;;  %v6893_v56 = vmul.f32 %v11943_v11, %v12650_v61  ;;  %v7014_v61 = vmul.f32 %v6984_v59, %v11949_v19 }
 0xafb   :  { %v6897_v7 = vadd.f32 %v6888_v5, %v12753_v9  ;;  %v6898_v57 = vadd.f32 %v6889_v60, %v12754_v45  ;;  %v6899_v41 = vadd.f32 %v6890_v50, %v12649_v53  ;;  %v7015_v17 = vmul.f32 %v6988_v38, %v11949_v19 }
 0xafc   :  { %v6900_v5 = vadd.f32 %v6891_v46, %v10543_v18  ;;  %v7000_v9 = vrot.slane %v6955_v52, %v12746_v39  ;;  %v6902_v59 = vadd.f32 %v6893_v56, %v10547_v62 }
 0xafd   :  { %v11962_v15 = vpop.permute.xlu0 %6907 }
 0xafe   :  { %v6910_v55 = vmul.f32 %v11962_v15, %v12755_v48  ;;  %v6911_v24 = vmul.f32 %v11962_v15, %v12756_v26  ;;  %v6912_v43 = vmul.f32 %v11962_v15, %v11685_v0  ;;  %v6913_v35 = vmul.f32 %v11962_v15, %v11663_v20 }
 0xaff   :  { %v6914_v60 = vmul.f32 %v11962_v15, %v12757_v54  ;;  %v6915_v53 = vmul.f32 %v11962_v15, %v11696_v49  ;;  %v6996_v0 = vrot.slane %v6951_v44, %v12746_v39  ;;  %v6901_v20 = vadd.f32 %v6892_v14, %v10553_v36 }
 0xb00   :  { %v6919_v50 = vadd.f32 %v6910_v55, %v6897_v7  ;;  %v6920_v33 = vadd.f32 %v6911_v24, %v6898_v57  ;;  %v6921_v2 = vadd.f32 %v6912_v43, %v6899_v41  ;;  %v6922_v38 = vadd.f32 %v6913_v35, %v6900_v5 }
 0xb01   :  { %v7016_v48 = vmul.f32 %v6992_v27, %v11949_v19  ;;  %v6923_v26 = vadd.f32 %v6914_v60, %v6901_v20  ;;  %v6924_v54 = vadd.f32 %v6915_v53, %v6902_v59  ;;  %v7017_v52 = vmul.f32 %v6996_v0, %v11949_v19  ;;  %v12759_v20 = vld [vmem:[#allocation49_spill] sm:$0xff] }
 0xb02   :  { %v7022_v45 = vadd.f32 %v7013_v12, %v6919_v50  ;;  %v7023_v18 = vadd.f32 %v7014_v61, %v6920_v33  ;;  %v7024_v46 = vadd.f32 %v7015_v17, %v6921_v2  ;;  %v7018_v36 = vmul.f32 %v7000_v9, %v11949_v19  ;;  %v12758_v50 = vld [vmem:[#allocation149_spill] sm:$0xff]  ;;  %v9894_v2 = vld [vmem:[#allocation18 + $0x20] sm:$0xf] }
 0xb03   :  { %v7025_v14 = vadd.f32 %v7016_v48, %v6922_v38  ;;  %v7026_v57 = vadd.f32 %v7017_v52, %v6923_v26  ;;  %v6895_v33 = vmul.f32 %v11943_v11, %v12758_v50  ;;  %v6967_v0 = vrot.slane %v9894_v2, %v12746_v39 }
 0xb04   :  { %v7442_v49 = vadd.f32 %v11906_v22, %v7022_v45  ;;  %v7443_v7 = vadd.f32 %v11908_v40, %v7023_v18  ;;  %v7444_v44 = vadd.f32 %v11910_v30, %v7024_v46  ;;  %v7027_v55 = vadd.f32 %v7018_v36, %v6924_v54  ;;  %v12760_v45 = vld [vmem:[#allocation48_spill] sm:$0xff] }
 0xb05   :  { %v7463_v27 = vadd.f32 %v11912_v23, %v7025_v14  ;;  %v7464_v22 = vadd.f32 %v11914_v42, %v7026_v57  ;;  %v9893_v23 = vld [vmem:[#allocation18 + $0x18] sm:$0xff]  ;;  %v6896_v9 = vmul.f32 %v11943_v11, %v11137_v51  ;;  %v6916_v59 = vmul.f32 %v11962_v15, %v12759_v20 }
 0xb06   :  { %v8267_v62 = vmul.f32 -1.442695, %v7442_v49  ;;  %v8268_v56 = vmul.f32 -1.442695, %v7443_v7  ;;  %v8269_v12 = vmul.f32 -1.442695, %v7444_v44  ;;  %v7465_v40 = vadd.f32 %v11916_v29, %v7027_v55 }
 0xb07   :  { %v8270_v30 = vmul.f32 -1.442695, %v7463_v27  ;;  %v8271_v41 = vmul.f32 -1.442695, %v7464_v22  ;;  %v6959_v42 = vrot.slane %v9893_v23, %v12746_v39  ;;  %v6894_v29 = vmul.f32 %v11943_v11, %v12654_v47 }
 0xb08   :  { %9629 = vpow2.f32 %v8267_v62  ;;  %v8272_v24 = vmul.f32 -1.442695, %v7465_v40  ;;  %v6963_v53 = vrot.slane %v9893_v23, %v12748_v34  ;;  %v6917_v18 = vmul.f32 %v11962_v15, %v12760_v45  ;;  %v9896_v23 = vld [vmem:[%s12081_s14 + $0x8] sm:$0xf] }
 0xb09   :  { %9631 = vpow2.f32 %v8268_v56  ;;  %v7004_v47 = vrot.slane %v6959_v42, %v12746_v39  ;;  %v6903_v34 = vadd.f32 %v6894_v29, %v10568_v28  ;;  %v6918_v48 = vmul.f32 %v11962_v15, %v11737_v37 }
 0xb0a   :  { %9633 = vpow2.f32 %v8269_v12  ;;  %v7008_v54 = vrot.slane %v6963_v53, %v12746_v39  ;;  %v6904_v51 = vadd.f32 %v6895_v33, %v10572_v32  ;;  %v7012_v11 = vrot.slane %v6967_v0, %v12746_v39 }
 0xb0b   :  { %9635 = vpow2.f32 %v8270_v30  ;;  %v6905_v49 = vadd.f32 %v6896_v9, %v10598_v16  ;;  %v6925_v7 = vadd.f32 %v6916_v59, %v6903_v34  ;;  %v7484_v14 = vadd.f32 %v11919_v31, %v10561_v10 }
 0xb0c   :  { %9637 = vpow2.f32 %v8271_v41  ;;  %v6926_v52 = vadd.f32 %v6917_v18, %v6904_v51  ;;  %v7019_v28 = vmul.f32 %v7004_v47, %v11949_v19  ;;  %v7485_v56 = vadd.f32 %v11921_v4, %v10566_v21  ;;  %v12761_v41 = vld [vmem:[#allocation33_spill] sm:$0xff] }
 0xb0d   :  { %9639 = vpow2.f32 %v8272_v24  ;;  %v6927_v62 = vadd.f32 %v6918_v48, %v6905_v49  ;;  %v7486_v32 = vadd.f32 %v11923_v6, %v10595_v8  ;;  %v7020_v16 = vmul.f32 %v7008_v54, %v11949_v19 }
 0xb0e   :  { %v7021_v12 = vmul.f32 %v7012_v11, %v11949_v19  ;;  %v7028_v57 = vadd.f32 %v7019_v28, %v6925_v7  ;;  %v9895_v19 = vld [vmem:[%s12081_s14] sm:$0xff]  ;;  %v7519_v42 = vrot.slane %v9896_v23, %v12761_v41 }
 0xb0f   :  { %v7029_v31 = vadd.f32 %v7020_v16, %v6926_v52  ;;  %v7511_v24 = vrot.slane %v9895_v19, %v12761_v41  ;;  %v12763_v7 = vld [vmem:[#allocation78_spill] sm:$0xff] }
 0xb10   :  { %v7030_v22 = vadd.f32 %v7021_v12, %v6927_v62  ;;  %v7534_v47 = vrot.slane %v7519_v42, %v12761_v41 }
 0xb11   :  { %v7526_v2 = vrot.slane %v7511_v24, %v12761_v41 }
 0xb15   :  { %v9630_v43 = vpop.eup %9629 }
 0xb16   :  { %v9632_v35 = vpop.eup %9631  ;;  %v7454_v61 = vadd.f32 1.0, %v9630_v43 }
 0xb17   :  { %v9634_v17 = vpop.eup %9633  ;;  %v7455_v5 = vadd.f32 1.0, %v9632_v35  ;;  %v12762_v35 = vld [vmem:[#allocation36_spill] sm:$0xff] }
 0xb18   :  { %v7456_v60 = vadd.f32 1.0, %v9634_v17  ;;  %9641 = vrcp.f32 %v7454_v61  ;;  %v9636_v38 = vpop.eup %9635  ;;  %v7515_v61 = vrot.slane %v9895_v19, %v12762_v35 }
 0xb19   :  { %9643 = vrcp.f32 %v7455_v5  ;;  %v9638_v46 = vpop.eup %9637  ;;  %v7475_v44 = vadd.f32 1.0, %v9636_v38 }
 0xb1a   :  { %9645 = vrcp.f32 %v7456_v60  ;;  %v9640_v26 = vpop.eup %9639  ;;  %v7476_v36 = vadd.f32 1.0, %v9638_v46  ;;  %v7530_v59 = vrot.slane %v7515_v61, %v12761_v41 }
 0xb1b   :  { %v7477_v37 = vadd.f32 1.0, %v9640_v26  ;;  %9647 = vrcp.f32 %v7475_v44  ;;  %v7550_v44 = vsel %vm7549_vm8, %v12763_v7, %v11731_v1 }
 0xb1c   :  { %9649 = vrcp.f32 %v7476_v36 }
 0xb1d   :  { %9651 = vrcp.f32 %v7477_v37 }
 0xb25   :  { %v9642_v15 = vpop.eup %9641 }
 0xb26   :  { %v9644_v39 = vpop.eup %9643  ;;  %v7487_v55 = vmul.f32 %v9642_v15, %v7484_v14 }
 0xb27   :  { %v9646_v10 = vpop.eup %9645  ;;  %v7488_v27 = vmul.f32 %v9644_v39, %v7485_v56 }
 0xb28   :  { %v7489_v40 = vmul.f32 %v9646_v10, %v7486_v32  ;;  %v7490_v30 = vadd.f32 %v7487_v55, %v7028_v57  ;;  %v9648_v8 = vpop.eup %9647 }
 0xb29   :  { %v7491_v21 = vadd.f32 %v7488_v27, %v7029_v31  ;;  %v9650_v6 = vpop.eup %9649  ;;  %v7496_v17 = vsub.f32 1.0, %v9648_v8  ;;  %v7502_v33 = vmul.f32 %v9648_v8, %v11747_v13 }
 0xb2a   :  { %v7492_v4 = vadd.f32 %v7489_v40, %v7030_v22  ;;  %9653 = vtanh.f32 %v7490_v30  ;;  %v9652_v43 = vpop.eup %9651  ;;  %v7497_v60 = vsub.f32 1.0, %v9650_v6  ;;  %v7503_v20 = vmul.f32 %v9650_v6, %v11749_v3  ;;  %v6847_v11 = vpop.xlane.xlu1 %6846 }
 0xb2b   :  { %9655 = vtanh.f32 %v7491_v21  ;;  %v7498_v53 = vsub.f32 1.0, %v9652_v43  ;;  %v7504_v45 = vmul.f32 %v9652_v43, %v11779_v25  ;;  %v6848_v49 = vadd.f32 %v11728_v58, %v6847_v11 }
 0xb2c   :  { %9657 = vtanh.f32 %v7492_v4 }
 0xb2d   :  { %v8264_v3 = vmul.f32 -1.442695, %v6848_v49  ;;  %v7552_v36 = vsel %vm7551_vm9, %v7550_v44, %v6848_v49 }
 0xb2f   :  { %9659 = vpow2.f32 %v8264_v3 }
 0xb37   :  { %v9654_v5 = vpop.eup %9653 }
 0xb38   :  { %v9656_v29 = vpop.eup %9655  ;;  %v7499_v50 = vmul.f32 %v9654_v5, %v7496_v17 }
 0xb39   :  { %v9658_v0 = vpop.eup %9657  ;;  %v7500_v9 = vmul.f32 %v9656_v29, %v7497_v60 }
 0xb3a   :  { %v7501_v38 = vmul.f32 %v9658_v0, %v7498_v53  ;;  %v7505_v18 = vadd.f32 %v7502_v33, %v7499_v50 }
 0xb3b   :  { %v7506_v46 = vadd.f32 %v7503_v20, %v7500_v9 }
 0xb3c   :  { %v7507_v34 = vadd.f32 %v7504_v45, %v7501_v38  ;;  %v7535_v48 = vmul.f32 %v7526_v2, %v7505_v18  ;;  %v9660_v62 = vpop.eup %9659 }
 0xb3d   :  { %v7536_v26 = vmul.f32 %v7530_v59, %v7506_v46  ;;  %v6852_v37 = vadd.f32 1.0, %v9660_v62 }
 0xb3e   :  { %v7537_v54 = vmul.f32 %v7534_v47, %v7507_v34 }
 0xb3f   :  { %v7538_v13 = vadd.f32 %v7536_v26, %v7535_v48 }
 0xb41   :  { %v7539_v51 = vadd.f32 %v7538_v13, %v7537_v54 }
 0xb43   :  { %7540 = vadd.xlane.f32.xlu0 %v7539_v51 }
 0xbcc   :  { %v7541_v25 = vpop.xlane.xlu0 %7540 }
 0xbcd   :  { %v7542_v52 = vadd.f32 %v11728_v58, %v7541_v25  ;;  %v12764_v58 = vld [vmem:[#allocation106_spill] sm:$0xff] }
 0xbce   :  { %v7556_v32 = vsel %vm7549_vm8, %v12764_v58, %v11772_v63 }
 0xbcf   :  { %v8273_v14 = vmul.f32 -1.442695, %v7542_v52  ;;  %v7554_v28 = vsel %vm7553_vm10, %v7552_v36, %v7542_v52 }
 0xbd0   :  { %7555 = vst.msk [vmem:[%s12083_s16] sm:$0xff] %vm4400_vm2, %v7554_v28 }
 0xbd1   :  { %9661 = vpow2.f32 %v8273_v14 }
 0xbd2   :  { %9663 = vrcp.f32 %v6852_v37 }
 0xbde   :  { %v9662_v15 = vpop.eup %9661 }
 0xbdf   :  { %v7546_v56 = vadd.f32 1.0, %v9662_v15  ;;  %v9664_v1 = vpop.eup %9663 }
 0xbe0   :  { %v7557_v39 = vsel %vm7551_vm9, %v7556_v32, %v9664_v1 }
 0xbe1   :  { %9665 = vrcp.f32 %v7546_v56 }
 0xbee   :  { %v9666_v16 = vpop.eup %9665 }
 0xbef   :  { %v7558_v12 = vsel %vm7553_vm10, %v7557_v39, %v9666_v16 }
 0xbf0   :  { %7559 = vst.msk [vmem:[%s12084_s17] sm:$0xff] %vm4400_vm2, %v7558_v12 }
 0xbf1   :  { %7568 = vsyncpa [#allocation3], 1 }
 0xbf2   :  { %7569 = vsyncpa [#allocation5], 1 }
 0xbf3   :  { %7570 = vsyncpa [#allocation8], 1 }
 0xbf4   :  { %7571 = vsyncpa [#allocation11], 1 }
 0xbf5   :  { %7572 = vsyncpa [#allocation14], 1 }
 0xbf6   :  { %7573 = vsyncpa [#allocation17], 1 }
 0xbf7   :  { %7574 = vsyncpa [#allocation20], 1 }
 0xbf8   :  { %7575 = vsyncpa [#allocation23], 1 }

</bundles_post_ra>
